<compile_context>
chip_gen: v7x
topology: tpu7x:2x2x1
jax: 0.10.0
libtpu: 0.0.40
codegen_flags: <defaults>
</compile_context>

<pallas_src>
import functools

import jax
import jax.numpy as jnp
from jax.experimental import pallas as pl
from jax.experimental.pallas import tpu as pltpu


# ----------------------------- Pallas kernels ------------------------------

def _mean_bc(x):
    """Mean over axes (1, 3) with keepdims, as two single-axis reductions."""
    n = x.shape[1] * x.shape[3]
    s = jnp.sum(x, axis=1, keepdims=True)
    s = jnp.sum(s, axis=3, keepdims=True)
    return s * (1.0 / n)


def _conv_kernel(x_ref, w_ref, b_ref, o_ref, *, k, stride, cin, cout, ho_n, wo_n):
    """Direct 3-D conv for one (batch, output-depth) grid point.

    x_ref : [1, Dp, Hp, P*Cin, Wq]  bf16   padded input (W-phase split if stride==2)
    w_ref : [k^3, Cout, Cin]        bf16
    b_ref : [Cout, 1]               f32
    o_ref : [1, 1, Ho, Cout, Wo]    f32
    """
    do = pl.program_id(1)
    bias = b_ref[...]                                   # [Cout, 1] f32
    for ho in range(ho_n):                              # static unroll (small Ho)
        acc = jnp.zeros((cout, wo_n), jnp.float32)
        for kd in range(k):
            d_idx = do * stride + kd                    # dynamic index, major dim
            for kh in range(k):
                h_idx = ho * stride + kh                # static index, major dim
                for kw in range(k):
                    if stride == 1:
                        c0, w0 = 0, kw
                    else:                               # stride-2: pick W phase
                        c0, w0 = (kw % stride) * cin, kw // stride
                    t = (kd * k + kh) * k + kw
                    xt = x_ref[0, d_idx, h_idx,
                               pl.ds(c0, cin), pl.ds(w0, wo_n)]     # [Cin, Wo] bf16
                    acc = acc + jnp.dot(w_ref[t], xt,
                                        preferred_element_type=jnp.float32)
        o_ref[0, 0, ho, :, :] = acc + bias


def _in_prelu_kernel(x_ref, alpha_ref, o_ref):
    # InstanceNorm3d (biased var, eps=1e-5, affine=False) + PReLU(alpha).
    x = x_ref[...]                                      # [1, M, tc, W] f32
    mean = _mean_bc(x)
    d = x - mean
    var = _mean_bc(d * d)
    xn = d * jax.lax.rsqrt(var + 1e-5)
    a = alpha_ref[0, 0]
    o_ref[...] = jnp.where(xn >= 0, xn, a * xn)


def _in_prelu_add_kernel(x_ref, r_ref, alpha_ref, o_ref):
    # Same, fused with the ResidualUnit skip-connection add.
    x = x_ref[...]
    mean = _mean_bc(x)
    d = x - mean
    var = _mean_bc(d * d)
    xn = d * jax.lax.rsqrt(var + 1e-5)
    a = alpha_ref[0, 0]
    o_ref[...] = jnp.where(xn >= 0, xn, a * xn) + r_ref[...]


def _final_in_pool_head_kernel(x_ref, r_ref, alpha_ref, wh_ref, bh_ref, s_ref):
    # Fused: IN + PReLU + residual add + AdaptiveAvgPool3d(1) + 1x1x1 latent head.
    x = x_ref[...]                                      # [1, M, C, W] f32
    mean = _mean_bc(x)
    d = x - mean
    var = _mean_bc(d * d)
    xn = d * jax.lax.rsqrt(var + 1e-5)
    a = alpha_ref[0, 0]
    y = jnp.where(xn >= 0, xn, a * xn) + r_ref[...]
    pooled = _mean_bc(y)                                # [1, 1, C, 1]
    p = pooled[0, 0]                                    # [C, 1]
    s_ref[0] = (jnp.dot(wh_ref[...], p, preferred_element_type=jnp.float32)
                + bh_ref[...])


# ------------------------------- wrappers -----------------------------------

_VMEM_LIMIT = 32 * 1024 * 1024


def conv3d(x, w, b, stride):
    """PyTorch-semantics Conv3d on [B, D, H, C, W]-layout activations.

    x: [B, D, H, Cin, W] f32;  w: [Cout, Cin, k, k, k];  b: [Cout]
    returns [B, Do, Ho, Cout, Wo] f32.
    """
    B, D, H, Cin, W = x.shape
    Cout, k = w.shape[0], w.shape[2]
    pad = 1 if k == 3 else 0
    Do = (D + 2 * pad - k) // stride + 1
    Ho = (H + 2 * pad - k) // stride + 1
    Wo = (W + 2 * pad - k) // stride + 1

    xp = jnp.pad(x, ((0, 0), (pad, pad), (pad, pad), (0, 0), (pad, pad)))
    if stride == 2:
        if xp.shape[-1] % 2:                 # keep both W-phases the same length
            xp = jnp.pad(xp, ((0, 0), (0, 0), (0, 0), (0, 0), (0, 1)))
        # W-phase split so every in-kernel tap slice is lane-contiguous.
        xp = jnp.concatenate([xp[..., 0::2], xp[..., 1::2]], axis=3)
    xp = xp.astype(jnp.bfloat16)             # bf16 at the MXU boundary, f32 accum
    _, Dp, Hp, PC, Wq = xp.shape

    wk = jnp.transpose(w, (2, 3, 4, 0, 1)).reshape(k * k * k, Cout, Cin)
    wk = wk.astype(jnp.bfloat16)
    bk = b.reshape(Cout, 1).astype(jnp.float32)

    kern = functools.partial(_conv_kernel, k=k, stride=stride, cin=Cin,
                             cout=Cout, ho_n=Ho, wo_n=Wo)
    return pl.pallas_call(
        kern,
        grid=(B, Do),
        in_specs=[
            pl.BlockSpec((1, Dp, Hp, PC, Wq), lambda bi, do: (bi, 0, 0, 0, 0)),
            pl.BlockSpec((k * k * k, Cout, Cin), lambda bi, do: (0, 0, 0)),
            pl.BlockSpec((Cout, 1), lambda bi, do: (0, 0)),
        ],
        out_specs=pl.BlockSpec((1, 1, Ho, Cout, Wo),
                               lambda bi, do: (bi, do, 0, 0, 0)),
        out_shape=jax.ShapeDtypeStruct((B, Do, Ho, Cout, Wo), jnp.float32),
        compiler_params=pltpu.CompilerParams(
            dimension_semantics=("parallel", "parallel"),
            vmem_limit_bytes=_VMEM_LIMIT),
    )(xp, wk, bk)


def instancenorm_prelu(y, alpha, residual=None):
    """InstanceNorm3d(affine=False) + PReLU (+ optional residual add).

    y (and residual): [B, D, H, C, W] f32; stats are per (batch, channel).
    """
    B, D1, H1, C, W1 = y.shape
    M = D1 * H1
    yr = y.reshape(B, M, C, W1)
    tc = 8 if C % 8 == 0 else C
    grid = (B, C // tc)
    spec = pl.BlockSpec((1, M, tc, W1), lambda b, c: (b, 0, c, 0))
    smem = pl.BlockSpec(memory_space=pltpu.MemorySpace.SMEM)
    a = jnp.reshape(alpha.astype(jnp.float32), (1, 1))
    cparams = pltpu.CompilerParams(
        dimension_semantics=("parallel", "parallel"),
        vmem_limit_bytes=_VMEM_LIMIT)
    out_shape = jax.ShapeDtypeStruct((B, M, C, W1), jnp.float32)
    if residual is None:
        out = pl.pallas_call(
            _in_prelu_kernel, grid=grid,
            in_specs=[spec, smem], out_specs=spec, out_shape=out_shape,
            compiler_params=cparams,
        )(yr, a)
    else:
        rr = residual.reshape(B, M, C, W1)
        out = pl.pallas_call(
            _in_prelu_add_kernel, grid=grid,
            in_specs=[spec, spec, smem], out_specs=spec, out_shape=out_shape,
            compiler_params=cparams,
        )(yr, rr, a)
    return out.reshape(B, D1, H1, C, W1)


def final_block_stats(y, res, alpha, w_head, b_head):
    """Fused final IN+PReLU+residual + global average pool + 1x1x1 latent head."""
    B, D1, H1, C, W1 = y.shape
    M = D1 * H1
    yr = y.reshape(B, M, C, W1)
    rr = res.reshape(B, M, C, W1)
    L2 = w_head.shape[0]
    a = jnp.reshape(alpha.astype(jnp.float32), (1, 1))
    wh = w_head.astype(jnp.float32)                      # [2L, C]
    bh = b_head.reshape(L2, 1).astype(jnp.float32)       # [2L, 1]
    data = pl.BlockSpec((1, M, C, W1), lambda b: (b, 0, 0, 0))
    stats = pl.pallas_call(
        _final_in_pool_head_kernel,
        grid=(B,),
        in_specs=[data, data,
                  pl.BlockSpec(memory_space=pltpu.MemorySpace.SMEM),
                  pl.BlockSpec((L2, C), lambda b: (0, 0)),
                  pl.BlockSpec((L2, 1), lambda b: (0, 0))],
        out_specs=pl.BlockSpec((1, L2, 1), lambda b: (b, 0, 0)),
        out_shape=jax.ShapeDtypeStruct((B, L2, 1), jnp.float32),
        compiler_params=pltpu.CompilerParams(
            dimension_semantics=("parallel",),
            vmem_limit_bytes=_VMEM_LIMIT),
    )(yr, rr, a, wh, bh)
    return stats.reshape(B, L2)


# --------------------------- network forward --------------------------------

def residual_unit(x, bp):
    """MONAI ResidualUnit (num_res_units=2 sub-convs, NDA ordering, eval-mode)."""
    s = bp["stride"]
    h = conv3d(x, bp["w0"], bp["b0"], stride=s)
    h = instancenorm_prelu(h, bp["a0"])
    h = conv3d(h, bp["w1"], bp["b1"], stride=1)
    if "wr" in bp:                 # projection residual (stride!=1 or channel change)
        res = conv3d(x, bp["wr"], bp["br"], stride=s)
    else:                          # identity residual (bottom block)
        res = x
    return instancenorm_prelu(h, bp["a1"], residual=res)


def prior_net_forward(params, x, latent_dim):
    """x: [B, C, D, H, W] (PyTorch layout). Returns (mu, logvar), each [B, latent]."""
    feats = jnp.transpose(x, (0, 2, 3, 1, 4)).astype(jnp.float32)  # -> [B,D,H,C,W]
    blocks = params["blocks"]
    for bp in blocks[:-1]:
        feats = residual_unit(feats, bp)

    # Bottom block: last IN+PReLU+residual is fused with the pool + latent head.
    bp = blocks[-1]
    s = bp["stride"]
    h = conv3d(feats, bp["w0"], bp["b0"], stride=s)
    h = instancenorm_prelu(h, bp["a0"])
    h = conv3d(h, bp["w1"], bp["b1"], stride=1)
    if "wr" in bp:
        res = conv3d(feats, bp["wr"], bp["br"], stride=s)
    else:
        res = feats
    stats = final_block_stats(h, res, bp["a1"], params["head_w"], params["head_b"])
    return stats[:, :latent_dim], stats[:, latent_dim:]


# --------------------------- deterministic init ------------------------------

def _init_conv(key, cout, cin, k):
    kw, kb = jax.random.split(key)
    w = jax.random.normal(kw, (cout, cin, k, k, k), jnp.float32) * 0.1
    b = jax.random.normal(kb, (cout,), jnp.float32) * 0.01
    return w, b


def init_prior_net(key, input_channels, latent_dim, feature_channels):
    # Encoder implied by the UNet construction + extract_unet_encoder_blocks:
    # len(feature_channels) stride-2 ResidualUnits, then a stride-1 bottom unit.
    channels = tuple(feature_channels) + (feature_channels[-1],)
    strides = tuple([2] * len(feature_channels)) + (1,)
    params = {"blocks": []}
    cin = input_channels
    for cout, s in zip(channels, strides):
        key, k0, k1, kr = jax.random.split(key, 4)
        w0, b0 = _init_conv(k0, cout, cin, 3)
        w1, b1 = _init_conv(k1, cout, cout, 3)
        bp = dict(stride=s,
                  w0=w0, b0=b0, a0=jnp.float32(0.25),   # PReLU default init
                  w1=w1, b1=b1, a1=jnp.float32(0.25))
        if not (s == 1 and cin == cout):
            rk = 3 if s != 1 else 1
            wr, br = _init_conv(kr, cout, cin, rk)
            bp.update(wr=wr, br=br)
        params["blocks"].append(bp)
        cin = cout
    key, kh = jax.random.split(key)
    params["head_w"] = jax.random.normal(
        kh, (2 * latent_dim, feature_channels[-1]), jnp.float32) * 0.1
    params["head_b"] = jnp.zeros((2 * latent_dim,), jnp.float32)  # nn.init.zeros_
    return params


# --------------------------------- main --------------------------------------

if __name__ == "__main__":
    key = jax.random.PRNGKey(0)
    kx, kp = jax.random.split(key)

    B, Cin, S = 2, 1, 16                # x: (B, C, D, H, W) 3-D image batch
    latent_dim = 4
    feature_channels = (8, 16)          # small config consistent with the module

    x = jax.random.normal(kx, (B, Cin, S, S, S), jnp.float32)
    params = init_prior_net(kp, Cin, latent_dim, feature_channels)

    mu, logvar = prior_net_forward(params, x, latent_dim)
    jax.block_until_ready((mu, logvar))

    assert mu.shape == (B, latent_dim) and logvar.shape == (B, latent_dim)
    assert bool(jnp.all(jnp.isfinite(mu))) and bool(jnp.all(jnp.isfinite(logvar)))
    print("KERNEL_OK")
</pallas_src>

<mosaic_0001>
module attributes {stable_mosaic.version = 11 : i64} {
  func.func @_conv_kernel(%arg0: i32, %arg1: i32, %arg2: memref<1x18x18x2x9xbf16, #tpu.memory_space<vmem>>, %arg3: memref<27x8x1xbf16, #tpu.memory_space<vmem>>, %arg4: memref<8x1xf32, #tpu.memory_space<vmem>>, %arg5: memref<1x1x8x8x8xf32, #tpu.memory_space<vmem>>) attributes {dimension_semantics = [#tpu.dimension_semantics<parallel>, #tpu.dimension_semantics<parallel>], iteration_bounds = array<i64: 2, 8>, scalar_prefetch = 0 : i64, scratch_operands = 0 : i64, tpu.core_type = #tpu.core_type<tc>, window_params = [{transform_indices = @transform_0, window_bounds = array<i64: 1, 18, 18, 2, 9>}, {pipeline_mode = #tpu.pipeline_mode<synchronous>, transform_indices = @transform_1, window_bounds = array<i64: 27, 8, 1>}, {pipeline_mode = #tpu.pipeline_mode<synchronous>, transform_indices = @transform_2, window_bounds = array<i64: 8, 1>}, {transform_indices = @transform_3, window_bounds = array<i64: 1, 1, 8, 8, 8>}]} {
    %c0 = arith.constant 0 : index
    %c0_0 = arith.constant 0 : index
    %0 = vector.load %arg4[%c0, %c0_0] : memref<8x1xf32, #tpu.memory_space<vmem>>, vector<8x1xf32>
    %cst = arith.constant 0.000000e+00 : f32
    %1 = vector.broadcast %cst : f32 to vector<8x8xf32>
    %c2_i32 = arith.constant 2 : i32
    %2 = arith.muli %arg1, %c2_i32 : i32
    %c0_i32 = arith.constant 0 : i32
    %3 = arith.addi %2, %c0_i32 : i32
    %c0_1 = arith.constant 0 : index
    %4 = arith.index_cast %3 : i32 to index
    %c0_2 = arith.constant 0 : index
    %c0_3 = arith.constant 0 : index
    %c0_4 = arith.constant 0 : index
    %5 = vector.load %arg2[%c0_1, %4, %c0_2, %c0_3, %c0_4] : memref<1x18x18x2x9xbf16, #tpu.memory_space<vmem>>, vector<1x1x1x1x8xbf16>
    %6 = vector.shape_cast %5 : vector<1x1x1x1x8xbf16> to vector<1x8xbf16>
    %c0_5 = arith.constant 0 : index
    %c0_6 = arith.constant 0 : index
    %c0_7 = arith.constant 0 : index
    %7 = vector.load %arg3[%c0_5, %c0_6, %c0_7] : memref<27x8x1xbf16, #tpu.memory_space<vmem>>, vector<1x8x1xbf16>
    %8 = vector.shape_cast %7 : vector<1x8x1xbf16> to vector<8x1xbf16>
    %cst_8 = arith.constant dense<0.000000e+00> : vector<8x8xf32>
    %9 = tpu.matmul %8, %6, %cst_8 {dimension_numbers = #tpu.dot_dimension_numbers<[1], [0], [0], [1], [0, 0, 1, 1], [], []>} : vector<8x1xbf16>, vector<1x8xbf16>, vector<8x8xf32> -> vector<8x8xf32>
    %10 = arith.addf %1, %9 : vector<8x8xf32>
    %c0_9 = arith.constant 0 : index
    %11 = arith.index_cast %3 : i32 to index
    %c0_10 = arith.constant 0 : index
    %c1 = arith.constant 1 : index
    %c0_11 = arith.constant 0 : index
    %12 = vector.load %arg2[%c0_9, %11, %c0_10, %c1, %c0_11] : memref<1x18x18x2x9xbf16, #tpu.memory_space<vmem>>, vector<1x1x1x1x8xbf16>
    %13 = vector.shape_cast %12 : vector<1x1x1x1x8xbf16> to vector<1x8xbf16>
    %c1_12 = arith.constant 1 : index
    %c0_13 = arith.constant 0 : index
    %c0_14 = arith.constant 0 : index
    %14 = vector.load %arg3[%c1_12, %c0_13, %c0_14] : memref<27x8x1xbf16, #tpu.memory_space<vmem>>, vector<1x8x1xbf16>
    %15 = vector.shape_cast %14 : vector<1x8x1xbf16> to vector<8x1xbf16>
    %cst_15 = arith.constant dense<0.000000e+00> : vector<8x8xf32>
    %16 = tpu.matmul %15, %13, %cst_15 {dimension_numbers = #tpu.dot_dimension_numbers<[1], [0], [0], [1], [0, 0, 1, 1], [], []>} : vector<8x1xbf16>, vector<1x8xbf16>, vector<8x8xf32> -> vector<8x8xf32>
    %17 = arith.addf %10, %16 : vector<8x8xf32>
    %c0_16 = arith.constant 0 : index
    %18 = arith.index_cast %3 : i32 to index
    %c0_17 = arith.constant 0 : index
    %c0_18 = arith.constant 0 : index
    %c1_19 = arith.constant 1 : index
    %19 = vector.load %arg2[%c0_16, %18, %c0_17, %c0_18, %c1_19] : memref<1x18x18x2x9xbf16, #tpu.memory_space<vmem>>, vector<1x1x1x1x8xbf16>
    %20 = vector.shape_cast %19 : vector<1x1x1x1x8xbf16> to vector<1x8xbf16>
    %c2 = arith.constant 2 : index
    %c0_20 = arith.constant 0 : index
    %c0_21 = arith.constant 0 : index
    %21 = vector.load %arg3[%c2, %c0_20, %c0_21] : memref<27x8x1xbf16, #tpu.memory_space<vmem>>, vector<1x8x1xbf16>
    %22 = vector.shape_cast %21 : vector<1x8x1xbf16> to vector<8x1xbf16>
    %cst_22 = arith.constant dense<0.000000e+00> : vector<8x8xf32>
    %23 = tpu.matmul %22, %20, %cst_22 {dimension_numbers = #tpu.dot_dimension_numbers<[1], [0], [0], [1], [0, 0, 1, 1], [], []>} : vector<8x1xbf16>, vector<1x8xbf16>, vector<8x8xf32> -> vector<8x8xf32>
    %24 = arith.addf %17, %23 : vector<8x8xf32>
    %c0_23 = arith.constant 0 : index
    %25 = arith.index_cast %3 : i32 to index
    %c1_24 = arith.constant 1 : index
    %c0_25 = arith.constant 0 : index
    %c0_26 = arith.constant 0 : index
    %26 = vector.load %arg2[%c0_23, %25, %c1_24, %c0_25, %c0_26] : memref<1x18x18x2x9xbf16, #tpu.memory_space<vmem>>, vector<1x1x1x1x8xbf16>
    %27 = vector.shape_cast %26 : vector<1x1x1x1x8xbf16> to vector<1x8xbf16>
    %c3 = arith.constant 3 : index
    %c0_27 = arith.constant 0 : index
    %c0_28 = arith.constant 0 : index
    %28 = vector.load %arg3[%c3, %c0_27, %c0_28] : memref<27x8x1xbf16, #tpu.memory_space<vmem>>, vector<1x8x1xbf16>
    %29 = vector.shape_cast %28 : vector<1x8x1xbf16> to vector<8x1xbf16>
    %cst_29 = arith.constant dense<0.000000e+00> : vector<8x8xf32>
    %30 = tpu.matmul %29, %27, %cst_29 {dimension_numbers = #tpu.dot_dimension_numbers<[1], [0], [0], [1], [0, 0, 1, 1], [], []>} : vector<8x1xbf16>, vector<1x8xbf16>, vector<8x8xf32> -> vector<8x8xf32>
    %31 = arith.addf %24, %30 : vector<8x8xf32>
    %c0_30 = arith.constant 0 : index
    %32 = arith.index_cast %3 : i32 to index
    %c1_31 = arith.constant 1 : index
    %c1_32 = arith.constant 1 : index
    %c0_33 = arith.constant 0 : index
    %33 = vector.load %arg2[%c0_30, %32, %c1_31, %c1_32, %c0_33] : memref<1x18x18x2x9xbf16, #tpu.memory_space<vmem>>, vector<1x1x1x1x8xbf16>
    %34 = vector.shape_cast %33 : vector<1x1x1x1x8xbf16> to vector<1x8xbf16>
    %c4 = arith.constant 4 : index
    %c0_34 = arith.constant 0 : index
    %c0_35 = arith.constant 0 : index
    %35 = vector.load %arg3[%c4, %c0_34, %c0_35] : memref<27x8x1xbf16, #tpu.memory_space<vmem>>, vector<1x8x1xbf16>
    %36 = vector.shape_cast %35 : vector<1x8x1xbf16> to vector<8x1xbf16>
    %cst_36 = arith.constant dense<0.000000e+00> : vector<8x8xf32>
    %37 = tpu.matmul %36, %34, %cst_36 {dimension_numbers = #tpu.dot_dimension_numbers<[1], [0], [0], [1], [0, 0, 1, 1], [], []>} : vector<8x1xbf16>, vector<1x8xbf16>, vector<8x8xf32> -> vector<8x8xf32>
    %38 = arith.addf %31, %37 : vector<8x8xf32>
    %c0_37 = arith.constant 0 : index
    %39 = arith.index_cast %3 : i32 to index
    %c1_38 = arith.constant 1 : index
    %c0_39 = arith.constant 0 : index
    %c1_40 = arith.constant 1 : index
    %40 = vector.load %arg2[%c0_37, %39, %c1_38, %c0_39, %c1_40] : memref<1x18x18x2x9xbf16, #tpu.memory_space<vmem>>, vector<1x1x1x1x8xbf16>
    %41 = vector.shape_cast %40 : vector<1x1x1x1x8xbf16> to vector<1x8xbf16>
    %c5 = arith.constant 5 : index
    %c0_41 = arith.constant 0 : index
    %c0_42 = arith.constant 0 : index
    %42 = vector.load %arg3[%c5, %c0_41, %c0_42] : memref<27x8x1xbf16, #tpu.memory_space<vmem>>, vector<1x8x1xbf16>
    %43 = vector.shape_cast %42 : vector<1x8x1xbf16> to vector<8x1xbf16>
    %cst_43 = arith.constant dense<0.000000e+00> : vector<8x8xf32>
    %44 = tpu.matmul %43, %41, %cst_43 {dimension_numbers = #tpu.dot_dimension_numbers<[1], [0], [0], [1], [0, 0, 1, 1], [], []>} : vector<8x1xbf16>, vector<1x8xbf16>, vector<8x8xf32> -> vector<8x8xf32>
    %45 = arith.addf %38, %44 : vector<8x8xf32>
    %c0_44 = arith.constant 0 : index
    %46 = arith.index_cast %3 : i32 to index
    %c2_45 = arith.constant 2 : index
    %c0_46 = arith.constant 0 : index
    %c0_47 = arith.constant 0 : index
    %47 = vector.load %arg2[%c0_44, %46, %c2_45, %c0_46, %c0_47] : memref<1x18x18x2x9xbf16, #tpu.memory_space<vmem>>, vector<1x1x1x1x8xbf16>
    %48 = vector.shape_cast %47 : vector<1x1x1x1x8xbf16> to vector<1x8xbf16>
    %c6 = arith.constant 6 : index
    %c0_48 = arith.constant 0 : index
    %c0_49 = arith.constant 0 : index
    %49 = vector.load %arg3[%c6, %c0_48, %c0_49] : memref<27x8x1xbf16, #tpu.memory_space<vmem>>, vector<1x8x1xbf16>
    %50 = vector.shape_cast %49 : vector<1x8x1xbf16> to vector<8x1xbf16>
    %cst_50 = arith.constant dense<0.000000e+00> : vector<8x8xf32>
    %51 = tpu.matmul %50, %48, %cst_50 {dimension_numbers = #tpu.dot_dimension_numbers<[1], [0], [0], [1], [0, 0, 1, 1], [], []>} : vector<8x1xbf16>, vector<1x8xbf16>, vector<8x8xf32> -> vector<8x8xf32>
    %52 = arith.addf %45, %51 : vector<8x8xf32>
    %c0_51 = arith.constant 0 : index
    %53 = arith.index_cast %3 : i32 to index
    %c2_52 = arith.constant 2 : index
    %c1_53 = arith.constant 1 : index
    %c0_54 = arith.constant 0 : index
    %54 = vector.load %arg2[%c0_51, %53, %c2_52, %c1_53, %c0_54] : memref<1x18x18x2x9xbf16, #tpu.memory_space<vmem>>, vector<1x1x1x1x8xbf16>
    %55 = vector.shape_cast %54 : vector<1x1x1x1x8xbf16> to vector<1x8xbf16>
    %c7 = arith.constant 7 : index
    %c0_55 = arith.constant 0 : index
    %c0_56 = arith.constant 0 : index
    %56 = vector.load %arg3[%c7, %c0_55, %c0_56] : memref<27x8x1xbf16, #tpu.memory_space<vmem>>, vector<1x8x1xbf16>
    %57 = vector.shape_cast %56 : vector<1x8x1xbf16> to vector<8x1xbf16>
    %cst_57 = arith.constant dense<0.000000e+00> : vector<8x8xf32>
    %58 = tpu.matmul %57, %55, %cst_57 {dimension_numbers = #tpu.dot_dimension_numbers<[1], [0], [0], [1], [0, 0, 1, 1], [], []>} : vector<8x1xbf16>, vector<1x8xbf16>, vector<8x8xf32> -> vector<8x8xf32>
    %59 = arith.addf %52, %58 : vector<8x8xf32>
    %c0_58 = arith.constant 0 : index
    %60 = arith.index_cast %3 : i32 to index
    %c2_59 = arith.constant 2 : index
    %c0_60 = arith.constant 0 : index
    %c1_61 = arith.constant 1 : index
    %61 = vector.load %arg2[%c0_58, %60, %c2_59, %c0_60, %c1_61] : memref<1x18x18x2x9xbf16, #tpu.memory_space<vmem>>, vector<1x1x1x1x8xbf16>
    %62 = vector.shape_cast %61 : vector<1x1x1x1x8xbf16> to vector<1x8xbf16>
    %c8 = arith.constant 8 : index
    %c0_62 = arith.constant 0 : index
    %c0_63 = arith.constant 0 : index
    %63 = vector.load %arg3[%c8, %c0_62, %c0_63] : memref<27x8x1xbf16, #tpu.memory_space<vmem>>, vector<1x8x1xbf16>
    %64 = vector.shape_cast %63 : vector<1x8x1xbf16> to vector<8x1xbf16>
    %cst_64 = arith.constant dense<0.000000e+00> : vector<8x8xf32>
    %65 = tpu.matmul %64, %62, %cst_64 {dimension_numbers = #tpu.dot_dimension_numbers<[1], [0], [0], [1], [0, 0, 1, 1], [], []>} : vector<8x1xbf16>, vector<1x8xbf16>, vector<8x8xf32> -> vector<8x8xf32>
    %66 = arith.addf %59, %65 : vector<8x8xf32>
    %c2_i32_65 = arith.constant 2 : i32
    %67 = arith.muli %arg1, %c2_i32_65 : i32
    %c1_i32 = arith.constant 1 : i32
    %68 = arith.addi %67, %c1_i32 : i32
    %c0_66 = arith.constant 0 : index
    %69 = arith.index_cast %68 : i32 to index
    %c0_67 = arith.constant 0 : index
    %c0_68 = arith.constant 0 : index
    %c0_69 = arith.constant 0 : index
    %70 = vector.load %arg2[%c0_66, %69, %c0_67, %c0_68, %c0_69] : memref<1x18x18x2x9xbf16, #tpu.memory_space<vmem>>, vector<1x1x1x1x8xbf16>
    %71 = vector.shape_cast %70 : vector<1x1x1x1x8xbf16> to vector<1x8xbf16>
    %c9 = arith.constant 9 : index
    %c0_70 = arith.constant 0 : index
    %c0_71 = arith.constant 0 : index
    %72 = vector.load %arg3[%c9, %c0_70, %c0_71] : memref<27x8x1xbf16, #tpu.memory_space<vmem>>, vector<1x8x1xbf16>
    %73 = vector.shape_cast %72 : vector<1x8x1xbf16> to vector<8x1xbf16>
    %cst_72 = arith.constant dense<0.000000e+00> : vector<8x8xf32>
    %74 = tpu.matmul %73, %71, %cst_72 {dimension_numbers = #tpu.dot_dimension_numbers<[1], [0], [0], [1], [0, 0, 1, 1], [], []>} : vector<8x1xbf16>, vector<1x8xbf16>, vector<8x8xf32> -> vector<8x8xf32>
    %75 = arith.addf %66, %74 : vector<8x8xf32>
    %c0_73 = arith.constant 0 : index
    %76 = arith.index_cast %68 : i32 to index
    %c0_74 = arith.constant 0 : index
    %c1_75 = arith.constant 1 : index
    %c0_76 = arith.constant 0 : index
    %77 = vector.load %arg2[%c0_73, %76, %c0_74, %c1_75, %c0_76] : memref<1x18x18x2x9xbf16, #tpu.memory_space<vmem>>, vector<1x1x1x1x8xbf16>
    %78 = vector.shape_cast %77 : vector<1x1x1x1x8xbf16> to vector<1x8xbf16>
    %c10 = arith.constant 10 : index
    %c0_77 = arith.constant 0 : index
    %c0_78 = arith.constant 0 : index
    %79 = vector.load %arg3[%c10, %c0_77, %c0_78] : memref<27x8x1xbf16, #tpu.memory_space<vmem>>, vector<1x8x1xbf16>
    %80 = vector.shape_cast %79 : vector<1x8x1xbf16> to vector<8x1xbf16>
    %cst_79 = arith.constant dense<0.000000e+00> : vector<8x8xf32>
    %81 = tpu.matmul %80, %78, %cst_79 {dimension_numbers = #tpu.dot_dimension_numbers<[1], [0], [0], [1], [0, 0, 1, 1], [], []>} : vector<8x1xbf16>, vector<1x8xbf16>, vector<8x8xf32> -> vector<8x8xf32>
    %82 = arith.addf %75, %81 : vector<8x8xf32>
    %c0_80 = arith.constant 0 : index
    %83 = arith.index_cast %68 : i32 to index
    %c0_81 = arith.constant 0 : index
    %c0_82 = arith.constant 0 : index
    %c1_83 = arith.constant 1 : index
    %84 = vector.load %arg2[%c0_80, %83, %c0_81, %c0_82, %c1_83] : memref<1x18x18x2x9xbf16, #tpu.memory_space<vmem>>, vector<1x1x1x1x8xbf16>
    %85 = vector.shape_cast %84 : vector<1x1x1x1x8xbf16> to vector<1x8xbf16>
    %c11 = arith.constant 11 : index
    %c0_84 = arith.constant 0 : index
    %c0_85 = arith.constant 0 : index
    %86 = vector.load %arg3[%c11, %c0_84, %c0_85] : memref<27x8x1xbf16, #tpu.memory_space<vmem>>, vector<1x8x1xbf16>
    %87 = vector.shape_cast %86 : vector<1x8x1xbf16> to vector<8x1xbf16>
    %cst_86 = arith.constant dense<0.000000e+00> : vector<8x8xf32>
    %88 = tpu.matmul %87, %85, %cst_86 {dimension_numbers = #tpu.dot_dimension_numbers<[1], [0], [0], [1], [0, 0, 1, 1], [], []>} : vector<8x1xbf16>, vector<1x8xbf16>, vector<8x8xf32> -> vector<8x8xf32>
    %89 = arith.addf %82, %88 : vector<8x8xf32>
    %c0_87 = arith.constant 0 : index
    %90 = arith.index_cast %68 : i32 to index
    %c1_88 = arith.constant 1 : index
    %c0_89 = arith.constant 0 : index
    %c0_90 = arith.constant 0 : index
    %91 = vector.load %arg2[%c0_87, %90, %c1_88, %c0_89, %c0_90] : memref<1x18x18x2x9xbf16, #tpu.memory_space<vmem>>, vector<1x1x1x1x8xbf16>
    %92 = vector.shape_cast %91 : vector<1x1x1x1x8xbf16> to vector<1x8xbf16>
    %c12 = arith.constant 12 : index
    %c0_91 = arith.constant 0 : index
    %c0_92 = arith.constant 0 : index
    %93 = vector.load %arg3[%c12, %c0_91, %c0_92] : memref<27x8x1xbf16, #tpu.memory_space<vmem>>, vector<1x8x1xbf16>
    %94 = vector.shape_cast %93 : vector<1x8x1xbf16> to vector<8x1xbf16>
    %cst_93 = arith.constant dense<0.000000e+00> : vector<8x8xf32>
    %95 = tpu.matmul %94, %92, %cst_93 {dimension_numbers = #tpu.dot_dimension_numbers<[1], [0], [0], [1], [0, 0, 1, 1], [], []>} : vector<8x1xbf16>, vector<1x8xbf16>, vector<8x8xf32> -> vector<8x8xf32>
    %96 = arith.addf %89, %95 : vector<8x8xf32>
    %c0_94 = arith.constant 0 : index
    %97 = arith.index_cast %68 : i32 to index
    %c1_95 = arith.constant 1 : index
    %c1_96 = arith.constant 1 : index
    %c0_97 = arith.constant 0 : index
    %98 = vector.load %arg2[%c0_94, %97, %c1_95, %c1_96, %c0_97] : memref<1x18x18x2x9xbf16, #tpu.memory_space<vmem>>, vector<1x1x1x1x8xbf16>
    %99 = vector.shape_cast %98 : vector<1x1x1x1x8xbf16> to vector<1x8xbf16>
    %c13 = arith.constant 13 : index
    %c0_98 = arith.constant 0 : index
    %c0_99 = arith.constant 0 : index
    %100 = vector.load %arg3[%c13, %c0_98, %c0_99] : memref<27x8x1xbf16, #tpu.memory_space<vmem>>, vector<1x8x1xbf16>
    %101 = vector.shape_cast %100 : vector<1x8x1xbf16> to vector<8x1xbf16>
    %cst_100 = arith.constant dense<0.000000e+00> : vector<8x8xf32>
    %102 = tpu.matmul %101, %99, %cst_100 {dimension_numbers = #tpu.dot_dimension_numbers<[1], [0], [0], [1], [0, 0, 1, 1], [], []>} : vector<8x1xbf16>, vector<1x8xbf16>, vector<8x8xf32> -> vector<8x8xf32>
    %103 = arith.addf %96, %102 : vector<8x8xf32>
    %c0_101 = arith.constant 0 : index
    %104 = arith.index_cast %68 : i32 to index
    %c1_102 = arith.constant 1 : index
    %c0_103 = arith.constant 0 : index
    %c1_104 = arith.constant 1 : index
    %105 = vector.load %arg2[%c0_101, %104, %c1_102, %c0_103, %c1_104] : memref<1x18x18x2x9xbf16, #tpu.memory_space<vmem>>, vector<1x1x1x1x8xbf16>
    %106 = vector.shape_cast %105 : vector<1x1x1x1x8xbf16> to vector<1x8xbf16>
    %c14 = arith.constant 14 : index
    %c0_105 = arith.constant 0 : index
    %c0_106 = arith.constant 0 : index
    %107 = vector.load %arg3[%c14, %c0_105, %c0_106] : memref<27x8x1xbf16, #tpu.memory_space<vmem>>, vector<1x8x1xbf16>
    %108 = vector.shape_cast %107 : vector<1x8x1xbf16> to vector<8x1xbf16>
    %cst_107 = arith.constant dense<0.000000e+00> : vector<8x8xf32>
    %109 = tpu.matmul %108, %106, %cst_107 {dimension_numbers = #tpu.dot_dimension_numbers<[1], [0], [0], [1], [0, 0, 1, 1], [], []>} : vector<8x1xbf16>, vector<1x8xbf16>, vector<8x8xf32> -> vector<8x8xf32>
    %110 = arith.addf %103, %109 : vector<8x8xf32>
    %c0_108 = arith.constant 0 : index
    %111 = arith.index_cast %68 : i32 to index
    %c2_109 = arith.constant 2 : index
    %c0_110 = arith.constant 0 : index
    %c0_111 = arith.constant 0 : index
    %112 = vector.load %arg2[%c0_108, %111, %c2_109, %c0_110, %c0_111] : memref<1x18x18x2x9xbf16, #tpu.memory_space<vmem>>, vector<1x1x1x1x8xbf16>
    %113 = vector.shape_cast %112 : vector<1x1x1x1x8xbf16> to vector<1x8xbf16>
    %c15 = arith.constant 15 : index
    %c0_112 = arith.constant 0 : index
    %c0_113 = arith.constant 0 : index
    %114 = vector.load %arg3[%c15, %c0_112, %c0_113] : memref<27x8x1xbf16, #tpu.memory_space<vmem>>, vector<1x8x1xbf16>
    %115 = vector.shape_cast %114 : vector<1x8x1xbf16> to vector<8x1xbf16>
    %cst_114 = arith.constant dense<0.000000e+00> : vector<8x8xf32>
    %116 = tpu.matmul %115, %113, %cst_114 {dimension_numbers = #tpu.dot_dimension_numbers<[1], [0], [0], [1], [0, 0, 1, 1], [], []>} : vector<8x1xbf16>, vector<1x8xbf16>, vector<8x8xf32> -> vector<8x8xf32>
    %117 = arith.addf %110, %116 : vector<8x8xf32>
    %c0_115 = arith.constant 0 : index
    %118 = arith.index_cast %68 : i32 to index
    %c2_116 = arith.constant 2 : index
    %c1_117 = arith.constant 1 : index
    %c0_118 = arith.constant 0 : index
    %119 = vector.load %arg2[%c0_115, %118, %c2_116, %c1_117, %c0_118] : memref<1x18x18x2x9xbf16, #tpu.memory_space<vmem>>, vector<1x1x1x1x8xbf16>
    %120 = vector.shape_cast %119 : vector<1x1x1x1x8xbf16> to vector<1x8xbf16>
    %c16 = arith.constant 16 : index
    %c0_119 = arith.constant 0 : index
    %c0_120 = arith.constant 0 : index
    %121 = vector.load %arg3[%c16, %c0_119, %c0_120] : memref<27x8x1xbf16, #tpu.memory_space<vmem>>, vector<1x8x1xbf16>
    %122 = vector.shape_cast %121 : vector<1x8x1xbf16> to vector<8x1xbf16>
    %cst_121 = arith.constant dense<0.000000e+00> : vector<8x8xf32>
    %123 = tpu.matmul %122, %120, %cst_121 {dimension_numbers = #tpu.dot_dimension_numbers<[1], [0], [0], [1], [0, 0, 1, 1], [], []>} : vector<8x1xbf16>, vector<1x8xbf16>, vector<8x8xf32> -> vector<8x8xf32>
    %124 = arith.addf %117, %123 : vector<8x8xf32>
    %c0_122 = arith.constant 0 : index
    %125 = arith.index_cast %68 : i32 to index
    %c2_123 = arith.constant 2 : index
    %c0_124 = arith.constant 0 : index
    %c1_125 = arith.constant 1 : index
    %126 = vector.load %arg2[%c0_122, %125, %c2_123, %c0_124, %c1_125] : memref<1x18x18x2x9xbf16, #tpu.memory_space<vmem>>, vector<1x1x1x1x8xbf16>
    %127 = vector.shape_cast %126 : vector<1x1x1x1x8xbf16> to vector<1x8xbf16>
    %c17 = arith.constant 17 : index
    %c0_126 = arith.constant 0 : index
    %c0_127 = arith.constant 0 : index
    %128 = vector.load %arg3[%c17, %c0_126, %c0_127] : memref<27x8x1xbf16, #tpu.memory_space<vmem>>, vector<1x8x1xbf16>
    %129 = vector.shape_cast %128 : vector<1x8x1xbf16> to vector<8x1xbf16>
    %cst_128 = arith.constant dense<0.000000e+00> : vector<8x8xf32>
    %130 = tpu.matmul %129, %127, %cst_128 {dimension_numbers = #tpu.dot_dimension_numbers<[1], [0], [0], [1], [0, 0, 1, 1], [], []>} : vector<8x1xbf16>, vector<1x8xbf16>, vector<8x8xf32> -> vector<8x8xf32>
    %131 = arith.addf %124, %130 : vector<8x8xf32>
    %c2_i32_129 = arith.constant 2 : i32
    %132 = arith.muli %arg1, %c2_i32_129 : i32
    %c2_i32_130 = arith.constant 2 : i32
    %133 = arith.addi %132, %c2_i32_130 : i32
    %c0_131 = arith.constant 0 : index
    %134 = arith.index_cast %133 : i32 to index
    %c0_132 = arith.constant 0 : index
    %c0_133 = arith.constant 0 : index
    %c0_134 = arith.constant 0 : index
    %135 = vector.load %arg2[%c0_131, %134, %c0_132, %c0_133, %c0_134] : memref<1x18x18x2x9xbf16, #tpu.memory_space<vmem>>, vector<1x1x1x1x8xbf16>
    %136 = vector.shape_cast %135 : vector<1x1x1x1x8xbf16> to vector<1x8xbf16>
    %c18 = arith.constant 18 : index
    %c0_135 = arith.constant 0 : index
    %c0_136 = arith.constant 0 : index
    %137 = vector.load %arg3[%c18, %c0_135, %c0_136] : memref<27x8x1xbf16, #tpu.memory_space<vmem>>, vector<1x8x1xbf16>
    %138 = vector.shape_cast %137 : vector<1x8x1xbf16> to vector<8x1xbf16>
    %cst_137 = arith.constant dense<0.000000e+00> : vector<8x8xf32>
    %139 = tpu.matmul %138, %136, %cst_137 {dimension_numbers = #tpu.dot_dimension_numbers<[1], [0], [0], [1], [0, 0, 1, 1], [], []>} : vector<8x1xbf16>, vector<1x8xbf16>, vector<8x8xf32> -> vector<8x8xf32>
    %140 = arith.addf %131, %139 : vector<8x8xf32>
    %c0_138 = arith.constant 0 : index
    %141 = arith.index_cast %133 : i32 to index
    %c0_139 = arith.constant 0 : index
    %c1_140 = arith.constant 1 : index
    %c0_141 = arith.constant 0 : index
    %142 = vector.load %arg2[%c0_138, %141, %c0_139, %c1_140, %c0_141] : memref<1x18x18x2x9xbf16, #tpu.memory_space<vmem>>, vector<1x1x1x1x8xbf16>
    %143 = vector.shape_cast %142 : vector<1x1x1x1x8xbf16> to vector<1x8xbf16>
    %c19 = arith.constant 19 : index
    %c0_142 = arith.constant 0 : index
    %c0_143 = arith.constant 0 : index
    %144 = vector.load %arg3[%c19, %c0_142, %c0_143] : memref<27x8x1xbf16, #tpu.memory_space<vmem>>, vector<1x8x1xbf16>
    %145 = vector.shape_cast %144 : vector<1x8x1xbf16> to vector<8x1xbf16>
    %cst_144 = arith.constant dense<0.000000e+00> : vector<8x8xf32>
    %146 = tpu.matmul %145, %143, %cst_144 {dimension_numbers = #tpu.dot_dimension_numbers<[1], [0], [0], [1], [0, 0, 1, 1], [], []>} : vector<8x1xbf16>, vector<1x8xbf16>, vector<8x8xf32> -> vector<8x8xf32>
    %147 = arith.addf %140, %146 : vector<8x8xf32>
    %c0_145 = arith.constant 0 : index
    %148 = arith.index_cast %133 : i32 to index
    %c0_146 = arith.constant 0 : index
    %c0_147 = arith.constant 0 : index
    %c1_148 = arith.constant 1 : index
    %149 = vector.load %arg2[%c0_145, %148, %c0_146, %c0_147, %c1_148] : memref<1x18x18x2x9xbf16, #tpu.memory_space<vmem>>, vector<1x1x1x1x8xbf16>
    %150 = vector.shape_cast %149 : vector<1x1x1x1x8xbf16> to vector<1x8xbf16>
    %c20 = arith.constant 20 : index
    %c0_149 = arith.constant 0 : index
    %c0_150 = arith.constant 0 : index
    %151 = vector.load %arg3[%c20, %c0_149, %c0_150] : memref<27x8x1xbf16, #tpu.memory_space<vmem>>, vector<1x8x1xbf16>
    %152 = vector.shape_cast %151 : vector<1x8x1xbf16> to vector<8x1xbf16>
    %cst_151 = arith.constant dense<0.000000e+00> : vector<8x8xf32>
    %153 = tpu.matmul %152, %150, %cst_151 {dimension_numbers = #tpu.dot_dimension_numbers<[1], [0], [0], [1], [0, 0, 1, 1], [], []>} : vector<8x1xbf16>, vector<1x8xbf16>, vector<8x8xf32> -> vector<8x8xf32>
    %154 = arith.addf %147, %153 : vector<8x8xf32>
    %c0_152 = arith.constant 0 : index
    %155 = arith.index_cast %133 : i32 to index
    %c1_153 = arith.constant 1 : index
    %c0_154 = arith.constant 0 : index
    %c0_155 = arith.constant 0 : index
    %156 = vector.load %arg2[%c0_152, %155, %c1_153, %c0_154, %c0_155] : memref<1x18x18x2x9xbf16, #tpu.memory_space<vmem>>, vector<1x1x1x1x8xbf16>
    %157 = vector.shape_cast %156 : vector<1x1x1x1x8xbf16> to vector<1x8xbf16>
    %c21 = arith.constant 21 : index
    %c0_156 = arith.constant 0 : index
    %c0_157 = arith.constant 0 : index
    %158 = vector.load %arg3[%c21, %c0_156, %c0_157] : memref<27x8x1xbf16, #tpu.memory_space<vmem>>, vector<1x8x1xbf16>
    %159 = vector.shape_cast %158 : vector<1x8x1xbf16> to vector<8x1xbf16>
    %cst_158 = arith.constant dense<0.000000e+00> : vector<8x8xf32>
    %160 = tpu.matmul %159, %157, %cst_158 {dimension_numbers = #tpu.dot_dimension_numbers<[1], [0], [0], [1], [0, 0, 1, 1], [], []>} : vector<8x1xbf16>, vector<1x8xbf16>, vector<8x8xf32> -> vector<8x8xf32>
    %161 = arith.addf %154, %160 : vector<8x8xf32>
    %c0_159 = arith.constant 0 : index
    %162 = arith.index_cast %133 : i32 to index
    %c1_160 = arith.constant 1 : index
    %c1_161 = arith.constant 1 : index
    %c0_162 = arith.constant 0 : index
    %163 = vector.load %arg2[%c0_159, %162, %c1_160, %c1_161, %c0_162] : memref<1x18x18x2x9xbf16, #tpu.memory_space<vmem>>, vector<1x1x1x1x8xbf16>
    %164 = vector.shape_cast %163 : vector<1x1x1x1x8xbf16> to vector<1x8xbf16>
    %c22 = arith.constant 22 : index
    %c0_163 = arith.constant 0 : index
    %c0_164 = arith.constant 0 : index
    %165 = vector.load %arg3[%c22, %c0_163, %c0_164] : memref<27x8x1xbf16, #tpu.memory_space<vmem>>, vector<1x8x1xbf16>
    %166 = vector.shape_cast %165 : vector<1x8x1xbf16> to vector<8x1xbf16>
    %cst_165 = arith.constant dense<0.000000e+00> : vector<8x8xf32>
    %167 = tpu.matmul %166, %164, %cst_165 {dimension_numbers = #tpu.dot_dimension_numbers<[1], [0], [0], [1], [0, 0, 1, 1], [], []>} : vector<8x1xbf16>, vector<1x8xbf16>, vector<8x8xf32> -> vector<8x8xf32>
    %168 = arith.addf %161, %167 : vector<8x8xf32>
    %c0_166 = arith.constant 0 : index
    %169 = arith.index_cast %133 : i32 to index
    %c1_167 = arith.constant 1 : index
    %c0_168 = arith.constant 0 : index
    %c1_169 = arith.constant 1 : index
    %170 = vector.load %arg2[%c0_166, %169, %c1_167, %c0_168, %c1_169] : memref<1x18x18x2x9xbf16, #tpu.memory_space<vmem>>, vector<1x1x1x1x8xbf16>
    %171 = vector.shape_cast %170 : vector<1x1x1x1x8xbf16> to vector<1x8xbf16>
    %c23 = arith.constant 23 : index
    %c0_170 = arith.constant 0 : index
    %c0_171 = arith.constant 0 : index
    %172 = vector.load %arg3[%c23, %c0_170, %c0_171] : memref<27x8x1xbf16, #tpu.memory_space<vmem>>, vector<1x8x1xbf16>
    %173 = vector.shape_cast %172 : vector<1x8x1xbf16> to vector<8x1xbf16>
    %cst_172 = arith.constant dense<0.000000e+00> : vector<8x8xf32>
    %174 = tpu.matmul %173, %171, %cst_172 {dimension_numbers = #tpu.dot_dimension_numbers<[1], [0], [0], [1], [0, 0, 1, 1], [], []>} : vector<8x1xbf16>, vector<1x8xbf16>, vector<8x8xf32> -> vector<8x8xf32>
    %175 = arith.addf %168, %174 : vector<8x8xf32>
    %c0_173 = arith.constant 0 : index
    %176 = arith.index_cast %133 : i32 to index
    %c2_174 = arith.constant 2 : index
    %c0_175 = arith.constant 0 : index
    %c0_176 = arith.constant 0 : index
    %177 = vector.load %arg2[%c0_173, %176, %c2_174, %c0_175, %c0_176] : memref<1x18x18x2x9xbf16, #tpu.memory_space<vmem>>, vector<1x1x1x1x8xbf16>
    %178 = vector.shape_cast %177 : vector<1x1x1x1x8xbf16> to vector<1x8xbf16>
    %c24 = arith.constant 24 : index
    %c0_177 = arith.constant 0 : index
    %c0_178 = arith.constant 0 : index
    %179 = vector.load %arg3[%c24, %c0_177, %c0_178] : memref<27x8x1xbf16, #tpu.memory_space<vmem>>, vector<1x8x1xbf16>
    %180 = vector.shape_cast %179 : vector<1x8x1xbf16> to vector<8x1xbf16>
    %cst_179 = arith.constant dense<0.000000e+00> : vector<8x8xf32>
    %181 = tpu.matmul %180, %178, %cst_179 {dimension_numbers = #tpu.dot_dimension_numbers<[1], [0], [0], [1], [0, 0, 1, 1], [], []>} : vector<8x1xbf16>, vector<1x8xbf16>, vector<8x8xf32> -> vector<8x8xf32>
    %182 = arith.addf %175, %181 : vector<8x8xf32>
    %c0_180 = arith.constant 0 : index
    %183 = arith.index_cast %133 : i32 to index
    %c2_181 = arith.constant 2 : index
    %c1_182 = arith.constant 1 : index
    %c0_183 = arith.constant 0 : index
    %184 = vector.load %arg2[%c0_180, %183, %c2_181, %c1_182, %c0_183] : memref<1x18x18x2x9xbf16, #tpu.memory_space<vmem>>, vector<1x1x1x1x8xbf16>
    %185 = vector.shape_cast %184 : vector<1x1x1x1x8xbf16> to vector<1x8xbf16>
    %c25 = arith.constant 25 : index
    %c0_184 = arith.constant 0 : index
    %c0_185 = arith.constant 0 : index
    %186 = vector.load %arg3[%c25, %c0_184, %c0_185] : memref<27x8x1xbf16, #tpu.memory_space<vmem>>, vector<1x8x1xbf16>
    %187 = vector.shape_cast %186 : vector<1x8x1xbf16> to vector<8x1xbf16>
    %cst_186 = arith.constant dense<0.000000e+00> : vector<8x8xf32>
    %188 = tpu.matmul %187, %185, %cst_186 {dimension_numbers = #tpu.dot_dimension_numbers<[1], [0], [0], [1], [0, 0, 1, 1], [], []>} : vector<8x1xbf16>, vector<1x8xbf16>, vector<8x8xf32> -> vector<8x8xf32>
    %189 = arith.addf %182, %188 : vector<8x8xf32>
    %c0_187 = arith.constant 0 : index
    %190 = arith.index_cast %133 : i32 to index
    %c2_188 = arith.constant 2 : index
    %c0_189 = arith.constant 0 : index
    %c1_190 = arith.constant 1 : index
    %191 = vector.load %arg2[%c0_187, %190, %c2_188, %c0_189, %c1_190] : memref<1x18x18x2x9xbf16, #tpu.memory_space<vmem>>, vector<1x1x1x1x8xbf16>
    %192 = vector.shape_cast %191 : vector<1x1x1x1x8xbf16> to vector<1x8xbf16>
    %c26 = arith.constant 26 : index
    %c0_191 = arith.constant 0 : index
    %c0_192 = arith.constant 0 : index
    %193 = vector.load %arg3[%c26, %c0_191, %c0_192] : memref<27x8x1xbf16, #tpu.memory_space<vmem>>, vector<1x8x1xbf16>
    %194 = vector.shape_cast %193 : vector<1x8x1xbf16> to vector<8x1xbf16>
    %cst_193 = arith.constant dense<0.000000e+00> : vector<8x8xf32>
    %195 = tpu.matmul %194, %192, %cst_193 {dimension_numbers = #tpu.dot_dimension_numbers<[1], [0], [0], [1], [0, 0, 1, 1], [], []>} : vector<8x1xbf16>, vector<1x8xbf16>, vector<8x8xf32> -> vector<8x8xf32>
    %196 = arith.addf %189, %195 : vector<8x8xf32>
    %197 = vector.broadcast %0 : vector<8x1xf32> to vector<8x8xf32>
    %198 = arith.addf %196, %197 : vector<8x8xf32>
    %c0_194 = arith.constant 0 : index
    %c0_195 = arith.constant 0 : index
    %c0_196 = arith.constant 0 : index
    %c0_197 = arith.constant 0 : index
    %c0_198 = arith.constant 0 : index
    %199 = vector.load %arg5[%c0_194, %c0_195, %c0_196, %c0_197, %c0_198] : memref<1x1x8x8x8xf32, #tpu.memory_space<vmem>>, vector<1x1x1x8x8xf32>
    %200 = vector.shape_cast %199 : vector<1x1x1x8x8xf32> to vector<8x8xf32>
    %201 = vector.shape_cast %198 : vector<8x8xf32> to vector<1x1x1x8x8xf32>
    tpu.vector_store %arg5[%c0_194, %c0_195, %c0_196, %c0_197, %c0_198], %201 {strides = array<i32>} : memref<1x1x8x8x8xf32, #tpu.memory_space<vmem>>, vector<1x1x1x8x8xf32>,
    %cst_199 = arith.constant 0.000000e+00 : f32
    %202 = vector.broadcast %cst_199 : f32 to vector<8x8xf32>
    %c2_i32_200 = arith.constant 2 : i32
    %203 = arith.muli %arg1, %c2_i32_200 : i32
    %c0_i32_201 = arith.constant 0 : i32
    %204 = arith.addi %203, %c0_i32_201 : i32
    %c0_202 = arith.constant 0 : index
    %205 = arith.index_cast %204 : i32 to index
    %c2_203 = arith.constant 2 : index
    %c0_204 = arith.constant 0 : index
    %c0_205 = arith.constant 0 : index
    %206 = vector.load %arg2[%c0_202, %205, %c2_203, %c0_204, %c0_205] : memref<1x18x18x2x9xbf16, #tpu.memory_space<vmem>>, vector<1x1x1x1x8xbf16>
    %207 = vector.shape_cast %206 : vector<1x1x1x1x8xbf16> to vector<1x8xbf16>
    %c0_206 = arith.constant 0 : index
    %c0_207 = arith.constant 0 : index
    %c0_208 = arith.constant 0 : index
    %208 = vector.load %arg3[%c0_206, %c0_207, %c0_208] : memref<27x8x1xbf16, #tpu.memory_space<vmem>>, vector<1x8x1xbf16>
    %209 = vector.shape_cast %208 : vector<1x8x1xbf16> to vector<8x1xbf16>
    %cst_209 = arith.constant dense<0.000000e+00> : vector<8x8xf32>
    %210 = tpu.matmul %209, %207, %cst_209 {dimension_numbers = #tpu.dot_dimension_numbers<[1], [0], [0], [1], [0, 0, 1, 1], [], []>} : vector<8x1xbf16>, vector<1x8xbf16>, vector<8x8xf32> -> vector<8x8xf32>
    %211 = arith.addf %202, %210 : vector<8x8xf32>
    %c0_210 = arith.constant 0 : index
    %212 = arith.index_cast %204 : i32 to index
    %c2_211 = arith.constant 2 : index
    %c1_212 = arith.constant 1 : index
    %c0_213 = arith.constant 0 : index
    %213 = vector.load %arg2[%c0_210, %212, %c2_211, %c1_212, %c0_213] : memref<1x18x18x2x9xbf16, #tpu.memory_space<vmem>>, vector<1x1x1x1x8xbf16>
    %214 = vector.shape_cast %213 : vector<1x1x1x1x8xbf16> to vector<1x8xbf16>
    %c1_214 = arith.constant 1 : index
    %c0_215 = arith.constant 0 : index
    %c0_216 = arith.constant 0 : index
    %215 = vector.load %arg3[%c1_214, %c0_215, %c0_216] : memref<27x8x1xbf16, #tpu.memory_space<vmem>>, vector<1x8x1xbf16>
    %216 = vector.shape_cast %215 : vector<1x8x1xbf16> to vector<8x1xbf16>
    %cst_217 = arith.constant dense<0.000000e+00> : vector<8x8xf32>
    %217 = tpu.matmul %216, %214, %cst_217 {dimension_numbers = #tpu.dot_dimension_numbers<[1], [0], [0], [1], [0, 0, 1, 1], [], []>} : vector<8x1xbf16>, vector<1x8xbf16>, vector<8x8xf32> -> vector<8x8xf32>
    %218 = arith.addf %211, %217 : vector<8x8xf32>
    %c0_218 = arith.constant 0 : index
    %219 = arith.index_cast %204 : i32 to index
    %c2_219 = arith.constant 2 : index
    %c0_220 = arith.constant 0 : index
    %c1_221 = arith.constant 1 : index
    %220 = vector.load %arg2[%c0_218, %219, %c2_219, %c0_220, %c1_221] : memref<1x18x18x2x9xbf16, #tpu.memory_space<vmem>>, vector<1x1x1x1x8xbf16>
    %221 = vector.shape_cast %220 : vector<1x1x1x1x8xbf16> to vector<1x8xbf16>
    %c2_222 = arith.constant 2 : index
    %c0_223 = arith.constant 0 : index
    %c0_224 = arith.constant 0 : index
    %222 = vector.load %arg3[%c2_222, %c0_223, %c0_224] : memref<27x8x1xbf16, #tpu.memory_space<vmem>>, vector<1x8x1xbf16>
    %223 = vector.shape_cast %222 : vector<1x8x1xbf16> to vector<8x1xbf16>
    %cst_225 = arith.constant dense<0.000000e+00> : vector<8x8xf32>
    %224 = tpu.matmul %223, %221, %cst_225 {dimension_numbers = #tpu.dot_dimension_numbers<[1], [0], [0], [1], [0, 0, 1, 1], [], []>} : vector<8x1xbf16>, vector<1x8xbf16>, vector<8x8xf32> -> vector<8x8xf32>
    %225 = arith.addf %218, %224 : vector<8x8xf32>
    %c0_226 = arith.constant 0 : index
    %226 = arith.index_cast %204 : i32 to index
    %c3_227 = arith.constant 3 : index
    %c0_228 = arith.constant 0 : index
    %c0_229 = arith.constant 0 : index
    %227 = vector.load %arg2[%c0_226, %226, %c3_227, %c0_228, %c0_229] : memref<1x18x18x2x9xbf16, #tpu.memory_space<vmem>>, vector<1x1x1x1x8xbf16>
    %228 = vector.shape_cast %227 : vector<1x1x1x1x8xbf16> to vector<1x8xbf16>
    %c3_230 = arith.constant 3 : index
    %c0_231 = arith.constant 0 : index
    %c0_232 = arith.constant 0 : index
    %229 = vector.load %arg3[%c3_230, %c0_231, %c0_232] : memref<27x8x1xbf16, #tpu.memory_space<vmem>>, vector<1x8x1xbf16>
    %230 = vector.shape_cast %229 : vector<1x8x1xbf16> to vector<8x1xbf16>
    %cst_233 = arith.constant dense<0.000000e+00> : vector<8x8xf32>
    %231 = tpu.matmul %230, %228, %cst_233 {dimension_numbers = #tpu.dot_dimension_numbers<[1], [0], [0], [1], [0, 0, 1, 1], [], []>} : vector<8x1xbf16>, vector<1x8xbf16>, vector<8x8xf32> -> vector<8x8xf32>
    %232 = arith.addf %225, %231 : vector<8x8xf32>
    %c0_234 = arith.constant 0 : index
    %233 = arith.index_cast %204 : i32 to index
    %c3_235 = arith.constant 3 : index
    %c1_236 = arith.constant 1 : index
    %c0_237 = arith.constant 0 : index
    %234 = vector.load %arg2[%c0_234, %233, %c3_235, %c1_236, %c0_237] : memref<1x18x18x2x9xbf16, #tpu.memory_space<vmem>>, vector<1x1x1x1x8xbf16>
    %235 = vector.shape_cast %234 : vector<1x1x1x1x8xbf16> to vector<1x8xbf16>
    %c4_238 = arith.constant 4 : index
    %c0_239 = arith.constant 0 : index
    %c0_240 = arith.constant 0 : index
    %236 = vector.load %arg3[%c4_238, %c0_239, %c0_240] : memref<27x8x1xbf16, #tpu.memory_space<vmem>>, vector<1x8x1xbf16>
    %237 = vector.shape_cast %236 : vector<1x8x1xbf16> to vector<8x1xbf16>
    %cst_241 = arith.constant dense<0.000000e+00> : vector<8x8xf32>
    %238 = tpu.matmul %237, %235, %cst_241 {dimension_numbers = #tpu.dot_dimension_numbers<[1], [0], [0], [1], [0, 0, 1, 1], [], []>} : vector<8x1xbf16>, vector<1x8xbf16>, vector<8x8xf32> -> vector<8x8xf32>
    %239 = arith.addf %232, %238 : vector<8x8xf32>
    %c0_242 = arith.constant 0 : index
    %240 = arith.index_cast %204 : i32 to index
    %c3_243 = arith.constant 3 : index
    %c0_244 = arith.constant 0 : index
    %c1_245 = arith.constant 1 : index
    %241 = vector.load %arg2[%c0_242, %240, %c3_243, %c0_244, %c1_245] : memref<1x18x18x2x9xbf16, #tpu.memory_space<vmem>>, vector<1x1x1x1x8xbf16>
    %242 = vector.shape_cast %241 : vector<1x1x1x1x8xbf16> to vector<1x8xbf16>
    %c5_246 = arith.constant 5 : index
    %c0_247 = arith.constant 0 : index
    %c0_248 = arith.constant 0 : index
    %243 = vector.load %arg3[%c5_246, %c0_247, %c0_248] : memref<27x8x1xbf16, #tpu.memory_space<vmem>>, vector<1x8x1xbf16>
    %244 = vector.shape_cast %243 : vector<1x8x1xbf16> to vector<8x1xbf16>
    %cst_249 = arith.constant dense<0.000000e+00> : vector<8x8xf32>
    %245 = tpu.matmul %244, %242, %cst_249 {dimension_numbers = #tpu.dot_dimension_numbers<[1], [0], [0], [1], [0, 0, 1, 1], [], []>} : vector<8x1xbf16>, vector<1x8xbf16>, vector<8x8xf32> -> vector<8x8xf32>
    %246 = arith.addf %239, %245 : vector<8x8xf32>
    %c0_250 = arith.constant 0 : index
    %247 = arith.index_cast %204 : i32 to index
    %c4_251 = arith.constant 4 : index
    %c0_252 = arith.constant 0 : index
    %c0_253 = arith.constant 0 : index
    %248 = vector.load %arg2[%c0_250, %247, %c4_251, %c0_252, %c0_253] : memref<1x18x18x2x9xbf16, #tpu.memory_space<vmem>>, vector<1x1x1x1x8xbf16>
    %249 = vector.shape_cast %248 : vector<1x1x1x1x8xbf16> to vector<1x8xbf16>
    %c6_254 = arith.constant 6 : index
    %c0_255 = arith.constant 0 : index
    %c0_256 = arith.constant 0 : index
    %250 = vector.load %arg3[%c6_254, %c0_255, %c0_256] : memref<27x8x1xbf16, #tpu.memory_space<vmem>>, vector<1x8x1xbf16>
    %251 = vector.shape_cast %250 : vector<1x8x1xbf16> to vector<8x1xbf16>
    %cst_257 = arith.constant dense<0.000000e+00> : vector<8x8xf32>
    %252 = tpu.matmul %251, %249, %cst_257 {dimension_numbers = #tpu.dot_dimension_numbers<[1], [0], [0], [1], [0, 0, 1, 1], [], []>} : vector<8x1xbf16>, vector<1x8xbf16>, vector<8x8xf32> -> vector<8x8xf32>
    %253 = arith.addf %246, %252 : vector<8x8xf32>
    %c0_258 = arith.constant 0 : index
    %254 = arith.index_cast %204 : i32 to index
    %c4_259 = arith.constant 4 : index
    %c1_260 = arith.constant 1 : index
    %c0_261 = arith.constant 0 : index
    %255 = vector.load %arg2[%c0_258, %254, %c4_259, %c1_260, %c0_261] : memref<1x18x18x2x9xbf16, #tpu.memory_space<vmem>>, vector<1x1x1x1x8xbf16>
    %256 = vector.shape_cast %255 : vector<1x1x1x1x8xbf16> to vector<1x8xbf16>
    %c7_262 = arith.constant 7 : index
    %c0_263 = arith.constant 0 : index
    %c0_264 = arith.constant 0 : index
    %257 = vector.load %arg3[%c7_262, %c0_263, %c0_264] : memref<27x8x1xbf16, #tpu.memory_space<vmem>>, vector<1x8x1xbf16>
    %258 = vector.shape_cast %257 : vector<1x8x1xbf16> to vector<8x1xbf16>
    %cst_265 = arith.constant dense<0.000000e+00> : vector<8x8xf32>
    %259 = tpu.matmul %258, %256, %cst_265 {dimension_numbers = #tpu.dot_dimension_numbers<[1], [0], [0], [1], [0, 0, 1, 1], [], []>} : vector<8x1xbf16>, vector<1x8xbf16>, vector<8x8xf32> -> vector<8x8xf32>
    %260 = arith.addf %253, %259 : vector<8x8xf32>
    %c0_266 = arith.constant 0 : index
    %261 = arith.index_cast %204 : i32 to index
    %c4_267 = arith.constant 4 : index
    %c0_268 = arith.constant 0 : index
    %c1_269 = arith.constant 1 : index
    %262 = vector.load %arg2[%c0_266, %261, %c4_267, %c0_268, %c1_269] : memref<1x18x18x2x9xbf16, #tpu.memory_space<vmem>>, vector<1x1x1x1x8xbf16>
    %263 = vector.shape_cast %262 : vector<1x1x1x1x8xbf16> to vector<1x8xbf16>
    %c8_270 = arith.constant 8 : index
    %c0_271 = arith.constant 0 : index
    %c0_272 = arith.constant 0 : index
    %264 = vector.load %arg3[%c8_270, %c0_271, %c0_272] : memref<27x8x1xbf16, #tpu.memory_space<vmem>>, vector<1x8x1xbf16>
    %265 = vector.shape_cast %264 : vector<1x8x1xbf16> to vector<8x1xbf16>
    %cst_273 = arith.constant dense<0.000000e+00> : vector<8x8xf32>
    %266 = tpu.matmul %265, %263, %cst_273 {dimension_numbers = #tpu.dot_dimension_numbers<[1], [0], [0], [1], [0, 0, 1, 1], [], []>} : vector<8x1xbf16>, vector<1x8xbf16>, vector<8x8xf32> -> vector<8x8xf32>
    %267 = arith.addf %260, %266 : vector<8x8xf32>
    %c2_i32_274 = arith.constant 2 : i32
    %268 = arith.muli %arg1, %c2_i32_274 : i32
    %c1_i32_275 = arith.constant 1 : i32
    %269 = arith.addi %268, %c1_i32_275 : i32
    %c0_276 = arith.constant 0 : index
    %270 = arith.index_cast %269 : i32 to index
    %c2_277 = arith.constant 2 : index
    %c0_278 = arith.constant 0 : index
    %c0_279 = arith.constant 0 : index
    %271 = vector.load %arg2[%c0_276, %270, %c2_277, %c0_278, %c0_279] : memref<1x18x18x2x9xbf16, #tpu.memory_space<vmem>>, vector<1x1x1x1x8xbf16>
    %272 = vector.shape_cast %271 : vector<1x1x1x1x8xbf16> to vector<1x8xbf16>
    %c9_280 = arith.constant 9 : index
    %c0_281 = arith.constant 0 : index
    %c0_282 = arith.constant 0 : index
    %273 = vector.load %arg3[%c9_280, %c0_281, %c0_282] : memref<27x8x1xbf16, #tpu.memory_space<vmem>>, vector<1x8x1xbf16>
    %274 = vector.shape_cast %273 : vector<1x8x1xbf16> to vector<8x1xbf16>
    %cst_283 = arith.constant dense<0.000000e+00> : vector<8x8xf32>
    %275 = tpu.matmul %274, %272, %cst_283 {dimension_numbers = #tpu.dot_dimension_numbers<[1], [0], [0], [1], [0, 0, 1, 1], [], []>} : vector<8x1xbf16>, vector<1x8xbf16>, vector<8x8xf32> -> vector<8x8xf32>
    %276 = arith.addf %267, %275 : vector<8x8xf32>
    %c0_284 = arith.constant 0 : index
    %277 = arith.index_cast %269 : i32 to index
    %c2_285 = arith.constant 2 : index
    %c1_286 = arith.constant 1 : index
    %c0_287 = arith.constant 0 : index
    %278 = vector.load %arg2[%c0_284, %277, %c2_285, %c1_286, %c0_287] : memref<1x18x18x2x9xbf16, #tpu.memory_space<vmem>>, vector<1x1x1x1x8xbf16>
    %279 = vector.shape_cast %278 : vector<1x1x1x1x8xbf16> to vector<1x8xbf16>
    %c10_288 = arith.constant 10 : index
    %c0_289 = arith.constant 0 : index
    %c0_290 = arith.constant 0 : index
    %280 = vector.load %arg3[%c10_288, %c0_289, %c0_290] : memref<27x8x1xbf16, #tpu.memory_space<vmem>>, vector<1x8x1xbf16>
    %281 = vector.shape_cast %280 : vector<1x8x1xbf16> to vector<8x1xbf16>
    %cst_291 = arith.constant dense<0.000000e+00> : vector<8x8xf32>
    %282 = tpu.matmul %281, %279, %cst_291 {dimension_numbers = #tpu.dot_dimension_numbers<[1], [0], [0], [1], [0, 0, 1, 1], [], []>} : vector<8x1xbf16>, vector<1x8xbf16>, vector<8x8xf32> -> vector<8x8xf32>
    %283 = arith.addf %276, %282 : vector<8x8xf32>
    %c0_292 = arith.constant 0 : index
    %284 = arith.index_cast %269 : i32 to index
    %c2_293 = arith.constant 2 : index
    %c0_294 = arith.constant 0 : index
    %c1_295 = arith.constant 1 : index
    %285 = vector.load %arg2[%c0_292, %284, %c2_293, %c0_294, %c1_295] : memref<1x18x18x2x9xbf16, #tpu.memory_space<vmem>>, vector<1x1x1x1x8xbf16>
    %286 = vector.shape_cast %285 : vector<1x1x1x1x8xbf16> to vector<1x8xbf16>
    %c11_296 = arith.constant 11 : index
    %c0_297 = arith.constant 0 : index
    %c0_298 = arith.constant 0 : index
    %287 = vector.load %arg3[%c11_296, %c0_297, %c0_298] : memref<27x8x1xbf16, #tpu.memory_space<vmem>>, vector<1x8x1xbf16>
    %288 = vector.shape_cast %287 : vector<1x8x1xbf16> to vector<8x1xbf16>
    %cst_299 = arith.constant dense<0.000000e+00> : vector<8x8xf32>
    %289 = tpu.matmul %288, %286, %cst_299 {dimension_numbers = #tpu.dot_dimension_numbers<[1], [0], [0], [1], [0, 0, 1, 1], [], []>} : vector<8x1xbf16>, vector<1x8xbf16>, vector<8x8xf32> -> vector<8x8xf32>
    %290 = arith.addf %283, %289 : vector<8x8xf32>
    %c0_300 = arith.constant 0 : index
    %291 = arith.index_cast %269 : i32 to index
    %c3_301 = arith.constant 3 : index
    %c0_302 = arith.constant 0 : index
    %c0_303 = arith.constant 0 : index
    %292 = vector.load %arg2[%c0_300, %291, %c3_301, %c0_302, %c0_303] : memref<1x18x18x2x9xbf16, #tpu.memory_space<vmem>>, vector<1x1x1x1x8xbf16>
    %293 = vector.shape_cast %292 : vector<1x1x1x1x8xbf16> to vector<1x8xbf16>
    %c12_304 = arith.constant 12 : index
    %c0_305 = arith.constant 0 : index
    %c0_306 = arith.constant 0 : index
    %294 = vector.load %arg3[%c12_304, %c0_305, %c0_306] : memref<27x8x1xbf16, #tpu.memory_space<vmem>>, vector<1x8x1xbf16>
    %295 = vector.shape_cast %294 : vector<1x8x1xbf16> to vector<8x1xbf16>
    %cst_307 = arith.constant dense<0.000000e+00> : vector<8x8xf32>
    %296 = tpu.matmul %295, %293, %cst_307 {dimension_numbers = #tpu.dot_dimension_numbers<[1], [0], [0], [1], [0, 0, 1, 1], [], []>} : vector<8x1xbf16>, vector<1x8xbf16>, vector<8x8xf32> -> vector<8x8xf32>
    %297 = arith.addf %290, %296 : vector<8x8xf32>
    %c0_308 = arith.constant 0 : index
    %298 = arith.index_cast %269 : i32 to index
    %c3_309 = arith.constant 3 : index
    %c1_310 = arith.constant 1 : index
    %c0_311 = arith.constant 0 : index
    %299 = vector.load %arg2[%c0_308, %298, %c3_309, %c1_310, %c0_311] : memref<1x18x18x2x9xbf16, #tpu.memory_space<vmem>>, vector<1x1x1x1x8xbf16>
    %300 = vector.shape_cast %299 : vector<1x1x1x1x8xbf16> to vector<1x8xbf16>
    %c13_312 = arith.constant 13 : index
    %c0_313 = arith.constant 0 : index
    %c0_314 = arith.constant 0 : index
    %301 = vector.load %arg3[%c13_312, %c0_313, %c0_314] : memref<27x8x1xbf16, #tpu.memory_space<vmem>>, vector<1x8x1xbf16>
    %302 = vector.shape_cast %301 : vector<1x8x1xbf16> to vector<8x1xbf16>
    %cst_315 = arith.constant dense<0.000000e+00> : vector<8x8xf32>
    %303 = tpu.matmul %302, %300, %cst_315 {dimension_numbers = #tpu.dot_dimension_numbers<[1], [0], [0], [1], [0, 0, 1, 1], [], []>} : vector<8x1xbf16>, vector<1x8xbf16>, vector<8x8xf32> -> vector<8x8xf32>
    %304 = arith.addf %297, %303 : vector<8x8xf32>
    %c0_316 = arith.constant 0 : index
    %305 = arith.index_cast %269 : i32 to index
    %c3_317 = arith.constant 3 : index
    %c0_318 = arith.constant 0 : index
    %c1_319 = arith.constant 1 : index
    %306 = vector.load %arg2[%c0_316, %305, %c3_317, %c0_318, %c1_319] : memref<1x18x18x2x9xbf16, #tpu.memory_space<vmem>>, vector<1x1x1x1x8xbf16>
    %307 = vector.shape_cast %306 : vector<1x1x1x1x8xbf16> to vector<1x8xbf16>
    %c14_320 = arith.constant 14 : index
    %c0_321 = arith.constant 0 : index
    %c0_322 = arith.constant 0 : index
    %308 = vector.load %arg3[%c14_320, %c0_321, %c0_322] : memref<27x8x1xbf16, #tpu.memory_space<vmem>>, vector<1x8x1xbf16>
    %309 = vector.shape_cast %308 : vector<1x8x1xbf16> to vector<8x1xbf16>
    %cst_323 = arith.constant dense<0.000000e+00> : vector<8x8xf32>
    %310 = tpu.matmul %309, %307, %cst_323 {dimension_numbers = #tpu.dot_dimension_numbers<[1], [0], [0], [1], [0, 0, 1, 1], [], []>} : vector<8x1xbf16>, vector<1x8xbf16>, vector<8x8xf32> -> vector<8x8xf32>
    %311 = arith.addf %304, %310 : vector<8x8xf32>
    %c0_324 = arith.constant 0 : index
    %312 = arith.index_cast %269 : i32 to index
    %c4_325 = arith.constant 4 : index
    %c0_326 = arith.constant 0 : index
    %c0_327 = arith.constant 0 : index
    %313 = vector.load %arg2[%c0_324, %312, %c4_325, %c0_326, %c0_327] : memref<1x18x18x2x9xbf16, #tpu.memory_space<vmem>>, vector<1x1x1x1x8xbf16>
    %314 = vector.shape_cast %313 : vector<1x1x1x1x8xbf16> to vector<1x8xbf16>
    %c15_328 = arith.constant 15 : index
    %c0_329 = arith.constant 0 : index
    %c0_330 = arith.constant 0 : index
    %315 = vector.load %arg3[%c15_328, %c0_329, %c0_330] : memref<27x8x1xbf16, #tpu.memory_space<vmem>>, vector<1x8x1xbf16>
    %316 = vector.shape_cast %315 : vector<1x8x1xbf16> to vector<8x1xbf16>
    %cst_331 = arith.constant dense<0.000000e+00> : vector<8x8xf32>
    %317 = tpu.matmul %316, %314, %cst_331 {dimension_numbers = #tpu.dot_dimension_numbers<[1], [0], [0], [1], [0, 0, 1, 1], [], []>} : vector<8x1xbf16>, vector<1x8xbf16>, vector<8x8xf32> -> vector<8x8xf32>
    %318 = arith.addf %311, %317 : vector<8x8xf32>
    %c0_332 = arith.constant 0 : index
    %319 = arith.index_cast %269 : i32 to index
    %c4_333 = arith.constant 4 : index
    %c1_334 = arith.constant 1 : index
    %c0_335 = arith.constant 0 : index
    %320 = vector.load %arg2[%c0_332, %319, %c4_333, %c1_334, %c0_335] : memref<1x18x18x2x9xbf16, #tpu.memory_space<vmem>>, vector<1x1x1x1x8xbf16>
    %321 = vector.shape_cast %320 : vector<1x1x1x1x8xbf16> to vector<1x8xbf16>
    %c16_336 = arith.constant 16 : index
    %c0_337 = arith.constant 0 : index
    %c0_338 = arith.constant 0 : index
    %322 = vector.load %arg3[%c16_336, %c0_337, %c0_338] : memref<27x8x1xbf16, #tpu.memory_space<vmem>>, vector<1x8x1xbf16>
    %323 = vector.shape_cast %322 : vector<1x8x1xbf16> to vector<8x1xbf16>
    %cst_339 = arith.constant dense<0.000000e+00> : vector<8x8xf32>
    %324 = tpu.matmul %323, %321, %cst_339 {dimension_numbers = #tpu.dot_dimension_numbers<[1], [0], [0], [1], [0, 0, 1, 1], [], []>} : vector<8x1xbf16>, vector<1x8xbf16>, vector<8x8xf32> -> vector<8x8xf32>
    %325 = arith.addf %318, %324 : vector<8x8xf32>
    %c0_340 = arith.constant 0 : index
    %326 = arith.index_cast %269 : i32 to index
    %c4_341 = arith.constant 4 : index
    %c0_342 = arith.constant 0 : index
    %c1_343 = arith.constant 1 : index
    %327 = vector.load %arg2[%c0_340, %326, %c4_341, %c0_342, %c1_343] : memref<1x18x18x2x9xbf16, #tpu.memory_space<vmem>>, vector<1x1x1x1x8xbf16>
    %328 = vector.shape_cast %327 : vector<1x1x1x1x8xbf16> to vector<1x8xbf16>
    %c17_344 = arith.constant 17 : index
    %c0_345 = arith.constant 0 : index
    %c0_346 = arith.constant 0 : index
    %329 = vector.load %arg3[%c17_344, %c0_345, %c0_346] : memref<27x8x1xbf16, #tpu.memory_space<vmem>>, vector<1x8x1xbf16>
    %330 = vector.shape_cast %329 : vector<1x8x1xbf16> to vector<8x1xbf16>
    %cst_347 = arith.constant dense<0.000000e+00> : vector<8x8xf32>
    %331 = tpu.matmul %330, %328, %cst_347 {dimension_numbers = #tpu.dot_dimension_numbers<[1], [0], [0], [1], [0, 0, 1, 1], [], []>} : vector<8x1xbf16>, vector<1x8xbf16>, vector<8x8xf32> -> vector<8x8xf32>
    %332 = arith.addf %325, %331 : vector<8x8xf32>
    %c2_i32_348 = arith.constant 2 : i32
    %333 = arith.muli %arg1, %c2_i32_348 : i32
    %c2_i32_349 = arith.constant 2 : i32
    %334 = arith.addi %333, %c2_i32_349 : i32
    %c0_350 = arith.constant 0 : index
    %335 = arith.index_cast %334 : i32 to index
    %c2_351 = arith.constant 2 : index
    %c0_352 = arith.constant 0 : index
    %c0_353 = arith.constant 0 : index
    %336 = vector.load %arg2[%c0_350, %335, %c2_351, %c0_352, %c0_353] : memref<1x18x18x2x9xbf16, #tpu.memory_space<vmem>>, vector<1x1x1x1x8xbf16>
    %337 = vector.shape_cast %336 : vector<1x1x1x1x8xbf16> to vector<1x8xbf16>
    %c18_354 = arith.constant 18 : index
    %c0_355 = arith.constant 0 : index
    %c0_356 = arith.constant 0 : index
    %338 = vector.load %arg3[%c18_354, %c0_355, %c0_356] : memref<27x8x1xbf16, #tpu.memory_space<vmem>>, vector<1x8x1xbf16>
    %339 = vector.shape_cast %338 : vector<1x8x1xbf16> to vector<8x1xbf16>
    %cst_357 = arith.constant dense<0.000000e+00> : vector<8x8xf32>
    %340 = tpu.matmul %339, %337, %cst_357 {dimension_numbers = #tpu.dot_dimension_numbers<[1], [0], [0], [1], [0, 0, 1, 1], [], []>} : vector<8x1xbf16>, vector<1x8xbf16>, vector<8x8xf32> -> vector<8x8xf32>
    %341 = arith.addf %332, %340 : vector<8x8xf32>
    %c0_358 = arith.constant 0 : index
    %342 = arith.index_cast %334 : i32 to index
    %c2_359 = arith.constant 2 : index
    %c1_360 = arith.constant 1 : index
    %c0_361 = arith.constant 0 : index
    %343 = vector.load %arg2[%c0_358, %342, %c2_359, %c1_360, %c0_361] : memref<1x18x18x2x9xbf16, #tpu.memory_space<vmem>>, vector<1x1x1x1x8xbf16>
    %344 = vector.shape_cast %343 : vector<1x1x1x1x8xbf16> to vector<1x8xbf16>
    %c19_362 = arith.constant 19 : index
    %c0_363 = arith.constant 0 : index
    %c0_364 = arith.constant 0 : index
    %345 = vector.load %arg3[%c19_362, %c0_363, %c0_364] : memref<27x8x1xbf16, #tpu.memory_space<vmem>>, vector<1x8x1xbf16>
    %346 = vector.shape_cast %345 : vector<1x8x1xbf16> to vector<8x1xbf16>
    %cst_365 = arith.constant dense<0.000000e+00> : vector<8x8xf32>
    %347 = tpu.matmul %346, %344, %cst_365 {dimension_numbers = #tpu.dot_dimension_numbers<[1], [0], [0], [1], [0, 0, 1, 1], [], []>} : vector<8x1xbf16>, vector<1x8xbf16>, vector<8x8xf32> -> vector<8x8xf32>
    %348 = arith.addf %341, %347 : vector<8x8xf32>
    %c0_366 = arith.constant 0 : index
    %349 = arith.index_cast %334 : i32 to index
    %c2_367 = arith.constant 2 : index
    %c0_368 = arith.constant 0 : index
    %c1_369 = arith.constant 1 : index
    %350 = vector.load %arg2[%c0_366, %349, %c2_367, %c0_368, %c1_369] : memref<1x18x18x2x9xbf16, #tpu.memory_space<vmem>>, vector<1x1x1x1x8xbf16>
    %351 = vector.shape_cast %350 : vector<1x1x1x1x8xbf16> to vector<1x8xbf16>
    %c20_370 = arith.constant 20 : index
    %c0_371 = arith.constant 0 : index
    %c0_372 = arith.constant 0 : index
    %352 = vector.load %arg3[%c20_370, %c0_371, %c0_372] : memref<27x8x1xbf16, #tpu.memory_space<vmem>>, vector<1x8x1xbf16>
    %353 = vector.shape_cast %352 : vector<1x8x1xbf16> to vector<8x1xbf16>
    %cst_373 = arith.constant dense<0.000000e+00> : vector<8x8xf32>
    %354 = tpu.matmul %353, %351, %cst_373 {dimension_numbers = #tpu.dot_dimension_numbers<[1], [0], [0], [1], [0, 0, 1, 1], [], []>} : vector<8x1xbf16>, vector<1x8xbf16>, vector<8x8xf32> -> vector<8x8xf32>
    %355 = arith.addf %348, %354 : vector<8x8xf32>
    %c0_374 = arith.constant 0 : index
    %356 = arith.index_cast %334 : i32 to index
    %c3_375 = arith.constant 3 : index
    %c0_376 = arith.constant 0 : index
    %c0_377 = arith.constant 0 : index
    %357 = vector.load %arg2[%c0_374, %356, %c3_375, %c0_376, %c0_377] : memref<1x18x18x2x9xbf16, #tpu.memory_space<vmem>>, vector<1x1x1x1x8xbf16>
    %358 = vector.shape_cast %357 : vector<1x1x1x1x8xbf16> to vector<1x8xbf16>
    %c21_378 = arith.constant 21 : index
    %c0_379 = arith.constant 0 : index
    %c0_380 = arith.constant 0 : index
    %359 = vector.load %arg3[%c21_378, %c0_379, %c0_380] : memref<27x8x1xbf16, #tpu.memory_space<vmem>>, vector<1x8x1xbf16>
    %360 = vector.shape_cast %359 : vector<1x8x1xbf16> to vector<8x1xbf16>
    %cst_381 = arith.constant dense<0.000000e+00> : vector<8x8xf32>
    %361 = tpu.matmul %360, %358, %cst_381 {dimension_numbers = #tpu.dot_dimension_numbers<[1], [0], [0], [1], [0, 0, 1, 1], [], []>} : vector<8x1xbf16>, vector<1x8xbf16>, vector<8x8xf32> -> vector<8x8xf32>
    %362 = arith.addf %355, %361 : vector<8x8xf32>
    %c0_382 = arith.constant 0 : index
    %363 = arith.index_cast %334 : i32 to index
    %c3_383 = arith.constant 3 : index
    %c1_384 = arith.constant 1 : index
    %c0_385 = arith.constant 0 : index
    %364 = vector.load %arg2[%c0_382, %363, %c3_383, %c1_384, %c0_385] : memref<1x18x18x2x9xbf16, #tpu.memory_space<vmem>>, vector<1x1x1x1x8xbf16>
    %365 = vector.shape_cast %364 : vector<1x1x1x1x8xbf16> to vector<1x8xbf16>
    %c22_386 = arith.constant 22 : index
    %c0_387 = arith.constant 0 : index
    %c0_388 = arith.constant 0 : index
    %366 = vector.load %arg3[%c22_386, %c0_387, %c0_388] : memref<27x8x1xbf16, #tpu.memory_space<vmem>>, vector<1x8x1xbf16>
    %367 = vector.shape_cast %366 : vector<1x8x1xbf16> to vector<8x1xbf16>
    %cst_389 = arith.constant dense<0.000000e+00> : vector<8x8xf32>
    %368 = tpu.matmul %367, %365, %cst_389 {dimension_numbers = #tpu.dot_dimension_numbers<[1], [0], [0], [1], [0, 0, 1, 1], [], []>} : vector<8x1xbf16>, vector<1x8xbf16>, vector<8x8xf32> -> vector<8x8xf32>
    %369 = arith.addf %362, %368 : vector<8x8xf32>
    %c0_390 = arith.constant 0 : index
    %370 = arith.index_cast %334 : i32 to index
    %c3_391 = arith.constant 3 : index
    %c0_392 = arith.constant 0 : index
    %c1_393 = arith.constant 1 : index
    %371 = vector.load %arg2[%c0_390, %370, %c3_391, %c0_392, %c1_393] : memref<1x18x18x2x9xbf16, #tpu.memory_space<vmem>>, vector<1x1x1x1x8xbf16>
    %372 = vector.shape_cast %371 : vector<1x1x1x1x8xbf16> to vector<1x8xbf16>
    %c23_394 = arith.constant 23 : index
    %c0_395 = arith.constant 0 : index
    %c0_396 = arith.constant 0 : index
    %373 = vector.load %arg3[%c23_394, %c0_395, %c0_396] : memref<27x8x1xbf16, #tpu.memory_space<vmem>>, vector<1x8x1xbf16>
    %374 = vector.shape_cast %373 : vector<1x8x1xbf16> to vector<8x1xbf16>
    %cst_397 = arith.constant dense<0.000000e+00> : vector<8x8xf32>
    %375 = tpu.matmul %374, %372, %cst_397 {dimension_numbers = #tpu.dot_dimension_numbers<[1], [0], [0], [1], [0, 0, 1, 1], [], []>} : vector<8x1xbf16>, vector<1x8xbf16>, vector<8x8xf32> -> vector<8x8xf32>
    %376 = arith.addf %369, %375 : vector<8x8xf32>
    %c0_398 = arith.constant 0 : index
    %377 = arith.index_cast %334 : i32 to index
    %c4_399 = arith.constant 4 : index
    %c0_400 = arith.constant 0 : index
    %c0_401 = arith.constant 0 : index
    %378 = vector.load %arg2[%c0_398, %377, %c4_399, %c0_400, %c0_401] : memref<1x18x18x2x9xbf16, #tpu.memory_space<vmem>>, vector<1x1x1x1x8xbf16>
    %379 = vector.shape_cast %378 : vector<1x1x1x1x8xbf16> to vector<1x8xbf16>
    %c24_402 = arith.constant 24 : index
    %c0_403 = arith.constant 0 : index
    %c0_404 = arith.constant 0 : index
    %380 = vector.load %arg3[%c24_402, %c0_403, %c0_404] : memref<27x8x1xbf16, #tpu.memory_space<vmem>>, vector<1x8x1xbf16>
    %381 = vector.shape_cast %380 : vector<1x8x1xbf16> to vector<8x1xbf16>
    %cst_405 = arith.constant dense<0.000000e+00> : vector<8x8xf32>
    %382 = tpu.matmul %381, %379, %cst_405 {dimension_numbers = #tpu.dot_dimension_numbers<[1], [0], [0], [1], [0, 0, 1, 1], [], []>} : vector<8x1xbf16>, vector<1x8xbf16>, vector<8x8xf32> -> vector<8x8xf32>
    %383 = arith.addf %376, %382 : vector<8x8xf32>
    %c0_406 = arith.constant 0 : index
    %384 = arith.index_cast %334 : i32 to index
    %c4_407 = arith.constant 4 : index
    %c1_408 = arith.constant 1 : index
    %c0_409 = arith.constant 0 : index
    %385 = vector.load %arg2[%c0_406, %384, %c4_407, %c1_408, %c0_409] : memref<1x18x18x2x9xbf16, #tpu.memory_space<vmem>>, vector<1x1x1x1x8xbf16>
    %386 = vector.shape_cast %385 : vector<1x1x1x1x8xbf16> to vector<1x8xbf16>
    %c25_410 = arith.constant 25 : index
    %c0_411 = arith.constant 0 : index
    %c0_412 = arith.constant 0 : index
    %387 = vector.load %arg3[%c25_410, %c0_411, %c0_412] : memref<27x8x1xbf16, #tpu.memory_space<vmem>>, vector<1x8x1xbf16>
    %388 = vector.shape_cast %387 : vector<1x8x1xbf16> to vector<8x1xbf16>
    %cst_413 = arith.constant dense<0.000000e+00> : vector<8x8xf32>
    %389 = tpu.matmul %388, %386, %cst_413 {dimension_numbers = #tpu.dot_dimension_numbers<[1], [0], [0], [1], [0, 0, 1, 1], [], []>} : vector<8x1xbf16>, vector<1x8xbf16>, vector<8x8xf32> -> vector<8x8xf32>
    %390 = arith.addf %383, %389 : vector<8x8xf32>
    %c0_414 = arith.constant 0 : index
    %391 = arith.index_cast %334 : i32 to index
    %c4_415 = arith.constant 4 : index
    %c0_416 = arith.constant 0 : index
    %c1_417 = arith.constant 1 : index
    %392 = vector.load %arg2[%c0_414, %391, %c4_415, %c0_416, %c1_417] : memref<1x18x18x2x9xbf16, #tpu.memory_space<vmem>>, vector<1x1x1x1x8xbf16>
    %393 = vector.shape_cast %392 : vector<1x1x1x1x8xbf16> to vector<1x8xbf16>
    %c26_418 = arith.constant 26 : index
    %c0_419 = arith.constant 0 : index
    %c0_420 = arith.constant 0 : index
    %394 = vector.load %arg3[%c26_418, %c0_419, %c0_420] : memref<27x8x1xbf16, #tpu.memory_space<vmem>>, vector<1x8x1xbf16>
    %395 = vector.shape_cast %394 : vector<1x8x1xbf16> to vector<8x1xbf16>
    %cst_421 = arith.constant dense<0.000000e+00> : vector<8x8xf32>
    %396 = tpu.matmul %395, %393, %cst_421 {dimension_numbers = #tpu.dot_dimension_numbers<[1], [0], [0], [1], [0, 0, 1, 1], [], []>} : vector<8x1xbf16>, vector<1x8xbf16>, vector<8x8xf32> -> vector<8x8xf32>
    %397 = arith.addf %390, %396 : vector<8x8xf32>
    %398 = vector.broadcast %0 : vector<8x1xf32> to vector<8x8xf32>
    %399 = arith.addf %397, %398 : vector<8x8xf32>
    %c0_422 = arith.constant 0 : index
    %c0_423 = arith.constant 0 : index
    %c1_424 = arith.constant 1 : index
    %c0_425 = arith.constant 0 : index
    %c0_426 = arith.constant 0 : index
    %400 = vector.load %arg5[%c0_422, %c0_423, %c1_424, %c0_425, %c0_426] : memref<1x1x8x8x8xf32, #tpu.memory_space<vmem>>, vector<1x1x1x8x8xf32>
    %401 = vector.shape_cast %400 : vector<1x1x1x8x8xf32> to vector<8x8xf32>
    %402 = vector.shape_cast %399 : vector<8x8xf32> to vector<1x1x1x8x8xf32>
    tpu.vector_store %arg5[%c0_422, %c0_423, %c1_424, %c0_425, %c0_426], %402 {strides = array<i32>} : memref<1x1x8x8x8xf32, #tpu.memory_space<vmem>>, vector<1x1x1x8x8xf32>,
    %cst_427 = arith.constant 0.000000e+00 : f32
    %403 = vector.broadcast %cst_427 : f32 to vector<8x8xf32>
    %c2_i32_428 = arith.constant 2 : i32
    %404 = arith.muli %arg1, %c2_i32_428 : i32
    %c0_i32_429 = arith.constant 0 : i32
    %405 = arith.addi %404, %c0_i32_429 : i32
    %c0_430 = arith.constant 0 : index
    %406 = arith.index_cast %405 : i32 to index
    %c4_431 = arith.constant 4 : index
    %c0_432 = arith.constant 0 : index
    %c0_433 = arith.constant 0 : index
    %407 = vector.load %arg2[%c0_430, %406, %c4_431, %c0_432, %c0_433] : memref<1x18x18x2x9xbf16, #tpu.memory_space<vmem>>, vector<1x1x1x1x8xbf16>
    %408 = vector.shape_cast %407 : vector<1x1x1x1x8xbf16> to vector<1x8xbf16>
    %c0_434 = arith.constant 0 : index
    %c0_435 = arith.constant 0 : index
    %c0_436 = arith.constant 0 : index
    %409 = vector.load %arg3[%c0_434, %c0_435, %c0_436] : memref<27x8x1xbf16, #tpu.memory_space<vmem>>, vector<1x8x1xbf16>
    %410 = vector.shape_cast %409 : vector<1x8x1xbf16> to vector<8x1xbf16>
    %cst_437 = arith.constant dense<0.000000e+00> : vector<8x8xf32>
    %411 = tpu.matmul %410, %408, %cst_437 {dimension_numbers = #tpu.dot_dimension_numbers<[1], [0], [0], [1], [0, 0, 1, 1], [], []>} : vector<8x1xbf16>, vector<1x8xbf16>, vector<8x8xf32> -> vector<8x8xf32>
    %412 = arith.addf %403, %411 : vector<8x8xf32>
    %c0_438 = arith.constant 0 : index
    %413 = arith.index_cast %405 : i32 to index
    %c4_439 = arith.constant 4 : index
    %c1_440 = arith.constant 1 : index
    %c0_441 = arith.constant 0 : index
    %414 = vector.load %arg2[%c0_438, %413, %c4_439, %c1_440, %c0_441] : memref<1x18x18x2x9xbf16, #tpu.memory_space<vmem>>, vector<1x1x1x1x8xbf16>
    %415 = vector.shape_cast %414 : vector<1x1x1x1x8xbf16> to vector<1x8xbf16>
    %c1_442 = arith.constant 1 : index
    %c0_443 = arith.constant 0 : index
    %c0_444 = arith.constant 0 : index
    %416 = vector.load %arg3[%c1_442, %c0_443, %c0_444] : memref<27x8x1xbf16, #tpu.memory_space<vmem>>, vector<1x8x1xbf16>
    %417 = vector.shape_cast %416 : vector<1x8x1xbf16> to vector<8x1xbf16>
    %cst_445 = arith.constant dense<0.000000e+00> : vector<8x8xf32>
    %418 = tpu.matmul %417, %415, %cst_445 {dimension_numbers = #tpu.dot_dimension_numbers<[1], [0], [0], [1], [0, 0, 1, 1], [], []>} : vector<8x1xbf16>, vector<1x8xbf16>, vector<8x8xf32> -> vector<8x8xf32>
    %419 = arith.addf %412, %418 : vector<8x8xf32>
    %c0_446 = arith.constant 0 : index
    %420 = arith.index_cast %405 : i32 to index
    %c4_447 = arith.constant 4 : index
    %c0_448 = arith.constant 0 : index
    %c1_449 = arith.constant 1 : index
    %421 = vector.load %arg2[%c0_446, %420, %c4_447, %c0_448, %c1_449] : memref<1x18x18x2x9xbf16, #tpu.memory_space<vmem>>, vector<1x1x1x1x8xbf16>
    %422 = vector.shape_cast %421 : vector<1x1x1x1x8xbf16> to vector<1x8xbf16>
    %c2_450 = arith.constant 2 : index
    %c0_451 = arith.constant 0 : index
    %c0_452 = arith.constant 0 : index
    %423 = vector.load %arg3[%c2_450, %c0_451, %c0_452] : memref<27x8x1xbf16, #tpu.memory_space<vmem>>, vector<1x8x1xbf16>
    %424 = vector.shape_cast %423 : vector<1x8x1xbf16> to vector<8x1xbf16>
    %cst_453 = arith.constant dense<0.000000e+00> : vector<8x8xf32>
    %425 = tpu.matmul %424, %422, %cst_453 {dimension_numbers = #tpu.dot_dimension_numbers<[1], [0], [0], [1], [0, 0, 1, 1], [], []>} : vector<8x1xbf16>, vector<1x8xbf16>, vector<8x8xf32> -> vector<8x8xf32>
    %426 = arith.addf %419, %425 : vector<8x8xf32>
    %c0_454 = arith.constant 0 : index
    %427 = arith.index_cast %405 : i32 to index
    %c5_455 = arith.constant 5 : index
    %c0_456 = arith.constant 0 : index
    %c0_457 = arith.constant 0 : index
    %428 = vector.load %arg2[%c0_454, %427, %c5_455, %c0_456, %c0_457] : memref<1x18x18x2x9xbf16, #tpu.memory_space<vmem>>, vector<1x1x1x1x8xbf16>
    %429 = vector.shape_cast %428 : vector<1x1x1x1x8xbf16> to vector<1x8xbf16>
    %c3_458 = arith.constant 3 : index
    %c0_459 = arith.constant 0 : index
    %c0_460 = arith.constant 0 : index
    %430 = vector.load %arg3[%c3_458, %c0_459, %c0_460] : memref<27x8x1xbf16, #tpu.memory_space<vmem>>, vector<1x8x1xbf16>
    %431 = vector.shape_cast %430 : vector<1x8x1xbf16> to vector<8x1xbf16>
    %cst_461 = arith.constant dense<0.000000e+00> : vector<8x8xf32>
    %432 = tpu.matmul %431, %429, %cst_461 {dimension_numbers = #tpu.dot_dimension_numbers<[1], [0], [0], [1], [0, 0, 1, 1], [], []>} : vector<8x1xbf16>, vector<1x8xbf16>, vector<8x8xf32> -> vector<8x8xf32>
    %433 = arith.addf %426, %432 : vector<8x8xf32>
    %c0_462 = arith.constant 0 : index
    %434 = arith.index_cast %405 : i32 to index
    %c5_463 = arith.constant 5 : index
    %c1_464 = arith.constant 1 : index
    %c0_465 = arith.constant 0 : index
    %435 = vector.load %arg2[%c0_462, %434, %c5_463, %c1_464, %c0_465] : memref<1x18x18x2x9xbf16, #tpu.memory_space<vmem>>, vector<1x1x1x1x8xbf16>
    %436 = vector.shape_cast %435 : vector<1x1x1x1x8xbf16> to vector<1x8xbf16>
    %c4_466 = arith.constant 4 : index
    %c0_467 = arith.constant 0 : index
    %c0_468 = arith.constant 0 : index
    %437 = vector.load %arg3[%c4_466, %c0_467, %c0_468] : memref<27x8x1xbf16, #tpu.memory_space<vmem>>, vector<1x8x1xbf16>
    %438 = vector.shape_cast %437 : vector<1x8x1xbf16> to vector<8x1xbf16>
    %cst_469 = arith.constant dense<0.000000e+00> : vector<8x8xf32>
    %439 = tpu.matmul %438, %436, %cst_469 {dimension_numbers = #tpu.dot_dimension_numbers<[1], [0], [0], [1], [0, 0, 1, 1], [], []>} : vector<8x1xbf16>, vector<1x8xbf16>, vector<8x8xf32> -> vector<8x8xf32>
    %440 = arith.addf %433, %439 : vector<8x8xf32>
    %c0_470 = arith.constant 0 : index
    %441 = arith.index_cast %405 : i32 to index
    %c5_471 = arith.constant 5 : index
    %c0_472 = arith.constant 0 : index
    %c1_473 = arith.constant 1 : index
    %442 = vector.load %arg2[%c0_470, %441, %c5_471, %c0_472, %c1_473] : memref<1x18x18x2x9xbf16, #tpu.memory_space<vmem>>, vector<1x1x1x1x8xbf16>
    %443 = vector.shape_cast %442 : vector<1x1x1x1x8xbf16> to vector<1x8xbf16>
    %c5_474 = arith.constant 5 : index
    %c0_475 = arith.constant 0 : index
    %c0_476 = arith.constant 0 : index
    %444 = vector.load %arg3[%c5_474, %c0_475, %c0_476] : memref<27x8x1xbf16, #tpu.memory_space<vmem>>, vector<1x8x1xbf16>
    %445 = vector.shape_cast %444 : vector<1x8x1xbf16> to vector<8x1xbf16>
    %cst_477 = arith.constant dense<0.000000e+00> : vector<8x8xf32>
    %446 = tpu.matmul %445, %443, %cst_477 {dimension_numbers = #tpu.dot_dimension_numbers<[1], [0], [0], [1], [0, 0, 1, 1], [], []>} : vector<8x1xbf16>, vector<1x8xbf16>, vector<8x8xf32> -> vector<8x8xf32>
    %447 = arith.addf %440, %446 : vector<8x8xf32>
    %c0_478 = arith.constant 0 : index
    %448 = arith.index_cast %405 : i32 to index
    %c6_479 = arith.constant 6 : index
    %c0_480 = arith.constant 0 : index
    %c0_481 = arith.constant 0 : index
    %449 = vector.load %arg2[%c0_478, %448, %c6_479, %c0_480, %c0_481] : memref<1x18x18x2x9xbf16, #tpu.memory_space<vmem>>, vector<1x1x1x1x8xbf16>
    %450 = vector.shape_cast %449 : vector<1x1x1x1x8xbf16> to vector<1x8xbf16>
    %c6_482 = arith.constant 6 : index
    %c0_483 = arith.constant 0 : index
    %c0_484 = arith.constant 0 : index
    %451 = vector.load %arg3[%c6_482, %c0_483, %c0_484] : memref<27x8x1xbf16, #tpu.memory_space<vmem>>, vector<1x8x1xbf16>
    %452 = vector.shape_cast %451 : vector<1x8x1xbf16> to vector<8x1xbf16>
    %cst_485 = arith.constant dense<0.000000e+00> : vector<8x8xf32>
    %453 = tpu.matmul %452, %450, %cst_485 {dimension_numbers = #tpu.dot_dimension_numbers<[1], [0], [0], [1], [0, 0, 1, 1], [], []>} : vector<8x1xbf16>, vector<1x8xbf16>, vector<8x8xf32> -> vector<8x8xf32>
    %454 = arith.addf %447, %453 : vector<8x8xf32>
    %c0_486 = arith.constant 0 : index
    %455 = arith.index_cast %405 : i32 to index
    %c6_487 = arith.constant 6 : index
    %c1_488 = arith.constant 1 : index
    %c0_489 = arith.constant 0 : index
    %456 = vector.load %arg2[%c0_486, %455, %c6_487, %c1_488, %c0_489] : memref<1x18x18x2x9xbf16, #tpu.memory_space<vmem>>, vector<1x1x1x1x8xbf16>
    %457 = vector.shape_cast %456 : vector<1x1x1x1x8xbf16> to vector<1x8xbf16>
    %c7_490 = arith.constant 7 : index
    %c0_491 = arith.constant 0 : index
    %c0_492 = arith.constant 0 : index
    %458 = vector.load %arg3[%c7_490, %c0_491, %c0_492] : memref<27x8x1xbf16, #tpu.memory_space<vmem>>, vector<1x8x1xbf16>
    %459 = vector.shape_cast %458 : vector<1x8x1xbf16> to vector<8x1xbf16>
    %cst_493 = arith.constant dense<0.000000e+00> : vector<8x8xf32>
    %460 = tpu.matmul %459, %457, %cst_493 {dimension_numbers = #tpu.dot_dimension_numbers<[1], [0], [0], [1], [0, 0, 1, 1], [], []>} : vector<8x1xbf16>, vector<1x8xbf16>, vector<8x8xf32> -> vector<8x8xf32>
    %461 = arith.addf %454, %460 : vector<8x8xf32>
    %c0_494 = arith.constant 0 : index
    %462 = arith.index_cast %405 : i32 to index
    %c6_495 = arith.constant 6 : index
    %c0_496 = arith.constant 0 : index
    %c1_497 = arith.constant 1 : index
    %463 = vector.load %arg2[%c0_494, %462, %c6_495, %c0_496, %c1_497] : memref<1x18x18x2x9xbf16, #tpu.memory_space<vmem>>, vector<1x1x1x1x8xbf16>
    %464 = vector.shape_cast %463 : vector<1x1x1x1x8xbf16> to vector<1x8xbf16>
    %c8_498 = arith.constant 8 : index
    %c0_499 = arith.constant 0 : index
    %c0_500 = arith.constant 0 : index
    %465 = vector.load %arg3[%c8_498, %c0_499, %c0_500] : memref<27x8x1xbf16, #tpu.memory_space<vmem>>, vector<1x8x1xbf16>
    %466 = vector.shape_cast %465 : vector<1x8x1xbf16> to vector<8x1xbf16>
    %cst_501 = arith.constant dense<0.000000e+00> : vector<8x8xf32>
    %467 = tpu.matmul %466, %464, %cst_501 {dimension_numbers = #tpu.dot_dimension_numbers<[1], [0], [0], [1], [0, 0, 1, 1], [], []>} : vector<8x1xbf16>, vector<1x8xbf16>, vector<8x8xf32> -> vector<8x8xf32>
    %468 = arith.addf %461, %467 : vector<8x8xf32>
    %c2_i32_502 = arith.constant 2 : i32
    %469 = arith.muli %arg1, %c2_i32_502 : i32
    %c1_i32_503 = arith.constant 1 : i32
    %470 = arith.addi %469, %c1_i32_503 : i32
    %c0_504 = arith.constant 0 : index
    %471 = arith.index_cast %470 : i32 to index
    %c4_505 = arith.constant 4 : index
    %c0_506 = arith.constant 0 : index
    %c0_507 = arith.constant 0 : index
    %472 = vector.load %arg2[%c0_504, %471, %c4_505, %c0_506, %c0_507] : memref<1x18x18x2x9xbf16, #tpu.memory_space<vmem>>, vector<1x1x1x1x8xbf16>
    %473 = vector.shape_cast %472 : vector<1x1x1x1x8xbf16> to vector<1x8xbf16>
    %c9_508 = arith.constant 9 : index
    %c0_509 = arith.constant 0 : index
    %c0_510 = arith.constant 0 : index
    %474 = vector.load %arg3[%c9_508, %c0_509, %c0_510] : memref<27x8x1xbf16, #tpu.memory_space<vmem>>, vector<1x8x1xbf16>
    %475 = vector.shape_cast %474 : vector<1x8x1xbf16> to vector<8x1xbf16>
    %cst_511 = arith.constant dense<0.000000e+00> : vector<8x8xf32>
    %476 = tpu.matmul %475, %473, %cst_511 {dimension_numbers = #tpu.dot_dimension_numbers<[1], [0], [0], [1], [0, 0, 1, 1], [], []>} : vector<8x1xbf16>, vector<1x8xbf16>, vector<8x8xf32> -> vector<8x8xf32>
    %477 = arith.addf %468, %476 : vector<8x8xf32>
    %c0_512 = arith.constant 0 : index
    %478 = arith.index_cast %470 : i32 to index
    %c4_513 = arith.constant 4 : index
    %c1_514 = arith.constant 1 : index
    %c0_515 = arith.constant 0 : index
    %479 = vector.load %arg2[%c0_512, %478, %c4_513, %c1_514, %c0_515] : memref<1x18x18x2x9xbf16, #tpu.memory_space<vmem>>, vector<1x1x1x1x8xbf16>
    %480 = vector.shape_cast %479 : vector<1x1x1x1x8xbf16> to vector<1x8xbf16>
    %c10_516 = arith.constant 10 : index
    %c0_517 = arith.constant 0 : index
    %c0_518 = arith.constant 0 : index
    %481 = vector.load %arg3[%c10_516, %c0_517, %c0_518] : memref<27x8x1xbf16, #tpu.memory_space<vmem>>, vector<1x8x1xbf16>
    %482 = vector.shape_cast %481 : vector<1x8x1xbf16> to vector<8x1xbf16>
    %cst_519 = arith.constant dense<0.000000e+00> : vector<8x8xf32>
    %483 = tpu.matmul %482, %480, %cst_519 {dimension_numbers = #tpu.dot_dimension_numbers<[1], [0], [0], [1], [0, 0, 1, 1], [], []>} : vector<8x1xbf16>, vector<1x8xbf16>, vector<8x8xf32> -> vector<8x8xf32>
    %484 = arith.addf %477, %483 : vector<8x8xf32>
    %c0_520 = arith.constant 0 : index
    %485 = arith.index_cast %470 : i32 to index
    %c4_521 = arith.constant 4 : index
    %c0_522 = arith.constant 0 : index
    %c1_523 = arith.constant 1 : index
    %486 = vector.load %arg2[%c0_520, %485, %c4_521, %c0_522, %c1_523] : memref<1x18x18x2x9xbf16, #tpu.memory_space<vmem>>, vector<1x1x1x1x8xbf16>
    %487 = vector.shape_cast %486 : vector<1x1x1x1x8xbf16> to vector<1x8xbf16>
    %c11_524 = arith.constant 11 : index
    %c0_525 = arith.constant 0 : index
    %c0_526 = arith.constant 0 : index
    %488 = vector.load %arg3[%c11_524, %c0_525, %c0_526] : memref<27x8x1xbf16, #tpu.memory_space<vmem>>, vector<1x8x1xbf16>
    %489 = vector.shape_cast %488 : vector<1x8x1xbf16> to vector<8x1xbf16>
    %cst_527 = arith.constant dense<0.000000e+00> : vector<8x8xf32>
    %490 = tpu.matmul %489, %487, %cst_527 {dimension_numbers = #tpu.dot_dimension_numbers<[1], [0], [0], [1], [0, 0, 1, 1], [], []>} : vector<8x1xbf16>, vector<1x8xbf16>, vector<8x8xf32> -> vector<8x8xf32>
    %491 = arith.addf %484, %490 : vector<8x8xf32>
    %c0_528 = arith.constant 0 : index
    %492 = arith.index_cast %470 : i32 to index
    %c5_529 = arith.constant 5 : index
    %c0_530 = arith.constant 0 : index
    %c0_531 = arith.constant 0 : index
    %493 = vector.load %arg2[%c0_528, %492, %c5_529, %c0_530, %c0_531] : memref<1x18x18x2x9xbf16, #tpu.memory_space<vmem>>, vector<1x1x1x1x8xbf16>
    %494 = vector.shape_cast %493 : vector<1x1x1x1x8xbf16> to vector<1x8xbf16>
    %c12_532 = arith.constant 12 : index
    %c0_533 = arith.constant 0 : index
    %c0_534 = arith.constant 0 : index
    %495 = vector.load %arg3[%c12_532, %c0_533, %c0_534] : memref<27x8x1xbf16, #tpu.memory_space<vmem>>, vector<1x8x1xbf16>
    %496 = vector.shape_cast %495 : vector<1x8x1xbf16> to vector<8x1xbf16>
    %cst_535 = arith.constant dense<0.000000e+00> : vector<8x8xf32>
    %497 = tpu.matmul %496, %494, %cst_535 {dimension_numbers = #tpu.dot_dimension_numbers<[1], [0], [0], [1], [0, 0, 1, 1], [], []>} : vector<8x1xbf16>, vector<1x8xbf16>, vector<8x8xf32> -> vector<8x8xf32>
    %498 = arith.addf %491, %497 : vector<8x8xf32>
    %c0_536 = arith.constant 0 : index
    %499 = arith.index_cast %470 : i32 to index
    %c5_537 = arith.constant 5 : index
    %c1_538 = arith.constant 1 : index
    %c0_539 = arith.constant 0 : index
    %500 = vector.load %arg2[%c0_536, %499, %c5_537, %c1_538, %c0_539] : memref<1x18x18x2x9xbf16, #tpu.memory_space<vmem>>, vector<1x1x1x1x8xbf16>
    %501 = vector.shape_cast %500 : vector<1x1x1x1x8xbf16> to vector<1x8xbf16>
    %c13_540 = arith.constant 13 : index
    %c0_541 = arith.constant 0 : index
    %c0_542 = arith.constant 0 : index
    %502 = vector.load %arg3[%c13_540, %c0_541, %c0_542] : memref<27x8x1xbf16, #tpu.memory_space<vmem>>, vector<1x8x1xbf16>
    %503 = vector.shape_cast %502 : vector<1x8x1xbf16> to vector<8x1xbf16>
    %cst_543 = arith.constant dense<0.000000e+00> : vector<8x8xf32>
    %504 = tpu.matmul %503, %501, %cst_543 {dimension_numbers = #tpu.dot_dimension_numbers<[1], [0], [0], [1], [0, 0, 1, 1], [], []>} : vector<8x1xbf16>, vector<1x8xbf16>, vector<8x8xf32> -> vector<8x8xf32>
    %505 = arith.addf %498, %504 : vector<8x8xf32>
    %c0_544 = arith.constant 0 : index
    %506 = arith.index_cast %470 : i32 to index
    %c5_545 = arith.constant 5 : index
    %c0_546 = arith.constant 0 : index
    %c1_547 = arith.constant 1 : index
    %507 = vector.load %arg2[%c0_544, %506, %c5_545, %c0_546, %c1_547] : memref<1x18x18x2x9xbf16, #tpu.memory_space<vmem>>, vector<1x1x1x1x8xbf16>
    %508 = vector.shape_cast %507 : vector<1x1x1x1x8xbf16> to vector<1x8xbf16>
    %c14_548 = arith.constant 14 : index
    %c0_549 = arith.constant 0 : index
    %c0_550 = arith.constant 0 : index
    %509 = vector.load %arg3[%c14_548, %c0_549, %c0_550] : memref<27x8x1xbf16, #tpu.memory_space<vmem>>, vector<1x8x1xbf16>
    %510 = vector.shape_cast %509 : vector<1x8x1xbf16> to vector<8x1xbf16>
    %cst_551 = arith.constant dense<0.000000e+00> : vector<8x8xf32>
    %511 = tpu.matmul %510, %508, %cst_551 {dimension_numbers = #tpu.dot_dimension_numbers<[1], [0], [0], [1], [0, 0, 1, 1], [], []>} : vector<8x1xbf16>, vector<1x8xbf16>, vector<8x8xf32> -> vector<8x8xf32>
    %512 = arith.addf %505, %511 : vector<8x8xf32>
    %c0_552 = arith.constant 0 : index
    %513 = arith.index_cast %470 : i32 to index
    %c6_553 = arith.constant 6 : index
    %c0_554 = arith.constant 0 : index
    %c0_555 = arith.constant 0 : index
    %514 = vector.load %arg2[%c0_552, %513, %c6_553, %c0_554, %c0_555] : memref<1x18x18x2x9xbf16, #tpu.memory_space<vmem>>, vector<1x1x1x1x8xbf16>
    %515 = vector.shape_cast %514 : vector<1x1x1x1x8xbf16> to vector<1x8xbf16>
    %c15_556 = arith.constant 15 : index
    %c0_557 = arith.constant 0 : index
    %c0_558 = arith.constant 0 : index
    %516 = vector.load %arg3[%c15_556, %c0_557, %c0_558] : memref<27x8x1xbf16, #tpu.memory_space<vmem>>, vector<1x8x1xbf16>
    %517 = vector.shape_cast %516 : vector<1x8x1xbf16> to vector<8x1xbf16>
    %cst_559 = arith.constant dense<0.000000e+00> : vector<8x8xf32>
    %518 = tpu.matmul %517, %515, %cst_559 {dimension_numbers = #tpu.dot_dimension_numbers<[1], [0], [0], [1], [0, 0, 1, 1], [], []>} : vector<8x1xbf16>, vector<1x8xbf16>, vector<8x8xf32> -> vector<8x8xf32>
    %519 = arith.addf %512, %518 : vector<8x8xf32>
    %c0_560 = arith.constant 0 : index
    %520 = arith.index_cast %470 : i32 to index
    %c6_561 = arith.constant 6 : index
    %c1_562 = arith.constant 1 : index
    %c0_563 = arith.constant 0 : index
    %521 = vector.load %arg2[%c0_560, %520, %c6_561, %c1_562, %c0_563] : memref<1x18x18x2x9xbf16, #tpu.memory_space<vmem>>, vector<1x1x1x1x8xbf16>
    %522 = vector.shape_cast %521 : vector<1x1x1x1x8xbf16> to vector<1x8xbf16>
    %c16_564 = arith.constant 16 : index
    %c0_565 = arith.constant 0 : index
    %c0_566 = arith.constant 0 : index
    %523 = vector.load %arg3[%c16_564, %c0_565, %c0_566] : memref<27x8x1xbf16, #tpu.memory_space<vmem>>, vector<1x8x1xbf16>
    %524 = vector.shape_cast %523 : vector<1x8x1xbf16> to vector<8x1xbf16>
    %cst_567 = arith.constant dense<0.000000e+00> : vector<8x8xf32>
    %525 = tpu.matmul %524, %522, %cst_567 {dimension_numbers = #tpu.dot_dimension_numbers<[1], [0], [0], [1], [0, 0, 1, 1], [], []>} : vector<8x1xbf16>, vector<1x8xbf16>, vector<8x8xf32> -> vector<8x8xf32>
    %526 = arith.addf %519, %525 : vector<8x8xf32>
    %c0_568 = arith.constant 0 : index
    %527 = arith.index_cast %470 : i32 to index
    %c6_569 = arith.constant 6 : index
    %c0_570 = arith.constant 0 : index
    %c1_571 = arith.constant 1 : index
    %528 = vector.load %arg2[%c0_568, %527, %c6_569, %c0_570, %c1_571] : memref<1x18x18x2x9xbf16, #tpu.memory_space<vmem>>, vector<1x1x1x1x8xbf16>
    %529 = vector.shape_cast %528 : vector<1x1x1x1x8xbf16> to vector<1x8xbf16>
    %c17_572 = arith.constant 17 : index
    %c0_573 = arith.constant 0 : index
    %c0_574 = arith.constant 0 : index
    %530 = vector.load %arg3[%c17_572, %c0_573, %c0_574] : memref<27x8x1xbf16, #tpu.memory_space<vmem>>, vector<1x8x1xbf16>
    %531 = vector.shape_cast %530 : vector<1x8x1xbf16> to vector<8x1xbf16>
    %cst_575 = arith.constant dense<0.000000e+00> : vector<8x8xf32>
    %532 = tpu.matmul %531, %529, %cst_575 {dimension_numbers = #tpu.dot_dimension_numbers<[1], [0], [0], [1], [0, 0, 1, 1], [], []>} : vector<8x1xbf16>, vector<1x8xbf16>, vector<8x8xf32> -> vector<8x8xf32>
    %533 = arith.addf %526, %532 : vector<8x8xf32>
    %c2_i32_576 = arith.constant 2 : i32
    %534 = arith.muli %arg1, %c2_i32_576 : i32
    %c2_i32_577 = arith.constant 2 : i32
    %535 = arith.addi %534, %c2_i32_577 : i32
    %c0_578 = arith.constant 0 : index
    %536 = arith.index_cast %535 : i32 to index
    %c4_579 = arith.constant 4 : index
    %c0_580 = arith.constant 0 : index
    %c0_581 = arith.constant 0 : index
    %537 = vector.load %arg2[%c0_578, %536, %c4_579, %c0_580, %c0_581] : memref<1x18x18x2x9xbf16, #tpu.memory_space<vmem>>, vector<1x1x1x1x8xbf16>
    %538 = vector.shape_cast %537 : vector<1x1x1x1x8xbf16> to vector<1x8xbf16>
    %c18_582 = arith.constant 18 : index
    %c0_583 = arith.constant 0 : index
    %c0_584 = arith.constant 0 : index
    %539 = vector.load %arg3[%c18_582, %c0_583, %c0_584] : memref<27x8x1xbf16, #tpu.memory_space<vmem>>, vector<1x8x1xbf16>
    %540 = vector.shape_cast %539 : vector<1x8x1xbf16> to vector<8x1xbf16>
    %cst_585 = arith.constant dense<0.000000e+00> : vector<8x8xf32>
    %541 = tpu.matmul %540, %538, %cst_585 {dimension_numbers = #tpu.dot_dimension_numbers<[1], [0], [0], [1], [0, 0, 1, 1], [], []>} : vector<8x1xbf16>, vector<1x8xbf16>, vector<8x8xf32> -> vector<8x8xf32>
    %542 = arith.addf %533, %541 : vector<8x8xf32>
    %c0_586 = arith.constant 0 : index
    %543 = arith.index_cast %535 : i32 to index
    %c4_587 = arith.constant 4 : index
    %c1_588 = arith.constant 1 : index
    %c0_589 = arith.constant 0 : index
    %544 = vector.load %arg2[%c0_586, %543, %c4_587, %c1_588, %c0_589] : memref<1x18x18x2x9xbf16, #tpu.memory_space<vmem>>, vector<1x1x1x1x8xbf16>
    %545 = vector.shape_cast %544 : vector<1x1x1x1x8xbf16> to vector<1x8xbf16>
    %c19_590 = arith.constant 19 : index
    %c0_591 = arith.constant 0 : index
    %c0_592 = arith.constant 0 : index
    %546 = vector.load %arg3[%c19_590, %c0_591, %c0_592] : memref<27x8x1xbf16, #tpu.memory_space<vmem>>, vector<1x8x1xbf16>
    %547 = vector.shape_cast %546 : vector<1x8x1xbf16> to vector<8x1xbf16>
    %cst_593 = arith.constant dense<0.000000e+00> : vector<8x8xf32>
    %548 = tpu.matmul %547, %545, %cst_593 {dimension_numbers = #tpu.dot_dimension_numbers<[1], [0], [0], [1], [0, 0, 1, 1], [], []>} : vector<8x1xbf16>, vector<1x8xbf16>, vector<8x8xf32> -> vector<8x8xf32>
    %549 = arith.addf %542, %548 : vector<8x8xf32>
    %c0_594 = arith.constant 0 : index
    %550 = arith.index_cast %535 : i32 to index
    %c4_595 = arith.constant 4 : index
    %c0_596 = arith.constant 0 : index
    %c1_597 = arith.constant 1 : index
    %551 = vector.load %arg2[%c0_594, %550, %c4_595, %c0_596, %c1_597] : memref<1x18x18x2x9xbf16, #tpu.memory_space<vmem>>, vector<1x1x1x1x8xbf16>
    %552 = vector.shape_cast %551 : vector<1x1x1x1x8xbf16> to vector<1x8xbf16>
    %c20_598 = arith.constant 20 : index
    %c0_599 = arith.constant 0 : index
    %c0_600 = arith.constant 0 : index
    %553 = vector.load %arg3[%c20_598, %c0_599, %c0_600] : memref<27x8x1xbf16, #tpu.memory_space<vmem>>, vector<1x8x1xbf16>
    %554 = vector.shape_cast %553 : vector<1x8x1xbf16> to vector<8x1xbf16>
    %cst_601 = arith.constant dense<0.000000e+00> : vector<8x8xf32>
    %555 = tpu.matmul %554, %552, %cst_601 {dimension_numbers = #tpu.dot_dimension_numbers<[1], [0], [0], [1], [0, 0, 1, 1], [], []>} : vector<8x1xbf16>, vector<1x8xbf16>, vector<8x8xf32> -> vector<8x8xf32>
    %556 = arith.addf %549, %555 : vector<8x8xf32>
    %c0_602 = arith.constant 0 : index
    %557 = arith.index_cast %535 : i32 to index
    %c5_603 = arith.constant 5 : index
    %c0_604 = arith.constant 0 : index
    %c0_605 = arith.constant 0 : index
    %558 = vector.load %arg2[%c0_602, %557, %c5_603, %c0_604, %c0_605] : memref<1x18x18x2x9xbf16, #tpu.memory_space<vmem>>, vector<1x1x1x1x8xbf16>
    %559 = vector.shape_cast %558 : vector<1x1x1x1x8xbf16> to vector<1x8xbf16>
    %c21_606 = arith.constant 21 : index
    %c0_607 = arith.constant 0 : index
    %c0_608 = arith.constant 0 : index
    %560 = vector.load %arg3[%c21_606, %c0_607, %c0_608] : memref<27x8x1xbf16, #tpu.memory_space<vmem>>, vector<1x8x1xbf16>
    %561 = vector.shape_cast %560 : vector<1x8x1xbf16> to vector<8x1xbf16>
    %cst_609 = arith.constant dense<0.000000e+00> : vector<8x8xf32>
    %562 = tpu.matmul %561, %559, %cst_609 {dimension_numbers = #tpu.dot_dimension_numbers<[1], [0], [0], [1], [0, 0, 1, 1], [], []>} : vector<8x1xbf16>, vector<1x8xbf16>, vector<8x8xf32> -> vector<8x8xf32>
    %563 = arith.addf %556, %562 : vector<8x8xf32>
    %c0_610 = arith.constant 0 : index
    %564 = arith.index_cast %535 : i32 to index
    %c5_611 = arith.constant 5 : index
    %c1_612 = arith.constant 1 : index
    %c0_613 = arith.constant 0 : index
    %565 = vector.load %arg2[%c0_610, %564, %c5_611, %c1_612, %c0_613] : memref<1x18x18x2x9xbf16, #tpu.memory_space<vmem>>, vector<1x1x1x1x8xbf16>
    %566 = vector.shape_cast %565 : vector<1x1x1x1x8xbf16> to vector<1x8xbf16>
    %c22_614 = arith.constant 22 : index
    %c0_615 = arith.constant 0 : index
    %c0_616 = arith.constant 0 : index
    %567 = vector.load %arg3[%c22_614, %c0_615, %c0_616] : memref<27x8x1xbf16, #tpu.memory_space<vmem>>, vector<1x8x1xbf16>
    %568 = vector.shape_cast %567 : vector<1x8x1xbf16> to vector<8x1xbf16>
    %cst_617 = arith.constant dense<0.000000e+00> : vector<8x8xf32>
    %569 = tpu.matmul %568, %566, %cst_617 {dimension_numbers = #tpu.dot_dimension_numbers<[1], [0], [0], [1], [0, 0, 1, 1], [], []>} : vector<8x1xbf16>, vector<1x8xbf16>, vector<8x8xf32> -> vector<8x8xf32>
    %570 = arith.addf %563, %569 : vector<8x8xf32>
    %c0_618 = arith.constant 0 : index
    %571 = arith.index_cast %535 : i32 to index
    %c5_619 = arith.constant 5 : index
    %c0_620 = arith.constant 0 : index
    %c1_621 = arith.constant 1 : index
    %572 = vector.load %arg2[%c0_618, %571, %c5_619, %c0_620, %c1_621] : memref<1x18x18x2x9xbf16, #tpu.memory_space<vmem>>, vector<1x1x1x1x8xbf16>
    %573 = vector.shape_cast %572 : vector<1x1x1x1x8xbf16> to vector<1x8xbf16>
    %c23_622 = arith.constant 23 : index
    %c0_623 = arith.constant 0 : index
    %c0_624 = arith.constant 0 : index
    %574 = vector.load %arg3[%c23_622, %c0_623, %c0_624] : memref<27x8x1xbf16, #tpu.memory_space<vmem>>, vector<1x8x1xbf16>
    %575 = vector.shape_cast %574 : vector<1x8x1xbf16> to vector<8x1xbf16>
    %cst_625 = arith.constant dense<0.000000e+00> : vector<8x8xf32>
    %576 = tpu.matmul %575, %573, %cst_625 {dimension_numbers = #tpu.dot_dimension_numbers<[1], [0], [0], [1], [0, 0, 1, 1], [], []>} : vector<8x1xbf16>, vector<1x8xbf16>, vector<8x8xf32> -> vector<8x8xf32>
    %577 = arith.addf %570, %576 : vector<8x8xf32>
    %c0_626 = arith.constant 0 : index
    %578 = arith.index_cast %535 : i32 to index
    %c6_627 = arith.constant 6 : index
    %c0_628 = arith.constant 0 : index
    %c0_629 = arith.constant 0 : index
    %579 = vector.load %arg2[%c0_626, %578, %c6_627, %c0_628, %c0_629] : memref<1x18x18x2x9xbf16, #tpu.memory_space<vmem>>, vector<1x1x1x1x8xbf16>
    %580 = vector.shape_cast %579 : vector<1x1x1x1x8xbf16> to vector<1x8xbf16>
    %c24_630 = arith.constant 24 : index
    %c0_631 = arith.constant 0 : index
    %c0_632 = arith.constant 0 : index
    %581 = vector.load %arg3[%c24_630, %c0_631, %c0_632] : memref<27x8x1xbf16, #tpu.memory_space<vmem>>, vector<1x8x1xbf16>
    %582 = vector.shape_cast %581 : vector<1x8x1xbf16> to vector<8x1xbf16>
    %cst_633 = arith.constant dense<0.000000e+00> : vector<8x8xf32>
    %583 = tpu.matmul %582, %580, %cst_633 {dimension_numbers = #tpu.dot_dimension_numbers<[1], [0], [0], [1], [0, 0, 1, 1], [], []>} : vector<8x1xbf16>, vector<1x8xbf16>, vector<8x8xf32> -> vector<8x8xf32>
    %584 = arith.addf %577, %583 : vector<8x8xf32>
    %c0_634 = arith.constant 0 : index
    %585 = arith.index_cast %535 : i32 to index
    %c6_635 = arith.constant 6 : index
    %c1_636 = arith.constant 1 : index
    %c0_637 = arith.constant 0 : index
    %586 = vector.load %arg2[%c0_634, %585, %c6_635, %c1_636, %c0_637] : memref<1x18x18x2x9xbf16, #tpu.memory_space<vmem>>, vector<1x1x1x1x8xbf16>
    %587 = vector.shape_cast %586 : vector<1x1x1x1x8xbf16> to vector<1x8xbf16>
    %c25_638 = arith.constant 25 : index
    %c0_639 = arith.constant 0 : index
    %c0_640 = arith.constant 0 : index
    %588 = vector.load %arg3[%c25_638, %c0_639, %c0_640] : memref<27x8x1xbf16, #tpu.memory_space<vmem>>, vector<1x8x1xbf16>
    %589 = vector.shape_cast %588 : vector<1x8x1xbf16> to vector<8x1xbf16>
    %cst_641 = arith.constant dense<0.000000e+00> : vector<8x8xf32>
    %590 = tpu.matmul %589, %587, %cst_641 {dimension_numbers = #tpu.dot_dimension_numbers<[1], [0], [0], [1], [0, 0, 1, 1], [], []>} : vector<8x1xbf16>, vector<1x8xbf16>, vector<8x8xf32> -> vector<8x8xf32>
    %591 = arith.addf %584, %590 : vector<8x8xf32>
    %c0_642 = arith.constant 0 : index
    %592 = arith.index_cast %535 : i32 to index
    %c6_643 = arith.constant 6 : index
    %c0_644 = arith.constant 0 : index
    %c1_645 = arith.constant 1 : index
    %593 = vector.load %arg2[%c0_642, %592, %c6_643, %c0_644, %c1_645] : memref<1x18x18x2x9xbf16, #tpu.memory_space<vmem>>, vector<1x1x1x1x8xbf16>
    %594 = vector.shape_cast %593 : vector<1x1x1x1x8xbf16> to vector<1x8xbf16>
    %c26_646 = arith.constant 26 : index
    %c0_647 = arith.constant 0 : index
    %c0_648 = arith.constant 0 : index
    %595 = vector.load %arg3[%c26_646, %c0_647, %c0_648] : memref<27x8x1xbf16, #tpu.memory_space<vmem>>, vector<1x8x1xbf16>
    %596 = vector.shape_cast %595 : vector<1x8x1xbf16> to vector<8x1xbf16>
    %cst_649 = arith.constant dense<0.000000e+00> : vector<8x8xf32>
    %597 = tpu.matmul %596, %594, %cst_649 {dimension_numbers = #tpu.dot_dimension_numbers<[1], [0], [0], [1], [0, 0, 1, 1], [], []>} : vector<8x1xbf16>, vector<1x8xbf16>, vector<8x8xf32> -> vector<8x8xf32>
    %598 = arith.addf %591, %597 : vector<8x8xf32>
    %599 = vector.broadcast %0 : vector<8x1xf32> to vector<8x8xf32>
    %600 = arith.addf %598, %599 : vector<8x8xf32>
    %c0_650 = arith.constant 0 : index
    %c0_651 = arith.constant 0 : index
    %c2_652 = arith.constant 2 : index
    %c0_653 = arith.constant 0 : index
    %c0_654 = arith.constant 0 : index
    %601 = vector.load %arg5[%c0_650, %c0_651, %c2_652, %c0_653, %c0_654] : memref<1x1x8x8x8xf32, #tpu.memory_space<vmem>>, vector<1x1x1x8x8xf32>
    %602 = vector.shape_cast %601 : vector<1x1x1x8x8xf32> to vector<8x8xf32>
    %603 = vector.shape_cast %600 : vector<8x8xf32> to vector<1x1x1x8x8xf32>
    tpu.vector_store %arg5[%c0_650, %c0_651, %c2_652, %c0_653, %c0_654], %603 {strides = array<i32>} : memref<1x1x8x8x8xf32, #tpu.memory_space<vmem>>, vector<1x1x1x8x8xf32>,
    %cst_655 = arith.constant 0.000000e+00 : f32
    %604 = vector.broadcast %cst_655 : f32 to vector<8x8xf32>
    %c2_i32_656 = arith.constant 2 : i32
    %605 = arith.muli %arg1, %c2_i32_656 : i32
    %c0_i32_657 = arith.constant 0 : i32
    %606 = arith.addi %605, %c0_i32_657 : i32
    %c0_658 = arith.constant 0 : index
    %607 = arith.index_cast %606 : i32 to index
    %c6_659 = arith.constant 6 : index
    %c0_660 = arith.constant 0 : index
    %c0_661 = arith.constant 0 : index
    %608 = vector.load %arg2[%c0_658, %607, %c6_659, %c0_660, %c0_661] : memref<1x18x18x2x9xbf16, #tpu.memory_space<vmem>>, vector<1x1x1x1x8xbf16>
    %609 = vector.shape_cast %608 : vector<1x1x1x1x8xbf16> to vector<1x8xbf16>
    %c0_662 = arith.constant 0 : index
    %c0_663 = arith.constant 0 : index
    %c0_664 = arith.constant 0 : index
    %610 = vector.load %arg3[%c0_662, %c0_663, %c0_664] : memref<27x8x1xbf16, #tpu.memory_space<vmem>>, vector<1x8x1xbf16>
    %611 = vector.shape_cast %610 : vector<1x8x1xbf16> to vector<8x1xbf16>
    %cst_665 = arith.constant dense<0.000000e+00> : vector<8x8xf32>
    %612 = tpu.matmul %611, %609, %cst_665 {dimension_numbers = #tpu.dot_dimension_numbers<[1], [0], [0], [1], [0, 0, 1, 1], [], []>} : vector<8x1xbf16>, vector<1x8xbf16>, vector<8x8xf32> -> vector<8x8xf32>
    %613 = arith.addf %604, %612 : vector<8x8xf32>
    %c0_666 = arith.constant 0 : index
    %614 = arith.index_cast %606 : i32 to index
    %c6_667 = arith.constant 6 : index
    %c1_668 = arith.constant 1 : index
    %c0_669 = arith.constant 0 : index
    %615 = vector.load %arg2[%c0_666, %614, %c6_667, %c1_668, %c0_669] : memref<1x18x18x2x9xbf16, #tpu.memory_space<vmem>>, vector<1x1x1x1x8xbf16>
    %616 = vector.shape_cast %615 : vector<1x1x1x1x8xbf16> to vector<1x8xbf16>
    %c1_670 = arith.constant 1 : index
    %c0_671 = arith.constant 0 : index
    %c0_672 = arith.constant 0 : index
    %617 = vector.load %arg3[%c1_670, %c0_671, %c0_672] : memref<27x8x1xbf16, #tpu.memory_space<vmem>>, vector<1x8x1xbf16>
    %618 = vector.shape_cast %617 : vector<1x8x1xbf16> to vector<8x1xbf16>
    %cst_673 = arith.constant dense<0.000000e+00> : vector<8x8xf32>
    %619 = tpu.matmul %618, %616, %cst_673 {dimension_numbers = #tpu.dot_dimension_numbers<[1], [0], [0], [1], [0, 0, 1, 1], [], []>} : vector<8x1xbf16>, vector<1x8xbf16>, vector<8x8xf32> -> vector<8x8xf32>
    %620 = arith.addf %613, %619 : vector<8x8xf32>
    %c0_674 = arith.constant 0 : index
    %621 = arith.index_cast %606 : i32 to index
    %c6_675 = arith.constant 6 : index
    %c0_676 = arith.constant 0 : index
    %c1_677 = arith.constant 1 : index
    %622 = vector.load %arg2[%c0_674, %621, %c6_675, %c0_676, %c1_677] : memref<1x18x18x2x9xbf16, #tpu.memory_space<vmem>>, vector<1x1x1x1x8xbf16>
    %623 = vector.shape_cast %622 : vector<1x1x1x1x8xbf16> to vector<1x8xbf16>
    %c2_678 = arith.constant 2 : index
    %c0_679 = arith.constant 0 : index
    %c0_680 = arith.constant 0 : index
    %624 = vector.load %arg3[%c2_678, %c0_679, %c0_680] : memref<27x8x1xbf16, #tpu.memory_space<vmem>>, vector<1x8x1xbf16>
    %625 = vector.shape_cast %624 : vector<1x8x1xbf16> to vector<8x1xbf16>
    %cst_681 = arith.constant dense<0.000000e+00> : vector<8x8xf32>
    %626 = tpu.matmul %625, %623, %cst_681 {dimension_numbers = #tpu.dot_dimension_numbers<[1], [0], [0], [1], [0, 0, 1, 1], [], []>} : vector<8x1xbf16>, vector<1x8xbf16>, vector<8x8xf32> -> vector<8x8xf32>
    %627 = arith.addf %620, %626 : vector<8x8xf32>
    %c0_682 = arith.constant 0 : index
    %628 = arith.index_cast %606 : i32 to index
    %c7_683 = arith.constant 7 : index
    %c0_684 = arith.constant 0 : index
    %c0_685 = arith.constant 0 : index
    %629 = vector.load %arg2[%c0_682, %628, %c7_683, %c0_684, %c0_685] : memref<1x18x18x2x9xbf16, #tpu.memory_space<vmem>>, vector<1x1x1x1x8xbf16>
    %630 = vector.shape_cast %629 : vector<1x1x1x1x8xbf16> to vector<1x8xbf16>
    %c3_686 = arith.constant 3 : index
    %c0_687 = arith.constant 0 : index
    %c0_688 = arith.constant 0 : index
    %631 = vector.load %arg3[%c3_686, %c0_687, %c0_688] : memref<27x8x1xbf16, #tpu.memory_space<vmem>>, vector<1x8x1xbf16>
    %632 = vector.shape_cast %631 : vector<1x8x1xbf16> to vector<8x1xbf16>
    %cst_689 = arith.constant dense<0.000000e+00> : vector<8x8xf32>
    %633 = tpu.matmul %632, %630, %cst_689 {dimension_numbers = #tpu.dot_dimension_numbers<[1], [0], [0], [1], [0, 0, 1, 1], [], []>} : vector<8x1xbf16>, vector<1x8xbf16>, vector<8x8xf32> -> vector<8x8xf32>
    %634 = arith.addf %627, %633 : vector<8x8xf32>
    %c0_690 = arith.constant 0 : index
    %635 = arith.index_cast %606 : i32 to index
    %c7_691 = arith.constant 7 : index
    %c1_692 = arith.constant 1 : index
    %c0_693 = arith.constant 0 : index
    %636 = vector.load %arg2[%c0_690, %635, %c7_691, %c1_692, %c0_693] : memref<1x18x18x2x9xbf16, #tpu.memory_space<vmem>>, vector<1x1x1x1x8xbf16>
    %637 = vector.shape_cast %636 : vector<1x1x1x1x8xbf16> to vector<1x8xbf16>
    %c4_694 = arith.constant 4 : index
    %c0_695 = arith.constant 0 : index
    %c0_696 = arith.constant 0 : index
    %638 = vector.load %arg3[%c4_694, %c0_695, %c0_696] : memref<27x8x1xbf16, #tpu.memory_space<vmem>>, vector<1x8x1xbf16>
    %639 = vector.shape_cast %638 : vector<1x8x1xbf16> to vector<8x1xbf16>
    %cst_697 = arith.constant dense<0.000000e+00> : vector<8x8xf32>
    %640 = tpu.matmul %639, %637, %cst_697 {dimension_numbers = #tpu.dot_dimension_numbers<[1], [0], [0], [1], [0, 0, 1, 1], [], []>} : vector<8x1xbf16>, vector<1x8xbf16>, vector<8x8xf32> -> vector<8x8xf32>
    %641 = arith.addf %634, %640 : vector<8x8xf32>
    %c0_698 = arith.constant 0 : index
    %642 = arith.index_cast %606 : i32 to index
    %c7_699 = arith.constant 7 : index
    %c0_700 = arith.constant 0 : index
    %c1_701 = arith.constant 1 : index
    %643 = vector.load %arg2[%c0_698, %642, %c7_699, %c0_700, %c1_701] : memref<1x18x18x2x9xbf16, #tpu.memory_space<vmem>>, vector<1x1x1x1x8xbf16>
    %644 = vector.shape_cast %643 : vector<1x1x1x1x8xbf16> to vector<1x8xbf16>
    %c5_702 = arith.constant 5 : index
    %c0_703 = arith.constant 0 : index
    %c0_704 = arith.constant 0 : index
    %645 = vector.load %arg3[%c5_702, %c0_703, %c0_704] : memref<27x8x1xbf16, #tpu.memory_space<vmem>>, vector<1x8x1xbf16>
    %646 = vector.shape_cast %645 : vector<1x8x1xbf16> to vector<8x1xbf16>
    %cst_705 = arith.constant dense<0.000000e+00> : vector<8x8xf32>
    %647 = tpu.matmul %646, %644, %cst_705 {dimension_numbers = #tpu.dot_dimension_numbers<[1], [0], [0], [1], [0, 0, 1, 1], [], []>} : vector<8x1xbf16>, vector<1x8xbf16>, vector<8x8xf32> -> vector<8x8xf32>
    %648 = arith.addf %641, %647 : vector<8x8xf32>
    %c0_706 = arith.constant 0 : index
    %649 = arith.index_cast %606 : i32 to index
    %c8_707 = arith.constant 8 : index
    %c0_708 = arith.constant 0 : index
    %c0_709 = arith.constant 0 : index
    %650 = vector.load %arg2[%c0_706, %649, %c8_707, %c0_708, %c0_709] : memref<1x18x18x2x9xbf16, #tpu.memory_space<vmem>>, vector<1x1x1x1x8xbf16>
    %651 = vector.shape_cast %650 : vector<1x1x1x1x8xbf16> to vector<1x8xbf16>
    %c6_710 = arith.constant 6 : index
    %c0_711 = arith.constant 0 : index
    %c0_712 = arith.constant 0 : index
    %652 = vector.load %arg3[%c6_710, %c0_711, %c0_712] : memref<27x8x1xbf16, #tpu.memory_space<vmem>>, vector<1x8x1xbf16>
    %653 = vector.shape_cast %652 : vector<1x8x1xbf16> to vector<8x1xbf16>
    %cst_713 = arith.constant dense<0.000000e+00> : vector<8x8xf32>
    %654 = tpu.matmul %653, %651, %cst_713 {dimension_numbers = #tpu.dot_dimension_numbers<[1], [0], [0], [1], [0, 0, 1, 1], [], []>} : vector<8x1xbf16>, vector<1x8xbf16>, vector<8x8xf32> -> vector<8x8xf32>
    %655 = arith.addf %648, %654 : vector<8x8xf32>
    %c0_714 = arith.constant 0 : index
    %656 = arith.index_cast %606 : i32 to index
    %c8_715 = arith.constant 8 : index
    %c1_716 = arith.constant 1 : index
    %c0_717 = arith.constant 0 : index
    %657 = vector.load %arg2[%c0_714, %656, %c8_715, %c1_716, %c0_717] : memref<1x18x18x2x9xbf16, #tpu.memory_space<vmem>>, vector<1x1x1x1x8xbf16>
    %658 = vector.shape_cast %657 : vector<1x1x1x1x8xbf16> to vector<1x8xbf16>
    %c7_718 = arith.constant 7 : index
    %c0_719 = arith.constant 0 : index
    %c0_720 = arith.constant 0 : index
    %659 = vector.load %arg3[%c7_718, %c0_719, %c0_720] : memref<27x8x1xbf16, #tpu.memory_space<vmem>>, vector<1x8x1xbf16>
    %660 = vector.shape_cast %659 : vector<1x8x1xbf16> to vector<8x1xbf16>
    %cst_721 = arith.constant dense<0.000000e+00> : vector<8x8xf32>
    %661 = tpu.matmul %660, %658, %cst_721 {dimension_numbers = #tpu.dot_dimension_numbers<[1], [0], [0], [1], [0, 0, 1, 1], [], []>} : vector<8x1xbf16>, vector<1x8xbf16>, vector<8x8xf32> -> vector<8x8xf32>
    %662 = arith.addf %655, %661 : vector<8x8xf32>
    %c0_722 = arith.constant 0 : index
    %663 = arith.index_cast %606 : i32 to index
    %c8_723 = arith.constant 8 : index
    %c0_724 = arith.constant 0 : index
    %c1_725 = arith.constant 1 : index
    %664 = vector.load %arg2[%c0_722, %663, %c8_723, %c0_724, %c1_725] : memref<1x18x18x2x9xbf16, #tpu.memory_space<vmem>>, vector<1x1x1x1x8xbf16>
    %665 = vector.shape_cast %664 : vector<1x1x1x1x8xbf16> to vector<1x8xbf16>
    %c8_726 = arith.constant 8 : index
    %c0_727 = arith.constant 0 : index
    %c0_728 = arith.constant 0 : index
    %666 = vector.load %arg3[%c8_726, %c0_727, %c0_728] : memref<27x8x1xbf16, #tpu.memory_space<vmem>>, vector<1x8x1xbf16>
    %667 = vector.shape_cast %666 : vector<1x8x1xbf16> to vector<8x1xbf16>
    %cst_729 = arith.constant dense<0.000000e+00> : vector<8x8xf32>
    %668 = tpu.matmul %667, %665, %cst_729 {dimension_numbers = #tpu.dot_dimension_numbers<[1], [0], [0], [1], [0, 0, 1, 1], [], []>} : vector<8x1xbf16>, vector<1x8xbf16>, vector<8x8xf32> -> vector<8x8xf32>
    %669 = arith.addf %662, %668 : vector<8x8xf32>
    %c2_i32_730 = arith.constant 2 : i32
    %670 = arith.muli %arg1, %c2_i32_730 : i32
    %c1_i32_731 = arith.constant 1 : i32
    %671 = arith.addi %670, %c1_i32_731 : i32
    %c0_732 = arith.constant 0 : index
    %672 = arith.index_cast %671 : i32 to index
    %c6_733 = arith.constant 6 : index
    %c0_734 = arith.constant 0 : index
    %c0_735 = arith.constant 0 : index
    %673 = vector.load %arg2[%c0_732, %672, %c6_733, %c0_734, %c0_735] : memref<1x18x18x2x9xbf16, #tpu.memory_space<vmem>>, vector<1x1x1x1x8xbf16>
    %674 = vector.shape_cast %673 : vector<1x1x1x1x8xbf16> to vector<1x8xbf16>
    %c9_736 = arith.constant 9 : index
    %c0_737 = arith.constant 0 : index
    %c0_738 = arith.constant 0 : index
    %675 = vector.load %arg3[%c9_736, %c0_737, %c0_738] : memref<27x8x1xbf16, #tpu.memory_space<vmem>>, vector<1x8x1xbf16>
    %676 = vector.shape_cast %675 : vector<1x8x1xbf16> to vector<8x1xbf16>
    %cst_739 = arith.constant dense<0.000000e+00> : vector<8x8xf32>
    %677 = tpu.matmul %676, %674, %cst_739 {dimension_numbers = #tpu.dot_dimension_numbers<[1], [0], [0], [1], [0, 0, 1, 1], [], []>} : vector<8x1xbf16>, vector<1x8xbf16>, vector<8x8xf32> -> vector<8x8xf32>
    %678 = arith.addf %669, %677 : vector<8x8xf32>
    %c0_740 = arith.constant 0 : index
    %679 = arith.index_cast %671 : i32 to index
    %c6_741 = arith.constant 6 : index
    %c1_742 = arith.constant 1 : index
    %c0_743 = arith.constant 0 : index
    %680 = vector.load %arg2[%c0_740, %679, %c6_741, %c1_742, %c0_743] : memref<1x18x18x2x9xbf16, #tpu.memory_space<vmem>>, vector<1x1x1x1x8xbf16>
    %681 = vector.shape_cast %680 : vector<1x1x1x1x8xbf16> to vector<1x8xbf16>
    %c10_744 = arith.constant 10 : index
    %c0_745 = arith.constant 0 : index
    %c0_746 = arith.constant 0 : index
    %682 = vector.load %arg3[%c10_744, %c0_745, %c0_746] : memref<27x8x1xbf16, #tpu.memory_space<vmem>>, vector<1x8x1xbf16>
    %683 = vector.shape_cast %682 : vector<1x8x1xbf16> to vector<8x1xbf16>
    %cst_747 = arith.constant dense<0.000000e+00> : vector<8x8xf32>
    %684 = tpu.matmul %683, %681, %cst_747 {dimension_numbers = #tpu.dot_dimension_numbers<[1], [0], [0], [1], [0, 0, 1, 1], [], []>} : vector<8x1xbf16>, vector<1x8xbf16>, vector<8x8xf32> -> vector<8x8xf32>
    %685 = arith.addf %678, %684 : vector<8x8xf32>
    %c0_748 = arith.constant 0 : index
    %686 = arith.index_cast %671 : i32 to index
    %c6_749 = arith.constant 6 : index
    %c0_750 = arith.constant 0 : index
    %c1_751 = arith.constant 1 : index
    %687 = vector.load %arg2[%c0_748, %686, %c6_749, %c0_750, %c1_751] : memref<1x18x18x2x9xbf16, #tpu.memory_space<vmem>>, vector<1x1x1x1x8xbf16>
    %688 = vector.shape_cast %687 : vector<1x1x1x1x8xbf16> to vector<1x8xbf16>
    %c11_752 = arith.constant 11 : index
    %c0_753 = arith.constant 0 : index
    %c0_754 = arith.constant 0 : index
    %689 = vector.load %arg3[%c11_752, %c0_753, %c0_754] : memref<27x8x1xbf16, #tpu.memory_space<vmem>>, vector<1x8x1xbf16>
    %690 = vector.shape_cast %689 : vector<1x8x1xbf16> to vector<8x1xbf16>
    %cst_755 = arith.constant dense<0.000000e+00> : vector<8x8xf32>
    %691 = tpu.matmul %690, %688, %cst_755 {dimension_numbers = #tpu.dot_dimension_numbers<[1], [0], [0], [1], [0, 0, 1, 1], [], []>} : vector<8x1xbf16>, vector<1x8xbf16>, vector<8x8xf32> -> vector<8x8xf32>
    %692 = arith.addf %685, %691 : vector<8x8xf32>
    %c0_756 = arith.constant 0 : index
    %693 = arith.index_cast %671 : i32 to index
    %c7_757 = arith.constant 7 : index
    %c0_758 = arith.constant 0 : index
    %c0_759 = arith.constant 0 : index
    %694 = vector.load %arg2[%c0_756, %693, %c7_757, %c0_758, %c0_759] : memref<1x18x18x2x9xbf16, #tpu.memory_space<vmem>>, vector<1x1x1x1x8xbf16>
    %695 = vector.shape_cast %694 : vector<1x1x1x1x8xbf16> to vector<1x8xbf16>
    %c12_760 = arith.constant 12 : index
    %c0_761 = arith.constant 0 : index
    %c0_762 = arith.constant 0 : index
    %696 = vector.load %arg3[%c12_760, %c0_761, %c0_762] : memref<27x8x1xbf16, #tpu.memory_space<vmem>>, vector<1x8x1xbf16>
    %697 = vector.shape_cast %696 : vector<1x8x1xbf16> to vector<8x1xbf16>
    %cst_763 = arith.constant dense<0.000000e+00> : vector<8x8xf32>
    %698 = tpu.matmul %697, %695, %cst_763 {dimension_numbers = #tpu.dot_dimension_numbers<[1], [0], [0], [1], [0, 0, 1, 1], [], []>} : vector<8x1xbf16>, vector<1x8xbf16>, vector<8x8xf32> -> vector<8x8xf32>
    %699 = arith.addf %692, %698 : vector<8x8xf32>
    %c0_764 = arith.constant 0 : index
    %700 = arith.index_cast %671 : i32 to index
    %c7_765 = arith.constant 7 : index
    %c1_766 = arith.constant 1 : index
    %c0_767 = arith.constant 0 : index
    %701 = vector.load %arg2[%c0_764, %700, %c7_765, %c1_766, %c0_767] : memref<1x18x18x2x9xbf16, #tpu.memory_space<vmem>>, vector<1x1x1x1x8xbf16>
    %702 = vector.shape_cast %701 : vector<1x1x1x1x8xbf16> to vector<1x8xbf16>
    %c13_768 = arith.constant 13 : index
    %c0_769 = arith.constant 0 : index
    %c0_770 = arith.constant 0 : index
    %703 = vector.load %arg3[%c13_768, %c0_769, %c0_770] : memref<27x8x1xbf16, #tpu.memory_space<vmem>>, vector<1x8x1xbf16>
    %704 = vector.shape_cast %703 : vector<1x8x1xbf16> to vector<8x1xbf16>
    %cst_771 = arith.constant dense<0.000000e+00> : vector<8x8xf32>
    %705 = tpu.matmul %704, %702, %cst_771 {dimension_numbers = #tpu.dot_dimension_numbers<[1], [0], [0], [1], [0, 0, 1, 1], [], []>} : vector<8x1xbf16>, vector<1x8xbf16>, vector<8x8xf32> -> vector<8x8xf32>
    %706 = arith.addf %699, %705 : vector<8x8xf32>
    %c0_772 = arith.constant 0 : index
    %707 = arith.index_cast %671 : i32 to index
    %c7_773 = arith.constant 7 : index
    %c0_774 = arith.constant 0 : index
    %c1_775 = arith.constant 1 : index
    %708 = vector.load %arg2[%c0_772, %707, %c7_773, %c0_774, %c1_775] : memref<1x18x18x2x9xbf16, #tpu.memory_space<vmem>>, vector<1x1x1x1x8xbf16>
    %709 = vector.shape_cast %708 : vector<1x1x1x1x8xbf16> to vector<1x8xbf16>
    %c14_776 = arith.constant 14 : index
    %c0_777 = arith.constant 0 : index
    %c0_778 = arith.constant 0 : index
    %710 = vector.load %arg3[%c14_776, %c0_777, %c0_778] : memref<27x8x1xbf16, #tpu.memory_space<vmem>>, vector<1x8x1xbf16>
    %711 = vector.shape_cast %710 : vector<1x8x1xbf16> to vector<8x1xbf16>
    %cst_779 = arith.constant dense<0.000000e+00> : vector<8x8xf32>
    %712 = tpu.matmul %711, %709, %cst_779 {dimension_numbers = #tpu.dot_dimension_numbers<[1], [0], [0], [1], [0, 0, 1, 1], [], []>} : vector<8x1xbf16>, vector<1x8xbf16>, vector<8x8xf32> -> vector<8x8xf32>
    %713 = arith.addf %706, %712 : vector<8x8xf32>
    %c0_780 = arith.constant 0 : index
    %714 = arith.index_cast %671 : i32 to index
    %c8_781 = arith.constant 8 : index
    %c0_782 = arith.constant 0 : index
    %c0_783 = arith.constant 0 : index
    %715 = vector.load %arg2[%c0_780, %714, %c8_781, %c0_782, %c0_783] : memref<1x18x18x2x9xbf16, #tpu.memory_space<vmem>>, vector<1x1x1x1x8xbf16>
    %716 = vector.shape_cast %715 : vector<1x1x1x1x8xbf16> to vector<1x8xbf16>
    %c15_784 = arith.constant 15 : index
    %c0_785 = arith.constant 0 : index
    %c0_786 = arith.constant 0 : index
    %717 = vector.load %arg3[%c15_784, %c0_785, %c0_786] : memref<27x8x1xbf16, #tpu.memory_space<vmem>>, vector<1x8x1xbf16>
    %718 = vector.shape_cast %717 : vector<1x8x1xbf16> to vector<8x1xbf16>
    %cst_787 = arith.constant dense<0.000000e+00> : vector<8x8xf32>
    %719 = tpu.matmul %718, %716, %cst_787 {dimension_numbers = #tpu.dot_dimension_numbers<[1], [0], [0], [1], [0, 0, 1, 1], [], []>} : vector<8x1xbf16>, vector<1x8xbf16>, vector<8x8xf32> -> vector<8x8xf32>
    %720 = arith.addf %713, %719 : vector<8x8xf32>
    %c0_788 = arith.constant 0 : index
    %721 = arith.index_cast %671 : i32 to index
    %c8_789 = arith.constant 8 : index
    %c1_790 = arith.constant 1 : index
    %c0_791 = arith.constant 0 : index
    %722 = vector.load %arg2[%c0_788, %721, %c8_789, %c1_790, %c0_791] : memref<1x18x18x2x9xbf16, #tpu.memory_space<vmem>>, vector<1x1x1x1x8xbf16>
    %723 = vector.shape_cast %722 : vector<1x1x1x1x8xbf16> to vector<1x8xbf16>
    %c16_792 = arith.constant 16 : index
    %c0_793 = arith.constant 0 : index
    %c0_794 = arith.constant 0 : index
    %724 = vector.load %arg3[%c16_792, %c0_793, %c0_794] : memref<27x8x1xbf16, #tpu.memory_space<vmem>>, vector<1x8x1xbf16>
    %725 = vector.shape_cast %724 : vector<1x8x1xbf16> to vector<8x1xbf16>
    %cst_795 = arith.constant dense<0.000000e+00> : vector<8x8xf32>
    %726 = tpu.matmul %725, %723, %cst_795 {dimension_numbers = #tpu.dot_dimension_numbers<[1], [0], [0], [1], [0, 0, 1, 1], [], []>} : vector<8x1xbf16>, vector<1x8xbf16>, vector<8x8xf32> -> vector<8x8xf32>
    %727 = arith.addf %720, %726 : vector<8x8xf32>
    %c0_796 = arith.constant 0 : index
    %728 = arith.index_cast %671 : i32 to index
    %c8_797 = arith.constant 8 : index
    %c0_798 = arith.constant 0 : index
    %c1_799 = arith.constant 1 : index
    %729 = vector.load %arg2[%c0_796, %728, %c8_797, %c0_798, %c1_799] : memref<1x18x18x2x9xbf16, #tpu.memory_space<vmem>>, vector<1x1x1x1x8xbf16>
    %730 = vector.shape_cast %729 : vector<1x1x1x1x8xbf16> to vector<1x8xbf16>
    %c17_800 = arith.constant 17 : index
    %c0_801 = arith.constant 0 : index
    %c0_802 = arith.constant 0 : index
    %731 = vector.load %arg3[%c17_800, %c0_801, %c0_802] : memref<27x8x1xbf16, #tpu.memory_space<vmem>>, vector<1x8x1xbf16>
    %732 = vector.shape_cast %731 : vector<1x8x1xbf16> to vector<8x1xbf16>
    %cst_803 = arith.constant dense<0.000000e+00> : vector<8x8xf32>
    %733 = tpu.matmul %732, %730, %cst_803 {dimension_numbers = #tpu.dot_dimension_numbers<[1], [0], [0], [1], [0, 0, 1, 1], [], []>} : vector<8x1xbf16>, vector<1x8xbf16>, vector<8x8xf32> -> vector<8x8xf32>
    %734 = arith.addf %727, %733 : vector<8x8xf32>
    %c2_i32_804 = arith.constant 2 : i32
    %735 = arith.muli %arg1, %c2_i32_804 : i32
    %c2_i32_805 = arith.constant 2 : i32
    %736 = arith.addi %735, %c2_i32_805 : i32
    %c0_806 = arith.constant 0 : index
    %737 = arith.index_cast %736 : i32 to index
    %c6_807 = arith.constant 6 : index
    %c0_808 = arith.constant 0 : index
    %c0_809 = arith.constant 0 : index
    %738 = vector.load %arg2[%c0_806, %737, %c6_807, %c0_808, %c0_809] : memref<1x18x18x2x9xbf16, #tpu.memory_space<vmem>>, vector<1x1x1x1x8xbf16>
    %739 = vector.shape_cast %738 : vector<1x1x1x1x8xbf16> to vector<1x8xbf16>
    %c18_810 = arith.constant 18 : index
    %c0_811 = arith.constant 0 : index
    %c0_812 = arith.constant 0 : index
    %740 = vector.load %arg3[%c18_810, %c0_811, %c0_812] : memref<27x8x1xbf16, #tpu.memory_space<vmem>>, vector<1x8x1xbf16>
    %741 = vector.shape_cast %740 : vector<1x8x1xbf16> to vector<8x1xbf16>
    %cst_813 = arith.constant dense<0.000000e+00> : vector<8x8xf32>
    %742 = tpu.matmul %741, %739, %cst_813 {dimension_numbers = #tpu.dot_dimension_numbers<[1], [0], [0], [1], [0, 0, 1, 1], [], []>} : vector<8x1xbf16>, vector<1x8xbf16>, vector<8x8xf32> -> vector<8x8xf32>
    %743 = arith.addf %734, %742 : vector<8x8xf32>
    %c0_814 = arith.constant 0 : index
    %744 = arith.index_cast %736 : i32 to index
    %c6_815 = arith.constant 6 : index
    %c1_816 = arith.constant 1 : index
    %c0_817 = arith.constant 0 : index
    %745 = vector.load %arg2[%c0_814, %744, %c6_815, %c1_816, %c0_817] : memref<1x18x18x2x9xbf16, #tpu.memory_space<vmem>>, vector<1x1x1x1x8xbf16>
    %746 = vector.shape_cast %745 : vector<1x1x1x1x8xbf16> to vector<1x8xbf16>
    %c19_818 = arith.constant 19 : index
    %c0_819 = arith.constant 0 : index
    %c0_820 = arith.constant 0 : index
    %747 = vector.load %arg3[%c19_818, %c0_819, %c0_820] : memref<27x8x1xbf16, #tpu.memory_space<vmem>>, vector<1x8x1xbf16>
    %748 = vector.shape_cast %747 : vector<1x8x1xbf16> to vector<8x1xbf16>
    %cst_821 = arith.constant dense<0.000000e+00> : vector<8x8xf32>
    %749 = tpu.matmul %748, %746, %cst_821 {dimension_numbers = #tpu.dot_dimension_numbers<[1], [0], [0], [1], [0, 0, 1, 1], [], []>} : vector<8x1xbf16>, vector<1x8xbf16>, vector<8x8xf32> -> vector<8x8xf32>
    %750 = arith.addf %743, %749 : vector<8x8xf32>
    %c0_822 = arith.constant 0 : index
    %751 = arith.index_cast %736 : i32 to index
    %c6_823 = arith.constant 6 : index
    %c0_824 = arith.constant 0 : index
    %c1_825 = arith.constant 1 : index
    %752 = vector.load %arg2[%c0_822, %751, %c6_823, %c0_824, %c1_825] : memref<1x18x18x2x9xbf16, #tpu.memory_space<vmem>>, vector<1x1x1x1x8xbf16>
    %753 = vector.shape_cast %752 : vector<1x1x1x1x8xbf16> to vector<1x8xbf16>
    %c20_826 = arith.constant 20 : index
    %c0_827 = arith.constant 0 : index
    %c0_828 = arith.constant 0 : index
    %754 = vector.load %arg3[%c20_826, %c0_827, %c0_828] : memref<27x8x1xbf16, #tpu.memory_space<vmem>>, vector<1x8x1xbf16>
    %755 = vector.shape_cast %754 : vector<1x8x1xbf16> to vector<8x1xbf16>
    %cst_829 = arith.constant dense<0.000000e+00> : vector<8x8xf32>
    %756 = tpu.matmul %755, %753, %cst_829 {dimension_numbers = #tpu.dot_dimension_numbers<[1], [0], [0], [1], [0, 0, 1, 1], [], []>} : vector<8x1xbf16>, vector<1x8xbf16>, vector<8x8xf32> -> vector<8x8xf32>
    %757 = arith.addf %750, %756 : vector<8x8xf32>
    %c0_830 = arith.constant 0 : index
    %758 = arith.index_cast %736 : i32 to index
    %c7_831 = arith.constant 7 : index
    %c0_832 = arith.constant 0 : index
    %c0_833 = arith.constant 0 : index
    %759 = vector.load %arg2[%c0_830, %758, %c7_831, %c0_832, %c0_833] : memref<1x18x18x2x9xbf16, #tpu.memory_space<vmem>>, vector<1x1x1x1x8xbf16>
    %760 = vector.shape_cast %759 : vector<1x1x1x1x8xbf16> to vector<1x8xbf16>
    %c21_834 = arith.constant 21 : index
    %c0_835 = arith.constant 0 : index
    %c0_836 = arith.constant 0 : index
    %761 = vector.load %arg3[%c21_834, %c0_835, %c0_836] : memref<27x8x1xbf16, #tpu.memory_space<vmem>>, vector<1x8x1xbf16>
    %762 = vector.shape_cast %761 : vector<1x8x1xbf16> to vector<8x1xbf16>
    %cst_837 = arith.constant dense<0.000000e+00> : vector<8x8xf32>
    %763 = tpu.matmul %762, %760, %cst_837 {dimension_numbers = #tpu.dot_dimension_numbers<[1], [0], [0], [1], [0, 0, 1, 1], [], []>} : vector<8x1xbf16>, vector<1x8xbf16>, vector<8x8xf32> -> vector<8x8xf32>
    %764 = arith.addf %757, %763 : vector<8x8xf32>
    %c0_838 = arith.constant 0 : index
    %765 = arith.index_cast %736 : i32 to index
    %c7_839 = arith.constant 7 : index
    %c1_840 = arith.constant 1 : index
    %c0_841 = arith.constant 0 : index
    %766 = vector.load %arg2[%c0_838, %765, %c7_839, %c1_840, %c0_841] : memref<1x18x18x2x9xbf16, #tpu.memory_space<vmem>>, vector<1x1x1x1x8xbf16>
    %767 = vector.shape_cast %766 : vector<1x1x1x1x8xbf16> to vector<1x8xbf16>
    %c22_842 = arith.constant 22 : index
    %c0_843 = arith.constant 0 : index
    %c0_844 = arith.constant 0 : index
    %768 = vector.load %arg3[%c22_842, %c0_843, %c0_844] : memref<27x8x1xbf16, #tpu.memory_space<vmem>>, vector<1x8x1xbf16>
    %769 = vector.shape_cast %768 : vector<1x8x1xbf16> to vector<8x1xbf16>
    %cst_845 = arith.constant dense<0.000000e+00> : vector<8x8xf32>
    %770 = tpu.matmul %769, %767, %cst_845 {dimension_numbers = #tpu.dot_dimension_numbers<[1], [0], [0], [1], [0, 0, 1, 1], [], []>} : vector<8x1xbf16>, vector<1x8xbf16>, vector<8x8xf32> -> vector<8x8xf32>
    %771 = arith.addf %764, %770 : vector<8x8xf32>
    %c0_846 = arith.constant 0 : index
    %772 = arith.index_cast %736 : i32 to index
    %c7_847 = arith.constant 7 : index
    %c0_848 = arith.constant 0 : index
    %c1_849 = arith.constant 1 : index
    %773 = vector.load %arg2[%c0_846, %772, %c7_847, %c0_848, %c1_849] : memref<1x18x18x2x9xbf16, #tpu.memory_space<vmem>>, vector<1x1x1x1x8xbf16>
    %774 = vector.shape_cast %773 : vector<1x1x1x1x8xbf16> to vector<1x8xbf16>
    %c23_850 = arith.constant 23 : index
    %c0_851 = arith.constant 0 : index
    %c0_852 = arith.constant 0 : index
    %775 = vector.load %arg3[%c23_850, %c0_851, %c0_852] : memref<27x8x1xbf16, #tpu.memory_space<vmem>>, vector<1x8x1xbf16>
    %776 = vector.shape_cast %775 : vector<1x8x1xbf16> to vector<8x1xbf16>
    %cst_853 = arith.constant dense<0.000000e+00> : vector<8x8xf32>
    %777 = tpu.matmul %776, %774, %cst_853 {dimension_numbers = #tpu.dot_dimension_numbers<[1], [0], [0], [1], [0, 0, 1, 1], [], []>} : vector<8x1xbf16>, vector<1x8xbf16>, vector<8x8xf32> -> vector<8x8xf32>
    %778 = arith.addf %771, %777 : vector<8x8xf32>
    %c0_854 = arith.constant 0 : index
    %779 = arith.index_cast %736 : i32 to index
    %c8_855 = arith.constant 8 : index
    %c0_856 = arith.constant 0 : index
    %c0_857 = arith.constant 0 : index
    %780 = vector.load %arg2[%c0_854, %779, %c8_855, %c0_856, %c0_857] : memref<1x18x18x2x9xbf16, #tpu.memory_space<vmem>>, vector<1x1x1x1x8xbf16>
    %781 = vector.shape_cast %780 : vector<1x1x1x1x8xbf16> to vector<1x8xbf16>
    %c24_858 = arith.constant 24 : index
    %c0_859 = arith.constant 0 : index
    %c0_860 = arith.constant 0 : index
    %782 = vector.load %arg3[%c24_858, %c0_859, %c0_860] : memref<27x8x1xbf16, #tpu.memory_space<vmem>>, vector<1x8x1xbf16>
    %783 = vector.shape_cast %782 : vector<1x8x1xbf16> to vector<8x1xbf16>
    %cst_861 = arith.constant dense<0.000000e+00> : vector<8x8xf32>
    %784 = tpu.matmul %783, %781, %cst_861 {dimension_numbers = #tpu.dot_dimension_numbers<[1], [0], [0], [1], [0, 0, 1, 1], [], []>} : vector<8x1xbf16>, vector<1x8xbf16>, vector<8x8xf32> -> vector<8x8xf32>
    %785 = arith.addf %778, %784 : vector<8x8xf32>
    %c0_862 = arith.constant 0 : index
    %786 = arith.index_cast %736 : i32 to index
    %c8_863 = arith.constant 8 : index
    %c1_864 = arith.constant 1 : index
    %c0_865 = arith.constant 0 : index
    %787 = vector.load %arg2[%c0_862, %786, %c8_863, %c1_864, %c0_865] : memref<1x18x18x2x9xbf16, #tpu.memory_space<vmem>>, vector<1x1x1x1x8xbf16>
    %788 = vector.shape_cast %787 : vector<1x1x1x1x8xbf16> to vector<1x8xbf16>
    %c25_866 = arith.constant 25 : index
    %c0_867 = arith.constant 0 : index
    %c0_868 = arith.constant 0 : index
    %789 = vector.load %arg3[%c25_866, %c0_867, %c0_868] : memref<27x8x1xbf16, #tpu.memory_space<vmem>>, vector<1x8x1xbf16>
    %790 = vector.shape_cast %789 : vector<1x8x1xbf16> to vector<8x1xbf16>
    %cst_869 = arith.constant dense<0.000000e+00> : vector<8x8xf32>
    %791 = tpu.matmul %790, %788, %cst_869 {dimension_numbers = #tpu.dot_dimension_numbers<[1], [0], [0], [1], [0, 0, 1, 1], [], []>} : vector<8x1xbf16>, vector<1x8xbf16>, vector<8x8xf32> -> vector<8x8xf32>
    %792 = arith.addf %785, %791 : vector<8x8xf32>
    %c0_870 = arith.constant 0 : index
    %793 = arith.index_cast %736 : i32 to index
    %c8_871 = arith.constant 8 : index
    %c0_872 = arith.constant 0 : index
    %c1_873 = arith.constant 1 : index
    %794 = vector.load %arg2[%c0_870, %793, %c8_871, %c0_872, %c1_873] : memref<1x18x18x2x9xbf16, #tpu.memory_space<vmem>>, vector<1x1x1x1x8xbf16>
    %795 = vector.shape_cast %794 : vector<1x1x1x1x8xbf16> to vector<1x8xbf16>
    %c26_874 = arith.constant 26 : index
    %c0_875 = arith.constant 0 : index
    %c0_876 = arith.constant 0 : index
    %796 = vector.load %arg3[%c26_874, %c0_875, %c0_876] : memref<27x8x1xbf16, #tpu.memory_space<vmem>>, vector<1x8x1xbf16>
    %797 = vector.shape_cast %796 : vector<1x8x1xbf16> to vector<8x1xbf16>
    %cst_877 = arith.constant dense<0.000000e+00> : vector<8x8xf32>
    %798 = tpu.matmul %797, %795, %cst_877 {dimension_numbers = #tpu.dot_dimension_numbers<[1], [0], [0], [1], [0, 0, 1, 1], [], []>} : vector<8x1xbf16>, vector<1x8xbf16>, vector<8x8xf32> -> vector<8x8xf32>
    %799 = arith.addf %792, %798 : vector<8x8xf32>
    %800 = vector.broadcast %0 : vector<8x1xf32> to vector<8x8xf32>
    %801 = arith.addf %799, %800 : vector<8x8xf32>
    %c0_878 = arith.constant 0 : index
    %c0_879 = arith.constant 0 : index
    %c3_880 = arith.constant 3 : index
    %c0_881 = arith.constant 0 : index
    %c0_882 = arith.constant 0 : index
    %802 = vector.load %arg5[%c0_878, %c0_879, %c3_880, %c0_881, %c0_882] : memref<1x1x8x8x8xf32, #tpu.memory_space<vmem>>, vector<1x1x1x8x8xf32>
    %803 = vector.shape_cast %802 : vector<1x1x1x8x8xf32> to vector<8x8xf32>
    %804 = vector.shape_cast %801 : vector<8x8xf32> to vector<1x1x1x8x8xf32>
    tpu.vector_store %arg5[%c0_878, %c0_879, %c3_880, %c0_881, %c0_882], %804 {strides = array<i32>} : memref<1x1x8x8x8xf32, #tpu.memory_space<vmem>>, vector<1x1x1x8x8xf32>,
    %cst_883 = arith.constant 0.000000e+00 : f32
    %805 = vector.broadcast %cst_883 : f32 to vector<8x8xf32>
    %c2_i32_884 = arith.constant 2 : i32
    %806 = arith.muli %arg1, %c2_i32_884 : i32
    %c0_i32_885 = arith.constant 0 : i32
    %807 = arith.addi %806, %c0_i32_885 : i32
    %c0_886 = arith.constant 0 : index
    %808 = arith.index_cast %807 : i32 to index
    %c8_887 = arith.constant 8 : index
    %c0_888 = arith.constant 0 : index
    %c0_889 = arith.constant 0 : index
    %809 = vector.load %arg2[%c0_886, %808, %c8_887, %c0_888, %c0_889] : memref<1x18x18x2x9xbf16, #tpu.memory_space<vmem>>, vector<1x1x1x1x8xbf16>
    %810 = vector.shape_cast %809 : vector<1x1x1x1x8xbf16> to vector<1x8xbf16>
    %c0_890 = arith.constant 0 : index
    %c0_891 = arith.constant 0 : index
    %c0_892 = arith.constant 0 : index
    %811 = vector.load %arg3[%c0_890, %c0_891, %c0_892] : memref<27x8x1xbf16, #tpu.memory_space<vmem>>, vector<1x8x1xbf16>
    %812 = vector.shape_cast %811 : vector<1x8x1xbf16> to vector<8x1xbf16>
    %cst_893 = arith.constant dense<0.000000e+00> : vector<8x8xf32>
    %813 = tpu.matmul %812, %810, %cst_893 {dimension_numbers = #tpu.dot_dimension_numbers<[1], [0], [0], [1], [0, 0, 1, 1], [], []>} : vector<8x1xbf16>, vector<1x8xbf16>, vector<8x8xf32> -> vector<8x8xf32>
    %814 = arith.addf %805, %813 : vector<8x8xf32>
    %c0_894 = arith.constant 0 : index
    %815 = arith.index_cast %807 : i32 to index
    %c8_895 = arith.constant 8 : index
    %c1_896 = arith.constant 1 : index
    %c0_897 = arith.constant 0 : index
    %816 = vector.load %arg2[%c0_894, %815, %c8_895, %c1_896, %c0_897] : memref<1x18x18x2x9xbf16, #tpu.memory_space<vmem>>, vector<1x1x1x1x8xbf16>
    %817 = vector.shape_cast %816 : vector<1x1x1x1x8xbf16> to vector<1x8xbf16>
    %c1_898 = arith.constant 1 : index
    %c0_899 = arith.constant 0 : index
    %c0_900 = arith.constant 0 : index
    %818 = vector.load %arg3[%c1_898, %c0_899, %c0_900] : memref<27x8x1xbf16, #tpu.memory_space<vmem>>, vector<1x8x1xbf16>
    %819 = vector.shape_cast %818 : vector<1x8x1xbf16> to vector<8x1xbf16>
    %cst_901 = arith.constant dense<0.000000e+00> : vector<8x8xf32>
    %820 = tpu.matmul %819, %817, %cst_901 {dimension_numbers = #tpu.dot_dimension_numbers<[1], [0], [0], [1], [0, 0, 1, 1], [], []>} : vector<8x1xbf16>, vector<1x8xbf16>, vector<8x8xf32> -> vector<8x8xf32>
    %821 = arith.addf %814, %820 : vector<8x8xf32>
    %c0_902 = arith.constant 0 : index
    %822 = arith.index_cast %807 : i32 to index
    %c8_903 = arith.constant 8 : index
    %c0_904 = arith.constant 0 : index
    %c1_905 = arith.constant 1 : index
    %823 = vector.load %arg2[%c0_902, %822, %c8_903, %c0_904, %c1_905] : memref<1x18x18x2x9xbf16, #tpu.memory_space<vmem>>, vector<1x1x1x1x8xbf16>
    %824 = vector.shape_cast %823 : vector<1x1x1x1x8xbf16> to vector<1x8xbf16>
    %c2_906 = arith.constant 2 : index
    %c0_907 = arith.constant 0 : index
    %c0_908 = arith.constant 0 : index
    %825 = vector.load %arg3[%c2_906, %c0_907, %c0_908] : memref<27x8x1xbf16, #tpu.memory_space<vmem>>, vector<1x8x1xbf16>
    %826 = vector.shape_cast %825 : vector<1x8x1xbf16> to vector<8x1xbf16>
    %cst_909 = arith.constant dense<0.000000e+00> : vector<8x8xf32>
    %827 = tpu.matmul %826, %824, %cst_909 {dimension_numbers = #tpu.dot_dimension_numbers<[1], [0], [0], [1], [0, 0, 1, 1], [], []>} : vector<8x1xbf16>, vector<1x8xbf16>, vector<8x8xf32> -> vector<8x8xf32>
    %828 = arith.addf %821, %827 : vector<8x8xf32>
    %c0_910 = arith.constant 0 : index
    %829 = arith.index_cast %807 : i32 to index
    %c9_911 = arith.constant 9 : index
    %c0_912 = arith.constant 0 : index
    %c0_913 = arith.constant 0 : index
    %830 = vector.load %arg2[%c0_910, %829, %c9_911, %c0_912, %c0_913] : memref<1x18x18x2x9xbf16, #tpu.memory_space<vmem>>, vector<1x1x1x1x8xbf16>
    %831 = vector.shape_cast %830 : vector<1x1x1x1x8xbf16> to vector<1x8xbf16>
    %c3_914 = arith.constant 3 : index
    %c0_915 = arith.constant 0 : index
    %c0_916 = arith.constant 0 : index
    %832 = vector.load %arg3[%c3_914, %c0_915, %c0_916] : memref<27x8x1xbf16, #tpu.memory_space<vmem>>, vector<1x8x1xbf16>
    %833 = vector.shape_cast %832 : vector<1x8x1xbf16> to vector<8x1xbf16>
    %cst_917 = arith.constant dense<0.000000e+00> : vector<8x8xf32>
    %834 = tpu.matmul %833, %831, %cst_917 {dimension_numbers = #tpu.dot_dimension_numbers<[1], [0], [0], [1], [0, 0, 1, 1], [], []>} : vector<8x1xbf16>, vector<1x8xbf16>, vector<8x8xf32> -> vector<8x8xf32>
    %835 = arith.addf %828, %834 : vector<8x8xf32>
    %c0_918 = arith.constant 0 : index
    %836 = arith.index_cast %807 : i32 to index
    %c9_919 = arith.constant 9 : index
    %c1_920 = arith.constant 1 : index
    %c0_921 = arith.constant 0 : index
    %837 = vector.load %arg2[%c0_918, %836, %c9_919, %c1_920, %c0_921] : memref<1x18x18x2x9xbf16, #tpu.memory_space<vmem>>, vector<1x1x1x1x8xbf16>
    %838 = vector.shape_cast %837 : vector<1x1x1x1x8xbf16> to vector<1x8xbf16>
    %c4_922 = arith.constant 4 : index
    %c0_923 = arith.constant 0 : index
    %c0_924 = arith.constant 0 : index
    %839 = vector.load %arg3[%c4_922, %c0_923, %c0_924] : memref<27x8x1xbf16, #tpu.memory_space<vmem>>, vector<1x8x1xbf16>
    %840 = vector.shape_cast %839 : vector<1x8x1xbf16> to vector<8x1xbf16>
    %cst_925 = arith.constant dense<0.000000e+00> : vector<8x8xf32>
    %841 = tpu.matmul %840, %838, %cst_925 {dimension_numbers = #tpu.dot_dimension_numbers<[1], [0], [0], [1], [0, 0, 1, 1], [], []>} : vector<8x1xbf16>, vector<1x8xbf16>, vector<8x8xf32> -> vector<8x8xf32>
    %842 = arith.addf %835, %841 : vector<8x8xf32>
    %c0_926 = arith.constant 0 : index
    %843 = arith.index_cast %807 : i32 to index
    %c9_927 = arith.constant 9 : index
    %c0_928 = arith.constant 0 : index
    %c1_929 = arith.constant 1 : index
    %844 = vector.load %arg2[%c0_926, %843, %c9_927, %c0_928, %c1_929] : memref<1x18x18x2x9xbf16, #tpu.memory_space<vmem>>, vector<1x1x1x1x8xbf16>
    %845 = vector.shape_cast %844 : vector<1x1x1x1x8xbf16> to vector<1x8xbf16>
    %c5_930 = arith.constant 5 : index
    %c0_931 = arith.constant 0 : index
    %c0_932 = arith.constant 0 : index
    %846 = vector.load %arg3[%c5_930, %c0_931, %c0_932] : memref<27x8x1xbf16, #tpu.memory_space<vmem>>, vector<1x8x1xbf16>
    %847 = vector.shape_cast %846 : vector<1x8x1xbf16> to vector<8x1xbf16>
    %cst_933 = arith.constant dense<0.000000e+00> : vector<8x8xf32>
    %848 = tpu.matmul %847, %845, %cst_933 {dimension_numbers = #tpu.dot_dimension_numbers<[1], [0], [0], [1], [0, 0, 1, 1], [], []>} : vector<8x1xbf16>, vector<1x8xbf16>, vector<8x8xf32> -> vector<8x8xf32>
    %849 = arith.addf %842, %848 : vector<8x8xf32>
    %c0_934 = arith.constant 0 : index
    %850 = arith.index_cast %807 : i32 to index
    %c10_935 = arith.constant 10 : index
    %c0_936 = arith.constant 0 : index
    %c0_937 = arith.constant 0 : index
    %851 = vector.load %arg2[%c0_934, %850, %c10_935, %c0_936, %c0_937] : memref<1x18x18x2x9xbf16, #tpu.memory_space<vmem>>, vector<1x1x1x1x8xbf16>
    %852 = vector.shape_cast %851 : vector<1x1x1x1x8xbf16> to vector<1x8xbf16>
    %c6_938 = arith.constant 6 : index
    %c0_939 = arith.constant 0 : index
    %c0_940 = arith.constant 0 : index
    %853 = vector.load %arg3[%c6_938, %c0_939, %c0_940] : memref<27x8x1xbf16, #tpu.memory_space<vmem>>, vector<1x8x1xbf16>
    %854 = vector.shape_cast %853 : vector<1x8x1xbf16> to vector<8x1xbf16>
    %cst_941 = arith.constant dense<0.000000e+00> : vector<8x8xf32>
    %855 = tpu.matmul %854, %852, %cst_941 {dimension_numbers = #tpu.dot_dimension_numbers<[1], [0], [0], [1], [0, 0, 1, 1], [], []>} : vector<8x1xbf16>, vector<1x8xbf16>, vector<8x8xf32> -> vector<8x8xf32>
    %856 = arith.addf %849, %855 : vector<8x8xf32>
    %c0_942 = arith.constant 0 : index
    %857 = arith.index_cast %807 : i32 to index
    %c10_943 = arith.constant 10 : index
    %c1_944 = arith.constant 1 : index
    %c0_945 = arith.constant 0 : index
    %858 = vector.load %arg2[%c0_942, %857, %c10_943, %c1_944, %c0_945] : memref<1x18x18x2x9xbf16, #tpu.memory_space<vmem>>, vector<1x1x1x1x8xbf16>
    %859 = vector.shape_cast %858 : vector<1x1x1x1x8xbf16> to vector<1x8xbf16>
    %c7_946 = arith.constant 7 : index
    %c0_947 = arith.constant 0 : index
    %c0_948 = arith.constant 0 : index
    %860 = vector.load %arg3[%c7_946, %c0_947, %c0_948] : memref<27x8x1xbf16, #tpu.memory_space<vmem>>, vector<1x8x1xbf16>
    %861 = vector.shape_cast %860 : vector<1x8x1xbf16> to vector<8x1xbf16>
    %cst_949 = arith.constant dense<0.000000e+00> : vector<8x8xf32>
    %862 = tpu.matmul %861, %859, %cst_949 {dimension_numbers = #tpu.dot_dimension_numbers<[1], [0], [0], [1], [0, 0, 1, 1], [], []>} : vector<8x1xbf16>, vector<1x8xbf16>, vector<8x8xf32> -> vector<8x8xf32>
    %863 = arith.addf %856, %862 : vector<8x8xf32>
    %c0_950 = arith.constant 0 : index
    %864 = arith.index_cast %807 : i32 to index
    %c10_951 = arith.constant 10 : index
    %c0_952 = arith.constant 0 : index
    %c1_953 = arith.constant 1 : index
    %865 = vector.load %arg2[%c0_950, %864, %c10_951, %c0_952, %c1_953] : memref<1x18x18x2x9xbf16, #tpu.memory_space<vmem>>, vector<1x1x1x1x8xbf16>
    %866 = vector.shape_cast %865 : vector<1x1x1x1x8xbf16> to vector<1x8xbf16>
    %c8_954 = arith.constant 8 : index
    %c0_955 = arith.constant 0 : index
    %c0_956 = arith.constant 0 : index
    %867 = vector.load %arg3[%c8_954, %c0_955, %c0_956] : memref<27x8x1xbf16, #tpu.memory_space<vmem>>, vector<1x8x1xbf16>
    %868 = vector.shape_cast %867 : vector<1x8x1xbf16> to vector<8x1xbf16>
    %cst_957 = arith.constant dense<0.000000e+00> : vector<8x8xf32>
    %869 = tpu.matmul %868, %866, %cst_957 {dimension_numbers = #tpu.dot_dimension_numbers<[1], [0], [0], [1], [0, 0, 1, 1], [], []>} : vector<8x1xbf16>, vector<1x8xbf16>, vector<8x8xf32> -> vector<8x8xf32>
    %870 = arith.addf %863, %869 : vector<8x8xf32>
    %c2_i32_958 = arith.constant 2 : i32
    %871 = arith.muli %arg1, %c2_i32_958 : i32
    %c1_i32_959 = arith.constant 1 : i32
    %872 = arith.addi %871, %c1_i32_959 : i32
    %c0_960 = arith.constant 0 : index
    %873 = arith.index_cast %872 : i32 to index
    %c8_961 = arith.constant 8 : index
    %c0_962 = arith.constant 0 : index
    %c0_963 = arith.constant 0 : index
    %874 = vector.load %arg2[%c0_960, %873, %c8_961, %c0_962, %c0_963] : memref<1x18x18x2x9xbf16, #tpu.memory_space<vmem>>, vector<1x1x1x1x8xbf16>
    %875 = vector.shape_cast %874 : vector<1x1x1x1x8xbf16> to vector<1x8xbf16>
    %c9_964 = arith.constant 9 : index
    %c0_965 = arith.constant 0 : index
    %c0_966 = arith.constant 0 : index
    %876 = vector.load %arg3[%c9_964, %c0_965, %c0_966] : memref<27x8x1xbf16, #tpu.memory_space<vmem>>, vector<1x8x1xbf16>
    %877 = vector.shape_cast %876 : vector<1x8x1xbf16> to vector<8x1xbf16>
    %cst_967 = arith.constant dense<0.000000e+00> : vector<8x8xf32>
    %878 = tpu.matmul %877, %875, %cst_967 {dimension_numbers = #tpu.dot_dimension_numbers<[1], [0], [0], [1], [0, 0, 1, 1], [], []>} : vector<8x1xbf16>, vector<1x8xbf16>, vector<8x8xf32> -> vector<8x8xf32>
    %879 = arith.addf %870, %878 : vector<8x8xf32>
    %c0_968 = arith.constant 0 : index
    %880 = arith.index_cast %872 : i32 to index
    %c8_969 = arith.constant 8 : index
    %c1_970 = arith.constant 1 : index
    %c0_971 = arith.constant 0 : index
    %881 = vector.load %arg2[%c0_968, %880, %c8_969, %c1_970, %c0_971] : memref<1x18x18x2x9xbf16, #tpu.memory_space<vmem>>, vector<1x1x1x1x8xbf16>
    %882 = vector.shape_cast %881 : vector<1x1x1x1x8xbf16> to vector<1x8xbf16>
    %c10_972 = arith.constant 10 : index
    %c0_973 = arith.constant 0 : index
    %c0_974 = arith.constant 0 : index
    %883 = vector.load %arg3[%c10_972, %c0_973, %c0_974] : memref<27x8x1xbf16, #tpu.memory_space<vmem>>, vector<1x8x1xbf16>
    %884 = vector.shape_cast %883 : vector<1x8x1xbf16> to vector<8x1xbf16>
    %cst_975 = arith.constant dense<0.000000e+00> : vector<8x8xf32>
    %885 = tpu.matmul %884, %882, %cst_975 {dimension_numbers = #tpu.dot_dimension_numbers<[1], [0], [0], [1], [0, 0, 1, 1], [], []>} : vector<8x1xbf16>, vector<1x8xbf16>, vector<8x8xf32> -> vector<8x8xf32>
    %886 = arith.addf %879, %885 : vector<8x8xf32>
    %c0_976 = arith.constant 0 : index
    %887 = arith.index_cast %872 : i32 to index
    %c8_977 = arith.constant 8 : index
    %c0_978 = arith.constant 0 : index
    %c1_979 = arith.constant 1 : index
    %888 = vector.load %arg2[%c0_976, %887, %c8_977, %c0_978, %c1_979] : memref<1x18x18x2x9xbf16, #tpu.memory_space<vmem>>, vector<1x1x1x1x8xbf16>
    %889 = vector.shape_cast %888 : vector<1x1x1x1x8xbf16> to vector<1x8xbf16>
    %c11_980 = arith.constant 11 : index
    %c0_981 = arith.constant 0 : index
    %c0_982 = arith.constant 0 : index
    %890 = vector.load %arg3[%c11_980, %c0_981, %c0_982] : memref<27x8x1xbf16, #tpu.memory_space<vmem>>, vector<1x8x1xbf16>
    %891 = vector.shape_cast %890 : vector<1x8x1xbf16> to vector<8x1xbf16>
    %cst_983 = arith.constant dense<0.000000e+00> : vector<8x8xf32>
    %892 = tpu.matmul %891, %889, %cst_983 {dimension_numbers = #tpu.dot_dimension_numbers<[1], [0], [0], [1], [0, 0, 1, 1], [], []>} : vector<8x1xbf16>, vector<1x8xbf16>, vector<8x8xf32> -> vector<8x8xf32>
    %893 = arith.addf %886, %892 : vector<8x8xf32>
    %c0_984 = arith.constant 0 : index
    %894 = arith.index_cast %872 : i32 to index
    %c9_985 = arith.constant 9 : index
    %c0_986 = arith.constant 0 : index
    %c0_987 = arith.constant 0 : index
    %895 = vector.load %arg2[%c0_984, %894, %c9_985, %c0_986, %c0_987] : memref<1x18x18x2x9xbf16, #tpu.memory_space<vmem>>, vector<1x1x1x1x8xbf16>
    %896 = vector.shape_cast %895 : vector<1x1x1x1x8xbf16> to vector<1x8xbf16>
    %c12_988 = arith.constant 12 : index
    %c0_989 = arith.constant 0 : index
    %c0_990 = arith.constant 0 : index
    %897 = vector.load %arg3[%c12_988, %c0_989, %c0_990] : memref<27x8x1xbf16, #tpu.memory_space<vmem>>, vector<1x8x1xbf16>
    %898 = vector.shape_cast %897 : vector<1x8x1xbf16> to vector<8x1xbf16>
    %cst_991 = arith.constant dense<0.000000e+00> : vector<8x8xf32>
    %899 = tpu.matmul %898, %896, %cst_991 {dimension_numbers = #tpu.dot_dimension_numbers<[1], [0], [0], [1], [0, 0, 1, 1], [], []>} : vector<8x1xbf16>, vector<1x8xbf16>, vector<8x8xf32> -> vector<8x8xf32>
    %900 = arith.addf %893, %899 : vector<8x8xf32>
    %c0_992 = arith.constant 0 : index
    %901 = arith.index_cast %872 : i32 to index
    %c9_993 = arith.constant 9 : index
    %c1_994 = arith.constant 1 : index
    %c0_995 = arith.constant 0 : index
    %902 = vector.load %arg2[%c0_992, %901, %c9_993, %c1_994, %c0_995] : memref<1x18x18x2x9xbf16, #tpu.memory_space<vmem>>, vector<1x1x1x1x8xbf16>
    %903 = vector.shape_cast %902 : vector<1x1x1x1x8xbf16> to vector<1x8xbf16>
    %c13_996 = arith.constant 13 : index
    %c0_997 = arith.constant 0 : index
    %c0_998 = arith.constant 0 : index
    %904 = vector.load %arg3[%c13_996, %c0_997, %c0_998] : memref<27x8x1xbf16, #tpu.memory_space<vmem>>, vector<1x8x1xbf16>
    %905 = vector.shape_cast %904 : vector<1x8x1xbf16> to vector<8x1xbf16>
    %cst_999 = arith.constant dense<0.000000e+00> : vector<8x8xf32>
    %906 = tpu.matmul %905, %903, %cst_999 {dimension_numbers = #tpu.dot_dimension_numbers<[1], [0], [0], [1], [0, 0, 1, 1], [], []>} : vector<8x1xbf16>, vector<1x8xbf16>, vector<8x8xf32> -> vector<8x8xf32>
    %907 = arith.addf %900, %906 : vector<8x8xf32>
    %c0_1000 = arith.constant 0 : index
    %908 = arith.index_cast %872 : i32 to index
    %c9_1001 = arith.constant 9 : index
    %c0_1002 = arith.constant 0 : index
    %c1_1003 = arith.constant 1 : index
    %909 = vector.load %arg2[%c0_1000, %908, %c9_1001, %c0_1002, %c1_1003] : memref<1x18x18x2x9xbf16, #tpu.memory_space<vmem>>, vector<1x1x1x1x8xbf16>
    %910 = vector.shape_cast %909 : vector<1x1x1x1x8xbf16> to vector<1x8xbf16>
    %c14_1004 = arith.constant 14 : index
    %c0_1005 = arith.constant 0 : index
    %c0_1006 = arith.constant 0 : index
    %911 = vector.load %arg3[%c14_1004, %c0_1005, %c0_1006] : memref<27x8x1xbf16, #tpu.memory_space<vmem>>, vector<1x8x1xbf16>
    %912 = vector.shape_cast %911 : vector<1x8x1xbf16> to vector<8x1xbf16>
    %cst_1007 = arith.constant dense<0.000000e+00> : vector<8x8xf32>
    %913 = tpu.matmul %912, %910, %cst_1007 {dimension_numbers = #tpu.dot_dimension_numbers<[1], [0], [0], [1], [0, 0, 1, 1], [], []>} : vector<8x1xbf16>, vector<1x8xbf16>, vector<8x8xf32> -> vector<8x8xf32>
    %914 = arith.addf %907, %913 : vector<8x8xf32>
    %c0_1008 = arith.constant 0 : index
    %915 = arith.index_cast %872 : i32 to index
    %c10_1009 = arith.constant 10 : index
    %c0_1010 = arith.constant 0 : index
    %c0_1011 = arith.constant 0 : index
    %916 = vector.load %arg2[%c0_1008, %915, %c10_1009, %c0_1010, %c0_1011] : memref<1x18x18x2x9xbf16, #tpu.memory_space<vmem>>, vector<1x1x1x1x8xbf16>
    %917 = vector.shape_cast %916 : vector<1x1x1x1x8xbf16> to vector<1x8xbf16>
    %c15_1012 = arith.constant 15 : index
    %c0_1013 = arith.constant 0 : index
    %c0_1014 = arith.constant 0 : index
    %918 = vector.load %arg3[%c15_1012, %c0_1013, %c0_1014] : memref<27x8x1xbf16, #tpu.memory_space<vmem>>, vector<1x8x1xbf16>
    %919 = vector.shape_cast %918 : vector<1x8x1xbf16> to vector<8x1xbf16>
    %cst_1015 = arith.constant dense<0.000000e+00> : vector<8x8xf32>
    %920 = tpu.matmul %919, %917, %cst_1015 {dimension_numbers = #tpu.dot_dimension_numbers<[1], [0], [0], [1], [0, 0, 1, 1], [], []>} : vector<8x1xbf16>, vector<1x8xbf16>, vector<8x8xf32> -> vector<8x8xf32>
    %921 = arith.addf %914, %920 : vector<8x8xf32>
    %c0_1016 = arith.constant 0 : index
    %922 = arith.index_cast %872 : i32 to index
    %c10_1017 = arith.constant 10 : index
    %c1_1018 = arith.constant 1 : index
    %c0_1019 = arith.constant 0 : index
    %923 = vector.load %arg2[%c0_1016, %922, %c10_1017, %c1_1018, %c0_1019] : memref<1x18x18x2x9xbf16, #tpu.memory_space<vmem>>, vector<1x1x1x1x8xbf16>
    %924 = vector.shape_cast %923 : vector<1x1x1x1x8xbf16> to vector<1x8xbf16>
    %c16_1020 = arith.constant 16 : index
    %c0_1021 = arith.constant 0 : index
    %c0_1022 = arith.constant 0 : index
    %925 = vector.load %arg3[%c16_1020, %c0_1021, %c0_1022] : memref<27x8x1xbf16, #tpu.memory_space<vmem>>, vector<1x8x1xbf16>
    %926 = vector.shape_cast %925 : vector<1x8x1xbf16> to vector<8x1xbf16>
    %cst_1023 = arith.constant dense<0.000000e+00> : vector<8x8xf32>
    %927 = tpu.matmul %926, %924, %cst_1023 {dimension_numbers = #tpu.dot_dimension_numbers<[1], [0], [0], [1], [0, 0, 1, 1], [], []>} : vector<8x1xbf16>, vector<1x8xbf16>, vector<8x8xf32> -> vector<8x8xf32>
    %928 = arith.addf %921, %927 : vector<8x8xf32>
    %c0_1024 = arith.constant 0 : index
    %929 = arith.index_cast %872 : i32 to index
    %c10_1025 = arith.constant 10 : index
    %c0_1026 = arith.constant 0 : index
    %c1_1027 = arith.constant 1 : index
    %930 = vector.load %arg2[%c0_1024, %929, %c10_1025, %c0_1026, %c1_1027] : memref<1x18x18x2x9xbf16, #tpu.memory_space<vmem>>, vector<1x1x1x1x8xbf16>
    %931 = vector.shape_cast %930 : vector<1x1x1x1x8xbf16> to vector<1x8xbf16>
    %c17_1028 = arith.constant 17 : index
    %c0_1029 = arith.constant 0 : index
    %c0_1030 = arith.constant 0 : index
    %932 = vector.load %arg3[%c17_1028, %c0_1029, %c0_1030] : memref<27x8x1xbf16, #tpu.memory_space<vmem>>, vector<1x8x1xbf16>
    %933 = vector.shape_cast %932 : vector<1x8x1xbf16> to vector<8x1xbf16>
    %cst_1031 = arith.constant dense<0.000000e+00> : vector<8x8xf32>
    %934 = tpu.matmul %933, %931, %cst_1031 {dimension_numbers = #tpu.dot_dimension_numbers<[1], [0], [0], [1], [0, 0, 1, 1], [], []>} : vector<8x1xbf16>, vector<1x8xbf16>, vector<8x8xf32> -> vector<8x8xf32>
    %935 = arith.addf %928, %934 : vector<8x8xf32>
    %c2_i32_1032 = arith.constant 2 : i32
    %936 = arith.muli %arg1, %c2_i32_1032 : i32
    %c2_i32_1033 = arith.constant 2 : i32
    %937 = arith.addi %936, %c2_i32_1033 : i32
    %c0_1034 = arith.constant 0 : index
    %938 = arith.index_cast %937 : i32 to index
    %c8_1035 = arith.constant 8 : index
    %c0_1036 = arith.constant 0 : index
    %c0_1037 = arith.constant 0 : index
    %939 = vector.load %arg2[%c0_1034, %938, %c8_1035, %c0_1036, %c0_1037] : memref<1x18x18x2x9xbf16, #tpu.memory_space<vmem>>, vector<1x1x1x1x8xbf16>
    %940 = vector.shape_cast %939 : vector<1x1x1x1x8xbf16> to vector<1x8xbf16>
    %c18_1038 = arith.constant 18 : index
    %c0_1039 = arith.constant 0 : index
    %c0_1040 = arith.constant 0 : index
    %941 = vector.load %arg3[%c18_1038, %c0_1039, %c0_1040] : memref<27x8x1xbf16, #tpu.memory_space<vmem>>, vector<1x8x1xbf16>
    %942 = vector.shape_cast %941 : vector<1x8x1xbf16> to vector<8x1xbf16>
    %cst_1041 = arith.constant dense<0.000000e+00> : vector<8x8xf32>
    %943 = tpu.matmul %942, %940, %cst_1041 {dimension_numbers = #tpu.dot_dimension_numbers<[1], [0], [0], [1], [0, 0, 1, 1], [], []>} : vector<8x1xbf16>, vector<1x8xbf16>, vector<8x8xf32> -> vector<8x8xf32>
    %944 = arith.addf %935, %943 : vector<8x8xf32>
    %c0_1042 = arith.constant 0 : index
    %945 = arith.index_cast %937 : i32 to index
    %c8_1043 = arith.constant 8 : index
    %c1_1044 = arith.constant 1 : index
    %c0_1045 = arith.constant 0 : index
    %946 = vector.load %arg2[%c0_1042, %945, %c8_1043, %c1_1044, %c0_1045] : memref<1x18x18x2x9xbf16, #tpu.memory_space<vmem>>, vector<1x1x1x1x8xbf16>
    %947 = vector.shape_cast %946 : vector<1x1x1x1x8xbf16> to vector<1x8xbf16>
    %c19_1046 = arith.constant 19 : index
    %c0_1047 = arith.constant 0 : index
    %c0_1048 = arith.constant 0 : index
    %948 = vector.load %arg3[%c19_1046, %c0_1047, %c0_1048] : memref<27x8x1xbf16, #tpu.memory_space<vmem>>, vector<1x8x1xbf16>
    %949 = vector.shape_cast %948 : vector<1x8x1xbf16> to vector<8x1xbf16>
    %cst_1049 = arith.constant dense<0.000000e+00> : vector<8x8xf32>
    %950 = tpu.matmul %949, %947, %cst_1049 {dimension_numbers = #tpu.dot_dimension_numbers<[1], [0], [0], [1], [0, 0, 1, 1], [], []>} : vector<8x1xbf16>, vector<1x8xbf16>, vector<8x8xf32> -> vector<8x8xf32>
    %951 = arith.addf %944, %950 : vector<8x8xf32>
    %c0_1050 = arith.constant 0 : index
    %952 = arith.index_cast %937 : i32 to index
    %c8_1051 = arith.constant 8 : index
    %c0_1052 = arith.constant 0 : index
    %c1_1053 = arith.constant 1 : index
    %953 = vector.load %arg2[%c0_1050, %952, %c8_1051, %c0_1052, %c1_1053] : memref<1x18x18x2x9xbf16, #tpu.memory_space<vmem>>, vector<1x1x1x1x8xbf16>
    %954 = vector.shape_cast %953 : vector<1x1x1x1x8xbf16> to vector<1x8xbf16>
    %c20_1054 = arith.constant 20 : index
    %c0_1055 = arith.constant 0 : index
    %c0_1056 = arith.constant 0 : index
    %955 = vector.load %arg3[%c20_1054, %c0_1055, %c0_1056] : memref<27x8x1xbf16, #tpu.memory_space<vmem>>, vector<1x8x1xbf16>
    %956 = vector.shape_cast %955 : vector<1x8x1xbf16> to vector<8x1xbf16>
    %cst_1057 = arith.constant dense<0.000000e+00> : vector<8x8xf32>
    %957 = tpu.matmul %956, %954, %cst_1057 {dimension_numbers = #tpu.dot_dimension_numbers<[1], [0], [0], [1], [0, 0, 1, 1], [], []>} : vector<8x1xbf16>, vector<1x8xbf16>, vector<8x8xf32> -> vector<8x8xf32>
    %958 = arith.addf %951, %957 : vector<8x8xf32>
    %c0_1058 = arith.constant 0 : index
    %959 = arith.index_cast %937 : i32 to index
    %c9_1059 = arith.constant 9 : index
    %c0_1060 = arith.constant 0 : index
    %c0_1061 = arith.constant 0 : index
    %960 = vector.load %arg2[%c0_1058, %959, %c9_1059, %c0_1060, %c0_1061] : memref<1x18x18x2x9xbf16, #tpu.memory_space<vmem>>, vector<1x1x1x1x8xbf16>
    %961 = vector.shape_cast %960 : vector<1x1x1x1x8xbf16> to vector<1x8xbf16>
    %c21_1062 = arith.constant 21 : index
    %c0_1063 = arith.constant 0 : index
    %c0_1064 = arith.constant 0 : index
    %962 = vector.load %arg3[%c21_1062, %c0_1063, %c0_1064] : memref<27x8x1xbf16, #tpu.memory_space<vmem>>, vector<1x8x1xbf16>
    %963 = vector.shape_cast %962 : vector<1x8x1xbf16> to vector<8x1xbf16>
    %cst_1065 = arith.constant dense<0.000000e+00> : vector<8x8xf32>
    %964 = tpu.matmul %963, %961, %cst_1065 {dimension_numbers = #tpu.dot_dimension_numbers<[1], [0], [0], [1], [0, 0, 1, 1], [], []>} : vector<8x1xbf16>, vector<1x8xbf16>, vector<8x8xf32> -> vector<8x8xf32>
    %965 = arith.addf %958, %964 : vector<8x8xf32>
    %c0_1066 = arith.constant 0 : index
    %966 = arith.index_cast %937 : i32 to index
    %c9_1067 = arith.constant 9 : index
    %c1_1068 = arith.constant 1 : index
    %c0_1069 = arith.constant 0 : index
    %967 = vector.load %arg2[%c0_1066, %966, %c9_1067, %c1_1068, %c0_1069] : memref<1x18x18x2x9xbf16, #tpu.memory_space<vmem>>, vector<1x1x1x1x8xbf16>
    %968 = vector.shape_cast %967 : vector<1x1x1x1x8xbf16> to vector<1x8xbf16>
    %c22_1070 = arith.constant 22 : index
    %c0_1071 = arith.constant 0 : index
    %c0_1072 = arith.constant 0 : index
    %969 = vector.load %arg3[%c22_1070, %c0_1071, %c0_1072] : memref<27x8x1xbf16, #tpu.memory_space<vmem>>, vector<1x8x1xbf16>
    %970 = vector.shape_cast %969 : vector<1x8x1xbf16> to vector<8x1xbf16>
    %cst_1073 = arith.constant dense<0.000000e+00> : vector<8x8xf32>
    %971 = tpu.matmul %970, %968, %cst_1073 {dimension_numbers = #tpu.dot_dimension_numbers<[1], [0], [0], [1], [0, 0, 1, 1], [], []>} : vector<8x1xbf16>, vector<1x8xbf16>, vector<8x8xf32> -> vector<8x8xf32>
    %972 = arith.addf %965, %971 : vector<8x8xf32>
    %c0_1074 = arith.constant 0 : index
    %973 = arith.index_cast %937 : i32 to index
    %c9_1075 = arith.constant 9 : index
    %c0_1076 = arith.constant 0 : index
    %c1_1077 = arith.constant 1 : index
    %974 = vector.load %arg2[%c0_1074, %973, %c9_1075, %c0_1076, %c1_1077] : memref<1x18x18x2x9xbf16, #tpu.memory_space<vmem>>, vector<1x1x1x1x8xbf16>
    %975 = vector.shape_cast %974 : vector<1x1x1x1x8xbf16> to vector<1x8xbf16>
    %c23_1078 = arith.constant 23 : index
    %c0_1079 = arith.constant 0 : index
    %c0_1080 = arith.constant 0 : index
    %976 = vector.load %arg3[%c23_1078, %c0_1079, %c0_1080] : memref<27x8x1xbf16, #tpu.memory_space<vmem>>, vector<1x8x1xbf16>
    %977 = vector.shape_cast %976 : vector<1x8x1xbf16> to vector<8x1xbf16>
    %cst_1081 = arith.constant dense<0.000000e+00> : vector<8x8xf32>
    %978 = tpu.matmul %977, %975, %cst_1081 {dimension_numbers = #tpu.dot_dimension_numbers<[1], [0], [0], [1], [0, 0, 1, 1], [], []>} : vector<8x1xbf16>, vector<1x8xbf16>, vector<8x8xf32> -> vector<8x8xf32>
    %979 = arith.addf %972, %978 : vector<8x8xf32>
    %c0_1082 = arith.constant 0 : index
    %980 = arith.index_cast %937 : i32 to index
    %c10_1083 = arith.constant 10 : index
    %c0_1084 = arith.constant 0 : index
    %c0_1085 = arith.constant 0 : index
    %981 = vector.load %arg2[%c0_1082, %980, %c10_1083, %c0_1084, %c0_1085] : memref<1x18x18x2x9xbf16, #tpu.memory_space<vmem>>, vector<1x1x1x1x8xbf16>
    %982 = vector.shape_cast %981 : vector<1x1x1x1x8xbf16> to vector<1x8xbf16>
    %c24_1086 = arith.constant 24 : index
    %c0_1087 = arith.constant 0 : index
    %c0_1088 = arith.constant 0 : index
    %983 = vector.load %arg3[%c24_1086, %c0_1087, %c0_1088] : memref<27x8x1xbf16, #tpu.memory_space<vmem>>, vector<1x8x1xbf16>
    %984 = vector.shape_cast %983 : vector<1x8x1xbf16> to vector<8x1xbf16>
    %cst_1089 = arith.constant dense<0.000000e+00> : vector<8x8xf32>
    %985 = tpu.matmul %984, %982, %cst_1089 {dimension_numbers = #tpu.dot_dimension_numbers<[1], [0], [0], [1], [0, 0, 1, 1], [], []>} : vector<8x1xbf16>, vector<1x8xbf16>, vector<8x8xf32> -> vector<8x8xf32>
    %986 = arith.addf %979, %985 : vector<8x8xf32>
    %c0_1090 = arith.constant 0 : index
    %987 = arith.index_cast %937 : i32 to index
    %c10_1091 = arith.constant 10 : index
    %c1_1092 = arith.constant 1 : index
    %c0_1093 = arith.constant 0 : index
    %988 = vector.load %arg2[%c0_1090, %987, %c10_1091, %c1_1092, %c0_1093] : memref<1x18x18x2x9xbf16, #tpu.memory_space<vmem>>, vector<1x1x1x1x8xbf16>
    %989 = vector.shape_cast %988 : vector<1x1x1x1x8xbf16> to vector<1x8xbf16>
    %c25_1094 = arith.constant 25 : index
    %c0_1095 = arith.constant 0 : index
    %c0_1096 = arith.constant 0 : index
    %990 = vector.load %arg3[%c25_1094, %c0_1095, %c0_1096] : memref<27x8x1xbf16, #tpu.memory_space<vmem>>, vector<1x8x1xbf16>
    %991 = vector.shape_cast %990 : vector<1x8x1xbf16> to vector<8x1xbf16>
    %cst_1097 = arith.constant dense<0.000000e+00> : vector<8x8xf32>
    %992 = tpu.matmul %991, %989, %cst_1097 {dimension_numbers = #tpu.dot_dimension_numbers<[1], [0], [0], [1], [0, 0, 1, 1], [], []>} : vector<8x1xbf16>, vector<1x8xbf16>, vector<8x8xf32> -> vector<8x8xf32>
    %993 = arith.addf %986, %992 : vector<8x8xf32>
    %c0_1098 = arith.constant 0 : index
    %994 = arith.index_cast %937 : i32 to index
    %c10_1099 = arith.constant 10 : index
    %c0_1100 = arith.constant 0 : index
    %c1_1101 = arith.constant 1 : index
    %995 = vector.load %arg2[%c0_1098, %994, %c10_1099, %c0_1100, %c1_1101] : memref<1x18x18x2x9xbf16, #tpu.memory_space<vmem>>, vector<1x1x1x1x8xbf16>
    %996 = vector.shape_cast %995 : vector<1x1x1x1x8xbf16> to vector<1x8xbf16>
    %c26_1102 = arith.constant 26 : index
    %c0_1103 = arith.constant 0 : index
    %c0_1104 = arith.constant 0 : index
    %997 = vector.load %arg3[%c26_1102, %c0_1103, %c0_1104] : memref<27x8x1xbf16, #tpu.memory_space<vmem>>, vector<1x8x1xbf16>
    %998 = vector.shape_cast %997 : vector<1x8x1xbf16> to vector<8x1xbf16>
    %cst_1105 = arith.constant dense<0.000000e+00> : vector<8x8xf32>
    %999 = tpu.matmul %998, %996, %cst_1105 {dimension_numbers = #tpu.dot_dimension_numbers<[1], [0], [0], [1], [0, 0, 1, 1], [], []>} : vector<8x1xbf16>, vector<1x8xbf16>, vector<8x8xf32> -> vector<8x8xf32>
    %1000 = arith.addf %993, %999 : vector<8x8xf32>
    %1001 = vector.broadcast %0 : vector<8x1xf32> to vector<8x8xf32>
    %1002 = arith.addf %1000, %1001 : vector<8x8xf32>
    %c0_1106 = arith.constant 0 : index
    %c0_1107 = arith.constant 0 : index
    %c4_1108 = arith.constant 4 : index
    %c0_1109 = arith.constant 0 : index
    %c0_1110 = arith.constant 0 : index
    %1003 = vector.load %arg5[%c0_1106, %c0_1107, %c4_1108, %c0_1109, %c0_1110] : memref<1x1x8x8x8xf32, #tpu.memory_space<vmem>>, vector<1x1x1x8x8xf32>
    %1004 = vector.shape_cast %1003 : vector<1x1x1x8x8xf32> to vector<8x8xf32>
    %1005 = vector.shape_cast %1002 : vector<8x8xf32> to vector<1x1x1x8x8xf32>
    tpu.vector_store %arg5[%c0_1106, %c0_1107, %c4_1108, %c0_1109, %c0_1110], %1005 {strides = array<i32>} : memref<1x1x8x8x8xf32, #tpu.memory_space<vmem>>, vector<1x1x1x8x8xf32>,
    %cst_1111 = arith.constant 0.000000e+00 : f32
    %1006 = vector.broadcast %cst_1111 : f32 to vector<8x8xf32>
    %c2_i32_1112 = arith.constant 2 : i32
    %1007 = arith.muli %arg1, %c2_i32_1112 : i32
    %c0_i32_1113 = arith.constant 0 : i32
    %1008 = arith.addi %1007, %c0_i32_1113 : i32
    %c0_1114 = arith.constant 0 : index
    %1009 = arith.index_cast %1008 : i32 to index
    %c10_1115 = arith.constant 10 : index
    %c0_1116 = arith.constant 0 : index
    %c0_1117 = arith.constant 0 : index
    %1010 = vector.load %arg2[%c0_1114, %1009, %c10_1115, %c0_1116, %c0_1117] : memref<1x18x18x2x9xbf16, #tpu.memory_space<vmem>>, vector<1x1x1x1x8xbf16>
    %1011 = vector.shape_cast %1010 : vector<1x1x1x1x8xbf16> to vector<1x8xbf16>
    %c0_1118 = arith.constant 0 : index
    %c0_1119 = arith.constant 0 : index
    %c0_1120 = arith.constant 0 : index
    %1012 = vector.load %arg3[%c0_1118, %c0_1119, %c0_1120] : memref<27x8x1xbf16, #tpu.memory_space<vmem>>, vector<1x8x1xbf16>
    %1013 = vector.shape_cast %1012 : vector<1x8x1xbf16> to vector<8x1xbf16>
    %cst_1121 = arith.constant dense<0.000000e+00> : vector<8x8xf32>
    %1014 = tpu.matmul %1013, %1011, %cst_1121 {dimension_numbers = #tpu.dot_dimension_numbers<[1], [0], [0], [1], [0, 0, 1, 1], [], []>} : vector<8x1xbf16>, vector<1x8xbf16>, vector<8x8xf32> -> vector<8x8xf32>
    %1015 = arith.addf %1006, %1014 : vector<8x8xf32>
    %c0_1122 = arith.constant 0 : index
    %1016 = arith.index_cast %1008 : i32 to index
    %c10_1123 = arith.constant 10 : index
    %c1_1124 = arith.constant 1 : index
    %c0_1125 = arith.constant 0 : index
    %1017 = vector.load %arg2[%c0_1122, %1016, %c10_1123, %c1_1124, %c0_1125] : memref<1x18x18x2x9xbf16, #tpu.memory_space<vmem>>, vector<1x1x1x1x8xbf16>
    %1018 = vector.shape_cast %1017 : vector<1x1x1x1x8xbf16> to vector<1x8xbf16>
    %c1_1126 = arith.constant 1 : index
    %c0_1127 = arith.constant 0 : index
    %c0_1128 = arith.constant 0 : index
    %1019 = vector.load %arg3[%c1_1126, %c0_1127, %c0_1128] : memref<27x8x1xbf16, #tpu.memory_space<vmem>>, vector<1x8x1xbf16>
    %1020 = vector.shape_cast %1019 : vector<1x8x1xbf16> to vector<8x1xbf16>
    %cst_1129 = arith.constant dense<0.000000e+00> : vector<8x8xf32>
    %1021 = tpu.matmul %1020, %1018, %cst_1129 {dimension_numbers = #tpu.dot_dimension_numbers<[1], [0], [0], [1], [0, 0, 1, 1], [], []>} : vector<8x1xbf16>, vector<1x8xbf16>, vector<8x8xf32> -> vector<8x8xf32>
    %1022 = arith.addf %1015, %1021 : vector<8x8xf32>
    %c0_1130 = arith.constant 0 : index
    %1023 = arith.index_cast %1008 : i32 to index
    %c10_1131 = arith.constant 10 : index
    %c0_1132 = arith.constant 0 : index
    %c1_1133 = arith.constant 1 : index
    %1024 = vector.load %arg2[%c0_1130, %1023, %c10_1131, %c0_1132, %c1_1133] : memref<1x18x18x2x9xbf16, #tpu.memory_space<vmem>>, vector<1x1x1x1x8xbf16>
    %1025 = vector.shape_cast %1024 : vector<1x1x1x1x8xbf16> to vector<1x8xbf16>
    %c2_1134 = arith.constant 2 : index
    %c0_1135 = arith.constant 0 : index
    %c0_1136 = arith.constant 0 : index
    %1026 = vector.load %arg3[%c2_1134, %c0_1135, %c0_1136] : memref<27x8x1xbf16, #tpu.memory_space<vmem>>, vector<1x8x1xbf16>
    %1027 = vector.shape_cast %1026 : vector<1x8x1xbf16> to vector<8x1xbf16>
    %cst_1137 = arith.constant dense<0.000000e+00> : vector<8x8xf32>
    %1028 = tpu.matmul %1027, %1025, %cst_1137 {dimension_numbers = #tpu.dot_dimension_numbers<[1], [0], [0], [1], [0, 0, 1, 1], [], []>} : vector<8x1xbf16>, vector<1x8xbf16>, vector<8x8xf32> -> vector<8x8xf32>
    %1029 = arith.addf %1022, %1028 : vector<8x8xf32>
    %c0_1138 = arith.constant 0 : index
    %1030 = arith.index_cast %1008 : i32 to index
    %c11_1139 = arith.constant 11 : index
    %c0_1140 = arith.constant 0 : index
    %c0_1141 = arith.constant 0 : index
    %1031 = vector.load %arg2[%c0_1138, %1030, %c11_1139, %c0_1140, %c0_1141] : memref<1x18x18x2x9xbf16, #tpu.memory_space<vmem>>, vector<1x1x1x1x8xbf16>
    %1032 = vector.shape_cast %1031 : vector<1x1x1x1x8xbf16> to vector<1x8xbf16>
    %c3_1142 = arith.constant 3 : index
    %c0_1143 = arith.constant 0 : index
    %c0_1144 = arith.constant 0 : index
    %1033 = vector.load %arg3[%c3_1142, %c0_1143, %c0_1144] : memref<27x8x1xbf16, #tpu.memory_space<vmem>>, vector<1x8x1xbf16>
    %1034 = vector.shape_cast %1033 : vector<1x8x1xbf16> to vector<8x1xbf16>
    %cst_1145 = arith.constant dense<0.000000e+00> : vector<8x8xf32>
    %1035 = tpu.matmul %1034, %1032, %cst_1145 {dimension_numbers = #tpu.dot_dimension_numbers<[1], [0], [0], [1], [0, 0, 1, 1], [], []>} : vector<8x1xbf16>, vector<1x8xbf16>, vector<8x8xf32> -> vector<8x8xf32>
    %1036 = arith.addf %1029, %1035 : vector<8x8xf32>
    %c0_1146 = arith.constant 0 : index
    %1037 = arith.index_cast %1008 : i32 to index
    %c11_1147 = arith.constant 11 : index
    %c1_1148 = arith.constant 1 : index
    %c0_1149 = arith.constant 0 : index
    %1038 = vector.load %arg2[%c0_1146, %1037, %c11_1147, %c1_1148, %c0_1149] : memref<1x18x18x2x9xbf16, #tpu.memory_space<vmem>>, vector<1x1x1x1x8xbf16>
    %1039 = vector.shape_cast %1038 : vector<1x1x1x1x8xbf16> to vector<1x8xbf16>
    %c4_1150 = arith.constant 4 : index
    %c0_1151 = arith.constant 0 : index
    %c0_1152 = arith.constant 0 : index
    %1040 = vector.load %arg3[%c4_1150, %c0_1151, %c0_1152] : memref<27x8x1xbf16, #tpu.memory_space<vmem>>, vector<1x8x1xbf16>
    %1041 = vector.shape_cast %1040 : vector<1x8x1xbf16> to vector<8x1xbf16>
    %cst_1153 = arith.constant dense<0.000000e+00> : vector<8x8xf32>
    %1042 = tpu.matmul %1041, %1039, %cst_1153 {dimension_numbers = #tpu.dot_dimension_numbers<[1], [0], [0], [1], [0, 0, 1, 1], [], []>} : vector<8x1xbf16>, vector<1x8xbf16>, vector<8x8xf32> -> vector<8x8xf32>
    %1043 = arith.addf %1036, %1042 : vector<8x8xf32>
    %c0_1154 = arith.constant 0 : index
    %1044 = arith.index_cast %1008 : i32 to index
    %c11_1155 = arith.constant 11 : index
    %c0_1156 = arith.constant 0 : index
    %c1_1157 = arith.constant 1 : index
    %1045 = vector.load %arg2[%c0_1154, %1044, %c11_1155, %c0_1156, %c1_1157] : memref<1x18x18x2x9xbf16, #tpu.memory_space<vmem>>, vector<1x1x1x1x8xbf16>
    %1046 = vector.shape_cast %1045 : vector<1x1x1x1x8xbf16> to vector<1x8xbf16>
    %c5_1158 = arith.constant 5 : index
    %c0_1159 = arith.constant 0 : index
    %c0_1160 = arith.constant 0 : index
    %1047 = vector.load %arg3[%c5_1158, %c0_1159, %c0_1160] : memref<27x8x1xbf16, #tpu.memory_space<vmem>>, vector<1x8x1xbf16>
    %1048 = vector.shape_cast %1047 : vector<1x8x1xbf16> to vector<8x1xbf16>
    %cst_1161 = arith.constant dense<0.000000e+00> : vector<8x8xf32>
    %1049 = tpu.matmul %1048, %1046, %cst_1161 {dimension_numbers = #tpu.dot_dimension_numbers<[1], [0], [0], [1], [0, 0, 1, 1], [], []>} : vector<8x1xbf16>, vector<1x8xbf16>, vector<8x8xf32> -> vector<8x8xf32>
    %1050 = arith.addf %1043, %1049 : vector<8x8xf32>
    %c0_1162 = arith.constant 0 : index
    %1051 = arith.index_cast %1008 : i32 to index
    %c12_1163 = arith.constant 12 : index
    %c0_1164 = arith.constant 0 : index
    %c0_1165 = arith.constant 0 : index
    %1052 = vector.load %arg2[%c0_1162, %1051, %c12_1163, %c0_1164, %c0_1165] : memref<1x18x18x2x9xbf16, #tpu.memory_space<vmem>>, vector<1x1x1x1x8xbf16>
    %1053 = vector.shape_cast %1052 : vector<1x1x1x1x8xbf16> to vector<1x8xbf16>
    %c6_1166 = arith.constant 6 : index
    %c0_1167 = arith.constant 0 : index
    %c0_1168 = arith.constant 0 : index
    %1054 = vector.load %arg3[%c6_1166, %c0_1167, %c0_1168] : memref<27x8x1xbf16, #tpu.memory_space<vmem>>, vector<1x8x1xbf16>
    %1055 = vector.shape_cast %1054 : vector<1x8x1xbf16> to vector<8x1xbf16>
    %cst_1169 = arith.constant dense<0.000000e+00> : vector<8x8xf32>
    %1056 = tpu.matmul %1055, %1053, %cst_1169 {dimension_numbers = #tpu.dot_dimension_numbers<[1], [0], [0], [1], [0, 0, 1, 1], [], []>} : vector<8x1xbf16>, vector<1x8xbf16>, vector<8x8xf32> -> vector<8x8xf32>
    %1057 = arith.addf %1050, %1056 : vector<8x8xf32>
    %c0_1170 = arith.constant 0 : index
    %1058 = arith.index_cast %1008 : i32 to index
    %c12_1171 = arith.constant 12 : index
    %c1_1172 = arith.constant 1 : index
    %c0_1173 = arith.constant 0 : index
    %1059 = vector.load %arg2[%c0_1170, %1058, %c12_1171, %c1_1172, %c0_1173] : memref<1x18x18x2x9xbf16, #tpu.memory_space<vmem>>, vector<1x1x1x1x8xbf16>
    %1060 = vector.shape_cast %1059 : vector<1x1x1x1x8xbf16> to vector<1x8xbf16>
    %c7_1174 = arith.constant 7 : index
    %c0_1175 = arith.constant 0 : index
    %c0_1176 = arith.constant 0 : index
    %1061 = vector.load %arg3[%c7_1174, %c0_1175, %c0_1176] : memref<27x8x1xbf16, #tpu.memory_space<vmem>>, vector<1x8x1xbf16>
    %1062 = vector.shape_cast %1061 : vector<1x8x1xbf16> to vector<8x1xbf16>
    %cst_1177 = arith.constant dense<0.000000e+00> : vector<8x8xf32>
    %1063 = tpu.matmul %1062, %1060, %cst_1177 {dimension_numbers = #tpu.dot_dimension_numbers<[1], [0], [0], [1], [0, 0, 1, 1], [], []>} : vector<8x1xbf16>, vector<1x8xbf16>, vector<8x8xf32> -> vector<8x8xf32>
    %1064 = arith.addf %1057, %1063 : vector<8x8xf32>
    %c0_1178 = arith.constant 0 : index
    %1065 = arith.index_cast %1008 : i32 to index
    %c12_1179 = arith.constant 12 : index
    %c0_1180 = arith.constant 0 : index
    %c1_1181 = arith.constant 1 : index
    %1066 = vector.load %arg2[%c0_1178, %1065, %c12_1179, %c0_1180, %c1_1181] : memref<1x18x18x2x9xbf16, #tpu.memory_space<vmem>>, vector<1x1x1x1x8xbf16>
    %1067 = vector.shape_cast %1066 : vector<1x1x1x1x8xbf16> to vector<1x8xbf16>
    %c8_1182 = arith.constant 8 : index
    %c0_1183 = arith.constant 0 : index
    %c0_1184 = arith.constant 0 : index
    %1068 = vector.load %arg3[%c8_1182, %c0_1183, %c0_1184] : memref<27x8x1xbf16, #tpu.memory_space<vmem>>, vector<1x8x1xbf16>
    %1069 = vector.shape_cast %1068 : vector<1x8x1xbf16> to vector<8x1xbf16>
    %cst_1185 = arith.constant dense<0.000000e+00> : vector<8x8xf32>
    %1070 = tpu.matmul %1069, %1067, %cst_1185 {dimension_numbers = #tpu.dot_dimension_numbers<[1], [0], [0], [1], [0, 0, 1, 1], [], []>} : vector<8x1xbf16>, vector<1x8xbf16>, vector<8x8xf32> -> vector<8x8xf32>
    %1071 = arith.addf %1064, %1070 : vector<8x8xf32>
    %c2_i32_1186 = arith.constant 2 : i32
    %1072 = arith.muli %arg1, %c2_i32_1186 : i32
    %c1_i32_1187 = arith.constant 1 : i32
    %1073 = arith.addi %1072, %c1_i32_1187 : i32
    %c0_1188 = arith.constant 0 : index
    %1074 = arith.index_cast %1073 : i32 to index
    %c10_1189 = arith.constant 10 : index
    %c0_1190 = arith.constant 0 : index
    %c0_1191 = arith.constant 0 : index
    %1075 = vector.load %arg2[%c0_1188, %1074, %c10_1189, %c0_1190, %c0_1191] : memref<1x18x18x2x9xbf16, #tpu.memory_space<vmem>>, vector<1x1x1x1x8xbf16>
    %1076 = vector.shape_cast %1075 : vector<1x1x1x1x8xbf16> to vector<1x8xbf16>
    %c9_1192 = arith.constant 9 : index
    %c0_1193 = arith.constant 0 : index
    %c0_1194 = arith.constant 0 : index
    %1077 = vector.load %arg3[%c9_1192, %c0_1193, %c0_1194] : memref<27x8x1xbf16, #tpu.memory_space<vmem>>, vector<1x8x1xbf16>
    %1078 = vector.shape_cast %1077 : vector<1x8x1xbf16> to vector<8x1xbf16>
    %cst_1195 = arith.constant dense<0.000000e+00> : vector<8x8xf32>
    %1079 = tpu.matmul %1078, %1076, %cst_1195 {dimension_numbers = #tpu.dot_dimension_numbers<[1], [0], [0], [1], [0, 0, 1, 1], [], []>} : vector<8x1xbf16>, vector<1x8xbf16>, vector<8x8xf32> -> vector<8x8xf32>
    %1080 = arith.addf %1071, %1079 : vector<8x8xf32>
    %c0_1196 = arith.constant 0 : index
    %1081 = arith.index_cast %1073 : i32 to index
    %c10_1197 = arith.constant 10 : index
    %c1_1198 = arith.constant 1 : index
    %c0_1199 = arith.constant 0 : index
    %1082 = vector.load %arg2[%c0_1196, %1081, %c10_1197, %c1_1198, %c0_1199] : memref<1x18x18x2x9xbf16, #tpu.memory_space<vmem>>, vector<1x1x1x1x8xbf16>
    %1083 = vector.shape_cast %1082 : vector<1x1x1x1x8xbf16> to vector<1x8xbf16>
    %c10_1200 = arith.constant 10 : index
    %c0_1201 = arith.constant 0 : index
    %c0_1202 = arith.constant 0 : index
    %1084 = vector.load %arg3[%c10_1200, %c0_1201, %c0_1202] : memref<27x8x1xbf16, #tpu.memory_space<vmem>>, vector<1x8x1xbf16>
    %1085 = vector.shape_cast %1084 : vector<1x8x1xbf16> to vector<8x1xbf16>
    %cst_1203 = arith.constant dense<0.000000e+00> : vector<8x8xf32>
    %1086 = tpu.matmul %1085, %1083, %cst_1203 {dimension_numbers = #tpu.dot_dimension_numbers<[1], [0], [0], [1], [0, 0, 1, 1], [], []>} : vector<8x1xbf16>, vector<1x8xbf16>, vector<8x8xf32> -> vector<8x8xf32>
    %1087 = arith.addf %1080, %1086 : vector<8x8xf32>
    %c0_1204 = arith.constant 0 : index
    %1088 = arith.index_cast %1073 : i32 to index
    %c10_1205 = arith.constant 10 : index
    %c0_1206 = arith.constant 0 : index
    %c1_1207 = arith.constant 1 : index
    %1089 = vector.load %arg2[%c0_1204, %1088, %c10_1205, %c0_1206, %c1_1207] : memref<1x18x18x2x9xbf16, #tpu.memory_space<vmem>>, vector<1x1x1x1x8xbf16>
    %1090 = vector.shape_cast %1089 : vector<1x1x1x1x8xbf16> to vector<1x8xbf16>
    %c11_1208 = arith.constant 11 : index
    %c0_1209 = arith.constant 0 : index
    %c0_1210 = arith.constant 0 : index
    %1091 = vector.load %arg3[%c11_1208, %c0_1209, %c0_1210] : memref<27x8x1xbf16, #tpu.memory_space<vmem>>, vector<1x8x1xbf16>
    %1092 = vector.shape_cast %1091 : vector<1x8x1xbf16> to vector<8x1xbf16>
    %cst_1211 = arith.constant dense<0.000000e+00> : vector<8x8xf32>
    %1093 = tpu.matmul %1092, %1090, %cst_1211 {dimension_numbers = #tpu.dot_dimension_numbers<[1], [0], [0], [1], [0, 0, 1, 1], [], []>} : vector<8x1xbf16>, vector<1x8xbf16>, vector<8x8xf32> -> vector<8x8xf32>
    %1094 = arith.addf %1087, %1093 : vector<8x8xf32>
    %c0_1212 = arith.constant 0 : index
    %1095 = arith.index_cast %1073 : i32 to index
    %c11_1213 = arith.constant 11 : index
    %c0_1214 = arith.constant 0 : index
    %c0_1215 = arith.constant 0 : index
    %1096 = vector.load %arg2[%c0_1212, %1095, %c11_1213, %c0_1214, %c0_1215] : memref<1x18x18x2x9xbf16, #tpu.memory_space<vmem>>, vector<1x1x1x1x8xbf16>
    %1097 = vector.shape_cast %1096 : vector<1x1x1x1x8xbf16> to vector<1x8xbf16>
    %c12_1216 = arith.constant 12 : index
    %c0_1217 = arith.constant 0 : index
    %c0_1218 = arith.constant 0 : index
    %1098 = vector.load %arg3[%c12_1216, %c0_1217, %c0_1218] : memref<27x8x1xbf16, #tpu.memory_space<vmem>>, vector<1x8x1xbf16>
    %1099 = vector.shape_cast %1098 : vector<1x8x1xbf16> to vector<8x1xbf16>
    %cst_1219 = arith.constant dense<0.000000e+00> : vector<8x8xf32>
    %1100 = tpu.matmul %1099, %1097, %cst_1219 {dimension_numbers = #tpu.dot_dimension_numbers<[1], [0], [0], [1], [0, 0, 1, 1], [], []>} : vector<8x1xbf16>, vector<1x8xbf16>, vector<8x8xf32> -> vector<8x8xf32>
    %1101 = arith.addf %1094, %1100 : vector<8x8xf32>
    %c0_1220 = arith.constant 0 : index
    %1102 = arith.index_cast %1073 : i32 to index
    %c11_1221 = arith.constant 11 : index
    %c1_1222 = arith.constant 1 : index
    %c0_1223 = arith.constant 0 : index
    %1103 = vector.load %arg2[%c0_1220, %1102, %c11_1221, %c1_1222, %c0_1223] : memref<1x18x18x2x9xbf16, #tpu.memory_space<vmem>>, vector<1x1x1x1x8xbf16>
    %1104 = vector.shape_cast %1103 : vector<1x1x1x1x8xbf16> to vector<1x8xbf16>
    %c13_1224 = arith.constant 13 : index
    %c0_1225 = arith.constant 0 : index
    %c0_1226 = arith.constant 0 : index
    %1105 = vector.load %arg3[%c13_1224, %c0_1225, %c0_1226] : memref<27x8x1xbf16, #tpu.memory_space<vmem>>, vector<1x8x1xbf16>
    %1106 = vector.shape_cast %1105 : vector<1x8x1xbf16> to vector<8x1xbf16>
    %cst_1227 = arith.constant dense<0.000000e+00> : vector<8x8xf32>
    %1107 = tpu.matmul %1106, %1104, %cst_1227 {dimension_numbers = #tpu.dot_dimension_numbers<[1], [0], [0], [1], [0, 0, 1, 1], [], []>} : vector<8x1xbf16>, vector<1x8xbf16>, vector<8x8xf32> -> vector<8x8xf32>
    %1108 = arith.addf %1101, %1107 : vector<8x8xf32>
    %c0_1228 = arith.constant 0 : index
    %1109 = arith.index_cast %1073 : i32 to index
    %c11_1229 = arith.constant 11 : index
    %c0_1230 = arith.constant 0 : index
    %c1_1231 = arith.constant 1 : index
    %1110 = vector.load %arg2[%c0_1228, %1109, %c11_1229, %c0_1230, %c1_1231] : memref<1x18x18x2x9xbf16, #tpu.memory_space<vmem>>, vector<1x1x1x1x8xbf16>
    %1111 = vector.shape_cast %1110 : vector<1x1x1x1x8xbf16> to vector<1x8xbf16>
    %c14_1232 = arith.constant 14 : index
    %c0_1233 = arith.constant 0 : index
    %c0_1234 = arith.constant 0 : index
    %1112 = vector.load %arg3[%c14_1232, %c0_1233, %c0_1234] : memref<27x8x1xbf16, #tpu.memory_space<vmem>>, vector<1x8x1xbf16>
    %1113 = vector.shape_cast %1112 : vector<1x8x1xbf16> to vector<8x1xbf16>
    %cst_1235 = arith.constant dense<0.000000e+00> : vector<8x8xf32>
    %1114 = tpu.matmul %1113, %1111, %cst_1235 {dimension_numbers = #tpu.dot_dimension_numbers<[1], [0], [0], [1], [0, 0, 1, 1], [], []>} : vector<8x1xbf16>, vector<1x8xbf16>, vector<8x8xf32> -> vector<8x8xf32>
    %1115 = arith.addf %1108, %1114 : vector<8x8xf32>
    %c0_1236 = arith.constant 0 : index
    %1116 = arith.index_cast %1073 : i32 to index
    %c12_1237 = arith.constant 12 : index
    %c0_1238 = arith.constant 0 : index
    %c0_1239 = arith.constant 0 : index
    %1117 = vector.load %arg2[%c0_1236, %1116, %c12_1237, %c0_1238, %c0_1239] : memref<1x18x18x2x9xbf16, #tpu.memory_space<vmem>>, vector<1x1x1x1x8xbf16>
    %1118 = vector.shape_cast %1117 : vector<1x1x1x1x8xbf16> to vector<1x8xbf16>
    %c15_1240 = arith.constant 15 : index
    %c0_1241 = arith.constant 0 : index
    %c0_1242 = arith.constant 0 : index
    %1119 = vector.load %arg3[%c15_1240, %c0_1241, %c0_1242] : memref<27x8x1xbf16, #tpu.memory_space<vmem>>, vector<1x8x1xbf16>
    %1120 = vector.shape_cast %1119 : vector<1x8x1xbf16> to vector<8x1xbf16>
    %cst_1243 = arith.constant dense<0.000000e+00> : vector<8x8xf32>
    %1121 = tpu.matmul %1120, %1118, %cst_1243 {dimension_numbers = #tpu.dot_dimension_numbers<[1], [0], [0], [1], [0, 0, 1, 1], [], []>} : vector<8x1xbf16>, vector<1x8xbf16>, vector<8x8xf32> -> vector<8x8xf32>
    %1122 = arith.addf %1115, %1121 : vector<8x8xf32>
    %c0_1244 = arith.constant 0 : index
    %1123 = arith.index_cast %1073 : i32 to index
    %c12_1245 = arith.constant 12 : index
    %c1_1246 = arith.constant 1 : index
    %c0_1247 = arith.constant 0 : index
    %1124 = vector.load %arg2[%c0_1244, %1123, %c12_1245, %c1_1246, %c0_1247] : memref<1x18x18x2x9xbf16, #tpu.memory_space<vmem>>, vector<1x1x1x1x8xbf16>
    %1125 = vector.shape_cast %1124 : vector<1x1x1x1x8xbf16> to vector<1x8xbf16>
    %c16_1248 = arith.constant 16 : index
    %c0_1249 = arith.constant 0 : index
    %c0_1250 = arith.constant 0 : index
    %1126 = vector.load %arg3[%c16_1248, %c0_1249, %c0_1250] : memref<27x8x1xbf16, #tpu.memory_space<vmem>>, vector<1x8x1xbf16>
    %1127 = vector.shape_cast %1126 : vector<1x8x1xbf16> to vector<8x1xbf16>
    %cst_1251 = arith.constant dense<0.000000e+00> : vector<8x8xf32>
    %1128 = tpu.matmul %1127, %1125, %cst_1251 {dimension_numbers = #tpu.dot_dimension_numbers<[1], [0], [0], [1], [0, 0, 1, 1], [], []>} : vector<8x1xbf16>, vector<1x8xbf16>, vector<8x8xf32> -> vector<8x8xf32>
    %1129 = arith.addf %1122, %1128 : vector<8x8xf32>
    %c0_1252 = arith.constant 0 : index
    %1130 = arith.index_cast %1073 : i32 to index
    %c12_1253 = arith.constant 12 : index
    %c0_1254 = arith.constant 0 : index
    %c1_1255 = arith.constant 1 : index
    %1131 = vector.load %arg2[%c0_1252, %1130, %c12_1253, %c0_1254, %c1_1255] : memref<1x18x18x2x9xbf16, #tpu.memory_space<vmem>>, vector<1x1x1x1x8xbf16>
    %1132 = vector.shape_cast %1131 : vector<1x1x1x1x8xbf16> to vector<1x8xbf16>
    %c17_1256 = arith.constant 17 : index
    %c0_1257 = arith.constant 0 : index
    %c0_1258 = arith.constant 0 : index
    %1133 = vector.load %arg3[%c17_1256, %c0_1257, %c0_1258] : memref<27x8x1xbf16, #tpu.memory_space<vmem>>, vector<1x8x1xbf16>
    %1134 = vector.shape_cast %1133 : vector<1x8x1xbf16> to vector<8x1xbf16>
    %cst_1259 = arith.constant dense<0.000000e+00> : vector<8x8xf32>
    %1135 = tpu.matmul %1134, %1132, %cst_1259 {dimension_numbers = #tpu.dot_dimension_numbers<[1], [0], [0], [1], [0, 0, 1, 1], [], []>} : vector<8x1xbf16>, vector<1x8xbf16>, vector<8x8xf32> -> vector<8x8xf32>
    %1136 = arith.addf %1129, %1135 : vector<8x8xf32>
    %c2_i32_1260 = arith.constant 2 : i32
    %1137 = arith.muli %arg1, %c2_i32_1260 : i32
    %c2_i32_1261 = arith.constant 2 : i32
    %1138 = arith.addi %1137, %c2_i32_1261 : i32
    %c0_1262 = arith.constant 0 : index
    %1139 = arith.index_cast %1138 : i32 to index
    %c10_1263 = arith.constant 10 : index
    %c0_1264 = arith.constant 0 : index
    %c0_1265 = arith.constant 0 : index
    %1140 = vector.load %arg2[%c0_1262, %1139, %c10_1263, %c0_1264, %c0_1265] : memref<1x18x18x2x9xbf16, #tpu.memory_space<vmem>>, vector<1x1x1x1x8xbf16>
    %1141 = vector.shape_cast %1140 : vector<1x1x1x1x8xbf16> to vector<1x8xbf16>
    %c18_1266 = arith.constant 18 : index
    %c0_1267 = arith.constant 0 : index
    %c0_1268 = arith.constant 0 : index
    %1142 = vector.load %arg3[%c18_1266, %c0_1267, %c0_1268] : memref<27x8x1xbf16, #tpu.memory_space<vmem>>, vector<1x8x1xbf16>
    %1143 = vector.shape_cast %1142 : vector<1x8x1xbf16> to vector<8x1xbf16>
    %cst_1269 = arith.constant dense<0.000000e+00> : vector<8x8xf32>
    %1144 = tpu.matmul %1143, %1141, %cst_1269 {dimension_numbers = #tpu.dot_dimension_numbers<[1], [0], [0], [1], [0, 0, 1, 1], [], []>} : vector<8x1xbf16>, vector<1x8xbf16>, vector<8x8xf32> -> vector<8x8xf32>
    %1145 = arith.addf %1136, %1144 : vector<8x8xf32>
    %c0_1270 = arith.constant 0 : index
    %1146 = arith.index_cast %1138 : i32 to index
    %c10_1271 = arith.constant 10 : index
    %c1_1272 = arith.constant 1 : index
    %c0_1273 = arith.constant 0 : index
    %1147 = vector.load %arg2[%c0_1270, %1146, %c10_1271, %c1_1272, %c0_1273] : memref<1x18x18x2x9xbf16, #tpu.memory_space<vmem>>, vector<1x1x1x1x8xbf16>
    %1148 = vector.shape_cast %1147 : vector<1x1x1x1x8xbf16> to vector<1x8xbf16>
    %c19_1274 = arith.constant 19 : index
    %c0_1275 = arith.constant 0 : index
    %c0_1276 = arith.constant 0 : index
    %1149 = vector.load %arg3[%c19_1274, %c0_1275, %c0_1276] : memref<27x8x1xbf16, #tpu.memory_space<vmem>>, vector<1x8x1xbf16>
    %1150 = vector.shape_cast %1149 : vector<1x8x1xbf16> to vector<8x1xbf16>
    %cst_1277 = arith.constant dense<0.000000e+00> : vector<8x8xf32>
    %1151 = tpu.matmul %1150, %1148, %cst_1277 {dimension_numbers = #tpu.dot_dimension_numbers<[1], [0], [0], [1], [0, 0, 1, 1], [], []>} : vector<8x1xbf16>, vector<1x8xbf16>, vector<8x8xf32> -> vector<8x8xf32>
    %1152 = arith.addf %1145, %1151 : vector<8x8xf32>
    %c0_1278 = arith.constant 0 : index
    %1153 = arith.index_cast %1138 : i32 to index
    %c10_1279 = arith.constant 10 : index
    %c0_1280 = arith.constant 0 : index
    %c1_1281 = arith.constant 1 : index
    %1154 = vector.load %arg2[%c0_1278, %1153, %c10_1279, %c0_1280, %c1_1281] : memref<1x18x18x2x9xbf16, #tpu.memory_space<vmem>>, vector<1x1x1x1x8xbf16>
    %1155 = vector.shape_cast %1154 : vector<1x1x1x1x8xbf16> to vector<1x8xbf16>
    %c20_1282 = arith.constant 20 : index
    %c0_1283 = arith.constant 0 : index
    %c0_1284 = arith.constant 0 : index
    %1156 = vector.load %arg3[%c20_1282, %c0_1283, %c0_1284] : memref<27x8x1xbf16, #tpu.memory_space<vmem>>, vector<1x8x1xbf16>
    %1157 = vector.shape_cast %1156 : vector<1x8x1xbf16> to vector<8x1xbf16>
    %cst_1285 = arith.constant dense<0.000000e+00> : vector<8x8xf32>
    %1158 = tpu.matmul %1157, %1155, %cst_1285 {dimension_numbers = #tpu.dot_dimension_numbers<[1], [0], [0], [1], [0, 0, 1, 1], [], []>} : vector<8x1xbf16>, vector<1x8xbf16>, vector<8x8xf32> -> vector<8x8xf32>
    %1159 = arith.addf %1152, %1158 : vector<8x8xf32>
    %c0_1286 = arith.constant 0 : index
    %1160 = arith.index_cast %1138 : i32 to index
    %c11_1287 = arith.constant 11 : index
    %c0_1288 = arith.constant 0 : index
    %c0_1289 = arith.constant 0 : index
    %1161 = vector.load %arg2[%c0_1286, %1160, %c11_1287, %c0_1288, %c0_1289] : memref<1x18x18x2x9xbf16, #tpu.memory_space<vmem>>, vector<1x1x1x1x8xbf16>
    %1162 = vector.shape_cast %1161 : vector<1x1x1x1x8xbf16> to vector<1x8xbf16>
    %c21_1290 = arith.constant 21 : index
    %c0_1291 = arith.constant 0 : index
    %c0_1292 = arith.constant 0 : index
    %1163 = vector.load %arg3[%c21_1290, %c0_1291, %c0_1292] : memref<27x8x1xbf16, #tpu.memory_space<vmem>>, vector<1x8x1xbf16>
    %1164 = vector.shape_cast %1163 : vector<1x8x1xbf16> to vector<8x1xbf16>
    %cst_1293 = arith.constant dense<0.000000e+00> : vector<8x8xf32>
    %1165 = tpu.matmul %1164, %1162, %cst_1293 {dimension_numbers = #tpu.dot_dimension_numbers<[1], [0], [0], [1], [0, 0, 1, 1], [], []>} : vector<8x1xbf16>, vector<1x8xbf16>, vector<8x8xf32> -> vector<8x8xf32>
    %1166 = arith.addf %1159, %1165 : vector<8x8xf32>
    %c0_1294 = arith.constant 0 : index
    %1167 = arith.index_cast %1138 : i32 to index
    %c11_1295 = arith.constant 11 : index
    %c1_1296 = arith.constant 1 : index
    %c0_1297 = arith.constant 0 : index
    %1168 = vector.load %arg2[%c0_1294, %1167, %c11_1295, %c1_1296, %c0_1297] : memref<1x18x18x2x9xbf16, #tpu.memory_space<vmem>>, vector<1x1x1x1x8xbf16>
    %1169 = vector.shape_cast %1168 : vector<1x1x1x1x8xbf16> to vector<1x8xbf16>
    %c22_1298 = arith.constant 22 : index
    %c0_1299 = arith.constant 0 : index
    %c0_1300 = arith.constant 0 : index
    %1170 = vector.load %arg3[%c22_1298, %c0_1299, %c0_1300] : memref<27x8x1xbf16, #tpu.memory_space<vmem>>, vector<1x8x1xbf16>
    %1171 = vector.shape_cast %1170 : vector<1x8x1xbf16> to vector<8x1xbf16>
    %cst_1301 = arith.constant dense<0.000000e+00> : vector<8x8xf32>
    %1172 = tpu.matmul %1171, %1169, %cst_1301 {dimension_numbers = #tpu.dot_dimension_numbers<[1], [0], [0], [1], [0, 0, 1, 1], [], []>} : vector<8x1xbf16>, vector<1x8xbf16>, vector<8x8xf32> -> vector<8x8xf32>
    %1173 = arith.addf %1166, %1172 : vector<8x8xf32>
    %c0_1302 = arith.constant 0 : index
    %1174 = arith.index_cast %1138 : i32 to index
    %c11_1303 = arith.constant 11 : index
    %c0_1304 = arith.constant 0 : index
    %c1_1305 = arith.constant 1 : index
    %1175 = vector.load %arg2[%c0_1302, %1174, %c11_1303, %c0_1304, %c1_1305] : memref<1x18x18x2x9xbf16, #tpu.memory_space<vmem>>, vector<1x1x1x1x8xbf16>
    %1176 = vector.shape_cast %1175 : vector<1x1x1x1x8xbf16> to vector<1x8xbf16>
    %c23_1306 = arith.constant 23 : index
    %c0_1307 = arith.constant 0 : index
    %c0_1308 = arith.constant 0 : index
    %1177 = vector.load %arg3[%c23_1306, %c0_1307, %c0_1308] : memref<27x8x1xbf16, #tpu.memory_space<vmem>>, vector<1x8x1xbf16>
    %1178 = vector.shape_cast %1177 : vector<1x8x1xbf16> to vector<8x1xbf16>
    %cst_1309 = arith.constant dense<0.000000e+00> : vector<8x8xf32>
    %1179 = tpu.matmul %1178, %1176, %cst_1309 {dimension_numbers = #tpu.dot_dimension_numbers<[1], [0], [0], [1], [0, 0, 1, 1], [], []>} : vector<8x1xbf16>, vector<1x8xbf16>, vector<8x8xf32> -> vector<8x8xf32>
    %1180 = arith.addf %1173, %1179 : vector<8x8xf32>
    %c0_1310 = arith.constant 0 : index
    %1181 = arith.index_cast %1138 : i32 to index
    %c12_1311 = arith.constant 12 : index
    %c0_1312 = arith.constant 0 : index
    %c0_1313 = arith.constant 0 : index
    %1182 = vector.load %arg2[%c0_1310, %1181, %c12_1311, %c0_1312, %c0_1313] : memref<1x18x18x2x9xbf16, #tpu.memory_space<vmem>>, vector<1x1x1x1x8xbf16>
    %1183 = vector.shape_cast %1182 : vector<1x1x1x1x8xbf16> to vector<1x8xbf16>
    %c24_1314 = arith.constant 24 : index
    %c0_1315 = arith.constant 0 : index
    %c0_1316 = arith.constant 0 : index
    %1184 = vector.load %arg3[%c24_1314, %c0_1315, %c0_1316] : memref<27x8x1xbf16, #tpu.memory_space<vmem>>, vector<1x8x1xbf16>
    %1185 = vector.shape_cast %1184 : vector<1x8x1xbf16> to vector<8x1xbf16>
    %cst_1317 = arith.constant dense<0.000000e+00> : vector<8x8xf32>
    %1186 = tpu.matmul %1185, %1183, %cst_1317 {dimension_numbers = #tpu.dot_dimension_numbers<[1], [0], [0], [1], [0, 0, 1, 1], [], []>} : vector<8x1xbf16>, vector<1x8xbf16>, vector<8x8xf32> -> vector<8x8xf32>
    %1187 = arith.addf %1180, %1186 : vector<8x8xf32>
    %c0_1318 = arith.constant 0 : index
    %1188 = arith.index_cast %1138 : i32 to index
    %c12_1319 = arith.constant 12 : index
    %c1_1320 = arith.constant 1 : index
    %c0_1321 = arith.constant 0 : index
    %1189 = vector.load %arg2[%c0_1318, %1188, %c12_1319, %c1_1320, %c0_1321] : memref<1x18x18x2x9xbf16, #tpu.memory_space<vmem>>, vector<1x1x1x1x8xbf16>
    %1190 = vector.shape_cast %1189 : vector<1x1x1x1x8xbf16> to vector<1x8xbf16>
    %c25_1322 = arith.constant 25 : index
    %c0_1323 = arith.constant 0 : index
    %c0_1324 = arith.constant 0 : index
    %1191 = vector.load %arg3[%c25_1322, %c0_1323, %c0_1324] : memref<27x8x1xbf16, #tpu.memory_space<vmem>>, vector<1x8x1xbf16>
    %1192 = vector.shape_cast %1191 : vector<1x8x1xbf16> to vector<8x1xbf16>
    %cst_1325 = arith.constant dense<0.000000e+00> : vector<8x8xf32>
    %1193 = tpu.matmul %1192, %1190, %cst_1325 {dimension_numbers = #tpu.dot_dimension_numbers<[1], [0], [0], [1], [0, 0, 1, 1], [], []>} : vector<8x1xbf16>, vector<1x8xbf16>, vector<8x8xf32> -> vector<8x8xf32>
    %1194 = arith.addf %1187, %1193 : vector<8x8xf32>
    %c0_1326 = arith.constant 0 : index
    %1195 = arith.index_cast %1138 : i32 to index
    %c12_1327 = arith.constant 12 : index
    %c0_1328 = arith.constant 0 : index
    %c1_1329 = arith.constant 1 : index
    %1196 = vector.load %arg2[%c0_1326, %1195, %c12_1327, %c0_1328, %c1_1329] : memref<1x18x18x2x9xbf16, #tpu.memory_space<vmem>>, vector<1x1x1x1x8xbf16>
    %1197 = vector.shape_cast %1196 : vector<1x1x1x1x8xbf16> to vector<1x8xbf16>
    %c26_1330 = arith.constant 26 : index
    %c0_1331 = arith.constant 0 : index
    %c0_1332 = arith.constant 0 : index
    %1198 = vector.load %arg3[%c26_1330, %c0_1331, %c0_1332] : memref<27x8x1xbf16, #tpu.memory_space<vmem>>, vector<1x8x1xbf16>
    %1199 = vector.shape_cast %1198 : vector<1x8x1xbf16> to vector<8x1xbf16>
    %cst_1333 = arith.constant dense<0.000000e+00> : vector<8x8xf32>
    %1200 = tpu.matmul %1199, %1197, %cst_1333 {dimension_numbers = #tpu.dot_dimension_numbers<[1], [0], [0], [1], [0, 0, 1, 1], [], []>} : vector<8x1xbf16>, vector<1x8xbf16>, vector<8x8xf32> -> vector<8x8xf32>
    %1201 = arith.addf %1194, %1200 : vector<8x8xf32>
    %1202 = vector.broadcast %0 : vector<8x1xf32> to vector<8x8xf32>
    %1203 = arith.addf %1201, %1202 : vector<8x8xf32>
    %c0_1334 = arith.constant 0 : index
    %c0_1335 = arith.constant 0 : index
    %c5_1336 = arith.constant 5 : index
    %c0_1337 = arith.constant 0 : index
    %c0_1338 = arith.constant 0 : index
    %1204 = vector.load %arg5[%c0_1334, %c0_1335, %c5_1336, %c0_1337, %c0_1338] : memref<1x1x8x8x8xf32, #tpu.memory_space<vmem>>, vector<1x1x1x8x8xf32>
    %1205 = vector.shape_cast %1204 : vector<1x1x1x8x8xf32> to vector<8x8xf32>
    %1206 = vector.shape_cast %1203 : vector<8x8xf32> to vector<1x1x1x8x8xf32>
    tpu.vector_store %arg5[%c0_1334, %c0_1335, %c5_1336, %c0_1337, %c0_1338], %1206 {strides = array<i32>} : memref<1x1x8x8x8xf32, #tpu.memory_space<vmem>>, vector<1x1x1x8x8xf32>,
    %cst_1339 = arith.constant 0.000000e+00 : f32
    %1207 = vector.broadcast %cst_1339 : f32 to vector<8x8xf32>
    %c2_i32_1340 = arith.constant 2 : i32
    %1208 = arith.muli %arg1, %c2_i32_1340 : i32
    %c0_i32_1341 = arith.constant 0 : i32
    %1209 = arith.addi %1208, %c0_i32_1341 : i32
    %c0_1342 = arith.constant 0 : index
    %1210 = arith.index_cast %1209 : i32 to index
    %c12_1343 = arith.constant 12 : index
    %c0_1344 = arith.constant 0 : index
    %c0_1345 = arith.constant 0 : index
    %1211 = vector.load %arg2[%c0_1342, %1210, %c12_1343, %c0_1344, %c0_1345] : memref<1x18x18x2x9xbf16, #tpu.memory_space<vmem>>, vector<1x1x1x1x8xbf16>
    %1212 = vector.shape_cast %1211 : vector<1x1x1x1x8xbf16> to vector<1x8xbf16>
    %c0_1346 = arith.constant 0 : index
    %c0_1347 = arith.constant 0 : index
    %c0_1348 = arith.constant 0 : index
    %1213 = vector.load %arg3[%c0_1346, %c0_1347, %c0_1348] : memref<27x8x1xbf16, #tpu.memory_space<vmem>>, vector<1x8x1xbf16>
    %1214 = vector.shape_cast %1213 : vector<1x8x1xbf16> to vector<8x1xbf16>
    %cst_1349 = arith.constant dense<0.000000e+00> : vector<8x8xf32>
    %1215 = tpu.matmul %1214, %1212, %cst_1349 {dimension_numbers = #tpu.dot_dimension_numbers<[1], [0], [0], [1], [0, 0, 1, 1], [], []>} : vector<8x1xbf16>, vector<1x8xbf16>, vector<8x8xf32> -> vector<8x8xf32>
    %1216 = arith.addf %1207, %1215 : vector<8x8xf32>
    %c0_1350 = arith.constant 0 : index
    %1217 = arith.index_cast %1209 : i32 to index
    %c12_1351 = arith.constant 12 : index
    %c1_1352 = arith.constant 1 : index
    %c0_1353 = arith.constant 0 : index
    %1218 = vector.load %arg2[%c0_1350, %1217, %c12_1351, %c1_1352, %c0_1353] : memref<1x18x18x2x9xbf16, #tpu.memory_space<vmem>>, vector<1x1x1x1x8xbf16>
    %1219 = vector.shape_cast %1218 : vector<1x1x1x1x8xbf16> to vector<1x8xbf16>
    %c1_1354 = arith.constant 1 : index
    %c0_1355 = arith.constant 0 : index
    %c0_1356 = arith.constant 0 : index
    %1220 = vector.load %arg3[%c1_1354, %c0_1355, %c0_1356] : memref<27x8x1xbf16, #tpu.memory_space<vmem>>, vector<1x8x1xbf16>
    %1221 = vector.shape_cast %1220 : vector<1x8x1xbf16> to vector<8x1xbf16>
    %cst_1357 = arith.constant dense<0.000000e+00> : vector<8x8xf32>
    %1222 = tpu.matmul %1221, %1219, %cst_1357 {dimension_numbers = #tpu.dot_dimension_numbers<[1], [0], [0], [1], [0, 0, 1, 1], [], []>} : vector<8x1xbf16>, vector<1x8xbf16>, vector<8x8xf32> -> vector<8x8xf32>
    %1223 = arith.addf %1216, %1222 : vector<8x8xf32>
    %c0_1358 = arith.constant 0 : index
    %1224 = arith.index_cast %1209 : i32 to index
    %c12_1359 = arith.constant 12 : index
    %c0_1360 = arith.constant 0 : index
    %c1_1361 = arith.constant 1 : index
    %1225 = vector.load %arg2[%c0_1358, %1224, %c12_1359, %c0_1360, %c1_1361] : memref<1x18x18x2x9xbf16, #tpu.memory_space<vmem>>, vector<1x1x1x1x8xbf16>
    %1226 = vector.shape_cast %1225 : vector<1x1x1x1x8xbf16> to vector<1x8xbf16>
    %c2_1362 = arith.constant 2 : index
    %c0_1363 = arith.constant 0 : index
    %c0_1364 = arith.constant 0 : index
    %1227 = vector.load %arg3[%c2_1362, %c0_1363, %c0_1364] : memref<27x8x1xbf16, #tpu.memory_space<vmem>>, vector<1x8x1xbf16>
    %1228 = vector.shape_cast %1227 : vector<1x8x1xbf16> to vector<8x1xbf16>
    %cst_1365 = arith.constant dense<0.000000e+00> : vector<8x8xf32>
    %1229 = tpu.matmul %1228, %1226, %cst_1365 {dimension_numbers = #tpu.dot_dimension_numbers<[1], [0], [0], [1], [0, 0, 1, 1], [], []>} : vector<8x1xbf16>, vector<1x8xbf16>, vector<8x8xf32> -> vector<8x8xf32>
    %1230 = arith.addf %1223, %1229 : vector<8x8xf32>
    %c0_1366 = arith.constant 0 : index
    %1231 = arith.index_cast %1209 : i32 to index
    %c13_1367 = arith.constant 13 : index
    %c0_1368 = arith.constant 0 : index
    %c0_1369 = arith.constant 0 : index
    %1232 = vector.load %arg2[%c0_1366, %1231, %c13_1367, %c0_1368, %c0_1369] : memref<1x18x18x2x9xbf16, #tpu.memory_space<vmem>>, vector<1x1x1x1x8xbf16>
    %1233 = vector.shape_cast %1232 : vector<1x1x1x1x8xbf16> to vector<1x8xbf16>
    %c3_1370 = arith.constant 3 : index
    %c0_1371 = arith.constant 0 : index
    %c0_1372 = arith.constant 0 : index
    %1234 = vector.load %arg3[%c3_1370, %c0_1371, %c0_1372] : memref<27x8x1xbf16, #tpu.memory_space<vmem>>, vector<1x8x1xbf16>
    %1235 = vector.shape_cast %1234 : vector<1x8x1xbf16> to vector<8x1xbf16>
    %cst_1373 = arith.constant dense<0.000000e+00> : vector<8x8xf32>
    %1236 = tpu.matmul %1235, %1233, %cst_1373 {dimension_numbers = #tpu.dot_dimension_numbers<[1], [0], [0], [1], [0, 0, 1, 1], [], []>} : vector<8x1xbf16>, vector<1x8xbf16>, vector<8x8xf32> -> vector<8x8xf32>
    %1237 = arith.addf %1230, %1236 : vector<8x8xf32>
    %c0_1374 = arith.constant 0 : index
    %1238 = arith.index_cast %1209 : i32 to index
    %c13_1375 = arith.constant 13 : index
    %c1_1376 = arith.constant 1 : index
    %c0_1377 = arith.constant 0 : index
    %1239 = vector.load %arg2[%c0_1374, %1238, %c13_1375, %c1_1376, %c0_1377] : memref<1x18x18x2x9xbf16, #tpu.memory_space<vmem>>, vector<1x1x1x1x8xbf16>
    %1240 = vector.shape_cast %1239 : vector<1x1x1x1x8xbf16> to vector<1x8xbf16>
    %c4_1378 = arith.constant 4 : index
    %c0_1379 = arith.constant 0 : index
    %c0_1380 = arith.constant 0 : index
    %1241 = vector.load %arg3[%c4_1378, %c0_1379, %c0_1380] : memref<27x8x1xbf16, #tpu.memory_space<vmem>>, vector<1x8x1xbf16>
    %1242 = vector.shape_cast %1241 : vector<1x8x1xbf16> to vector<8x1xbf16>
    %cst_1381 = arith.constant dense<0.000000e+00> : vector<8x8xf32>
    %1243 = tpu.matmul %1242, %1240, %cst_1381 {dimension_numbers = #tpu.dot_dimension_numbers<[1], [0], [0], [1], [0, 0, 1, 1], [], []>} : vector<8x1xbf16>, vector<1x8xbf16>, vector<8x8xf32> -> vector<8x8xf32>
    %1244 = arith.addf %1237, %1243 : vector<8x8xf32>
    %c0_1382 = arith.constant 0 : index
    %1245 = arith.index_cast %1209 : i32 to index
    %c13_1383 = arith.constant 13 : index
    %c0_1384 = arith.constant 0 : index
    %c1_1385 = arith.constant 1 : index
    %1246 = vector.load %arg2[%c0_1382, %1245, %c13_1383, %c0_1384, %c1_1385] : memref<1x18x18x2x9xbf16, #tpu.memory_space<vmem>>, vector<1x1x1x1x8xbf16>
    %1247 = vector.shape_cast %1246 : vector<1x1x1x1x8xbf16> to vector<1x8xbf16>
    %c5_1386 = arith.constant 5 : index
    %c0_1387 = arith.constant 0 : index
    %c0_1388 = arith.constant 0 : index
    %1248 = vector.load %arg3[%c5_1386, %c0_1387, %c0_1388] : memref<27x8x1xbf16, #tpu.memory_space<vmem>>, vector<1x8x1xbf16>
    %1249 = vector.shape_cast %1248 : vector<1x8x1xbf16> to vector<8x1xbf16>
    %cst_1389 = arith.constant dense<0.000000e+00> : vector<8x8xf32>
    %1250 = tpu.matmul %1249, %1247, %cst_1389 {dimension_numbers = #tpu.dot_dimension_numbers<[1], [0], [0], [1], [0, 0, 1, 1], [], []>} : vector<8x1xbf16>, vector<1x8xbf16>, vector<8x8xf32> -> vector<8x8xf32>
    %1251 = arith.addf %1244, %1250 : vector<8x8xf32>
    %c0_1390 = arith.constant 0 : index
    %1252 = arith.index_cast %1209 : i32 to index
    %c14_1391 = arith.constant 14 : index
    %c0_1392 = arith.constant 0 : index
    %c0_1393 = arith.constant 0 : index
    %1253 = vector.load %arg2[%c0_1390, %1252, %c14_1391, %c0_1392, %c0_1393] : memref<1x18x18x2x9xbf16, #tpu.memory_space<vmem>>, vector<1x1x1x1x8xbf16>
    %1254 = vector.shape_cast %1253 : vector<1x1x1x1x8xbf16> to vector<1x8xbf16>
    %c6_1394 = arith.constant 6 : index
    %c0_1395 = arith.constant 0 : index
    %c0_1396 = arith.constant 0 : index
    %1255 = vector.load %arg3[%c6_1394, %c0_1395, %c0_1396] : memref<27x8x1xbf16, #tpu.memory_space<vmem>>, vector<1x8x1xbf16>
    %1256 = vector.shape_cast %1255 : vector<1x8x1xbf16> to vector<8x1xbf16>
    %cst_1397 = arith.constant dense<0.000000e+00> : vector<8x8xf32>
    %1257 = tpu.matmul %1256, %1254, %cst_1397 {dimension_numbers = #tpu.dot_dimension_numbers<[1], [0], [0], [1], [0, 0, 1, 1], [], []>} : vector<8x1xbf16>, vector<1x8xbf16>, vector<8x8xf32> -> vector<8x8xf32>
    %1258 = arith.addf %1251, %1257 : vector<8x8xf32>
    %c0_1398 = arith.constant 0 : index
    %1259 = arith.index_cast %1209 : i32 to index
    %c14_1399 = arith.constant 14 : index
    %c1_1400 = arith.constant 1 : index
    %c0_1401 = arith.constant 0 : index
    %1260 = vector.load %arg2[%c0_1398, %1259, %c14_1399, %c1_1400, %c0_1401] : memref<1x18x18x2x9xbf16, #tpu.memory_space<vmem>>, vector<1x1x1x1x8xbf16>
    %1261 = vector.shape_cast %1260 : vector<1x1x1x1x8xbf16> to vector<1x8xbf16>
    %c7_1402 = arith.constant 7 : index
    %c0_1403 = arith.constant 0 : index
    %c0_1404 = arith.constant 0 : index
    %1262 = vector.load %arg3[%c7_1402, %c0_1403, %c0_1404] : memref<27x8x1xbf16, #tpu.memory_space<vmem>>, vector<1x8x1xbf16>
    %1263 = vector.shape_cast %1262 : vector<1x8x1xbf16> to vector<8x1xbf16>
    %cst_1405 = arith.constant dense<0.000000e+00> : vector<8x8xf32>
    %1264 = tpu.matmul %1263, %1261, %cst_1405 {dimension_numbers = #tpu.dot_dimension_numbers<[1], [0], [0], [1], [0, 0, 1, 1], [], []>} : vector<8x1xbf16>, vector<1x8xbf16>, vector<8x8xf32> -> vector<8x8xf32>
    %1265 = arith.addf %1258, %1264 : vector<8x8xf32>
    %c0_1406 = arith.constant 0 : index
    %1266 = arith.index_cast %1209 : i32 to index
    %c14_1407 = arith.constant 14 : index
    %c0_1408 = arith.constant 0 : index
    %c1_1409 = arith.constant 1 : index
    %1267 = vector.load %arg2[%c0_1406, %1266, %c14_1407, %c0_1408, %c1_1409] : memref<1x18x18x2x9xbf16, #tpu.memory_space<vmem>>, vector<1x1x1x1x8xbf16>
    %1268 = vector.shape_cast %1267 : vector<1x1x1x1x8xbf16> to vector<1x8xbf16>
    %c8_1410 = arith.constant 8 : index
    %c0_1411 = arith.constant 0 : index
    %c0_1412 = arith.constant 0 : index
    %1269 = vector.load %arg3[%c8_1410, %c0_1411, %c0_1412] : memref<27x8x1xbf16, #tpu.memory_space<vmem>>, vector<1x8x1xbf16>
    %1270 = vector.shape_cast %1269 : vector<1x8x1xbf16> to vector<8x1xbf16>
    %cst_1413 = arith.constant dense<0.000000e+00> : vector<8x8xf32>
    %1271 = tpu.matmul %1270, %1268, %cst_1413 {dimension_numbers = #tpu.dot_dimension_numbers<[1], [0], [0], [1], [0, 0, 1, 1], [], []>} : vector<8x1xbf16>, vector<1x8xbf16>, vector<8x8xf32> -> vector<8x8xf32>
    %1272 = arith.addf %1265, %1271 : vector<8x8xf32>
    %c2_i32_1414 = arith.constant 2 : i32
    %1273 = arith.muli %arg1, %c2_i32_1414 : i32
    %c1_i32_1415 = arith.constant 1 : i32
    %1274 = arith.addi %1273, %c1_i32_1415 : i32
    %c0_1416 = arith.constant 0 : index
    %1275 = arith.index_cast %1274 : i32 to index
    %c12_1417 = arith.constant 12 : index
    %c0_1418 = arith.constant 0 : index
    %c0_1419 = arith.constant 0 : index
    %1276 = vector.load %arg2[%c0_1416, %1275, %c12_1417, %c0_1418, %c0_1419] : memref<1x18x18x2x9xbf16, #tpu.memory_space<vmem>>, vector<1x1x1x1x8xbf16>
    %1277 = vector.shape_cast %1276 : vector<1x1x1x1x8xbf16> to vector<1x8xbf16>
    %c9_1420 = arith.constant 9 : index
    %c0_1421 = arith.constant 0 : index
    %c0_1422 = arith.constant 0 : index
    %1278 = vector.load %arg3[%c9_1420, %c0_1421, %c0_1422] : memref<27x8x1xbf16, #tpu.memory_space<vmem>>, vector<1x8x1xbf16>
    %1279 = vector.shape_cast %1278 : vector<1x8x1xbf16> to vector<8x1xbf16>
    %cst_1423 = arith.constant dense<0.000000e+00> : vector<8x8xf32>
    %1280 = tpu.matmul %1279, %1277, %cst_1423 {dimension_numbers = #tpu.dot_dimension_numbers<[1], [0], [0], [1], [0, 0, 1, 1], [], []>} : vector<8x1xbf16>, vector<1x8xbf16>, vector<8x8xf32> -> vector<8x8xf32>
    %1281 = arith.addf %1272, %1280 : vector<8x8xf32>
    %c0_1424 = arith.constant 0 : index
    %1282 = arith.index_cast %1274 : i32 to index
    %c12_1425 = arith.constant 12 : index
    %c1_1426 = arith.constant 1 : index
    %c0_1427 = arith.constant 0 : index
    %1283 = vector.load %arg2[%c0_1424, %1282, %c12_1425, %c1_1426, %c0_1427] : memref<1x18x18x2x9xbf16, #tpu.memory_space<vmem>>, vector<1x1x1x1x8xbf16>
    %1284 = vector.shape_cast %1283 : vector<1x1x1x1x8xbf16> to vector<1x8xbf16>
    %c10_1428 = arith.constant 10 : index
    %c0_1429 = arith.constant 0 : index
    %c0_1430 = arith.constant 0 : index
    %1285 = vector.load %arg3[%c10_1428, %c0_1429, %c0_1430] : memref<27x8x1xbf16, #tpu.memory_space<vmem>>, vector<1x8x1xbf16>
    %1286 = vector.shape_cast %1285 : vector<1x8x1xbf16> to vector<8x1xbf16>
    %cst_1431 = arith.constant dense<0.000000e+00> : vector<8x8xf32>
    %1287 = tpu.matmul %1286, %1284, %cst_1431 {dimension_numbers = #tpu.dot_dimension_numbers<[1], [0], [0], [1], [0, 0, 1, 1], [], []>} : vector<8x1xbf16>, vector<1x8xbf16>, vector<8x8xf32> -> vector<8x8xf32>
    %1288 = arith.addf %1281, %1287 : vector<8x8xf32>
    %c0_1432 = arith.constant 0 : index
    %1289 = arith.index_cast %1274 : i32 to index
    %c12_1433 = arith.constant 12 : index
    %c0_1434 = arith.constant 0 : index
    %c1_1435 = arith.constant 1 : index
    %1290 = vector.load %arg2[%c0_1432, %1289, %c12_1433, %c0_1434, %c1_1435] : memref<1x18x18x2x9xbf16, #tpu.memory_space<vmem>>, vector<1x1x1x1x8xbf16>
    %1291 = vector.shape_cast %1290 : vector<1x1x1x1x8xbf16> to vector<1x8xbf16>
    %c11_1436 = arith.constant 11 : index
    %c0_1437 = arith.constant 0 : index
    %c0_1438 = arith.constant 0 : index
    %1292 = vector.load %arg3[%c11_1436, %c0_1437, %c0_1438] : memref<27x8x1xbf16, #tpu.memory_space<vmem>>, vector<1x8x1xbf16>
    %1293 = vector.shape_cast %1292 : vector<1x8x1xbf16> to vector<8x1xbf16>
    %cst_1439 = arith.constant dense<0.000000e+00> : vector<8x8xf32>
    %1294 = tpu.matmul %1293, %1291, %cst_1439 {dimension_numbers = #tpu.dot_dimension_numbers<[1], [0], [0], [1], [0, 0, 1, 1], [], []>} : vector<8x1xbf16>, vector<1x8xbf16>, vector<8x8xf32> -> vector<8x8xf32>
    %1295 = arith.addf %1288, %1294 : vector<8x8xf32>
    %c0_1440 = arith.constant 0 : index
    %1296 = arith.index_cast %1274 : i32 to index
    %c13_1441 = arith.constant 13 : index
    %c0_1442 = arith.constant 0 : index
    %c0_1443 = arith.constant 0 : index
    %1297 = vector.load %arg2[%c0_1440, %1296, %c13_1441, %c0_1442, %c0_1443] : memref<1x18x18x2x9xbf16, #tpu.memory_space<vmem>>, vector<1x1x1x1x8xbf16>
    %1298 = vector.shape_cast %1297 : vector<1x1x1x1x8xbf16> to vector<1x8xbf16>
    %c12_1444 = arith.constant 12 : index
    %c0_1445 = arith.constant 0 : index
    %c0_1446 = arith.constant 0 : index
    %1299 = vector.load %arg3[%c12_1444, %c0_1445, %c0_1446] : memref<27x8x1xbf16, #tpu.memory_space<vmem>>, vector<1x8x1xbf16>
    %1300 = vector.shape_cast %1299 : vector<1x8x1xbf16> to vector<8x1xbf16>
    %cst_1447 = arith.constant dense<0.000000e+00> : vector<8x8xf32>
    %1301 = tpu.matmul %1300, %1298, %cst_1447 {dimension_numbers = #tpu.dot_dimension_numbers<[1], [0], [0], [1], [0, 0, 1, 1], [], []>} : vector<8x1xbf16>, vector<1x8xbf16>, vector<8x8xf32> -> vector<8x8xf32>
    %1302 = arith.addf %1295, %1301 : vector<8x8xf32>
    %c0_1448 = arith.constant 0 : index
    %1303 = arith.index_cast %1274 : i32 to index
    %c13_1449 = arith.constant 13 : index
    %c1_1450 = arith.constant 1 : index
    %c0_1451 = arith.constant 0 : index
    %1304 = vector.load %arg2[%c0_1448, %1303, %c13_1449, %c1_1450, %c0_1451] : memref<1x18x18x2x9xbf16, #tpu.memory_space<vmem>>, vector<1x1x1x1x8xbf16>
    %1305 = vector.shape_cast %1304 : vector<1x1x1x1x8xbf16> to vector<1x8xbf16>
    %c13_1452 = arith.constant 13 : index
    %c0_1453 = arith.constant 0 : index
    %c0_1454 = arith.constant 0 : index
    %1306 = vector.load %arg3[%c13_1452, %c0_1453, %c0_1454] : memref<27x8x1xbf16, #tpu.memory_space<vmem>>, vector<1x8x1xbf16>
    %1307 = vector.shape_cast %1306 : vector<1x8x1xbf16> to vector<8x1xbf16>
    %cst_1455 = arith.constant dense<0.000000e+00> : vector<8x8xf32>
    %1308 = tpu.matmul %1307, %1305, %cst_1455 {dimension_numbers = #tpu.dot_dimension_numbers<[1], [0], [0], [1], [0, 0, 1, 1], [], []>} : vector<8x1xbf16>, vector<1x8xbf16>, vector<8x8xf32> -> vector<8x8xf32>
    %1309 = arith.addf %1302, %1308 : vector<8x8xf32>
    %c0_1456 = arith.constant 0 : index
    %1310 = arith.index_cast %1274 : i32 to index
    %c13_1457 = arith.constant 13 : index
    %c0_1458 = arith.constant 0 : index
    %c1_1459 = arith.constant 1 : index
    %1311 = vector.load %arg2[%c0_1456, %1310, %c13_1457, %c0_1458, %c1_1459] : memref<1x18x18x2x9xbf16, #tpu.memory_space<vmem>>, vector<1x1x1x1x8xbf16>
    %1312 = vector.shape_cast %1311 : vector<1x1x1x1x8xbf16> to vector<1x8xbf16>
    %c14_1460 = arith.constant 14 : index
    %c0_1461 = arith.constant 0 : index
    %c0_1462 = arith.constant 0 : index
    %1313 = vector.load %arg3[%c14_1460, %c0_1461, %c0_1462] : memref<27x8x1xbf16, #tpu.memory_space<vmem>>, vector<1x8x1xbf16>
    %1314 = vector.shape_cast %1313 : vector<1x8x1xbf16> to vector<8x1xbf16>
    %cst_1463 = arith.constant dense<0.000000e+00> : vector<8x8xf32>
    %1315 = tpu.matmul %1314, %1312, %cst_1463 {dimension_numbers = #tpu.dot_dimension_numbers<[1], [0], [0], [1], [0, 0, 1, 1], [], []>} : vector<8x1xbf16>, vector<1x8xbf16>, vector<8x8xf32> -> vector<8x8xf32>
    %1316 = arith.addf %1309, %1315 : vector<8x8xf32>
    %c0_1464 = arith.constant 0 : index
    %1317 = arith.index_cast %1274 : i32 to index
    %c14_1465 = arith.constant 14 : index
    %c0_1466 = arith.constant 0 : index
    %c0_1467 = arith.constant 0 : index
    %1318 = vector.load %arg2[%c0_1464, %1317, %c14_1465, %c0_1466, %c0_1467] : memref<1x18x18x2x9xbf16, #tpu.memory_space<vmem>>, vector<1x1x1x1x8xbf16>
    %1319 = vector.shape_cast %1318 : vector<1x1x1x1x8xbf16> to vector<1x8xbf16>
    %c15_1468 = arith.constant 15 : index
    %c0_1469 = arith.constant 0 : index
    %c0_1470 = arith.constant 0 : index
    %1320 = vector.load %arg3[%c15_1468, %c0_1469, %c0_1470] : memref<27x8x1xbf16, #tpu.memory_space<vmem>>, vector<1x8x1xbf16>
    %1321 = vector.shape_cast %1320 : vector<1x8x1xbf16> to vector<8x1xbf16>
    %cst_1471 = arith.constant dense<0.000000e+00> : vector<8x8xf32>
    %1322 = tpu.matmul %1321, %1319, %cst_1471 {dimension_numbers = #tpu.dot_dimension_numbers<[1], [0], [0], [1], [0, 0, 1, 1], [], []>} : vector<8x1xbf16>, vector<1x8xbf16>, vector<8x8xf32> -> vector<8x8xf32>
    %1323 = arith.addf %1316, %1322 : vector<8x8xf32>
    %c0_1472 = arith.constant 0 : index
    %1324 = arith.index_cast %1274 : i32 to index
    %c14_1473 = arith.constant 14 : index
    %c1_1474 = arith.constant 1 : index
    %c0_1475 = arith.constant 0 : index
    %1325 = vector.load %arg2[%c0_1472, %1324, %c14_1473, %c1_1474, %c0_1475] : memref<1x18x18x2x9xbf16, #tpu.memory_space<vmem>>, vector<1x1x1x1x8xbf16>
    %1326 = vector.shape_cast %1325 : vector<1x1x1x1x8xbf16> to vector<1x8xbf16>
    %c16_1476 = arith.constant 16 : index
    %c0_1477 = arith.constant 0 : index
    %c0_1478 = arith.constant 0 : index
    %1327 = vector.load %arg3[%c16_1476, %c0_1477, %c0_1478] : memref<27x8x1xbf16, #tpu.memory_space<vmem>>, vector<1x8x1xbf16>
    %1328 = vector.shape_cast %1327 : vector<1x8x1xbf16> to vector<8x1xbf16>
    %cst_1479 = arith.constant dense<0.000000e+00> : vector<8x8xf32>
    %1329 = tpu.matmul %1328, %1326, %cst_1479 {dimension_numbers = #tpu.dot_dimension_numbers<[1], [0], [0], [1], [0, 0, 1, 1], [], []>} : vector<8x1xbf16>, vector<1x8xbf16>, vector<8x8xf32> -> vector<8x8xf32>
    %1330 = arith.addf %1323, %1329 : vector<8x8xf32>
    %c0_1480 = arith.constant 0 : index
    %1331 = arith.index_cast %1274 : i32 to index
    %c14_1481 = arith.constant 14 : index
    %c0_1482 = arith.constant 0 : index
    %c1_1483 = arith.constant 1 : index
    %1332 = vector.load %arg2[%c0_1480, %1331, %c14_1481, %c0_1482, %c1_1483] : memref<1x18x18x2x9xbf16, #tpu.memory_space<vmem>>, vector<1x1x1x1x8xbf16>
    %1333 = vector.shape_cast %1332 : vector<1x1x1x1x8xbf16> to vector<1x8xbf16>
    %c17_1484 = arith.constant 17 : index
    %c0_1485 = arith.constant 0 : index
    %c0_1486 = arith.constant 0 : index
    %1334 = vector.load %arg3[%c17_1484, %c0_1485, %c0_1486] : memref<27x8x1xbf16, #tpu.memory_space<vmem>>, vector<1x8x1xbf16>
    %1335 = vector.shape_cast %1334 : vector<1x8x1xbf16> to vector<8x1xbf16>
    %cst_1487 = arith.constant dense<0.000000e+00> : vector<8x8xf32>
    %1336 = tpu.matmul %1335, %1333, %cst_1487 {dimension_numbers = #tpu.dot_dimension_numbers<[1], [0], [0], [1], [0, 0, 1, 1], [], []>} : vector<8x1xbf16>, vector<1x8xbf16>, vector<8x8xf32> -> vector<8x8xf32>
    %1337 = arith.addf %1330, %1336 : vector<8x8xf32>
    %c2_i32_1488 = arith.constant 2 : i32
    %1338 = arith.muli %arg1, %c2_i32_1488 : i32
    %c2_i32_1489 = arith.constant 2 : i32
    %1339 = arith.addi %1338, %c2_i32_1489 : i32
    %c0_1490 = arith.constant 0 : index
    %1340 = arith.index_cast %1339 : i32 to index
    %c12_1491 = arith.constant 12 : index
    %c0_1492 = arith.constant 0 : index
    %c0_1493 = arith.constant 0 : index
    %1341 = vector.load %arg2[%c0_1490, %1340, %c12_1491, %c0_1492, %c0_1493] : memref<1x18x18x2x9xbf16, #tpu.memory_space<vmem>>, vector<1x1x1x1x8xbf16>
    %1342 = vector.shape_cast %1341 : vector<1x1x1x1x8xbf16> to vector<1x8xbf16>
    %c18_1494 = arith.constant 18 : index
    %c0_1495 = arith.constant 0 : index
    %c0_1496 = arith.constant 0 : index
    %1343 = vector.load %arg3[%c18_1494, %c0_1495, %c0_1496] : memref<27x8x1xbf16, #tpu.memory_space<vmem>>, vector<1x8x1xbf16>
    %1344 = vector.shape_cast %1343 : vector<1x8x1xbf16> to vector<8x1xbf16>
    %cst_1497 = arith.constant dense<0.000000e+00> : vector<8x8xf32>
    %1345 = tpu.matmul %1344, %1342, %cst_1497 {dimension_numbers = #tpu.dot_dimension_numbers<[1], [0], [0], [1], [0, 0, 1, 1], [], []>} : vector<8x1xbf16>, vector<1x8xbf16>, vector<8x8xf32> -> vector<8x8xf32>
    %1346 = arith.addf %1337, %1345 : vector<8x8xf32>
    %c0_1498 = arith.constant 0 : index
    %1347 = arith.index_cast %1339 : i32 to index
    %c12_1499 = arith.constant 12 : index
    %c1_1500 = arith.constant 1 : index
    %c0_1501 = arith.constant 0 : index
    %1348 = vector.load %arg2[%c0_1498, %1347, %c12_1499, %c1_1500, %c0_1501] : memref<1x18x18x2x9xbf16, #tpu.memory_space<vmem>>, vector<1x1x1x1x8xbf16>
    %1349 = vector.shape_cast %1348 : vector<1x1x1x1x8xbf16> to vector<1x8xbf16>
    %c19_1502 = arith.constant 19 : index
    %c0_1503 = arith.constant 0 : index
    %c0_1504 = arith.constant 0 : index
    %1350 = vector.load %arg3[%c19_1502, %c0_1503, %c0_1504] : memref<27x8x1xbf16, #tpu.memory_space<vmem>>, vector<1x8x1xbf16>
    %1351 = vector.shape_cast %1350 : vector<1x8x1xbf16> to vector<8x1xbf16>
    %cst_1505 = arith.constant dense<0.000000e+00> : vector<8x8xf32>
    %1352 = tpu.matmul %1351, %1349, %cst_1505 {dimension_numbers = #tpu.dot_dimension_numbers<[1], [0], [0], [1], [0, 0, 1, 1], [], []>} : vector<8x1xbf16>, vector<1x8xbf16>, vector<8x8xf32> -> vector<8x8xf32>
    %1353 = arith.addf %1346, %1352 : vector<8x8xf32>
    %c0_1506 = arith.constant 0 : index
    %1354 = arith.index_cast %1339 : i32 to index
    %c12_1507 = arith.constant 12 : index
    %c0_1508 = arith.constant 0 : index
    %c1_1509 = arith.constant 1 : index
    %1355 = vector.load %arg2[%c0_1506, %1354, %c12_1507, %c0_1508, %c1_1509] : memref<1x18x18x2x9xbf16, #tpu.memory_space<vmem>>, vector<1x1x1x1x8xbf16>
    %1356 = vector.shape_cast %1355 : vector<1x1x1x1x8xbf16> to vector<1x8xbf16>
    %c20_1510 = arith.constant 20 : index
    %c0_1511 = arith.constant 0 : index
    %c0_1512 = arith.constant 0 : index
    %1357 = vector.load %arg3[%c20_1510, %c0_1511, %c0_1512] : memref<27x8x1xbf16, #tpu.memory_space<vmem>>, vector<1x8x1xbf16>
    %1358 = vector.shape_cast %1357 : vector<1x8x1xbf16> to vector<8x1xbf16>
    %cst_1513 = arith.constant dense<0.000000e+00> : vector<8x8xf32>
    %1359 = tpu.matmul %1358, %1356, %cst_1513 {dimension_numbers = #tpu.dot_dimension_numbers<[1], [0], [0], [1], [0, 0, 1, 1], [], []>} : vector<8x1xbf16>, vector<1x8xbf16>, vector<8x8xf32> -> vector<8x8xf32>
    %1360 = arith.addf %1353, %1359 : vector<8x8xf32>
    %c0_1514 = arith.constant 0 : index
    %1361 = arith.index_cast %1339 : i32 to index
    %c13_1515 = arith.constant 13 : index
    %c0_1516 = arith.constant 0 : index
    %c0_1517 = arith.constant 0 : index
    %1362 = vector.load %arg2[%c0_1514, %1361, %c13_1515, %c0_1516, %c0_1517] : memref<1x18x18x2x9xbf16, #tpu.memory_space<vmem>>, vector<1x1x1x1x8xbf16>
    %1363 = vector.shape_cast %1362 : vector<1x1x1x1x8xbf16> to vector<1x8xbf16>
    %c21_1518 = arith.constant 21 : index
    %c0_1519 = arith.constant 0 : index
    %c0_1520 = arith.constant 0 : index
    %1364 = vector.load %arg3[%c21_1518, %c0_1519, %c0_1520] : memref<27x8x1xbf16, #tpu.memory_space<vmem>>, vector<1x8x1xbf16>
    %1365 = vector.shape_cast %1364 : vector<1x8x1xbf16> to vector<8x1xbf16>
    %cst_1521 = arith.constant dense<0.000000e+00> : vector<8x8xf32>
    %1366 = tpu.matmul %1365, %1363, %cst_1521 {dimension_numbers = #tpu.dot_dimension_numbers<[1], [0], [0], [1], [0, 0, 1, 1], [], []>} : vector<8x1xbf16>, vector<1x8xbf16>, vector<8x8xf32> -> vector<8x8xf32>
    %1367 = arith.addf %1360, %1366 : vector<8x8xf32>
    %c0_1522 = arith.constant 0 : index
    %1368 = arith.index_cast %1339 : i32 to index
    %c13_1523 = arith.constant 13 : index
    %c1_1524 = arith.constant 1 : index
    %c0_1525 = arith.constant 0 : index
    %1369 = vector.load %arg2[%c0_1522, %1368, %c13_1523, %c1_1524, %c0_1525] : memref<1x18x18x2x9xbf16, #tpu.memory_space<vmem>>, vector<1x1x1x1x8xbf16>
    %1370 = vector.shape_cast %1369 : vector<1x1x1x1x8xbf16> to vector<1x8xbf16>
    %c22_1526 = arith.constant 22 : index
    %c0_1527 = arith.constant 0 : index
    %c0_1528 = arith.constant 0 : index
    %1371 = vector.load %arg3[%c22_1526, %c0_1527, %c0_1528] : memref<27x8x1xbf16, #tpu.memory_space<vmem>>, vector<1x8x1xbf16>
    %1372 = vector.shape_cast %1371 : vector<1x8x1xbf16> to vector<8x1xbf16>
    %cst_1529 = arith.constant dense<0.000000e+00> : vector<8x8xf32>
    %1373 = tpu.matmul %1372, %1370, %cst_1529 {dimension_numbers = #tpu.dot_dimension_numbers<[1], [0], [0], [1], [0, 0, 1, 1], [], []>} : vector<8x1xbf16>, vector<1x8xbf16>, vector<8x8xf32> -> vector<8x8xf32>
    %1374 = arith.addf %1367, %1373 : vector<8x8xf32>
    %c0_1530 = arith.constant 0 : index
    %1375 = arith.index_cast %1339 : i32 to index
    %c13_1531 = arith.constant 13 : index
    %c0_1532 = arith.constant 0 : index
    %c1_1533 = arith.constant 1 : index
    %1376 = vector.load %arg2[%c0_1530, %1375, %c13_1531, %c0_1532, %c1_1533] : memref<1x18x18x2x9xbf16, #tpu.memory_space<vmem>>, vector<1x1x1x1x8xbf16>
    %1377 = vector.shape_cast %1376 : vector<1x1x1x1x8xbf16> to vector<1x8xbf16>
    %c23_1534 = arith.constant 23 : index
    %c0_1535 = arith.constant 0 : index
    %c0_1536 = arith.constant 0 : index
    %1378 = vector.load %arg3[%c23_1534, %c0_1535, %c0_1536] : memref<27x8x1xbf16, #tpu.memory_space<vmem>>, vector<1x8x1xbf16>
    %1379 = vector.shape_cast %1378 : vector<1x8x1xbf16> to vector<8x1xbf16>
    %cst_1537 = arith.constant dense<0.000000e+00> : vector<8x8xf32>
    %1380 = tpu.matmul %1379, %1377, %cst_1537 {dimension_numbers = #tpu.dot_dimension_numbers<[1], [0], [0], [1], [0, 0, 1, 1], [], []>} : vector<8x1xbf16>, vector<1x8xbf16>, vector<8x8xf32> -> vector<8x8xf32>
    %1381 = arith.addf %1374, %1380 : vector<8x8xf32>
    %c0_1538 = arith.constant 0 : index
    %1382 = arith.index_cast %1339 : i32 to index
    %c14_1539 = arith.constant 14 : index
    %c0_1540 = arith.constant 0 : index
    %c0_1541 = arith.constant 0 : index
    %1383 = vector.load %arg2[%c0_1538, %1382, %c14_1539, %c0_1540, %c0_1541] : memref<1x18x18x2x9xbf16, #tpu.memory_space<vmem>>, vector<1x1x1x1x8xbf16>
    %1384 = vector.shape_cast %1383 : vector<1x1x1x1x8xbf16> to vector<1x8xbf16>
    %c24_1542 = arith.constant 24 : index
    %c0_1543 = arith.constant 0 : index
    %c0_1544 = arith.constant 0 : index
    %1385 = vector.load %arg3[%c24_1542, %c0_1543, %c0_1544] : memref<27x8x1xbf16, #tpu.memory_space<vmem>>, vector<1x8x1xbf16>
    %1386 = vector.shape_cast %1385 : vector<1x8x1xbf16> to vector<8x1xbf16>
    %cst_1545 = arith.constant dense<0.000000e+00> : vector<8x8xf32>
    %1387 = tpu.matmul %1386, %1384, %cst_1545 {dimension_numbers = #tpu.dot_dimension_numbers<[1], [0], [0], [1], [0, 0, 1, 1], [], []>} : vector<8x1xbf16>, vector<1x8xbf16>, vector<8x8xf32> -> vector<8x8xf32>
    %1388 = arith.addf %1381, %1387 : vector<8x8xf32>
    %c0_1546 = arith.constant 0 : index
    %1389 = arith.index_cast %1339 : i32 to index
    %c14_1547 = arith.constant 14 : index
    %c1_1548 = arith.constant 1 : index
    %c0_1549 = arith.constant 0 : index
    %1390 = vector.load %arg2[%c0_1546, %1389, %c14_1547, %c1_1548, %c0_1549] : memref<1x18x18x2x9xbf16, #tpu.memory_space<vmem>>, vector<1x1x1x1x8xbf16>
    %1391 = vector.shape_cast %1390 : vector<1x1x1x1x8xbf16> to vector<1x8xbf16>
    %c25_1550 = arith.constant 25 : index
    %c0_1551 = arith.constant 0 : index
    %c0_1552 = arith.constant 0 : index
    %1392 = vector.load %arg3[%c25_1550, %c0_1551, %c0_1552] : memref<27x8x1xbf16, #tpu.memory_space<vmem>>, vector<1x8x1xbf16>
    %1393 = vector.shape_cast %1392 : vector<1x8x1xbf16> to vector<8x1xbf16>
    %cst_1553 = arith.constant dense<0.000000e+00> : vector<8x8xf32>
    %1394 = tpu.matmul %1393, %1391, %cst_1553 {dimension_numbers = #tpu.dot_dimension_numbers<[1], [0], [0], [1], [0, 0, 1, 1], [], []>} : vector<8x1xbf16>, vector<1x8xbf16>, vector<8x8xf32> -> vector<8x8xf32>
    %1395 = arith.addf %1388, %1394 : vector<8x8xf32>
    %c0_1554 = arith.constant 0 : index
    %1396 = arith.index_cast %1339 : i32 to index
    %c14_1555 = arith.constant 14 : index
    %c0_1556 = arith.constant 0 : index
    %c1_1557 = arith.constant 1 : index
    %1397 = vector.load %arg2[%c0_1554, %1396, %c14_1555, %c0_1556, %c1_1557] : memref<1x18x18x2x9xbf16, #tpu.memory_space<vmem>>, vector<1x1x1x1x8xbf16>
    %1398 = vector.shape_cast %1397 : vector<1x1x1x1x8xbf16> to vector<1x8xbf16>
    %c26_1558 = arith.constant 26 : index
    %c0_1559 = arith.constant 0 : index
    %c0_1560 = arith.constant 0 : index
    %1399 = vector.load %arg3[%c26_1558, %c0_1559, %c0_1560] : memref<27x8x1xbf16, #tpu.memory_space<vmem>>, vector<1x8x1xbf16>
    %1400 = vector.shape_cast %1399 : vector<1x8x1xbf16> to vector<8x1xbf16>
    %cst_1561 = arith.constant dense<0.000000e+00> : vector<8x8xf32>
    %1401 = tpu.matmul %1400, %1398, %cst_1561 {dimension_numbers = #tpu.dot_dimension_numbers<[1], [0], [0], [1], [0, 0, 1, 1], [], []>} : vector<8x1xbf16>, vector<1x8xbf16>, vector<8x8xf32> -> vector<8x8xf32>
    %1402 = arith.addf %1395, %1401 : vector<8x8xf32>
    %1403 = vector.broadcast %0 : vector<8x1xf32> to vector<8x8xf32>
    %1404 = arith.addf %1402, %1403 : vector<8x8xf32>
    %c0_1562 = arith.constant 0 : index
    %c0_1563 = arith.constant 0 : index
    %c6_1564 = arith.constant 6 : index
    %c0_1565 = arith.constant 0 : index
    %c0_1566 = arith.constant 0 : index
    %1405 = vector.load %arg5[%c0_1562, %c0_1563, %c6_1564, %c0_1565, %c0_1566] : memref<1x1x8x8x8xf32, #tpu.memory_space<vmem>>, vector<1x1x1x8x8xf32>
    %1406 = vector.shape_cast %1405 : vector<1x1x1x8x8xf32> to vector<8x8xf32>
    %1407 = vector.shape_cast %1404 : vector<8x8xf32> to vector<1x1x1x8x8xf32>
    tpu.vector_store %arg5[%c0_1562, %c0_1563, %c6_1564, %c0_1565, %c0_1566], %1407 {strides = array<i32>} : memref<1x1x8x8x8xf32, #tpu.memory_space<vmem>>, vector<1x1x1x8x8xf32>,
    %cst_1567 = arith.constant 0.000000e+00 : f32
    %1408 = vector.broadcast %cst_1567 : f32 to vector<8x8xf32>
    %c2_i32_1568 = arith.constant 2 : i32
    %1409 = arith.muli %arg1, %c2_i32_1568 : i32
    %c0_i32_1569 = arith.constant 0 : i32
    %1410 = arith.addi %1409, %c0_i32_1569 : i32
    %c0_1570 = arith.constant 0 : index
    %1411 = arith.index_cast %1410 : i32 to index
    %c14_1571 = arith.constant 14 : index
    %c0_1572 = arith.constant 0 : index
    %c0_1573 = arith.constant 0 : index
    %1412 = vector.load %arg2[%c0_1570, %1411, %c14_1571, %c0_1572, %c0_1573] : memref<1x18x18x2x9xbf16, #tpu.memory_space<vmem>>, vector<1x1x1x1x8xbf16>
    %1413 = vector.shape_cast %1412 : vector<1x1x1x1x8xbf16> to vector<1x8xbf16>
    %c0_1574 = arith.constant 0 : index
    %c0_1575 = arith.constant 0 : index
    %c0_1576 = arith.constant 0 : index
    %1414 = vector.load %arg3[%c0_1574, %c0_1575, %c0_1576] : memref<27x8x1xbf16, #tpu.memory_space<vmem>>, vector<1x8x1xbf16>
    %1415 = vector.shape_cast %1414 : vector<1x8x1xbf16> to vector<8x1xbf16>
    %cst_1577 = arith.constant dense<0.000000e+00> : vector<8x8xf32>
    %1416 = tpu.matmul %1415, %1413, %cst_1577 {dimension_numbers = #tpu.dot_dimension_numbers<[1], [0], [0], [1], [0, 0, 1, 1], [], []>} : vector<8x1xbf16>, vector<1x8xbf16>, vector<8x8xf32> -> vector<8x8xf32>
    %1417 = arith.addf %1408, %1416 : vector<8x8xf32>
    %c0_1578 = arith.constant 0 : index
    %1418 = arith.index_cast %1410 : i32 to index
    %c14_1579 = arith.constant 14 : index
    %c1_1580 = arith.constant 1 : index
    %c0_1581 = arith.constant 0 : index
    %1419 = vector.load %arg2[%c0_1578, %1418, %c14_1579, %c1_1580, %c0_1581] : memref<1x18x18x2x9xbf16, #tpu.memory_space<vmem>>, vector<1x1x1x1x8xbf16>
    %1420 = vector.shape_cast %1419 : vector<1x1x1x1x8xbf16> to vector<1x8xbf16>
    %c1_1582 = arith.constant 1 : index
    %c0_1583 = arith.constant 0 : index
    %c0_1584 = arith.constant 0 : index
    %1421 = vector.load %arg3[%c1_1582, %c0_1583, %c0_1584] : memref<27x8x1xbf16, #tpu.memory_space<vmem>>, vector<1x8x1xbf16>
    %1422 = vector.shape_cast %1421 : vector<1x8x1xbf16> to vector<8x1xbf16>
    %cst_1585 = arith.constant dense<0.000000e+00> : vector<8x8xf32>
    %1423 = tpu.matmul %1422, %1420, %cst_1585 {dimension_numbers = #tpu.dot_dimension_numbers<[1], [0], [0], [1], [0, 0, 1, 1], [], []>} : vector<8x1xbf16>, vector<1x8xbf16>, vector<8x8xf32> -> vector<8x8xf32>
    %1424 = arith.addf %1417, %1423 : vector<8x8xf32>
    %c0_1586 = arith.constant 0 : index
    %1425 = arith.index_cast %1410 : i32 to index
    %c14_1587 = arith.constant 14 : index
    %c0_1588 = arith.constant 0 : index
    %c1_1589 = arith.constant 1 : index
    %1426 = vector.load %arg2[%c0_1586, %1425, %c14_1587, %c0_1588, %c1_1589] : memref<1x18x18x2x9xbf16, #tpu.memory_space<vmem>>, vector<1x1x1x1x8xbf16>
    %1427 = vector.shape_cast %1426 : vector<1x1x1x1x8xbf16> to vector<1x8xbf16>
    %c2_1590 = arith.constant 2 : index
    %c0_1591 = arith.constant 0 : index
    %c0_1592 = arith.constant 0 : index
    %1428 = vector.load %arg3[%c2_1590, %c0_1591, %c0_1592] : memref<27x8x1xbf16, #tpu.memory_space<vmem>>, vector<1x8x1xbf16>
    %1429 = vector.shape_cast %1428 : vector<1x8x1xbf16> to vector<8x1xbf16>
    %cst_1593 = arith.constant dense<0.000000e+00> : vector<8x8xf32>
    %1430 = tpu.matmul %1429, %1427, %cst_1593 {dimension_numbers = #tpu.dot_dimension_numbers<[1], [0], [0], [1], [0, 0, 1, 1], [], []>} : vector<8x1xbf16>, vector<1x8xbf16>, vector<8x8xf32> -> vector<8x8xf32>
    %1431 = arith.addf %1424, %1430 : vector<8x8xf32>
    %c0_1594 = arith.constant 0 : index
    %1432 = arith.index_cast %1410 : i32 to index
    %c15_1595 = arith.constant 15 : index
    %c0_1596 = arith.constant 0 : index
    %c0_1597 = arith.constant 0 : index
    %1433 = vector.load %arg2[%c0_1594, %1432, %c15_1595, %c0_1596, %c0_1597] : memref<1x18x18x2x9xbf16, #tpu.memory_space<vmem>>, vector<1x1x1x1x8xbf16>
    %1434 = vector.shape_cast %1433 : vector<1x1x1x1x8xbf16> to vector<1x8xbf16>
    %c3_1598 = arith.constant 3 : index
    %c0_1599 = arith.constant 0 : index
    %c0_1600 = arith.constant 0 : index
    %1435 = vector.load %arg3[%c3_1598, %c0_1599, %c0_1600] : memref<27x8x1xbf16, #tpu.memory_space<vmem>>, vector<1x8x1xbf16>
    %1436 = vector.shape_cast %1435 : vector<1x8x1xbf16> to vector<8x1xbf16>
    %cst_1601 = arith.constant dense<0.000000e+00> : vector<8x8xf32>
    %1437 = tpu.matmul %1436, %1434, %cst_1601 {dimension_numbers = #tpu.dot_dimension_numbers<[1], [0], [0], [1], [0, 0, 1, 1], [], []>} : vector<8x1xbf16>, vector<1x8xbf16>, vector<8x8xf32> -> vector<8x8xf32>
    %1438 = arith.addf %1431, %1437 : vector<8x8xf32>
    %c0_1602 = arith.constant 0 : index
    %1439 = arith.index_cast %1410 : i32 to index
    %c15_1603 = arith.constant 15 : index
    %c1_1604 = arith.constant 1 : index
    %c0_1605 = arith.constant 0 : index
    %1440 = vector.load %arg2[%c0_1602, %1439, %c15_1603, %c1_1604, %c0_1605] : memref<1x18x18x2x9xbf16, #tpu.memory_space<vmem>>, vector<1x1x1x1x8xbf16>
    %1441 = vector.shape_cast %1440 : vector<1x1x1x1x8xbf16> to vector<1x8xbf16>
    %c4_1606 = arith.constant 4 : index
    %c0_1607 = arith.constant 0 : index
    %c0_1608 = arith.constant 0 : index
    %1442 = vector.load %arg3[%c4_1606, %c0_1607, %c0_1608] : memref<27x8x1xbf16, #tpu.memory_space<vmem>>, vector<1x8x1xbf16>
    %1443 = vector.shape_cast %1442 : vector<1x8x1xbf16> to vector<8x1xbf16>
    %cst_1609 = arith.constant dense<0.000000e+00> : vector<8x8xf32>
    %1444 = tpu.matmul %1443, %1441, %cst_1609 {dimension_numbers = #tpu.dot_dimension_numbers<[1], [0], [0], [1], [0, 0, 1, 1], [], []>} : vector<8x1xbf16>, vector<1x8xbf16>, vector<8x8xf32> -> vector<8x8xf32>
    %1445 = arith.addf %1438, %1444 : vector<8x8xf32>
    %c0_1610 = arith.constant 0 : index
    %1446 = arith.index_cast %1410 : i32 to index
    %c15_1611 = arith.constant 15 : index
    %c0_1612 = arith.constant 0 : index
    %c1_1613 = arith.constant 1 : index
    %1447 = vector.load %arg2[%c0_1610, %1446, %c15_1611, %c0_1612, %c1_1613] : memref<1x18x18x2x9xbf16, #tpu.memory_space<vmem>>, vector<1x1x1x1x8xbf16>
    %1448 = vector.shape_cast %1447 : vector<1x1x1x1x8xbf16> to vector<1x8xbf16>
    %c5_1614 = arith.constant 5 : index
    %c0_1615 = arith.constant 0 : index
    %c0_1616 = arith.constant 0 : index
    %1449 = vector.load %arg3[%c5_1614, %c0_1615, %c0_1616] : memref<27x8x1xbf16, #tpu.memory_space<vmem>>, vector<1x8x1xbf16>
    %1450 = vector.shape_cast %1449 : vector<1x8x1xbf16> to vector<8x1xbf16>
    %cst_1617 = arith.constant dense<0.000000e+00> : vector<8x8xf32>
    %1451 = tpu.matmul %1450, %1448, %cst_1617 {dimension_numbers = #tpu.dot_dimension_numbers<[1], [0], [0], [1], [0, 0, 1, 1], [], []>} : vector<8x1xbf16>, vector<1x8xbf16>, vector<8x8xf32> -> vector<8x8xf32>
    %1452 = arith.addf %1445, %1451 : vector<8x8xf32>
    %c0_1618 = arith.constant 0 : index
    %1453 = arith.index_cast %1410 : i32 to index
    %c16_1619 = arith.constant 16 : index
    %c0_1620 = arith.constant 0 : index
    %c0_1621 = arith.constant 0 : index
    %1454 = vector.load %arg2[%c0_1618, %1453, %c16_1619, %c0_1620, %c0_1621] : memref<1x18x18x2x9xbf16, #tpu.memory_space<vmem>>, vector<1x1x1x1x8xbf16>
    %1455 = vector.shape_cast %1454 : vector<1x1x1x1x8xbf16> to vector<1x8xbf16>
    %c6_1622 = arith.constant 6 : index
    %c0_1623 = arith.constant 0 : index
    %c0_1624 = arith.constant 0 : index
    %1456 = vector.load %arg3[%c6_1622, %c0_1623, %c0_1624] : memref<27x8x1xbf16, #tpu.memory_space<vmem>>, vector<1x8x1xbf16>
    %1457 = vector.shape_cast %1456 : vector<1x8x1xbf16> to vector<8x1xbf16>
    %cst_1625 = arith.constant dense<0.000000e+00> : vector<8x8xf32>
    %1458 = tpu.matmul %1457, %1455, %cst_1625 {dimension_numbers = #tpu.dot_dimension_numbers<[1], [0], [0], [1], [0, 0, 1, 1], [], []>} : vector<8x1xbf16>, vector<1x8xbf16>, vector<8x8xf32> -> vector<8x8xf32>
    %1459 = arith.addf %1452, %1458 : vector<8x8xf32>
    %c0_1626 = arith.constant 0 : index
    %1460 = arith.index_cast %1410 : i32 to index
    %c16_1627 = arith.constant 16 : index
    %c1_1628 = arith.constant 1 : index
    %c0_1629 = arith.constant 0 : index
    %1461 = vector.load %arg2[%c0_1626, %1460, %c16_1627, %c1_1628, %c0_1629] : memref<1x18x18x2x9xbf16, #tpu.memory_space<vmem>>, vector<1x1x1x1x8xbf16>
    %1462 = vector.shape_cast %1461 : vector<1x1x1x1x8xbf16> to vector<1x8xbf16>
    %c7_1630 = arith.constant 7 : index
    %c0_1631 = arith.constant 0 : index
    %c0_1632 = arith.constant 0 : index
    %1463 = vector.load %arg3[%c7_1630, %c0_1631, %c0_1632] : memref<27x8x1xbf16, #tpu.memory_space<vmem>>, vector<1x8x1xbf16>
    %1464 = vector.shape_cast %1463 : vector<1x8x1xbf16> to vector<8x1xbf16>
    %cst_1633 = arith.constant dense<0.000000e+00> : vector<8x8xf32>
    %1465 = tpu.matmul %1464, %1462, %cst_1633 {dimension_numbers = #tpu.dot_dimension_numbers<[1], [0], [0], [1], [0, 0, 1, 1], [], []>} : vector<8x1xbf16>, vector<1x8xbf16>, vector<8x8xf32> -> vector<8x8xf32>
    %1466 = arith.addf %1459, %1465 : vector<8x8xf32>
    %c0_1634 = arith.constant 0 : index
    %1467 = arith.index_cast %1410 : i32 to index
    %c16_1635 = arith.constant 16 : index
    %c0_1636 = arith.constant 0 : index
    %c1_1637 = arith.constant 1 : index
    %1468 = vector.load %arg2[%c0_1634, %1467, %c16_1635, %c0_1636, %c1_1637] : memref<1x18x18x2x9xbf16, #tpu.memory_space<vmem>>, vector<1x1x1x1x8xbf16>
    %1469 = vector.shape_cast %1468 : vector<1x1x1x1x8xbf16> to vector<1x8xbf16>
    %c8_1638 = arith.constant 8 : index
    %c0_1639 = arith.constant 0 : index
    %c0_1640 = arith.constant 0 : index
    %1470 = vector.load %arg3[%c8_1638, %c0_1639, %c0_1640] : memref<27x8x1xbf16, #tpu.memory_space<vmem>>, vector<1x8x1xbf16>
    %1471 = vector.shape_cast %1470 : vector<1x8x1xbf16> to vector<8x1xbf16>
    %cst_1641 = arith.constant dense<0.000000e+00> : vector<8x8xf32>
    %1472 = tpu.matmul %1471, %1469, %cst_1641 {dimension_numbers = #tpu.dot_dimension_numbers<[1], [0], [0], [1], [0, 0, 1, 1], [], []>} : vector<8x1xbf16>, vector<1x8xbf16>, vector<8x8xf32> -> vector<8x8xf32>
    %1473 = arith.addf %1466, %1472 : vector<8x8xf32>
    %c2_i32_1642 = arith.constant 2 : i32
    %1474 = arith.muli %arg1, %c2_i32_1642 : i32
    %c1_i32_1643 = arith.constant 1 : i32
    %1475 = arith.addi %1474, %c1_i32_1643 : i32
    %c0_1644 = arith.constant 0 : index
    %1476 = arith.index_cast %1475 : i32 to index
    %c14_1645 = arith.constant 14 : index
    %c0_1646 = arith.constant 0 : index
    %c0_1647 = arith.constant 0 : index
    %1477 = vector.load %arg2[%c0_1644, %1476, %c14_1645, %c0_1646, %c0_1647] : memref<1x18x18x2x9xbf16, #tpu.memory_space<vmem>>, vector<1x1x1x1x8xbf16>
    %1478 = vector.shape_cast %1477 : vector<1x1x1x1x8xbf16> to vector<1x8xbf16>
    %c9_1648 = arith.constant 9 : index
    %c0_1649 = arith.constant 0 : index
    %c0_1650 = arith.constant 0 : index
    %1479 = vector.load %arg3[%c9_1648, %c0_1649, %c0_1650] : memref<27x8x1xbf16, #tpu.memory_space<vmem>>, vector<1x8x1xbf16>
    %1480 = vector.shape_cast %1479 : vector<1x8x1xbf16> to vector<8x1xbf16>
    %cst_1651 = arith.constant dense<0.000000e+00> : vector<8x8xf32>
    %1481 = tpu.matmul %1480, %1478, %cst_1651 {dimension_numbers = #tpu.dot_dimension_numbers<[1], [0], [0], [1], [0, 0, 1, 1], [], []>} : vector<8x1xbf16>, vector<1x8xbf16>, vector<8x8xf32> -> vector<8x8xf32>
    %1482 = arith.addf %1473, %1481 : vector<8x8xf32>
    %c0_1652 = arith.constant 0 : index
    %1483 = arith.index_cast %1475 : i32 to index
    %c14_1653 = arith.constant 14 : index
    %c1_1654 = arith.constant 1 : index
    %c0_1655 = arith.constant 0 : index
    %1484 = vector.load %arg2[%c0_1652, %1483, %c14_1653, %c1_1654, %c0_1655] : memref<1x18x18x2x9xbf16, #tpu.memory_space<vmem>>, vector<1x1x1x1x8xbf16>
    %1485 = vector.shape_cast %1484 : vector<1x1x1x1x8xbf16> to vector<1x8xbf16>
    %c10_1656 = arith.constant 10 : index
    %c0_1657 = arith.constant 0 : index
    %c0_1658 = arith.constant 0 : index
    %1486 = vector.load %arg3[%c10_1656, %c0_1657, %c0_1658] : memref<27x8x1xbf16, #tpu.memory_space<vmem>>, vector<1x8x1xbf16>
    %1487 = vector.shape_cast %1486 : vector<1x8x1xbf16> to vector<8x1xbf16>
    %cst_1659 = arith.constant dense<0.000000e+00> : vector<8x8xf32>
    %1488 = tpu.matmul %1487, %1485, %cst_1659 {dimension_numbers = #tpu.dot_dimension_numbers<[1], [0], [0], [1], [0, 0, 1, 1], [], []>} : vector<8x1xbf16>, vector<1x8xbf16>, vector<8x8xf32> -> vector<8x8xf32>
    %1489 = arith.addf %1482, %1488 : vector<8x8xf32>
    %c0_1660 = arith.constant 0 : index
    %1490 = arith.index_cast %1475 : i32 to index
    %c14_1661 = arith.constant 14 : index
    %c0_1662 = arith.constant 0 : index
    %c1_1663 = arith.constant 1 : index
    %1491 = vector.load %arg2[%c0_1660, %1490, %c14_1661, %c0_1662, %c1_1663] : memref<1x18x18x2x9xbf16, #tpu.memory_space<vmem>>, vector<1x1x1x1x8xbf16>
    %1492 = vector.shape_cast %1491 : vector<1x1x1x1x8xbf16> to vector<1x8xbf16>
    %c11_1664 = arith.constant 11 : index
    %c0_1665 = arith.constant 0 : index
    %c0_1666 = arith.constant 0 : index
    %1493 = vector.load %arg3[%c11_1664, %c0_1665, %c0_1666] : memref<27x8x1xbf16, #tpu.memory_space<vmem>>, vector<1x8x1xbf16>
    %1494 = vector.shape_cast %1493 : vector<1x8x1xbf16> to vector<8x1xbf16>
    %cst_1667 = arith.constant dense<0.000000e+00> : vector<8x8xf32>
    %1495 = tpu.matmul %1494, %1492, %cst_1667 {dimension_numbers = #tpu.dot_dimension_numbers<[1], [0], [0], [1], [0, 0, 1, 1], [], []>} : vector<8x1xbf16>, vector<1x8xbf16>, vector<8x8xf32> -> vector<8x8xf32>
    %1496 = arith.addf %1489, %1495 : vector<8x8xf32>
    %c0_1668 = arith.constant 0 : index
    %1497 = arith.index_cast %1475 : i32 to index
    %c15_1669 = arith.constant 15 : index
    %c0_1670 = arith.constant 0 : index
    %c0_1671 = arith.constant 0 : index
    %1498 = vector.load %arg2[%c0_1668, %1497, %c15_1669, %c0_1670, %c0_1671] : memref<1x18x18x2x9xbf16, #tpu.memory_space<vmem>>, vector<1x1x1x1x8xbf16>
    %1499 = vector.shape_cast %1498 : vector<1x1x1x1x8xbf16> to vector<1x8xbf16>
    %c12_1672 = arith.constant 12 : index
    %c0_1673 = arith.constant 0 : index
    %c0_1674 = arith.constant 0 : index
    %1500 = vector.load %arg3[%c12_1672, %c0_1673, %c0_1674] : memref<27x8x1xbf16, #tpu.memory_space<vmem>>, vector<1x8x1xbf16>
    %1501 = vector.shape_cast %1500 : vector<1x8x1xbf16> to vector<8x1xbf16>
    %cst_1675 = arith.constant dense<0.000000e+00> : vector<8x8xf32>
    %1502 = tpu.matmul %1501, %1499, %cst_1675 {dimension_numbers = #tpu.dot_dimension_numbers<[1], [0], [0], [1], [0, 0, 1, 1], [], []>} : vector<8x1xbf16>, vector<1x8xbf16>, vector<8x8xf32> -> vector<8x8xf32>
    %1503 = arith.addf %1496, %1502 : vector<8x8xf32>
    %c0_1676 = arith.constant 0 : index
    %1504 = arith.index_cast %1475 : i32 to index
    %c15_1677 = arith.constant 15 : index
    %c1_1678 = arith.constant 1 : index
    %c0_1679 = arith.constant 0 : index
    %1505 = vector.load %arg2[%c0_1676, %1504, %c15_1677, %c1_1678, %c0_1679] : memref<1x18x18x2x9xbf16, #tpu.memory_space<vmem>>, vector<1x1x1x1x8xbf16>
    %1506 = vector.shape_cast %1505 : vector<1x1x1x1x8xbf16> to vector<1x8xbf16>
    %c13_1680 = arith.constant 13 : index
    %c0_1681 = arith.constant 0 : index
    %c0_1682 = arith.constant 0 : index
    %1507 = vector.load %arg3[%c13_1680, %c0_1681, %c0_1682] : memref<27x8x1xbf16, #tpu.memory_space<vmem>>, vector<1x8x1xbf16>
    %1508 = vector.shape_cast %1507 : vector<1x8x1xbf16> to vector<8x1xbf16>
    %cst_1683 = arith.constant dense<0.000000e+00> : vector<8x8xf32>
    %1509 = tpu.matmul %1508, %1506, %cst_1683 {dimension_numbers = #tpu.dot_dimension_numbers<[1], [0], [0], [1], [0, 0, 1, 1], [], []>} : vector<8x1xbf16>, vector<1x8xbf16>, vector<8x8xf32> -> vector<8x8xf32>
    %1510 = arith.addf %1503, %1509 : vector<8x8xf32>
    %c0_1684 = arith.constant 0 : index
    %1511 = arith.index_cast %1475 : i32 to index
    %c15_1685 = arith.constant 15 : index
    %c0_1686 = arith.constant 0 : index
    %c1_1687 = arith.constant 1 : index
    %1512 = vector.load %arg2[%c0_1684, %1511, %c15_1685, %c0_1686, %c1_1687] : memref<1x18x18x2x9xbf16, #tpu.memory_space<vmem>>, vector<1x1x1x1x8xbf16>
    %1513 = vector.shape_cast %1512 : vector<1x1x1x1x8xbf16> to vector<1x8xbf16>
    %c14_1688 = arith.constant 14 : index
    %c0_1689 = arith.constant 0 : index
    %c0_1690 = arith.constant 0 : index
    %1514 = vector.load %arg3[%c14_1688, %c0_1689, %c0_1690] : memref<27x8x1xbf16, #tpu.memory_space<vmem>>, vector<1x8x1xbf16>
    %1515 = vector.shape_cast %1514 : vector<1x8x1xbf16> to vector<8x1xbf16>
    %cst_1691 = arith.constant dense<0.000000e+00> : vector<8x8xf32>
    %1516 = tpu.matmul %1515, %1513, %cst_1691 {dimension_numbers = #tpu.dot_dimension_numbers<[1], [0], [0], [1], [0, 0, 1, 1], [], []>} : vector<8x1xbf16>, vector<1x8xbf16>, vector<8x8xf32> -> vector<8x8xf32>
    %1517 = arith.addf %1510, %1516 : vector<8x8xf32>
    %c0_1692 = arith.constant 0 : index
    %1518 = arith.index_cast %1475 : i32 to index
    %c16_1693 = arith.constant 16 : index
    %c0_1694 = arith.constant 0 : index
    %c0_1695 = arith.constant 0 : index
    %1519 = vector.load %arg2[%c0_1692, %1518, %c16_1693, %c0_1694, %c0_1695] : memref<1x18x18x2x9xbf16, #tpu.memory_space<vmem>>, vector<1x1x1x1x8xbf16>
    %1520 = vector.shape_cast %1519 : vector<1x1x1x1x8xbf16> to vector<1x8xbf16>
    %c15_1696 = arith.constant 15 : index
    %c0_1697 = arith.constant 0 : index
    %c0_1698 = arith.constant 0 : index
    %1521 = vector.load %arg3[%c15_1696, %c0_1697, %c0_1698] : memref<27x8x1xbf16, #tpu.memory_space<vmem>>, vector<1x8x1xbf16>
    %1522 = vector.shape_cast %1521 : vector<1x8x1xbf16> to vector<8x1xbf16>
    %cst_1699 = arith.constant dense<0.000000e+00> : vector<8x8xf32>
    %1523 = tpu.matmul %1522, %1520, %cst_1699 {dimension_numbers = #tpu.dot_dimension_numbers<[1], [0], [0], [1], [0, 0, 1, 1], [], []>} : vector<8x1xbf16>, vector<1x8xbf16>, vector<8x8xf32> -> vector<8x8xf32>
    %1524 = arith.addf %1517, %1523 : vector<8x8xf32>
    %c0_1700 = arith.constant 0 : index
    %1525 = arith.index_cast %1475 : i32 to index
    %c16_1701 = arith.constant 16 : index
    %c1_1702 = arith.constant 1 : index
    %c0_1703 = arith.constant 0 : index
    %1526 = vector.load %arg2[%c0_1700, %1525, %c16_1701, %c1_1702, %c0_1703] : memref<1x18x18x2x9xbf16, #tpu.memory_space<vmem>>, vector<1x1x1x1x8xbf16>
    %1527 = vector.shape_cast %1526 : vector<1x1x1x1x8xbf16> to vector<1x8xbf16>
    %c16_1704 = arith.constant 16 : index
    %c0_1705 = arith.constant 0 : index
    %c0_1706 = arith.constant 0 : index
    %1528 = vector.load %arg3[%c16_1704, %c0_1705, %c0_1706] : memref<27x8x1xbf16, #tpu.memory_space<vmem>>, vector<1x8x1xbf16>
    %1529 = vector.shape_cast %1528 : vector<1x8x1xbf16> to vector<8x1xbf16>
    %cst_1707 = arith.constant dense<0.000000e+00> : vector<8x8xf32>
    %1530 = tpu.matmul %1529, %1527, %cst_1707 {dimension_numbers = #tpu.dot_dimension_numbers<[1], [0], [0], [1], [0, 0, 1, 1], [], []>} : vector<8x1xbf16>, vector<1x8xbf16>, vector<8x8xf32> -> vector<8x8xf32>
    %1531 = arith.addf %1524, %1530 : vector<8x8xf32>
    %c0_1708 = arith.constant 0 : index
    %1532 = arith.index_cast %1475 : i32 to index
    %c16_1709 = arith.constant 16 : index
    %c0_1710 = arith.constant 0 : index
    %c1_1711 = arith.constant 1 : index
    %1533 = vector.load %arg2[%c0_1708, %1532, %c16_1709, %c0_1710, %c1_1711] : memref<1x18x18x2x9xbf16, #tpu.memory_space<vmem>>, vector<1x1x1x1x8xbf16>
    %1534 = vector.shape_cast %1533 : vector<1x1x1x1x8xbf16> to vector<1x8xbf16>
    %c17_1712 = arith.constant 17 : index
    %c0_1713 = arith.constant 0 : index
    %c0_1714 = arith.constant 0 : index
    %1535 = vector.load %arg3[%c17_1712, %c0_1713, %c0_1714] : memref<27x8x1xbf16, #tpu.memory_space<vmem>>, vector<1x8x1xbf16>
    %1536 = vector.shape_cast %1535 : vector<1x8x1xbf16> to vector<8x1xbf16>
    %cst_1715 = arith.constant dense<0.000000e+00> : vector<8x8xf32>
    %1537 = tpu.matmul %1536, %1534, %cst_1715 {dimension_numbers = #tpu.dot_dimension_numbers<[1], [0], [0], [1], [0, 0, 1, 1], [], []>} : vector<8x1xbf16>, vector<1x8xbf16>, vector<8x8xf32> -> vector<8x8xf32>
    %1538 = arith.addf %1531, %1537 : vector<8x8xf32>
    %c2_i32_1716 = arith.constant 2 : i32
    %1539 = arith.muli %arg1, %c2_i32_1716 : i32
    %c2_i32_1717 = arith.constant 2 : i32
    %1540 = arith.addi %1539, %c2_i32_1717 : i32
    %c0_1718 = arith.constant 0 : index
    %1541 = arith.index_cast %1540 : i32 to index
    %c14_1719 = arith.constant 14 : index
    %c0_1720 = arith.constant 0 : index
    %c0_1721 = arith.constant 0 : index
    %1542 = vector.load %arg2[%c0_1718, %1541, %c14_1719, %c0_1720, %c0_1721] : memref<1x18x18x2x9xbf16, #tpu.memory_space<vmem>>, vector<1x1x1x1x8xbf16>
    %1543 = vector.shape_cast %1542 : vector<1x1x1x1x8xbf16> to vector<1x8xbf16>
    %c18_1722 = arith.constant 18 : index
    %c0_1723 = arith.constant 0 : index
    %c0_1724 = arith.constant 0 : index
    %1544 = vector.load %arg3[%c18_1722, %c0_1723, %c0_1724] : memref<27x8x1xbf16, #tpu.memory_space<vmem>>, vector<1x8x1xbf16>
    %1545 = vector.shape_cast %1544 : vector<1x8x1xbf16> to vector<8x1xbf16>
    %cst_1725 = arith.constant dense<0.000000e+00> : vector<8x8xf32>
    %1546 = tpu.matmul %1545, %1543, %cst_1725 {dimension_numbers = #tpu.dot_dimension_numbers<[1], [0], [0], [1], [0, 0, 1, 1], [], []>} : vector<8x1xbf16>, vector<1x8xbf16>, vector<8x8xf32> -> vector<8x8xf32>
    %1547 = arith.addf %1538, %1546 : vector<8x8xf32>
    %c0_1726 = arith.constant 0 : index
    %1548 = arith.index_cast %1540 : i32 to index
    %c14_1727 = arith.constant 14 : index
    %c1_1728 = arith.constant 1 : index
    %c0_1729 = arith.constant 0 : index
    %1549 = vector.load %arg2[%c0_1726, %1548, %c14_1727, %c1_1728, %c0_1729] : memref<1x18x18x2x9xbf16, #tpu.memory_space<vmem>>, vector<1x1x1x1x8xbf16>
    %1550 = vector.shape_cast %1549 : vector<1x1x1x1x8xbf16> to vector<1x8xbf16>
    %c19_1730 = arith.constant 19 : index
    %c0_1731 = arith.constant 0 : index
    %c0_1732 = arith.constant 0 : index
    %1551 = vector.load %arg3[%c19_1730, %c0_1731, %c0_1732] : memref<27x8x1xbf16, #tpu.memory_space<vmem>>, vector<1x8x1xbf16>
    %1552 = vector.shape_cast %1551 : vector<1x8x1xbf16> to vector<8x1xbf16>
    %cst_1733 = arith.constant dense<0.000000e+00> : vector<8x8xf32>
    %1553 = tpu.matmul %1552, %1550, %cst_1733 {dimension_numbers = #tpu.dot_dimension_numbers<[1], [0], [0], [1], [0, 0, 1, 1], [], []>} : vector<8x1xbf16>, vector<1x8xbf16>, vector<8x8xf32> -> vector<8x8xf32>
    %1554 = arith.addf %1547, %1553 : vector<8x8xf32>
    %c0_1734 = arith.constant 0 : index
    %1555 = arith.index_cast %1540 : i32 to index
    %c14_1735 = arith.constant 14 : index
    %c0_1736 = arith.constant 0 : index
    %c1_1737 = arith.constant 1 : index
    %1556 = vector.load %arg2[%c0_1734, %1555, %c14_1735, %c0_1736, %c1_1737] : memref<1x18x18x2x9xbf16, #tpu.memory_space<vmem>>, vector<1x1x1x1x8xbf16>
    %1557 = vector.shape_cast %1556 : vector<1x1x1x1x8xbf16> to vector<1x8xbf16>
    %c20_1738 = arith.constant 20 : index
    %c0_1739 = arith.constant 0 : index
    %c0_1740 = arith.constant 0 : index
    %1558 = vector.load %arg3[%c20_1738, %c0_1739, %c0_1740] : memref<27x8x1xbf16, #tpu.memory_space<vmem>>, vector<1x8x1xbf16>
    %1559 = vector.shape_cast %1558 : vector<1x8x1xbf16> to vector<8x1xbf16>
    %cst_1741 = arith.constant dense<0.000000e+00> : vector<8x8xf32>
    %1560 = tpu.matmul %1559, %1557, %cst_1741 {dimension_numbers = #tpu.dot_dimension_numbers<[1], [0], [0], [1], [0, 0, 1, 1], [], []>} : vector<8x1xbf16>, vector<1x8xbf16>, vector<8x8xf32> -> vector<8x8xf32>
    %1561 = arith.addf %1554, %1560 : vector<8x8xf32>
    %c0_1742 = arith.constant 0 : index
    %1562 = arith.index_cast %1540 : i32 to index
    %c15_1743 = arith.constant 15 : index
    %c0_1744 = arith.constant 0 : index
    %c0_1745 = arith.constant 0 : index
    %1563 = vector.load %arg2[%c0_1742, %1562, %c15_1743, %c0_1744, %c0_1745] : memref<1x18x18x2x9xbf16, #tpu.memory_space<vmem>>, vector<1x1x1x1x8xbf16>
    %1564 = vector.shape_cast %1563 : vector<1x1x1x1x8xbf16> to vector<1x8xbf16>
    %c21_1746 = arith.constant 21 : index
    %c0_1747 = arith.constant 0 : index
    %c0_1748 = arith.constant 0 : index
    %1565 = vector.load %arg3[%c21_1746, %c0_1747, %c0_1748] : memref<27x8x1xbf16, #tpu.memory_space<vmem>>, vector<1x8x1xbf16>
    %1566 = vector.shape_cast %1565 : vector<1x8x1xbf16> to vector<8x1xbf16>
    %cst_1749 = arith.constant dense<0.000000e+00> : vector<8x8xf32>
    %1567 = tpu.matmul %1566, %1564, %cst_1749 {dimension_numbers = #tpu.dot_dimension_numbers<[1], [0], [0], [1], [0, 0, 1, 1], [], []>} : vector<8x1xbf16>, vector<1x8xbf16>, vector<8x8xf32> -> vector<8x8xf32>
    %1568 = arith.addf %1561, %1567 : vector<8x8xf32>
    %c0_1750 = arith.constant 0 : index
    %1569 = arith.index_cast %1540 : i32 to index
    %c15_1751 = arith.constant 15 : index
    %c1_1752 = arith.constant 1 : index
    %c0_1753 = arith.constant 0 : index
    %1570 = vector.load %arg2[%c0_1750, %1569, %c15_1751, %c1_1752, %c0_1753] : memref<1x18x18x2x9xbf16, #tpu.memory_space<vmem>>, vector<1x1x1x1x8xbf16>
    %1571 = vector.shape_cast %1570 : vector<1x1x1x1x8xbf16> to vector<1x8xbf16>
    %c22_1754 = arith.constant 22 : index
    %c0_1755 = arith.constant 0 : index
    %c0_1756 = arith.constant 0 : index
    %1572 = vector.load %arg3[%c22_1754, %c0_1755, %c0_1756] : memref<27x8x1xbf16, #tpu.memory_space<vmem>>, vector<1x8x1xbf16>
    %1573 = vector.shape_cast %1572 : vector<1x8x1xbf16> to vector<8x1xbf16>
    %cst_1757 = arith.constant dense<0.000000e+00> : vector<8x8xf32>
    %1574 = tpu.matmul %1573, %1571, %cst_1757 {dimension_numbers = #tpu.dot_dimension_numbers<[1], [0], [0], [1], [0, 0, 1, 1], [], []>} : vector<8x1xbf16>, vector<1x8xbf16>, vector<8x8xf32> -> vector<8x8xf32>
    %1575 = arith.addf %1568, %1574 : vector<8x8xf32>
    %c0_1758 = arith.constant 0 : index
    %1576 = arith.index_cast %1540 : i32 to index
    %c15_1759 = arith.constant 15 : index
    %c0_1760 = arith.constant 0 : index
    %c1_1761 = arith.constant 1 : index
    %1577 = vector.load %arg2[%c0_1758, %1576, %c15_1759, %c0_1760, %c1_1761] : memref<1x18x18x2x9xbf16, #tpu.memory_space<vmem>>, vector<1x1x1x1x8xbf16>
    %1578 = vector.shape_cast %1577 : vector<1x1x1x1x8xbf16> to vector<1x8xbf16>
    %c23_1762 = arith.constant 23 : index
    %c0_1763 = arith.constant 0 : index
    %c0_1764 = arith.constant 0 : index
    %1579 = vector.load %arg3[%c23_1762, %c0_1763, %c0_1764] : memref<27x8x1xbf16, #tpu.memory_space<vmem>>, vector<1x8x1xbf16>
    %1580 = vector.shape_cast %1579 : vector<1x8x1xbf16> to vector<8x1xbf16>
    %cst_1765 = arith.constant dense<0.000000e+00> : vector<8x8xf32>
    %1581 = tpu.matmul %1580, %1578, %cst_1765 {dimension_numbers = #tpu.dot_dimension_numbers<[1], [0], [0], [1], [0, 0, 1, 1], [], []>} : vector<8x1xbf16>, vector<1x8xbf16>, vector<8x8xf32> -> vector<8x8xf32>
    %1582 = arith.addf %1575, %1581 : vector<8x8xf32>
    %c0_1766 = arith.constant 0 : index
    %1583 = arith.index_cast %1540 : i32 to index
    %c16_1767 = arith.constant 16 : index
    %c0_1768 = arith.constant 0 : index
    %c0_1769 = arith.constant 0 : index
    %1584 = vector.load %arg2[%c0_1766, %1583, %c16_1767, %c0_1768, %c0_1769] : memref<1x18x18x2x9xbf16, #tpu.memory_space<vmem>>, vector<1x1x1x1x8xbf16>
    %1585 = vector.shape_cast %1584 : vector<1x1x1x1x8xbf16> to vector<1x8xbf16>
    %c24_1770 = arith.constant 24 : index
    %c0_1771 = arith.constant 0 : index
    %c0_1772 = arith.constant 0 : index
    %1586 = vector.load %arg3[%c24_1770, %c0_1771, %c0_1772] : memref<27x8x1xbf16, #tpu.memory_space<vmem>>, vector<1x8x1xbf16>
    %1587 = vector.shape_cast %1586 : vector<1x8x1xbf16> to vector<8x1xbf16>
    %cst_1773 = arith.constant dense<0.000000e+00> : vector<8x8xf32>
    %1588 = tpu.matmul %1587, %1585, %cst_1773 {dimension_numbers = #tpu.dot_dimension_numbers<[1], [0], [0], [1], [0, 0, 1, 1], [], []>} : vector<8x1xbf16>, vector<1x8xbf16>, vector<8x8xf32> -> vector<8x8xf32>
    %1589 = arith.addf %1582, %1588 : vector<8x8xf32>
    %c0_1774 = arith.constant 0 : index
    %1590 = arith.index_cast %1540 : i32 to index
    %c16_1775 = arith.constant 16 : index
    %c1_1776 = arith.constant 1 : index
    %c0_1777 = arith.constant 0 : index
    %1591 = vector.load %arg2[%c0_1774, %1590, %c16_1775, %c1_1776, %c0_1777] : memref<1x18x18x2x9xbf16, #tpu.memory_space<vmem>>, vector<1x1x1x1x8xbf16>
    %1592 = vector.shape_cast %1591 : vector<1x1x1x1x8xbf16> to vector<1x8xbf16>
    %c25_1778 = arith.constant 25 : index
    %c0_1779 = arith.constant 0 : index
    %c0_1780 = arith.constant 0 : index
    %1593 = vector.load %arg3[%c25_1778, %c0_1779, %c0_1780] : memref<27x8x1xbf16, #tpu.memory_space<vmem>>, vector<1x8x1xbf16>
    %1594 = vector.shape_cast %1593 : vector<1x8x1xbf16> to vector<8x1xbf16>
    %cst_1781 = arith.constant dense<0.000000e+00> : vector<8x8xf32>
    %1595 = tpu.matmul %1594, %1592, %cst_1781 {dimension_numbers = #tpu.dot_dimension_numbers<[1], [0], [0], [1], [0, 0, 1, 1], [], []>} : vector<8x1xbf16>, vector<1x8xbf16>, vector<8x8xf32> -> vector<8x8xf32>
    %1596 = arith.addf %1589, %1595 : vector<8x8xf32>
    %c0_1782 = arith.constant 0 : index
    %1597 = arith.index_cast %1540 : i32 to index
    %c16_1783 = arith.constant 16 : index
    %c0_1784 = arith.constant 0 : index
    %c1_1785 = arith.constant 1 : index
    %1598 = vector.load %arg2[%c0_1782, %1597, %c16_1783, %c0_1784, %c1_1785] : memref<1x18x18x2x9xbf16, #tpu.memory_space<vmem>>, vector<1x1x1x1x8xbf16>
    %1599 = vector.shape_cast %1598 : vector<1x1x1x1x8xbf16> to vector<1x8xbf16>
    %c26_1786 = arith.constant 26 : index
    %c0_1787 = arith.constant 0 : index
    %c0_1788 = arith.constant 0 : index
    %1600 = vector.load %arg3[%c26_1786, %c0_1787, %c0_1788] : memref<27x8x1xbf16, #tpu.memory_space<vmem>>, vector<1x8x1xbf16>
    %1601 = vector.shape_cast %1600 : vector<1x8x1xbf16> to vector<8x1xbf16>
    %cst_1789 = arith.constant dense<0.000000e+00> : vector<8x8xf32>
    %1602 = tpu.matmul %1601, %1599, %cst_1789 {dimension_numbers = #tpu.dot_dimension_numbers<[1], [0], [0], [1], [0, 0, 1, 1], [], []>} : vector<8x1xbf16>, vector<1x8xbf16>, vector<8x8xf32> -> vector<8x8xf32>
    %1603 = arith.addf %1596, %1602 : vector<8x8xf32>
    %1604 = vector.broadcast %0 : vector<8x1xf32> to vector<8x8xf32>
    %1605 = arith.addf %1603, %1604 : vector<8x8xf32>
    %c0_1790 = arith.constant 0 : index
    %c0_1791 = arith.constant 0 : index
    %c7_1792 = arith.constant 7 : index
    %c0_1793 = arith.constant 0 : index
    %c0_1794 = arith.constant 0 : index
    %1606 = vector.load %arg5[%c0_1790, %c0_1791, %c7_1792, %c0_1793, %c0_1794] : memref<1x1x8x8x8xf32, #tpu.memory_space<vmem>>, vector<1x1x1x8x8xf32>
    %1607 = vector.shape_cast %1606 : vector<1x1x1x8x8xf32> to vector<8x8xf32>
    %1608 = vector.shape_cast %1605 : vector<8x8xf32> to vector<1x1x1x8x8xf32>
    tpu.vector_store %arg5[%c0_1790, %c0_1791, %c7_1792, %c0_1793, %c0_1794], %1608 {strides = array<i32>} : memref<1x1x8x8x8xf32, #tpu.memory_space<vmem>>, vector<1x1x1x8x8xf32>,
    return
  }
  func.func @transform_0(%arg0: i32, %arg1: i32) -> (i32, i32, i32, i32, i32) {
    %c0_i32 = arith.constant 0 : i32
    %c0_i32_0 = arith.constant 0 : i32
    %c0_i32_1 = arith.constant 0 : i32
    %c0_i32_2 = arith.constant 0 : i32
    %c0_i32_3 = arith.constant 0 : i32
    return %arg0, %c0_i32, %c0_i32_0, %c0_i32_1, %c0_i32_2 : i32, i32, i32, i32, i32
  }
  func.func @transform_1(%arg0: i32, %arg1: i32) -> (i32, i32, i32) {
    %c0_i32 = arith.constant 0 : i32
    %c0_i32_0 = arith.constant 0 : i32
    %c0_i32_1 = arith.constant 0 : i32
    %c0_i32_2 = arith.constant 0 : i32
    return %c0_i32, %c0_i32_0, %c0_i32_1 : i32, i32, i32
  }
  func.func @transform_2(%arg0: i32, %arg1: i32) -> (i32, i32) {
    %c0_i32 = arith.constant 0 : i32
    %c0_i32_0 = arith.constant 0 : i32
    %c0_i32_1 = arith.constant 0 : i32
    return %c0_i32, %c0_i32_0 : i32, i32
  }
  func.func @transform_3(%arg0: i32, %arg1: i32) -> (i32, i32, i32, i32, i32) {
    %c0_i32 = arith.constant 0 : i32
    %c0_i32_0 = arith.constant 0 : i32
    %c0_i32_1 = arith.constant 0 : i32
    %c0_i32_2 = arith.constant 0 : i32
    return %arg0, %arg1, %c0_i32, %c0_i32_0, %c0_i32_1 : i32, i32, i32, i32, i32
  }
}

</mosaic_0001>

<bundles_post_ra>
// kernel: tpu_custom_call.1
= control target key start
LH: loop header
LB: loop body
LE: loop exit
PB: predicated region body
PF: predicated region fallthrough
CT: control target
= control target key end

     0   :  { %8 = vsyncpa [#allocation3], 0  ;;  %s18832_s0 = inlined_call_operand.vmem [shape: bf16[2,18,18,2,9], index: 0, kind: input, shape index: {}]   ;;  %s18833_s1 = inlined_call_operand.vmem [shape: bf16[27,8,1], index: 1, kind: input, shape index: {}]   ;;  %s18834_s2 = inlined_call_operand.vmem [shape: f32[8,1], index: 2, kind: input, shape index: {}]   ;;  %s18835_s3 = inlined_call_operand.hbm [shape: f32[2,8,8,8,8], index: 3, kind: output, shape index: {}]  }
   0x1   :  { %10 = vsyncpa [#allocation3 + $0x1], 0  ;;  %s16299_s12 = smov 0   ;;  %s16301_s13 = smov 0  }
   0x2   :  { %s16303_s14 = smov 0   ;;  %s16305_s15 = smov 0  }
   0x3   :  { %s16307_s16 = smov 0   ;;  %s16309_s17 = smov 0  }
   0x4   :  { %s16311_s18 = smov 0   ;;  %s16313_s19 = smov 0  }
   0x5 LB: > { %s13640_s20 = sadd.s32 4294967295, %s16269_s19   ;;  %s13641_s21 = sadd.s32 4294967294, %s16269_s19   ;;  %s16269_s19 = sphi %s16313_s19, %s16_s19   ;;  %s16265_s18 = sphi %s16311_s18, %s18844_s18   ;;  %s16261_s17 = sphi %s16309_s17, %s18843_s17   ;;  %s16257_s16 = sphi %s16307_s16, %s18842_s16   ;;  %s16253_s15 = sphi %s16305_s15, %s18841_s15   ;;  %s16249_s14 = sphi %s16303_s14, %s18840_s14   ;;  %s16245_s13 = sphi %s16301_s13, %s18839_s13   ;;  %s16241_s12 = sphi %s16299_s12, %s18838_s12  }
   0x6   : > { %s25_s22 = sadd.s32 1, %s16261_s17  ;;  %s28_s23 = sadd.s32 1, %s16265_s18 }
   0x7   : > { %p26_p0 = scmp.ge.s32.totalorder %s25_s22, 8  ;;  %p115_p1 = scmp.ne.s32.totalorder %s16249_s14, %s16245_s13 }
   0x8   : > { %p116_p2 = scmp.eq.s32.totalorder %s13640_s20, 15  ;;  %p121_p5 = scmp.ne.s32.totalorder %s16245_s13, %s16241_s12 }
   0x9   : > { %s18846_s22 = smov (%p26_p0, %s25_s22), 0  ;;  %s18848_s23 = smov (!%p26_p0, %s28_s23), %s16265_s18 }
   0xa   : > { %s101_s24 = ssub.s32 %s16261_s17, %s18846_s22  ;;  %p16350_p3 = por %p116_p2, %p115_p1 }
   0xb   : > { %p30_p4 = scmp.ge.s32.totalorder %s18848_s23, 2  ;;  %p122_p6 = scmp.eq.s32.totalorder %s13641_s21, 15 }
   0xc   : > { %p13644_p7 = scmp.ge.s32.totalorder %s16269_s19, 1  ;;  %p153_p9 = scmp.lt.s32.totalorder %s16269_s19, 17 }
   0xd   : > { %s18850_s23 = smov (%p30_p4, %s18848_s23), 0  ;;  %p16359_p8 = por %p122_p6, %p121_p5 }
   0xe   : > { %s100_s27 = ssub.s32 %s16265_s18, %s18850_s23  ;;  %s105_s28 = sadd.s32 1, %s16249_s14 }
   0xf   : > { %s102_s29 = sor.u32 %s101_s24, %s100_s27  ;;  %p154_p10 = pnand %p13644_p7, %p153_p9 }
  0x10   : > { %p103_p11 = scmp.eq.s32.totalorder %s102_s29, 0  ;;  %p176_p12 = scmp.lt.s32.totalorder (!%p154_p10), %s16257_s16, 1  ;;  %v193_v0 = vlaneseq (!%p154_p10)  ;;  %v16271_v1 = vmov (!%p154_p10), 1966171168   ;;  %v16272_v3 = vmov (!%p154_p10), 0.0   ;;  %vm16273_vm0 = vmmov (!%p154_p10), 0  }
  0x11   : > { %157 = sbr.rel (%p154_p10) target bundleno = 1234 (0x4d2), region = 32  ;;  %v191_v2 = vunpack.c.l.s4 (!%p154_p10), %v16271_v1  ;;  %14799 = vmatprep.subr.bf16.mxu0 (!%p154_p10), %v16272_v3  ;;  %14805 = vmatprep.subr.bf16.mxu1 (!%p154_p10), %v16272_v3  ;;  %v16274_v6 = vmov (!%p154_p10), 0   ;;  %vm211_vm1 = vcmask (!%p154_p10), 1040384   ;;  %s16275_s11 = smov (!%p154_p10), 127   ;;  %v186_v21 = vld [vmem:[%s18833_s1] sm:$0xf] (!%p154_p10) }
  0x12   : > { %s16368_s30 = scalar_select %p103_p11, %s16249_s14, %s105_s28  }
  0x13   : > { %v194_v4 = vshrl.u32 (!%p154_p10), %v193_v0, 7  ;;  %14801 = vmatprep.mubr.msk.bf16.mxu0 (!%p154_p10), %vm16273_vm0, %v16272_v3  ;;  %14807 = vmatprep.mubr.msk.bf16.mxu1 (!%p154_p10), %vm16273_vm0, %v16272_v3  ;;  %s13647_s5 = smul.u32 (!%p154_p10), 36, %s16253_s15  ;;  %v192_v5 = vunpack.c.0.s8 (!%p154_p10), %v191_v2  ;;  %v16386_v8 = vsel (!%p154_p10), %vm211_vm1, 65535, %v16274_v6  ;;  %vm207_vm2 = vcmask (!%p154_p10), 7168   ;;  %v13648_v31 = vld [vmem:[%s18833_s1 + $0x4] sm:$0xf] (!%p154_p10) }
  0x14   : > { %16174 = vset.pattern.permute.xlu0 (!%p154_p10), %v16274_v6  ;;  %v13655_v34 = vld [vmem:[%s18833_s1 + $0xc] sm:$0xf] (!%p154_p10)  ;;  %vm1866_vm3 = vcmask (!%p154_p10), 64512   ;;  %s16276_s27 = smov (!%p154_p10), [#allocation2]  }
  0x15   : > { %v16379_v7 = vsub.s32 (!%p154_p10), %v192_v5, %v194_v4  ;;  %s16179_s28 = sshll.u32 (!%p154_p10), %s16276_s27, 4  ;;  %s16180_s28 = int_to_ptr.vmem [resolvable:$false] %s16179_s28 }
  0x16   : > { %s16181_s29 = scalar_lea.vmem (!%p154_p10), %s16180_s28, 2048 }
  0x18   : > { %s177_s4 = scalar_select %p176_p12, %s16257_s16, 1 }
  0x1a   : > { %s16095_s6 = smul.u32 324, %s177_s4  ;;  %s173_s4 = sand.u32 1, %s16245_s13  }
  0x1c   : > { %s179_s9 = scalar_lea.vmem %s18832_s0, %s16095_s6  ;;  %s14363_s6 = sshll.u32 %s16257_s16, 6 }
  0x1d   : > { %s16384_s10 = scalar_lea.vmem %s179_s9, %s13647_s5  ;;  %s13645_s5 = sshll.u32 %s173_s4, 6 }
  0x1e   : > { %v13652_v9 = vld.sshfl [vmem:[%s16384_s10] sm:$0x1 pattern:$0x75316420]  ;;  %v16395_v15 = vld [vmem:[%s16384_s10 + $0x1] sm:$0x1] }
  0x1f   : > { %v185_v10 = vld [vmem:[%s16384_s10] sm:$0x1]  ;;  %v320_v11 = vrot.slane %v13652_v9, %v16379_v7  ;;  %v13661_v12 = vld.sshfl [vmem:[%s16384_s10 + $0x1] sm:$0x1 pattern:$0x75316420]  ;;  %v379_v22 = vand.u32 %v16395_v15, %v16386_v8  ;;  %v431_v9 = vrot.slane %v16395_v15, %v16379_v7 }
  0x20   : > { %v196_v13 = vrot.slane %v185_v10, %v16379_v7  ;;  %v261_v14 = vand.u32 %v16386_v8, %v185_v10  ;;  %v506_v16 = vrot.slane %v13661_v12, %v16379_v7  ;;  %v13670_v17 = vld.sshfl [vmem:[%s16384_s10 + $0x2] sm:$0x1 pattern:$0x75316420]  ;;  %s17405_s20 = scalar_lea.vmem [#allocation2], %s13645_s5  ;;  %s18780_s16 = scalar_lea.sflag [#allocation3], %s173_s4 }
  0x21   : > { %321 = vrot.lane.b32.xlu0 %v320_v11, %s16275_s11  ;;  %v692_v18 = vrot.slane %v13670_v17, %v16379_v7  ;;  %v13681_v19 = vld.sshfl [vmem:[%s16384_s10 + $0x12] sm:$0x1 pattern:$0x75316420]  ;;  %v13663_v12 = vld [vmem:[%s16384_s10 + $0x2] sm:$0x1] }
  0x22   : > { %v203_v20 = vrot.slane %v196_v13, %v16379_v7  ;;  %14806 = vmatpush3.bf16.msra.mxu1 %v261_v14  ;;  %v13692_v23 = vld.sshfl [vmem:[%s16384_s10 + $0x13] sm:$0x1 pattern:$0x75316420]  ;;  %v879_v24 = vrot.slane %v13681_v19, %v16379_v7  ;;  %v438_v13 = vrot.slane %v431_v9, %v16379_v7  ;;  %v617_v14 = vrot.slane %v13663_v12, %v16379_v7  ;;  %v13677_v9 = vld [vmem:[%s18833_s1 + $0x28] sm:$0xf] }
  0x23   : > { %14817 = vmatprep.subr.bf16.mxu1 %v16272_v3  ;;  %693 = vrot.lane.b32.xlu1 %v692_v18, %s16275_s11  ;;  %v13703_v26 = vld.sshfl [vmem:[%s16384_s10 + $0x14] sm:$0x1 pattern:$0x75316420]  ;;  %v1065_v27 = vrot.slane %v13692_v23, %v16379_v7  ;;  %v13651_v23 = vld [vmem:[%s18833_s1 + $0x8] sm:$0xf] }
  0x24   : > { %v205_v25 = vshrl.u32 %v203_v20, 16  ;;  %v13714_v29 = vld.sshfl [vmem:[%s16384_s10 + $0x24] sm:$0x1 pattern:$0x75316420]  ;;  %v1251_v30 = vrot.slane %v13703_v26, %v16379_v7  ;;  %v624_v15 = vrot.slane %v617_v14, %v16379_v7  ;;  %s13378_s8 = sshll.u32 %s17405_s20, 4  ;;  %s18773_s8 = int_to_ptr.vmem [resolvable:$true] %s13378_s8 }
  0x25   : > { %14808 = vmatmul.mubr.msk.bf16.vlgmr.msra.gmra.mrb[0].mxu1 %vm207_vm2, %v186_v21  ;;  %507 = vrot.lane.b32.xlu0 %v506_v16, %s16275_s11  ;;  %v13725_v32 = vld.sshfl [vmem:[%s16384_s10 + $0x25] sm:$0x1 pattern:$0x75316420]  ;;  %v1438_v33 = vrot.slane %v13714_v29, %v16379_v7  ;;  %s16175_s24 = scalar_lea.vmem %s18773_s8, 1024  ;;  %p16182_p2 = scmp.lt.s32.totalorder %s18773_s8, %s16180_s28 }
  0x26   : > { %v215_v28 = vand.u32 %v16386_v8, %v205_v25  ;;  %14818 = vmatpush3.bf16.msra.mxu1 %v379_v22  ;;  %14819 = vmatprep.mubr.msk.bf16.mxu1 %vm16273_vm0, %v16272_v3  ;;  %v13736_v35 = vld.sshfl [vmem:[%s16384_s10 + $0x26] sm:$0x1 pattern:$0x75316420]  ;;  %v1624_v36 = vrot.slane %v13725_v32, %v16379_v7  ;;  %v626_v26 = vshrl.u32 %v624_v15, 16  ;;  %p16176_p13 = scmp.ne.s32.totalorder %s18773_s8, %s16175_s24  ;;  %p16183_p4 = scmp.lt.s32.totalorder %s16181_s29, %s16175_s24 }
  0x27   : > { %14829 = vmatprep.subr.bf16.mxu1 %v16272_v3  ;;  %880 = vrot.lane.b32.xlu1 %v879_v24, %s16275_s11  ;;  %v1810_v37 = vrot.slane %v13736_v35, %v16379_v7  ;;  %v13753_v38 = vld.sshfl [vmem:[%s16384_s10 + $0x3] sm:$0x1 pattern:$0x75316420]  ;;  %v565_v35 = vand.u32 %v13663_v12, %v16386_v8 }
  0x28   : > { %14800 = vmatpush3.bf16.msra.mxu0 %v215_v28  ;;  %v13762_v39 = vld.sshfl [vmem:[%s16384_s10 + $0x4] sm:$0x1 pattern:$0x75316420]  ;;  %v2180_v40 = vrot.slane %v13753_v38, %v16379_v7  ;;  %v632_v32 = vand.u32 %v626_v26, %v16386_v8  ;;  %p16177_p0 = pnand %p16176_p13, %p16350_p3  ;;  %p16184_p5 = por %p16183_p4, %p16182_p2 }
  0x29   : > { %14811 = vmatprep.subr.bf16.mxu0 %v16272_v3  ;;  %1066 = vrot.lane.b32.xlu0 %v1065_v27, %s16275_s11  ;;  %v2363_v41 = vrot.slane %v13762_v39, %v16379_v7  ;;  %v13782_v42 = vld.sshfl [vmem:[%s16384_s10 + $0x15] sm:$0x1 pattern:$0x75316420] }
  0x2a   : > { %v2727_v43 = vrot.slane %v13782_v42, %v16379_v7  ;;  %v13793_v44 = vld.sshfl [vmem:[%s16384_s10 + $0x16] sm:$0x1 pattern:$0x75316420]  ;;  %v13666_v42 = vld [vmem:[%s18833_s1 + $0x1c] sm:$0xf]  ;;  %p16178_p1 = pneg %p16177_p0 }
  0x2b   : > { %14802 = vmatmul.mubr.msk.bf16.vlgmr.msra.gmra.mrb[0].mxu0 %vm207_vm2, %v13648_v31  ;;  %1252 = vrot.lane.b32.xlu1 %v1251_v30, %s16275_s11  ;;  %v2910_v45 = vrot.slane %v13793_v44, %v16379_v7  ;;  %v13813_v46 = vld.sshfl [vmem:[%s16384_s10 + $0x27] sm:$0x1 pattern:$0x75316420]  ;;  %v13660_v31 = vld [vmem:[%s18833_s1 + $0x14] sm:$0xf] }
  0x2c   : > { %14813 = vmatprep.mubr.msk.bf16.mxu0 %vm16273_vm0, %v16272_v3  ;;  %v3274_v47 = vrot.slane %v13813_v46, %v16379_v7  ;;  %v13851_v48 = vld.sshfl [vmem:[%s16384_s10 + $0x6] sm:$0x1 pattern:$0x75316420]  ;;  %v13685_v44 = vld [vmem:[%s16384_s10 + $0x13] sm:$0x1]  ;;  %p16185_p6 = pnand %p16184_p5, %p16178_p1 }
  0x2d   : > { %14820 = vmatmul.mubr.msk.bf16.vlgmr.msra.gmra.mrb[4].mxu1 %vm207_vm2, %v13655_v34  ;;  %1439 = vrot.lane.b32.xlu0 %v1438_v33, %s16275_s11  ;;  %v16467_v49 = vrot.slane %v13851_v48, %v16379_v7  ;;  %v13824_v50 = vld.sshfl [vmem:[%s16384_s10 + $0x28] sm:$0x1 pattern:$0x75316420]  ;;  %v13657_v34 = vld [vmem:[%s18833_s1 + $0x10] sm:$0xf] }
  0x2e   : > { %14831 = vmatprep.mubr.msk.bf16.mxu1 %vm16273_vm0, %v16272_v3  ;;  %v3457_v51 = vrot.slane %v13824_v50, %v16379_v7  ;;  %v13871_v52 = vld.sshfl [vmem:[%s16384_s10 + $0x17] sm:$0x1 pattern:$0x75316420]  ;;  %v13664_v46 = vld [vmem:[%s18833_s1 + $0x18] sm:$0xf]  ;;  %v990_v50 = vrot.slane %v13685_v44, %v16379_v7 }
  0x2f   : > { %1625 = vrot.lane.b32.xlu1 %v1624_v36, %s16275_s11  ;;  %v4369_v53 = vrot.slane %v13871_v52, %v16379_v7  ;;  %v13913_v54 = vld.sshfl [vmem:[%s16384_s10 + $0x2a] sm:$0x1 pattern:$0x75316420]  ;;  %v13674_v36 = vld [vmem:[%s16384_s10 + $0x12] sm:$0x1] }
  0x30   : > { %v5099_v55 = vrot.slane %v13913_v54, %v16379_v7  ;;  %v13931_v56 = vld.sshfl [vmem:[%s16384_s10 + $0x7] sm:$0x1 pattern:$0x75316420]  ;;  %v804_v39 = vrot.slane %v13674_v36, %v16379_v7 }
  0x31   : > { %1811 = vrot.lane.b32.xlu0 %v1810_v37, %s16275_s11  ;;  %v5464_v57 = vrot.slane %v13931_v56, %v16379_v7  ;;  %v13949_v58 = vld.sshfl [vmem:[%s16384_s10 + $0x18] sm:$0x1 pattern:$0x75316420]  ;;  %v13675_v56 = vld [vmem:[%s18833_s1 + $0x24] sm:$0xf] }
  0x32   : > { %v5828_v59 = vrot.slane %v13949_v58, %v16379_v7  ;;  %v13971_v60 = vld.sshfl [vmem:[%s16384_s10 + $0x1a] sm:$0x1 pattern:$0x75316420]  ;;  %v811_v48 = vrot.slane %v804_v39, %v16379_v7  ;;  %v997_v58 = vrot.slane %v990_v50, %v16379_v7 }
  0x33   : > { %1998 = vrot.lane.b32.xlu1 %v692_v18, %s16275_s11  ;;  %v6194_v61 = vrot.slane %v13971_v60, %v16379_v7  ;;  %v13842_v62 = vld.sshfl [vmem:[%s16384_s10 + $0x5] sm:$0x1 pattern:$0x75316420]  ;;  %v440_v18 = vshrl.u32 %v438_v13, 16 }
  0x34   : > { %v3822_v63 = vrot.slane %v13842_v62, %v16379_v7  ;;  %v13991_v0 = vld.sshfl [vmem:[%s16384_s10 + $0x2b] sm:$0x1 pattern:$0x75316420]  ;;  %v813_v54 = vshrl.u32 %v811_v48, 16  ;;  %v999_v62 = vshrl.u32 %v997_v58, 16 }
  0x35   : > { %2181 = vrot.lane.b32.xlu0 %v2180_v40, %s16275_s11  ;;  %v6558_v1 = vrot.slane %v13991_v0, %v16379_v7  ;;  %v14011_v2 = vld.sshfl [vmem:[%s16384_s10 + $0x8] sm:$0x1 pattern:$0x75316420]  ;;  %v446_v24 = vand.u32 %v440_v18, %v16386_v8  ;;  %v13669_v60 = vld [vmem:[%s18833_s1 + $0x20] sm:$0xf] }
  0x36   : > { %v16498_v4 = vrot.slane %v14011_v2, %v16379_v7  ;;  %v14029_v5 = vld.sshfl [vmem:[%s16384_s10 + $0xa] sm:$0x1 pattern:$0x75316420]  ;;  %v13680_v2 = vld [vmem:[%s18833_s1 + $0x2c] sm:$0xf] }
  0x37   : > { %2364 = vrot.lane.b32.xlu1 %v2363_v41, %s16275_s11  ;;  %v7289_v6 = vrot.slane %v14029_v5, %v16379_v7  ;;  %v14049_v10 = vld.sshfl [vmem:[%s16384_s10 + $0x1b] sm:$0x1 pattern:$0x75316420]  ;;  %v1005_v5 = vand.u32 %v999_v62, %v16386_v8  ;;  %v13688_v18 = vld [vmem:[%s18833_s1 + $0x34] sm:$0xf] }
  0x38   : > { %v7653_v11 = vrot.slane %v14049_v10, %v16379_v7  ;;  %v14069_v16 = vld.sshfl [vmem:[%s16384_s10 + $0x2c] sm:$0x1 pattern:$0x75316420]  ;;  %v938_v10 = vand.u32 %v13685_v44, %v16386_v8  ;;  %v13699_v44 = vld [vmem:[%s18833_s1 + $0x40] sm:$0xf] }
  0x39   : > { %2545 = vrot.lane.b32.xlu0 %v1251_v30, %s16275_s11  ;;  %v8017_v17 = vrot.slane %v14069_v16, %v16379_v7  ;;  %v14091_v19 = vld.sshfl [vmem:[%s16384_s10 + $0x2e] sm:$0x1 pattern:$0x75316420] }
  0x3a   : > { %v8383_v21 = vrot.slane %v14091_v19, %v16379_v7  ;;  %v14109_v28 = vld.sshfl [vmem:[%s16384_s10 + $0xb] sm:$0x1 pattern:$0x75316420]  ;;  %v13710_v48 = vld [vmem:[%s18833_s1 + $0x4c] sm:$0xf] }
  0x3b   : > { %2728 = vrot.lane.b32.xlu1 %v2727_v43, %s16275_s11  ;;  %v8748_v29 = vrot.slane %v14109_v28, %v16379_v7  ;;  %v14127_v30 = vld.sshfl [vmem:[%s16384_s10 + $0x1c] sm:$0x1 pattern:$0x75316420]  ;;  %v752_v43 = vand.u32 %v13674_v36, %v16386_v8 }
  0x3c   : > { %v9112_v33 = vrot.slane %v14127_v30, %v16379_v7  ;;  %v14169_v40 = vld.sshfl [vmem:[%s16384_s10 + $0x2f] sm:$0x1 pattern:$0x75316420]  ;;  %v13697_v30 = vld [vmem:[%s18833_s1 + $0x3c] sm:$0xf] }
  0x3d   : > { %2911 = vrot.lane.b32.xlu0 %v2910_v45, %s16275_s11  ;;  %v14189_v52 = vld.sshfl [vmem:[%s16384_s10 + $0xc] sm:$0x1 pattern:$0x75316420] }
  0x3e   : > { %v14269_v12 = vld.sshfl [vmem:[%s16384_s10 + $0x32] sm:$0x1 pattern:$0x75316420] }
  0x3f   : > { %3092 = vrot.lane.b32.xlu1 %v1810_v37, %s16275_s11  ;;  %v14149_v37 = vld.sshfl [vmem:[%s16384_s10 + $0x1e] sm:$0x1 pattern:$0x75316420]  ;;  %v11667_v13 = vrot.slane %v14269_v12, %v16379_v7  ;;  %v13732_v12 = vld [vmem:[%s18833_s1 + $0x64] sm:$0xf] }
  0x40   : > { %v9478_v38 = vrot.slane %v14149_v37, %v16379_v7  ;;  %v14287_v16 = vld.sshfl [vmem:[%s16384_s10 + $0xf] sm:$0x1 pattern:$0x75316420] }
  0x41   : > { %3275 = vrot.lane.b32.xlu0 %v3274_v47, %s16275_s11  ;;  %v12032_v15 = vrot.slane %v14287_v16, %v16379_v7  ;;  %v14305_v26 = vld.sshfl [vmem:[%s16384_s10 + $0x20] sm:$0x1 pattern:$0x75316420] }
  0x42   : > { %v14347_v39 = vld.sshfl [vmem:[%s16384_s10 + $0x33] sm:$0x1 pattern:$0x75316420]  ;;  %v13730_v16 = vld [vmem:[%s18833_s1 + $0x60] sm:$0xf] }
  0x43   : > { %3458 = vrot.lane.b32.xlu1 %v3457_v51, %s16275_s11 }
  0x45   : > { %3640 = vrot.lane.b32.xlu0 %v2363_v41, %s16275_s11 }
  0x47   : > { %3823 = vrot.lane.b32.xlu1 %v3822_v63, %s16275_s11  ;;  %v14227_v63 = vld.sshfl [vmem:[%s16384_s10 + $0x1f] sm:$0x1 pattern:$0x75316420] }
  0x48   : > { %v10937_v0 = vrot.slane %v14227_v63, %v16379_v7 }
  0x49   : > { %4006 = vrot.lane.b32.xlu0 %v16467_v49, %s16275_s11 }
  0x4b   : > { %4187 = vrot.lane.b32.xlu1 %v2910_v45, %s16275_s11  ;;  %v9842_v45 = vrot.slane %v14169_v40, %v16379_v7  ;;  %v13126_v40 = vrot.slane %v14347_v39, %v16379_v7 }
  0x4d   : > { %4370 = vrot.lane.b32.xlu0 %v4369_v53, %s16275_s11  ;;  %v10207_v53 = vrot.slane %v14189_v52, %v16379_v7 }
  0x4f   : > { %4553 = vrot.lane.b32.xlu1 %v5828_v59, %s16275_s11 }
  0x51   : > { %4734 = vrot.lane.b32.xlu0 %v3457_v51, %s16275_s11 }
  0x55   : > { %5100 = vrot.lane.b32.xlu0 %v5099_v55, %s16275_s11  ;;  %v14207_v55 = vld.sshfl [vmem:[%s16384_s10 + $0xe] sm:$0x1 pattern:$0x75316420] }
  0x59   : > { %5465 = vrot.lane.b32.xlu0 %v5464_v57, %s16275_s11 }
  0x5d   : > { %5829 = vrot.lane.b32.xlu0 %v5828_v59, %s16275_s11  ;;  %v10573_v59 = vrot.slane %v14207_v55, %v16379_v7 }
  0x61   : > { %6195 = vrot.lane.b32.xlu0 %v6194_v61, %s16275_s11  ;;  %v819_v61 = vand.u32 %v813_v54, %v16386_v8 }
  0x65   : > { %6559 = vrot.lane.b32.xlu0 %v6558_v1, %s16275_s11  ;;  %v14247_v1 = vld.sshfl [vmem:[%s16384_s10 + $0x30] sm:$0x1 pattern:$0x75316420] }
  0x69   : > { %6924 = vrot.lane.b32.xlu0 %v16498_v4, %s16275_s11 }
  0x6d   : > { %7290 = vrot.lane.b32.xlu0 %v7289_v6, %s16275_s11  ;;  %v11301_v6 = vrot.slane %v14247_v1, %v16379_v7  ;;  %v13724_v1 = vld [vmem:[%s18833_s1 + $0x5c] sm:$0xf] }
  0x71   : > { %7654 = vrot.lane.b32.xlu0 %v7653_v11, %s16275_s11  ;;  %v13696_v11 = vld [vmem:[%s16384_s10 + $0x14] sm:$0x1] }
  0x72   : > { %v1176_v14 = vrot.slane %v13696_v11, %v16379_v7  ;;  %v1124_v19 = vand.u32 %v13696_v11, %v16386_v8 }
  0x75   : > { %8018 = vrot.lane.b32.xlu0 %v8017_v17, %s16275_s11 }
  0x79   : > { %8384 = vrot.lane.b32.xlu0 %v8383_v21, %s16275_s11  ;;  %v13686_v21 = vld [vmem:[%s18833_s1 + $0x30] sm:$0xf] }
  0x7d   : > { %8749 = vrot.lane.b32.xlu0 %v8748_v29, %s16275_s11  ;;  %v14327_v29 = vld.sshfl [vmem:[%s16384_s10 + $0x22] sm:$0x1 pattern:$0x75316420] }
  0x81   : > { %9113 = vrot.lane.b32.xlu0 %v9112_v33, %s16275_s11  ;;  %v12762_v33 = vrot.slane %v14327_v29, %v16379_v7  ;;  %v13743_v29 = vld [vmem:[%s18833_s1 + $0x8] sm:$0xf] }
  0x85   : > { %9479 = vrot.lane.b32.xlu0 %v9478_v38, %s16275_s11 }
  0x89   : > { %9843 = vrot.lane.b32.xlu0 %v9842_v45, %s16275_s11 }
  0x8d   : > { %10208 = vrot.lane.b32.xlu0 %v10207_v53, %s16275_s11 }
  0x91   : > { %10574 = vrot.lane.b32.xlu0 %v10573_v59, %s16275_s11 }
  0x93   : > { %v322_v20 = vpop.permute.xlu0 %321 }
  0x94   : > { %v327_v22 = vand.u32 %v322_v20, %v16386_v8  ;;  %v13707_v20 = vld [vmem:[%s16384_s10 + $0x24] sm:$0x1] }
  0x95   : > { %v694_v41 = vpop.permute.xlu1 %693  ;;  %10938 = vrot.lane.b32.xlu0 %v10937_v0, %s16275_s11  ;;  %v1311_v45 = vand.u32 %v13707_v20, %v16386_v8 }
  0x96   : > { %14812 = vmatpush3.bf16.msra.mxu0 %v327_v22  ;;  %v699_v47 = vand.u32 %v694_v41, %v16386_v8  ;;  %v13702_v41 = vld [vmem:[%s18833_s1 + $0x44] sm:$0xf] }
  0x97   : > { %v508_v25 = vpop.permute.xlu0 %507  ;;  %14823 = vmatprep.subr.bf16.mxu0 %v16272_v3 }
  0x98   : > { %v513_v27 = vand.u32 %v508_v25, %v16386_v8 }
  0x99   : > { %14814 = vmatmul.mubr.msk.bf16.vlgmr.msra.gmra.mrb[4].mxu0 %vm207_vm2, %v13651_v23  ;;  %v881_v51 = vpop.permute.xlu1 %880  ;;  %11302 = vrot.lane.b32.xlu0 %v11301_v6, %s16275_s11  ;;  %v1183_v23 = vrot.slane %v1176_v14, %v16379_v7  ;;  %v13721_v6 = vld [vmem:[%s18833_s1 + $0x58] sm:$0xf]  ;;  %v13746_v14 = vld [vmem:[%s16384_s10 + $0x3] sm:$0x1] }
  0x9a   : > { %14824 = vmatpush3.bf16.msra.mxu0 %v446_v24  ;;  %14825 = vmatprep.mubr.msk.bf16.mxu0 %vm16273_vm0, %v16272_v3  ;;  %v886_v57 = vand.u32 %v881_v51, %v16386_v8  ;;  %v1363_v24 = vrot.slane %v13707_v20, %v16379_v7  ;;  %v13729_v51 = vld [vmem:[%s16384_s10 + $0x26] sm:$0x1] }
  0x9b   : > { %14830 = vmatpush3.bf16.msra.mxu1 %v513_v27  ;;  %14835 = vmatprep.subr.bf16.mxu0 %v16272_v3  ;;  %v1067_v17 = vpop.permute.xlu0 %1066  ;;  %v12396_v27 = vrot.slane %v14305_v26, %v16379_v7  ;;  %v1185_v28 = vshrl.u32 %v1183_v23, 16  ;;  %v1735_v54 = vrot.slane %v13729_v51, %v16379_v7  ;;  %v13739_v20 = vld [vmem:[%s18833_s1 + $0x4] sm:$0xf] }
  0x9c   : > { %14841 = vmatprep.subr.bf16.mxu1 %v16272_v3  ;;  %v1072_v22 = vand.u32 %v1067_v17, %v16386_v8 }
  0x9d   : > { %11668 = vrot.lane.b32.xlu0 %v11667_v13, %s16275_s11  ;;  %v1253_v25 = vpop.permute.xlu1 %1252  ;;  %v1191_v36 = vand.u32 %v1185_v28, %v16386_v8  ;;  %v1742_v59 = vrot.slane %v1735_v54, %v16379_v7 }
  0x9e   : > { %14832 = vmatmul.mubr.msk.bf16.vlgmr.msra.gmra.mrb[8].mxu1 %vm207_vm2, %v13660_v31  ;;  %v1258_v31 = vand.u32 %v1253_v25, %v16386_v8 }
  0x9f   : > { %14842 = vmatpush3.bf16.msra.mxu1 %v632_v32  ;;  %14843 = vmatprep.mubr.msk.bf16.mxu1 %vm16273_vm0, %v16272_v3  ;;  %v1370_v32 = vrot.slane %v1363_v24, %v16379_v7  ;;  %v1744_v63 = vshrl.u32 %v1742_v59, 16 }
  0xa0   : > { %14853 = vmatprep.subr.bf16.mxu1 %v16272_v3 }
  0xa1   : > { %14826 = vmatmul.mubr.msk.bf16.vlgmr.msra.gmra.mrb[8].mxu0 %vm207_vm2, %v13657_v34  ;;  %12033 = vrot.lane.b32.xlu0 %v12032_v15, %s16275_s11  ;;  %v13902_v34 = vld.sshfl [vmem:[%s16384_s10 + $0x29] sm:$0x1 pattern:$0x75316420]  ;;  %v1372_v38 = vshrl.u32 %v1370_v32, 16  ;;  %v1626_v55 = vpop.permute.xlu1 %1625 }
  0xa2   : > { %14836 = vmatpush3.bf16.msra.mxu0 %v565_v35  ;;  %14837 = vmatprep.mubr.msk.bf16.mxu0 %vm16273_vm0, %v16272_v3  ;;  %v13691_v35 = vld [vmem:[%s18833_s1 + $0x38] sm:$0xf]  ;;  %v4916_v37 = vrot.slane %v13902_v34, %v16379_v7  ;;  %v1631_v58 = vand.u32 %v1626_v55, %v16386_v8  ;;  %v1869_v32 = vld [vmem:[%s18833_s1] sm:$0xf] }
  0xa3   : > { %14847 = vmatprep.subr.bf16.mxu0 %v16272_v3 }
  0xa4   : > { %4917 = vrot.lane.b32.xlu1 %v4916_v37, %s16275_s11 }
  0xa5   : > { %12397 = vrot.lane.b32.xlu0 %v12396_v27, %s16275_s11 }
  0xa6   : > { %14844 = vmatmul.mubr.msk.bf16.vlgmr.msra.gmra.mrb[12].mxu1 %vm207_vm2, %v13666_v42  ;;  %v1378_v42 = vand.u32 %v1372_v38, %v16386_v8  ;;  %v13755_v38 = vld [vmem:[%s16384_s10 + $0x4] sm:$0x1] }
  0xa7   : > { %14854 = vmatpush3.bf16.msra.mxu1 %v752_v43  ;;  %14855 = vmatprep.mubr.msk.bf16.mxu1 %vm16273_vm0, %v16272_v3  ;;  %v181_v43 = vld [vmem:[%s18834_s2] sm:$0xff] }
  0xa8   : > { %14865 = vmatprep.subr.bf16.mxu1 %v16272_v3  ;;  %5282 = vrot.lane.b32.xlu1 %v16467_v49, %s16275_s11 }
  0xa9   : > { %14838 = vmatmul.mubr.msk.bf16.vlgmr.msra.gmra.mrb[12].mxu0 %vm207_vm2, %v13664_v46  ;;  %12763 = vrot.lane.b32.xlu0 %v12762_v33, %s16275_s11  ;;  %v13718_v46 = vld [vmem:[%s16384_s10 + $0x25] sm:$0x1]  ;;  %v2055_v33 = vand.u32 %v13746_v14, %v16386_v8 }
  0xaa   : > { %14848 = vmatpush3.bf16.msra.mxu0 %v699_v47  ;;  %14849 = vmatprep.mubr.msk.bf16.mxu0 %vm16273_vm0, %v16272_v3  ;;  %v1549_v49 = vrot.slane %v13718_v46, %v16379_v7  ;;  %v1440_v47 = vpop.permute.xlu0 %1439  ;;  %v1497_v50 = vand.u32 %v13718_v46, %v16386_v8  ;;  %v2238_v46 = vand.u32 %v13755_v38, %v16386_v8 }
  0xab   : > { %14859 = vmatprep.subr.bf16.mxu0 %v16272_v3  ;;  %v1445_v52 = vand.u32 %v1440_v47, %v16386_v8  ;;  %v13747_v47 = vld [vmem:[%s18833_s1 + $0xc] sm:$0xf] }
  0xac   : > { %5648 = vrot.lane.b32.xlu1 %v16498_v4, %s16275_s11  ;;  %v13708_v4 = vld [vmem:[%s18833_s1 + $0x48] sm:$0xf]  ;;  %v1556_v53 = vrot.slane %v1549_v49, %v16379_v7  ;;  %v13764_v49 = vld [vmem:[%s16384_s10 + $0x14] sm:$0x1] }
  0xad   : > { %13127 = vrot.lane.b32.xlu0 %v13126_v40, %s16275_s11 }
  0xae   : > { %14856 = vmatmul.mubr.msk.bf16.vlgmr.msra.gmra.mrb[16].mxu1 %vm207_vm2, %v13675_v56  ;;  %v1558_v56 = vshrl.u32 %v1556_v53, 16  ;;  %v1812_v11 = vpop.permute.xlu0 %1811  ;;  %v13756_v53 = vld [vmem:[%s18833_s1 + $0x18] sm:$0xf] }
  0xaf   : > { %14866 = vmatpush3.bf16.msra.mxu1 %v886_v57  ;;  %14867 = vmatprep.mubr.msk.bf16.mxu1 %vm16273_vm0, %v16272_v3  ;;  %v13719_v57 = vld [vmem:[%s18833_s1 + $0x54] sm:$0xf]  ;;  %v1817_v17 = vand.u32 %v1812_v11, %v16386_v8  ;;  %v13765_v11 = vld [vmem:[%s18833_s1 + $0x24] sm:$0xf] }
  0xb0   : > { %14877 = vmatprep.subr.bf16.mxu1 %v16272_v3  ;;  %v1564_v62 = vand.u32 %v1558_v56, %v16386_v8  ;;  %v13960_v56 = vld.sshfl [vmem:[%s16384_s10 + $0x19] sm:$0x1 pattern:$0x75316420] }
  0xb1   : > { %14850 = vmatmul.mubr.msk.bf16.vlgmr.msra.gmra.mrb[16].mxu0 %vm207_vm2, %v13669_v60  ;;  %1862 = vperm.xlu0 %16174, %v181_v43   ;;  %v13738_v60 = vld [vmem:[%s16384_s10 + $0x2] sm:$0x1]  ;;  %v6011_v59 = vrot.slane %v13960_v56, %v16379_v7  ;;  %v13801_v56 = vld [vmem:[%s18833_s1 + $0x50] sm:$0xf] }
  0xb2   : > { %14860 = vmatpush3.bf16.msra.mxu0 %v819_v61  ;;  %14861 = vmatprep.mubr.msk.bf16.mxu0 %vm16273_vm0, %v16272_v3  ;;  %v13713_v61 = vld [vmem:[%s18833_s1 + $0x50] sm:$0xf]  ;;  %v1878_v0 = vrot.slane %v13738_v60, %v16379_v7  ;;  %v1939_v23 = vand.u32 %v13738_v60, %v16386_v8 }
  0xb3   : > { %14871 = vmatprep.subr.bf16.mxu0 %v16272_v3  ;;  %6012 = vrot.lane.b32.xlu1 %v6011_v59, %s16275_s11 }
  0xb6   : > { %14868 = vmatmul.mubr.msk.bf16.vlgmr.msra.gmra.mrb[20].mxu1 %vm207_vm2, %v13680_v2  ;;  %v1750_v2 = vand.u32 %v1744_v63, %v16386_v8  ;;  %v13758_v63 = vld [vmem:[%s18833_s1 + $0x1c] sm:$0xf] }
  0xb7   : > { %14878 = vmatpush3.bf16.msra.mxu1 %v1005_v5  ;;  %14879 = vmatprep.mubr.msk.bf16.mxu1 %vm16273_vm0, %v16272_v3  ;;  %v1885_v5 = vrot.slane %v1878_v0, %v16379_v7  ;;  %v2419_v0 = vand.u32 %v13764_v49, %v16386_v8 }
  0xb8   : > { %14889 = vmatprep.subr.bf16.mxu1 %v16272_v3 }
  0xb9   : > { %14862 = vmatmul.mubr.msk.bf16.vlgmr.msra.gmra.mrb[20].mxu0 %vm207_vm2, %v13677_v9  ;;  %v1683_v9 = vand.u32 %v13729_v51, %v16386_v8  ;;  %v2470_v51 = vrot.slane %v13764_v49, %v16379_v7  ;;  %v13796_v49 = vld [vmem:[%s18833_s1 + $0x48] sm:$0xf] }
  0xba   : > { %14872 = vmatpush3.bf16.msra.mxu0 %v938_v10  ;;  %14873 = vmatprep.mubr.msk.bf16.mxu0 %vm16273_vm0, %v16272_v3  ;;  %v1887_v10 = vshrl.u32 %v1885_v5, 16 }
  0xbb   : > { %14883 = vmatprep.subr.bf16.mxu0 %v16272_v3  ;;  %v2477_v55 = vrot.slane %v2470_v51, %v16379_v7  ;;  %v14002_v51 = vld.sshfl [vmem:[%s16384_s10 + $0x2c] sm:$0x1 pattern:$0x75316420] }
  0xbc   : > { %v1893_v13 = vand.u32 %v1887_v10, %v16386_v8  ;;  %v13786_v10 = vld [vmem:[%s16384_s10 + $0x16] sm:$0x1] }
  0xbd   : > { %v2479_v60 = vshrl.u32 %v2477_v55, 16 }
  0xbe   : > { %14880 = vmatmul.mubr.msk.bf16.vlgmr.msra.gmra.mrb[24].mxu1 %vm207_vm2, %v13688_v18  ;;  %v2106_v18 = vrot.slane %v13746_v14, %v16379_v7  ;;  %v2836_v14 = vrot.slane %v13786_v10, %v16379_v7 }
  0xbf   : > { %14890 = vmatpush3.bf16.msra.mxu1 %v1124_v19  ;;  %14891 = vmatprep.mubr.msk.bf16.mxu1 %vm16273_vm0, %v16272_v3  ;;  %v1999_v19 = vpop.permute.xlu1 %1998 }
  0xc0   : > { %14901 = vmatprep.subr.bf16.mxu1 %v16272_v3  ;;  %v2004_v15 = vand.u32 %v1999_v19, %v16386_v8  ;;  %v13776_v19 = vld [vmem:[%s18833_s1 + $0x30] sm:$0xf] }
  0xc1   : > { %14874 = vmatmul.mubr.msk.bf16.vlgmr.msra.gmra.mrb[24].mxu0 %vm207_vm2, %v13686_v21  ;;  %v2113_v21 = vrot.slane %v2106_v18, %v16379_v7 }
  0xc2   : > { %14884 = vmatpush3.bf16.msra.mxu0 %v1072_v22  ;;  %14885 = vmatprep.mubr.msk.bf16.mxu0 %vm16273_vm0, %v16272_v3  ;;  %v13735_v22 = vld [vmem:[%s18833_s1 + $0x68] sm:$0xf] }
  0xc3   : > { %14895 = vmatprep.subr.bf16.mxu0 %v16272_v3  ;;  %v2115_v24 = vshrl.u32 %v2113_v21, 16 }
  0xc6   : > { %14892 = vmatmul.mubr.msk.bf16.vlgmr.msra.gmra.mrb[28].mxu1 %vm207_vm2, %v13697_v30  ;;  %v2121_v30 = vand.u32 %v2115_v24, %v16386_v8 }
  0xc7   : > { %14902 = vmatpush3.bf16.msra.mxu1 %v1258_v31  ;;  %14903 = vmatprep.mubr.msk.bf16.mxu1 %vm16273_vm0, %v16272_v3 }
  0xc8   : > { %14913 = vmatprep.subr.bf16.mxu1 %v16272_v3 }
  0xc9   : > { %14886 = vmatmul.mubr.msk.bf16.vlgmr.msra.gmra.mrb[28].mxu0 %vm207_vm2, %v13691_v35 }
  0xca   : > { %14896 = vmatpush3.bf16.msra.mxu0 %v1191_v36  ;;  %14897 = vmatprep.mubr.msk.bf16.mxu0 %vm16273_vm0, %v16272_v3 }
  0xcb   : > { %14907 = vmatprep.subr.bf16.mxu0 %v16272_v3 }
  0xce   : > { %14904 = vmatmul.mubr.msk.bf16.vlgmr.msra.gmra.mrb[32].mxu1 %vm207_vm2, %v13702_v41 }
  0xcf   : > { %14914 = vmatpush3.bf16.msra.mxu1 %v1378_v42  ;;  %14915 = vmatprep.mubr.msk.bf16.mxu1 %vm16273_vm0, %v16272_v3  ;;  %v2289_v42 = vrot.slane %v13755_v38, %v16379_v7 }
  0xd0   : > { %14925 = vmatprep.subr.bf16.mxu1 %v16272_v3 }
  0xd1   : > { %14898 = vmatmul.mubr.msk.bf16.vlgmr.msra.gmra.mrb[32].mxu0 %vm207_vm2, %v13699_v44  ;;  %v2182_v44 = vpop.permute.xlu0 %2181 }
  0xd2   : > { %14908 = vmatpush3.bf16.msra.mxu0 %v1311_v45  ;;  %14909 = vmatprep.mubr.msk.bf16.mxu0 %vm16273_vm0, %v16272_v3  ;;  %v13749_v45 = vld [vmem:[%s18833_s1 + $0x10] sm:$0xf] }
  0xd3   : > { %14919 = vmatprep.subr.bf16.mxu0 %v16272_v3 }
  0xd5   : > { %v2546_v5 = vpop.permute.xlu0 %2545 }
  0xd6   : > { %14916 = vmatmul.mubr.msk.bf16.vlgmr.msra.gmra.mrb[36].mxu1 %vm207_vm2, %v13710_v48  ;;  %v2187_v48 = vand.u32 %v2182_v44, %v16386_v8 }
  0xd7   : > { %14926 = vmatpush3.bf16.msra.mxu1 %v1497_v50  ;;  %14927 = vmatprep.mubr.msk.bf16.mxu1 %vm16273_vm0, %v16272_v3  ;;  %v2296_v50 = vrot.slane %v2289_v42, %v16379_v7 }
  0xd8   : > { %14937 = vmatprep.subr.bf16.mxu1 %v16272_v3 }
  0xd9   : > { %14910 = vmatmul.mubr.msk.bf16.vlgmr.msra.gmra.mrb[36].mxu0 %vm207_vm2, %v13708_v4  ;;  %v2365_v4 = vpop.permute.xlu1 %2364 }
  0xda   : > { %14920 = vmatpush3.bf16.msra.mxu0 %v1445_v52  ;;  %14921 = vmatprep.mubr.msk.bf16.mxu0 %vm16273_vm0, %v16272_v3  ;;  %v2298_v52 = vshrl.u32 %v2296_v50, 16  ;;  %v2370_v54 = vand.u32 %v2365_v4, %v16386_v8  ;;  %v13792_v4 = vld [vmem:[%s18833_s1 + $0x44] sm:$0xf] }
  0xdb   : > { %14931 = vmatprep.subr.bf16.mxu0 %v16272_v3 }
  0xde   : > { %14928 = vmatmul.mubr.msk.bf16.vlgmr.msra.gmra.mrb[40].mxu1 %vm207_vm2, %v13719_v57  ;;  %v13752_v57 = vld [vmem:[%s18833_s1 + $0x14] sm:$0xf] }
  0xdf   : > { %14938 = vmatpush3.bf16.msra.mxu1 %v1631_v58  ;;  %14939 = vmatprep.mubr.msk.bf16.mxu1 %vm16273_vm0, %v16272_v3  ;;  %v2304_v58 = vand.u32 %v2298_v52, %v16386_v8 }
  0xe0   : > { %14949 = vmatprep.subr.bf16.mxu1 %v16272_v3 }
  0xe1   : > { %14922 = vmatmul.mubr.msk.bf16.vlgmr.msra.gmra.mrb[40].mxu0 %vm207_vm2, %v13713_v61  ;;  %v13761_v61 = vld [vmem:[%s18833_s1 + $0x20] sm:$0xf] }
  0xe2   : > { %14932 = vmatpush3.bf16.msra.mxu0 %v1564_v62  ;;  %14933 = vmatprep.mubr.msk.bf16.mxu0 %vm16273_vm0, %v16272_v3  ;;  %v2485_v62 = vand.u32 %v2479_v60, %v16386_v8 }
  0xe3   : > { %14943 = vmatprep.subr.bf16.mxu0 %v16272_v3 }
  0xe6   : > { %14940 = vmatmul.mubr.msk.bf16.vlgmr.msra.gmra.mrb[44].mxu1 %vm207_vm2, %v13724_v1  ;;  %v13775_v1 = vld [vmem:[%s16384_s10 + $0x15] sm:$0x1] }
  0xe7   : > { %14950 = vmatpush3.bf16.msra.mxu1 %v1750_v2  ;;  %14951 = vmatprep.mubr.msk.bf16.mxu1 %vm16273_vm0, %v16272_v3  ;;  %v2653_v2 = vrot.slane %v13775_v1, %v16379_v7 }
  0xe8   : > { %14961 = vmatprep.subr.bf16.mxu1 %v16272_v3 }
  0xe9   : > { %14934 = vmatmul.mubr.msk.bf16.vlgmr.msra.gmra.mrb[44].mxu0 %vm207_vm2, %v13721_v6  ;;  %v13767_v6 = vld [vmem:[%s18833_s1 + $0x28] sm:$0xf] }
  0xea   : > { %14944 = vmatpush3.bf16.msra.mxu0 %v1683_v9  ;;  %14945 = vmatprep.mubr.msk.bf16.mxu0 %vm16273_vm0, %v16272_v3  ;;  %v2602_v9 = vand.u32 %v13775_v1, %v16386_v8 }
  0xeb   : > { %14955 = vmatprep.subr.bf16.mxu0 %v16272_v3 }
  0xee   : > { %14952 = vmatmul.mubr.msk.bf16.vlgmr.msra.gmra.mrb[48].mxu1 %vm207_vm2, %v13732_v12  ;;  %v2551_v12 = vand.u32 %v2546_v5, %v16386_v8 }
  0xef   : > { %14962 = vmatpush3.bf16.msra.mxu1 %v1893_v13  ;;  %14963 = vmatprep.mubr.msk.bf16.mxu1 %vm16273_vm0, %v16272_v3  ;;  %v2660_v13 = vrot.slane %v2653_v2, %v16379_v7  ;;  %v13807_v2 = vld [vmem:[%s18833_s1 + $0x54] sm:$0xf] }
  0xf0   : > { %14973 = vmatprep.subr.bf16.mxu1 %v16272_v3 }
  0xf1   : > { %14946 = vmatmul.mubr.msk.bf16.vlgmr.msra.gmra.mrb[48].mxu0 %vm207_vm2, %v13730_v16  ;;  %v2729_v16 = vpop.permute.xlu1 %2728  ;;  %v2662_v18 = vshrl.u32 %v2660_v13, 16  ;;  %v13818_v13 = vld [vmem:[%s18833_s1 + $0x60] sm:$0xf] }
  0xf2   : > { %14956 = vmatpush3.bf16.msra.mxu0 %v1817_v17  ;;  %14957 = vmatprep.mubr.msk.bf16.mxu0 %vm16273_vm0, %v16272_v3  ;;  %v2912_v17 = vpop.permute.xlu0 %2911 }
  0xf3   : > { %14967 = vmatprep.subr.bf16.mxu0 %v16272_v3  ;;  %v2668_v24 = vand.u32 %v2662_v18, %v16386_v8  ;;  %v2917_v42 = vand.u32 %v2912_v17, %v16386_v8  ;;  %v14020_v17 = vld.sshfl [vmem:[%s16384_s10 + $0x9] sm:$0x1 pattern:$0x75316420]  ;;  %v13812_v18 = vld [vmem:[%s18833_s1 + $0x5c] sm:$0xf] }
  0xf6   : > { %14964 = vmatmul.mubr.msk.bf16.vlgmr.msra.gmra.mrb[52].mxu1 %vm207_vm2, %v13739_v20  ;;  %v2734_v20 = vand.u32 %v2729_v16, %v16386_v8  ;;  %v16902_v21 = vpop.permute.xlu0 %3275 }
  0xf7   : > { %14974 = vmatpush3.bf16.msra.mxu1 %v2004_v15  ;;  %14975 = vmatprep.mubr.msk.bf16.mxu1 %vm16273_vm0, %v16272_v3  ;;  %v2843_v15 = vrot.slane %v2836_v14, %v16379_v7  ;;  %v3281_v5 = vand.u32 %v16902_v21, %v16386_v8 }
  0xf8   : > { %v297_v25 = vpop.f32.mrb[0].mxu1  ;;  %14985 = vmatprep.subr.bf16.mxu1 %v16272_v3 }
  0xf9   : > { %v14809_v26 = vpop.f32.mrb[1].mxu1  ;;  %14958 = vmatmul.mubr.msk.bf16.vlgmr.msra.gmra.mrb[52].mxu0 %vm207_vm2, %v13735_v22  ;;  %v13980_v22 = vld.sshfl [vmem:[%s16384_s10 + $0x2a] sm:$0x1 pattern:$0x75316420] }
  0xfa   : > { %v300_v27 = vpop.f32.mrb[2].mxu1  ;;  %14968 = vmatpush3.bf16.msra.mxu0 %v1939_v23  ;;  %14969 = vmatprep.mubr.msk.bf16.mxu0 %vm16273_vm0, %v16272_v3  ;;  %v13770_v23 = vld [vmem:[%s18833_s1 + $0x2c] sm:$0xf]  ;;  %v2845_v26 = vshrl.u32 %v2843_v15, 16  ;;  %v7106_v15 = vrot.slane %v14020_v17, %v16379_v7 }
  0xfb   : > { %v14810_v28 = vpop.f32.mrb[3].mxu1  ;;  %14979 = vmatprep.subr.bf16.mxu0 %v16272_v3  ;;  %v16916_v27 = vpop.permute.xlu0 %3640 }
  0xfc   : > { %v13781_v28 = vld [vmem:[%s18833_s1 + $0x38] sm:$0xf] }
  0xfe   : > { %v251_v31 = vpop.f32.mrb[0].mxu0  ;;  %14976 = vmatmul.mubr.msk.bf16.vlgmr.msra.gmra.mrb[56].mxu1 %vm207_vm2, %v13743_v29  ;;  %v2851_v29 = vand.u32 %v2845_v26, %v16386_v8 }
  0xff   : > { %v14803_v34 = vpop.f32.mrb[1].mxu0  ;;  %v16808_v35 = vadd.f32 %v297_v25, %v251_v31  ;;  %14986 = vmatpush3.bf16.msra.mxu1 %v2121_v30  ;;  %14987 = vmatprep.mubr.msk.bf16.mxu1 %vm16273_vm0, %v16272_v3  ;;  %v6375_v25 = vrot.slane %v13980_v22, %v16379_v7  ;;  %v13778_v30 = vld [vmem:[%s18833_s1 + $0x34] sm:$0xf]  ;;  %v2785_v31 = vand.u32 %v13786_v10, %v16386_v8 }
 0x100   : > { %v254_v36 = vpop.f32.mrb[2].mxu0  ;;  %v16812_v37 = vpop.f32.mrb[4].mxu1  ;;  %14997 = vmatprep.subr.bf16.mxu1 %v16272_v3 }
 0x101   : > { %v14804_v39 = vpop.f32.mrb[3].mxu0  ;;  %v14821_v40 = vpop.f32.mrb[5].mxu1  ;;  %14970 = vmatmul.mubr.msk.bf16.vlgmr.msra.gmra.mrb[56].mxu0 %vm207_vm2, %v1869_v32  ;;  %6376 = vrot.lane.b32.xlu1 %v6375_v25, %s16275_s11  ;;  %v13789_v36 = vld [vmem:[%s18833_s1 + $0x40] sm:$0xf]  ;;  %v13820_v25 = vld [vmem:[%s18833_s1 + $0x64] sm:$0xf] }
 0x102   : > { %v418_v41 = vpop.f32.mrb[6].mxu1  ;;  %14980 = vmatpush3.bf16.msra.mxu0 %v2055_v33  ;;  %14981 = vmatprep.mubr.msk.bf16.mxu0 %vm16273_vm0, %v16272_v3  ;;  %v16932_v32 = vpop.permute.xlu0 %4006  ;;  %v13795_v33 = vld [vmem:[%s16384_s10 + $0x26] sm:$0x1]  ;;  %v13806_v39 = vld [vmem:[%s16384_s10 + $0x27] sm:$0x1] }
 0x103   : > { %v14822_v43 = vpop.f32.mrb[7].mxu1  ;;  %14991 = vmatprep.subr.bf16.mxu0 %v16272_v3  ;;  %v3017_v34 = vrot.slane %v13795_v33, %v16379_v7  ;;  %v2966_v38 = vand.u32 %v13795_v33, %v16386_v8  ;;  %v13787_v41 = vld [vmem:[%s18833_s1 + $0x3c] sm:$0xf]  ;;  %v3200_v44 = vrot.slane %v13806_v39, %v16379_v7  ;;  %v3149_v59 = vand.u32 %v13806_v39, %v16386_v8  ;;  %v13828_v39 = vld [vmem:[%s18833_s1 + $0x4] sm:$0xf] }
 0x105   : > { %v3024_v43 = vrot.slane %v3017_v34, %v16379_v7  ;;  %v17077_v34 = vld [vmem:[%s16384_s10 + $0x6] sm:$0x1] }
 0x106   : > { %14988 = vmatmul.mubr.msk.bf16.vlgmr.msra.gmra.mrb[60].mxu1 %vm207_vm2, %v13749_v45  ;;  %v16946_v40 = vpop.permute.xlu0 %4370  ;;  %v3093_v45 = vpop.permute.xlu1 %3092 }
 0x107   : > { %14998 = vmatpush3.bf16.msra.mxu1 %v2238_v46  ;;  %14999 = vmatprep.mubr.msk.bf16.mxu1 %vm16273_vm0, %v16272_v3  ;;  %v3026_v46 = vshrl.u32 %v3024_v43, 16 }
 0x108   : > { %15009 = vmatprep.subr.bf16.mxu1 %v16272_v3 }
 0x109   : > { %14982 = vmatmul.mubr.msk.bf16.vlgmr.msra.gmra.mrb[60].mxu0 %vm207_vm2, %v13747_v47  ;;  %v3098_v47 = vand.u32 %v3093_v45, %v16386_v8  ;;  %v3032_v52 = vand.u32 %v3026_v46, %v16386_v8 }
 0x10a   : > { %14992 = vmatpush3.bf16.msra.mxu0 %v2187_v48  ;;  %14993 = vmatprep.mubr.msk.bf16.mxu0 %vm16273_vm0, %v16272_v3  ;;  %v3207_v48 = vrot.slane %v3200_v44, %v16379_v7  ;;  %v16967_v50 = vpop.permute.xlu0 %4734  ;;  %v3459_v10 = vpop.permute.xlu1 %3458  ;;  %v13836_v44 = vld [vmem:[%s18833_s1 + $0xc] sm:$0xf] }
 0x10b   : > { %15003 = vmatprep.subr.bf16.mxu0 %v16272_v3  ;;  %v3464_v14 = vand.u32 %v3459_v10, %v16386_v8 }
 0x10e   : > { %15000 = vmatmul.mubr.msk.bf16.vlgmr.msra.gmra.mrb[64].mxu1 %vm207_vm2, %v13756_v53  ;;  %v6741_v53 = vrot.slane %v14002_v51, %v16379_v7  ;;  %v16981_v55 = vpop.permute.xlu0 %5100  ;;  %v3824_v43 = vpop.permute.xlu1 %3823 }
 0x10f   : > { %15010 = vmatpush3.bf16.msra.mxu1 %v2370_v54  ;;  %15011 = vmatprep.mubr.msk.bf16.mxu1 %vm16273_vm0, %v16272_v3  ;;  %v3209_v54 = vshrl.u32 %v3207_v48, 16  ;;  %v3829_v45 = vand.u32 %v3824_v43, %v16386_v8 }
 0x110   : > { %15021 = vmatprep.subr.bf16.mxu1 %v16272_v3  ;;  %6742 = vrot.lane.b32.xlu1 %v6741_v53, %s16275_s11  ;;  %v13832_v53 = vld [vmem:[%s18833_s1 + $0x8] sm:$0xf] }
 0x111   : > { %14994 = vmatmul.mubr.msk.bf16.vlgmr.msra.gmra.mrb[64].mxu0 %vm207_vm2, %v13752_v57  ;;  %v3215_v57 = vand.u32 %v3209_v54, %v16386_v8 }
 0x112   : > { %15004 = vmatpush3.bf16.msra.mxu0 %v2304_v58  ;;  %15005 = vmatprep.mubr.msk.bf16.mxu0 %vm16273_vm0, %v16272_v3  ;;  %v13798_v58 = vld [vmem:[%s18833_s1 + $0x4c] sm:$0xf]  ;;  %v16997_v60 = vpop.permute.xlu0 %5465 }
 0x113   : > { %15015 = vmatprep.subr.bf16.mxu0 %v16272_v3 }
 0x114   : > { %7107 = vrot.lane.b32.xlu1 %v7106_v15, %s16275_s11 }
 0x116   : > { %15012 = vmatmul.mubr.msk.bf16.vlgmr.msra.gmra.mrb[68].mxu1 %vm207_vm2, %v13761_v61  ;;  %v13817_v61 = vld [vmem:[%s16384_s10 + $0x28] sm:$0x1]  ;;  %v17010_v1 = vpop.permute.xlu0 %5829 }
 0x117   : > { %15022 = vmatpush3.bf16.msra.mxu1 %v2485_v62  ;;  %15023 = vmatprep.mubr.msk.bf16.mxu1 %vm16273_vm0, %v16272_v3  ;;  %v3383_v62 = vrot.slane %v13817_v61, %v16379_v7 }
 0x118   : > { %15033 = vmatprep.subr.bf16.mxu1 %v16272_v3 }
 0x119   : > { %15006 = vmatmul.mubr.msk.bf16.vlgmr.msra.gmra.mrb[68].mxu0 %vm207_vm2, %v13758_v63  ;;  %v13809_v63 = vld [vmem:[%s18833_s1 + $0x58] sm:$0xf] }
 0x11a   : > { %15016 = vmatpush3.bf16.msra.mxu0 %v2419_v0  ;;  %15017 = vmatprep.mubr.msk.bf16.mxu0 %vm16273_vm0, %v16272_v3  ;;  %v3332_v0 = vand.u32 %v13817_v61, %v16386_v8  ;;  %v17032_v16 = vpop.permute.xlu0 %6195 }
 0x11b   : > { %15027 = vmatprep.subr.bf16.mxu0 %v16272_v3 }
 0x11e   : > { %15024 = vmatmul.mubr.msk.bf16.vlgmr.msra.gmra.mrb[72].mxu1 %vm207_vm2, %v13767_v6  ;;  %v3390_v6 = vrot.slane %v3383_v62, %v16379_v7  ;;  %v17047_v21 = vpop.permute.xlu0 %6559 }
 0x11f   : > { %15034 = vmatpush3.bf16.msra.mxu1 %v2602_v9  ;;  %15035 = vmatprep.mubr.msk.bf16.mxu1 %vm16273_vm0, %v16272_v3  ;;  %v13827_v9 = vld [vmem:[%s16384_s10 + $0x4] sm:$0x1] }
 0x120   : > { %15045 = vmatprep.subr.bf16.mxu1 %v16272_v3 }
 0x121   : > { %15018 = vmatmul.mubr.msk.bf16.vlgmr.msra.gmra.mrb[72].mxu0 %vm207_vm2, %v13765_v11  ;;  %v3392_v11 = vshrl.u32 %v3390_v6, 16 }
 0x122   : > { %15028 = vmatpush3.bf16.msra.mxu0 %v2551_v12  ;;  %15029 = vmatprep.mubr.msk.bf16.mxu0 %vm16273_vm0, %v16272_v3  ;;  %v3520_v12 = vrot.slane %v13827_v9, %v16379_v7 }
 0x123   : > { %15039 = vmatprep.subr.bf16.mxu0 %v16272_v3 }
 0x126   : > { %15036 = vmatmul.mubr.msk.bf16.vlgmr.msra.gmra.mrb[76].mxu1 %vm207_vm2, %v13776_v19  ;;  %v3398_v19 = vand.u32 %v3392_v11, %v16386_v8  ;;  %v13838_v11 = vld [vmem:[%s18833_s1 + $0x10] sm:$0xf] }
 0x127   : > { %15046 = vmatpush3.bf16.msra.mxu1 %v2734_v20  ;;  %15047 = vmatprep.mubr.msk.bf16.mxu1 %vm16273_vm0, %v16272_v3  ;;  %v3527_v20 = vrot.slane %v3520_v12, %v16379_v7  ;;  %v3880_v12 = vand.u32 %v17077_v34, %v16386_v8 }
 0x128   : > { %15057 = vmatprep.subr.bf16.mxu1 %v16272_v3 }
 0x129   : > { %15030 = vmatmul.mubr.msk.bf16.vlgmr.msra.gmra.mrb[76].mxu0 %vm207_vm2, %v13770_v23  ;;  %v3529_v22 = vshrl.u32 %v3527_v20, 16  ;;  %v13823_v23 = vld [vmem:[%s18833_s1 + $0x68] sm:$0xf] }
 0x12a   : > { %15040 = vmatpush3.bf16.msra.mxu0 %v2668_v24  ;;  %15041 = vmatprep.mubr.msk.bf16.mxu0 %vm16273_vm0, %v16272_v3  ;;  %v3581_v24 = vand.u32 %v13827_v9, %v16386_v8 }
 0x12b   : > { %15051 = vmatprep.subr.bf16.mxu0 %v16272_v3  ;;  %v3535_v26 = vand.u32 %v3529_v22, %v16386_v8 }
 0x12e   : > { %15048 = vmatmul.mubr.msk.bf16.vlgmr.msra.gmra.mrb[80].mxu1 %vm207_vm2, %v13781_v28  ;;  %v17063_v28 = vpop.permute.xlu0 %6924 }
 0x12f   : > { %15058 = vmatpush3.bf16.msra.mxu1 %v2851_v29  ;;  %15059 = vmatprep.mubr.msk.bf16.mxu1 %vm16273_vm0, %v16272_v3  ;;  %v13835_v29 = vld [vmem:[%s16384_s10 + $0x5] sm:$0x1] }
 0x130   : > { %15069 = vmatprep.subr.bf16.mxu1 %v16272_v3  ;;  %v3697_v33 = vand.u32 %v13835_v29, %v16386_v8 }
 0x131   : > { %15042 = vmatmul.mubr.msk.bf16.vlgmr.msra.gmra.mrb[80].mxu0 %vm207_vm2, %v13778_v30  ;;  %v3748_v30 = vrot.slane %v13835_v29, %v16379_v7  ;;  %v17149_v29 = vld [vmem:[%s16384_s10 + $0x17] sm:$0x1] }
 0x132   : > { %15052 = vmatpush3.bf16.msra.mxu0 %v2785_v31  ;;  %15053 = vmatprep.mubr.msk.bf16.mxu0 %vm16273_vm0, %v16272_v3  ;;  %v3511_v31 = vld [vmem:[%s18833_s1] sm:$0xf] }
 0x133   : > { %15063 = vmatprep.subr.bf16.mxu0 %v16272_v3 }
 0x136   : > { %15060 = vmatmul.mubr.msk.bf16.vlgmr.msra.gmra.mrb[84].mxu1 %vm207_vm2, %v13789_v36  ;;  %v17079_v36 = vpop.permute.xlu0 %7290 }
 0x137   : > { %15070 = vmatpush3.bf16.msra.mxu1 %v2966_v38  ;;  %15071 = vmatprep.mubr.msk.bf16.mxu1 %vm16273_vm0, %v16272_v3  ;;  %v3646_v38 = vand.u32 %v16916_v27, %v16386_v8 }
 0x138   : > { %15081 = vmatprep.subr.bf16.mxu1 %v16272_v3 }
 0x139   : > { %15054 = vmatmul.mubr.msk.bf16.vlgmr.msra.gmra.mrb[84].mxu0 %vm207_vm2, %v13787_v41  ;;  %v3755_v41 = vrot.slane %v3748_v30, %v16379_v7 }
 0x13a   : > { %15064 = vmatpush3.bf16.msra.mxu0 %v2917_v42  ;;  %15065 = vmatprep.mubr.msk.bf16.mxu0 %vm16273_vm0, %v16272_v3  ;;  %v3931_v42 = vrot.slane %v17077_v34, %v16379_v7  ;;  %v4012_v34 = vand.u32 %v16932_v32, %v16386_v8 }
 0x13b   : > { %15075 = vmatprep.subr.bf16.mxu0 %v16272_v3  ;;  %v3757_v27 = vshrl.u32 %v3755_v41, 16 }
 0x13c   : > { %v3938_v46 = vrot.slane %v3931_v42, %v16379_v7 }
 0x13d   : > { %v3763_v54 = vand.u32 %v3757_v27, %v16386_v8  ;;  %v4295_v27 = vrot.slane %v17149_v29, %v16379_v7 }
 0x13e   : > { %15072 = vmatmul.mubr.msk.bf16.vlgmr.msra.gmra.mrb[88].mxu1 %vm207_vm2, %v13796_v49  ;;  %v17102_v49 = vpop.permute.xlu0 %7654 }
 0x13f   : > { %15082 = vmatpush3.bf16.msra.mxu1 %v3098_v47  ;;  %15083 = vmatprep.mubr.msk.bf16.mxu1 %vm16273_vm0, %v16272_v3 }
 0x140   : > { %15093 = vmatprep.subr.bf16.mxu1 %v16272_v3 }
 0x141   : > { %15066 = vmatmul.mubr.msk.bf16.vlgmr.msra.gmra.mrb[88].mxu0 %vm207_vm2, %v13792_v4  ;;  %v14038_v4 = vld.sshfl [vmem:[%s16384_s10 + $0x1a] sm:$0x1 pattern:$0x75316420] }
 0x142   : > { %15076 = vmatpush3.bf16.msra.mxu0 %v3032_v52  ;;  %15077 = vmatprep.mubr.msk.bf16.mxu0 %vm16273_vm0, %v16272_v3  ;;  %v17118_v61 = vpop.permute.xlu0 %8018 }
 0x143   : > { %15087 = vmatprep.subr.bf16.mxu0 %v16272_v3 }
 0x146   : > { %15084 = vmatmul.mubr.msk.bf16.vlgmr.msra.gmra.mrb[92].mxu1 %vm207_vm2, %v13801_v56  ;;  %v7470_v56 = vrot.slane %v14038_v4, %v16379_v7  ;;  %v17135_v17 = vpop.permute.xlu0 %8384  ;;  %v4302_v4 = vrot.slane %v4295_v27, %v16379_v7 }
 0x147   : > { %15094 = vmatpush3.bf16.msra.mxu1 %v3215_v57  ;;  %15095 = vmatprep.mubr.msk.bf16.mxu1 %vm16273_vm0, %v16272_v3 }
 0x148   : > { %15105 = vmatprep.subr.bf16.mxu1 %v16272_v3  ;;  %7471 = vrot.lane.b32.xlu1 %v7470_v56, %s16275_s11 }
 0x149   : > { %15078 = vmatmul.mubr.msk.bf16.vlgmr.msra.gmra.mrb[92].mxu0 %vm207_vm2, %v13798_v58 }
 0x14a   : > { %15088 = vmatpush3.bf16.msra.mxu0 %v3149_v59  ;;  %15089 = vmatprep.mubr.msk.bf16.mxu0 %vm16273_vm0, %v16272_v3 }
 0x14b   : > { %15099 = vmatprep.subr.bf16.mxu0 %v16272_v3 }
 0x14e   : > { %15096 = vmatmul.mubr.msk.bf16.vlgmr.msra.gmra.mrb[96].mxu1 %vm207_vm2, %v13809_v63  ;;  %v13841_v63 = vld [vmem:[%s18833_s1 + $0x14] sm:$0xf] }
 0x14f   : > { %15106 = vmatpush3.bf16.msra.mxu1 %v3332_v0  ;;  %15107 = vmatprep.mubr.msk.bf16.mxu1 %vm16273_vm0, %v16272_v3 }
 0x150   : > { %15117 = vmatprep.subr.bf16.mxu1 %v16272_v3 }
 0x151   : > { %15090 = vmatmul.mubr.msk.bf16.vlgmr.msra.gmra.mrb[96].mxu0 %vm207_vm2, %v13807_v2 }
 0x152   : > { %15100 = vmatpush3.bf16.msra.mxu0 %v3281_v5  ;;  %15101 = vmatprep.mubr.msk.bf16.mxu0 %vm16273_vm0, %v16272_v3 }
 0x153   : > { %15111 = vmatprep.subr.bf16.mxu0 %v16272_v3 }
 0x156   : > { %15108 = vmatmul.mubr.msk.bf16.vlgmr.msra.gmra.mrb[100].mxu1 %vm207_vm2, %v13818_v13 }
 0x157   : > { %15118 = vmatpush3.bf16.msra.mxu1 %v3464_v14  ;;  %15119 = vmatprep.mubr.msk.bf16.mxu1 %vm16273_vm0, %v16272_v3 }
 0x158   : > { %15129 = vmatprep.subr.bf16.mxu1 %v16272_v3 }
 0x159   : > { %15102 = vmatmul.mubr.msk.bf16.vlgmr.msra.gmra.mrb[100].mxu0 %vm207_vm2, %v13812_v18  ;;  %v13853_v18 = vld [vmem:[%s16384_s10 + $0x16] sm:$0x1] }
 0x15a   : > { %15112 = vmatpush3.bf16.msra.mxu0 %v3398_v19  ;;  %15113 = vmatprep.mubr.msk.bf16.mxu0 %vm16273_vm0, %v16272_v3  ;;  %v4112_v15 = vrot.slane %v13853_v18, %v16379_v7 }
 0x15b   : > { %15123 = vmatprep.subr.bf16.mxu0 %v16272_v3 }
 0x15c   : > { %v4119_v41 = vrot.slane %v4112_v15, %v16379_v7  ;;  %v13856_v15 = vld [vmem:[%s18833_s1 + $0x28] sm:$0xf] }
 0x15e   : > { %15120 = vmatmul.mubr.msk.bf16.vlgmr.msra.gmra.mrb[104].mxu1 %vm207_vm2, %v13823_v23  ;;  %v13847_v23 = vld [vmem:[%s18833_s1 + $0x1c] sm:$0xf] }
 0x15f   : > { %15130 = vmatpush3.bf16.msra.mxu1 %v3581_v24  ;;  %15131 = vmatprep.mubr.msk.bf16.mxu1 %vm16273_vm0, %v16272_v3  ;;  %v4061_v24 = vand.u32 %v13853_v18, %v16386_v8 }
 0x160   : > { %15141 = vmatprep.subr.bf16.mxu1 %v16272_v3 }
 0x161   : > { %15114 = vmatmul.mubr.msk.bf16.vlgmr.msra.gmra.mrb[104].mxu0 %vm207_vm2, %v13820_v25 }
 0x162   : > { %15124 = vmatpush3.bf16.msra.mxu0 %v3535_v26  ;;  %15125 = vmatprep.mubr.msk.bf16.mxu0 %vm16273_vm0, %v16272_v3 }
 0x163   : > { %15135 = vmatprep.subr.bf16.mxu0 %v16272_v3 }
 0x166   : > { %15132 = vmatmul.mubr.msk.bf16.vlgmr.msra.gmra.mrb[108].mxu1 %vm207_vm2, %v3511_v31 }
 0x167   : > { %15142 = vmatpush3.bf16.msra.mxu1 %v3697_v33  ;;  %15143 = vmatprep.mubr.msk.bf16.mxu1 %vm16273_vm0, %v16272_v3  ;;  %v17151_v33 = vpop.permute.xlu0 %8749 }
 0x168   : > { %15153 = vmatprep.subr.bf16.mxu1 %v16272_v3 }
 0x169   : > { %15126 = vmatmul.mubr.msk.bf16.vlgmr.msra.gmra.mrb[108].mxu0 %vm207_vm2, %v13828_v39  ;;  %v13845_v39 = vld [vmem:[%s18833_s1 + $0x18] sm:$0xf] }
 0x16a   : > { %15136 = vmatpush3.bf16.msra.mxu0 %v3646_v38  ;;  %15137 = vmatprep.mubr.msk.bf16.mxu0 %vm16273_vm0, %v16272_v3 }
 0x16b   : > { %15147 = vmatprep.subr.bf16.mxu0 %v16272_v3 }
 0x16c   : > { %v363_v47 = vpop.f32.mrb[4].mxu0 }
 0x16d   : > { %v369_v48 = vadd.f32 %v363_v47, %v16808_v35  ;;  %v14815_v51 = vpop.f32.mrb[5].mxu0  ;;  %v3940_v35 = vshrl.u32 %v3938_v46, 16  ;;  %v4121_v46 = vshrl.u32 %v4119_v41, 16 }
 0x16e   : > { %v366_v52 = vpop.f32.mrb[6].mxu0  ;;  %15144 = vmatmul.mubr.msk.bf16.vlgmr.msra.gmra.mrb[112].mxu1 %vm207_vm2, %v13836_v44  ;;  %v4188_v44 = vpop.permute.xlu1 %4187 }
 0x16f   : > { %v421_v57 = vadd.f32 %v16812_v37, %v369_v48  ;;  %v14816_v58 = vpop.f32.mrb[7].mxu0  ;;  %15154 = vmatpush3.bf16.msra.mxu1 %v3829_v45  ;;  %15155 = vmatprep.mubr.msk.bf16.mxu1 %vm16273_vm0, %v16272_v3  ;;  %v3946_v0 = vand.u32 %v3940_v35, %v16386_v8  ;;  %v13854_v48 = vld [vmem:[%s18833_s1 + $0x24] sm:$0xf]  ;;  %v4193_v51 = vand.u32 %v4188_v44, %v16386_v8  ;;  %v17174_v52 = vpop.permute.xlu0 %9113 }
 0x170   : > { %15165 = vmatprep.subr.bf16.mxu1 %v16272_v3  ;;  %v14060_v58 = vld.sshfl [vmem:[%s16384_s10 + $0x1c] sm:$0x1 pattern:$0x75316420] }
 0x171   : > { %15138 = vmatmul.mubr.msk.bf16.vlgmr.msra.gmra.mrb[112].mxu0 %vm207_vm2, %v13832_v53  ;;  %v549_v59 = vpop.f32.mrb[8].mxu1 }
 0x172   : > { %15148 = vmatpush3.bf16.msra.mxu0 %v3763_v54  ;;  %15149 = vmatprep.mubr.msk.bf16.mxu0 %vm16273_vm0, %v16272_v3  ;;  %v14833_v37 = vpop.f32.mrb[9].mxu1 }
 0x173   : > { %v552_v62 = vpop.f32.mrb[10].mxu1  ;;  %15159 = vmatprep.subr.bf16.mxu0 %v16272_v3  ;;  %v4127_v37 = vand.u32 %v4121_v46, %v16386_v8 }
 0x174   : > { %v482_v2 = vpop.f32.mrb[8].mxu0  ;;  %v14834_v5 = vpop.f32.mrb[11].mxu1  ;;  %v7836_v62 = vrot.slane %v14060_v58, %v16379_v7 }
 0x175   : > { %v488_v6 = vadd.f32 %v482_v2, %v421_v57  ;;  %v14827_v9 = vpop.f32.mrb[9].mxu0  ;;  %v4304_v2 = vshrl.u32 %v4302_v4, 16 }
 0x176   : > { %v485_v10 = vpop.f32.mrb[10].mxu0  ;;  %15156 = vmatmul.mubr.msk.bf16.vlgmr.msra.gmra.mrb[116].mxu1 %vm207_vm2, %v13841_v63  ;;  %7837 = vrot.lane.b32.xlu1 %v7836_v62, %s16275_s11 }
 0x177   : > { %v555_v13 = vadd.f32 %v549_v59, %v488_v6  ;;  %v14828_v14 = vpop.f32.mrb[11].mxu0  ;;  %15166 = vmatpush3.bf16.msra.mxu1 %v3946_v0  ;;  %15167 = vmatprep.mubr.msk.bf16.mxu1 %vm16273_vm0, %v16272_v3  ;;  %v13850_v59 = vld [vmem:[%s18833_s1 + $0x20] sm:$0xf]  ;;  %v17188_v6 = vpop.permute.xlu0 %9479 }
 0x178   : > { %15177 = vmatprep.subr.bf16.mxu1 %v16272_v3 }
 0x179   : > { %15150 = vmatmul.mubr.msk.bf16.vlgmr.msra.gmra.mrb[116].mxu0 %vm207_vm2, %v13838_v11  ;;  %v668_v19 = vpop.f32.mrb[12].mxu1  ;;  %v13859_v11 = vld [vmem:[%s18833_s1 + $0x2c] sm:$0xf] }
 0x17a   : > { %15160 = vmatpush3.bf16.msra.mxu0 %v3880_v12  ;;  %15161 = vmatprep.mubr.msk.bf16.mxu0 %vm16273_vm0, %v16272_v3  ;;  %v14845_v20 = vpop.f32.mrb[13].mxu1  ;;  %v4310_v12 = vand.u32 %v4304_v2, %v16386_v8 }
 0x17b   : > { %v671_v22 = vpop.f32.mrb[14].mxu1  ;;  %15171 = vmatprep.subr.bf16.mxu0 %v16272_v3 }
 0x17c   : > { %v601_v25 = vpop.f32.mrb[12].mxu0  ;;  %v14846_v26 = vpop.f32.mrb[15].mxu1  ;;  %v4244_v22 = vand.u32 %v17149_v29, %v16386_v8 }
 0x17d   : > { %v607_v30 = vadd.f32 %v601_v25, %v555_v13  ;;  %v14839_v31 = vpop.f32.mrb[13].mxu0  ;;  %v17205_v25 = vpop.permute.xlu0 %9843  ;;  %v13875_v26 = vld [vmem:[%s16384_s10 + $0x18] sm:$0x1] }
 0x17e   : > { %v604_v38 = vpop.f32.mrb[14].mxu0  ;;  %15168 = vmatmul.mubr.msk.bf16.vlgmr.msra.gmra.mrb[120].mxu1 %vm207_vm2, %v13847_v23  ;;  %v4478_v31 = vrot.slane %v13875_v26, %v16379_v7 }
 0x17f   : > { %v674_v42 = vadd.f32 %v668_v19, %v607_v30  ;;  %v14840_v43 = vpop.f32.mrb[15].mxu0  ;;  %15178 = vmatpush3.bf16.msra.mxu1 %v4061_v24  ;;  %15179 = vmatprep.mubr.msk.bf16.mxu1 %vm16273_vm0, %v16272_v3  ;;  %v13867_v38 = vld [vmem:[%s18833_s1 + $0x34] sm:$0xf] }
 0x180   : > { %15189 = vmatprep.subr.bf16.mxu1 %v16272_v3  ;;  %v17219_v43 = vld [vmem:[%s16384_s10 + $0x28] sm:$0x1] }
 0x181   : > { %15162 = vmatmul.mubr.msk.bf16.vlgmr.msra.gmra.mrb[120].mxu0 %vm207_vm2, %v13845_v39  ;;  %v788_v32 = vpop.f32.mrb[16].mxu1  ;;  %v4427_v39 = vand.u32 %v13875_v26, %v16386_v8 }
 0x182   : > { %15172 = vmatpush3.bf16.msra.mxu0 %v4012_v34  ;;  %15173 = vmatprep.mubr.msk.bf16.mxu0 %vm16273_vm0, %v16272_v3  ;;  %v14857_v45 = vpop.f32.mrb[17].mxu1 }
 0x183   : > { %v791_v47 = vpop.f32.mrb[18].mxu1  ;;  %15183 = vmatprep.subr.bf16.mxu0 %v16272_v3  ;;  %v4376_v45 = vand.u32 %v16946_v40, %v16386_v8 }
 0x184   : > { %v735_v53 = vpop.f32.mrb[16].mxu0  ;;  %v14858_v54 = vpop.f32.mrb[19].mxu1  ;;  %v13865_v47 = vld [vmem:[%s18833_s1 + $0x30] sm:$0xf] }
 0x185   : > { %v741_v56 = vadd.f32 %v735_v53, %v674_v42  ;;  %v14851_v57 = vpop.f32.mrb[17].mxu0  ;;  %v4659_v53 = vrot.slane %v17219_v43, %v16379_v7  ;;  %v4554_v54 = vpop.permute.xlu1 %4553 }
 0x186   : > { %v738_v35 = vpop.f32.mrb[18].mxu0  ;;  %15180 = vmatmul.mubr.msk.bf16.vlgmr.msra.gmra.mrb[124].mxu1 %vm207_vm2, %v13854_v48  ;;  %v4485_v48 = vrot.slane %v4478_v31, %v16379_v7 }
 0x187   : > { %v794_v63 = vadd.f32 %v788_v32, %v741_v56  ;;  %v14852_v0 = vpop.f32.mrb[19].mxu0  ;;  %15190 = vmatpush3.bf16.msra.mxu1 %v4193_v51  ;;  %15191 = vmatprep.mubr.msk.bf16.mxu1 %vm16273_vm0, %v16272_v3  ;;  %v17221_v32 = vpop.permute.xlu0 %10208  ;;  %v13876_v35 = vld [vmem:[%s18833_s1 + $0x3c] sm:$0xf]  ;;  %v4666_v62 = vrot.slane %v4659_v53, %v16379_v7 }
 0x188   : > { %15201 = vmatprep.subr.bf16.mxu1 %v16272_v3  ;;  %v4487_v57 = vshrl.u32 %v4485_v48, 16 }
 0x189   : > { %15174 = vmatmul.mubr.msk.bf16.vlgmr.msra.gmra.mrb[124].mxu0 %vm207_vm2, %v13850_v59  ;;  %v922_v5 = vpop.f32.mrb[20].mxu1  ;;  %v4559_v59 = vand.u32 %v4554_v54, %v16386_v8 }
 0x18a   : > { %15184 = vmatpush3.bf16.msra.mxu0 %v4127_v37  ;;  %15185 = vmatprep.mubr.msk.bf16.mxu0 %vm16273_vm0, %v16272_v3  ;;  %v14869_v9 = vpop.f32.mrb[21].mxu1 }
 0x18b   : > { %v925_v10 = vpop.f32.mrb[22].mxu1  ;;  %15195 = vmatprep.subr.bf16.mxu0 %v16272_v3  ;;  %v17243_v37 = vpop.permute.xlu0 %10574  ;;  %v14080_v9 = vld.sshfl [vmem:[%s16384_s10 + $0x2d] sm:$0x1 pattern:$0x75316420] }
 0x18c   : > { %v855_v13 = vpop.f32.mrb[20].mxu0  ;;  %v14870_v14 = vpop.f32.mrb[23].mxu1 }
 0x18d   : > { %v861_v18 = vadd.f32 %v855_v13, %v794_v63  ;;  %v14863_v19 = vpop.f32.mrb[21].mxu0  ;;  %v8200_v13 = vrot.slane %v14080_v9, %v16379_v7  ;;  %v4918_v9 = vpop.permute.xlu1 %4917 }
 0x18e   : > { %v858_v20 = vpop.f32.mrb[22].mxu0  ;;  %15192 = vmatmul.mubr.msk.bf16.vlgmr.msra.gmra.mrb[128].mxu1 %vm207_vm2, %v13859_v11  ;;  %v13870_v11 = vld [vmem:[%s18833_s1 + $0x38] sm:$0xf]  ;;  %v4668_v19 = vshrl.u32 %v4666_v62, 16  ;;  %v13885_v62 = vld [vmem:[%s18833_s1 + $0x48] sm:$0xf] }
 0x18f   : > { %v928_v23 = vadd.f32 %v922_v5, %v861_v18  ;;  %v14864_v24 = vpop.f32.mrb[23].mxu0  ;;  %15202 = vmatpush3.bf16.msra.mxu1 %v4310_v12  ;;  %15203 = vmatprep.mubr.msk.bf16.mxu1 %vm16273_vm0, %v16272_v3  ;;  %v4493_v12 = vand.u32 %v4487_v57, %v16386_v8 }
 0x190   : > { %15213 = vmatprep.subr.bf16.mxu1 %v16272_v3  ;;  %8201 = vrot.lane.b32.xlu1 %v8200_v13, %s16275_s11  ;;  %v13881_v24 = vld [vmem:[%s18833_s1 + $0x44] sm:$0xf]  ;;  %v4674_v26 = vand.u32 %v4668_v19, %v16386_v8  ;;  %v13896_v13 = vld [vmem:[%s18833_s1 + $0x54] sm:$0xf] }
 0x191   : > { %15186 = vmatmul.mubr.msk.bf16.vlgmr.msra.gmra.mrb[128].mxu0 %vm207_vm2, %v13856_v15  ;;  %v1041_v30 = vpop.f32.mrb[24].mxu1  ;;  %v17258_v15 = vpop.permute.xlu0 %10938 }
 0x192   : > { %15196 = vmatpush3.bf16.msra.mxu0 %v4244_v22  ;;  %15197 = vmatprep.mubr.msk.bf16.mxu0 %vm16273_vm0, %v16272_v3  ;;  %v14881_v29 = vpop.f32.mrb[25].mxu1 }
 0x193   : > { %v1044_v34 = vpop.f32.mrb[26].mxu1  ;;  %15207 = vmatprep.subr.bf16.mxu0 %v16272_v3 }
 0x194   : > { %v974_v41 = vpop.f32.mrb[24].mxu0  ;;  %v14882_v42 = vpop.f32.mrb[27].mxu1 }
 0x195   : > { %v980_v27 = vadd.f32 %v974_v41, %v928_v23  ;;  %v14875_v44 = vpop.f32.mrb[25].mxu0  ;;  %v4608_v41 = vand.u32 %v17219_v43, %v16386_v8 }
 0x196   : > { %v977_v46 = vpop.f32.mrb[26].mxu0  ;;  %15204 = vmatmul.mubr.msk.bf16.vlgmr.msra.gmra.mrb[132].mxu1 %vm207_vm2, %v13867_v38  ;;  %v17275_v44 = vpop.permute.xlu0 %11302 }
 0x197   : > { %v1047_v51 = vadd.f32 %v1041_v30, %v980_v27  ;;  %v14876_v4 = vpop.f32.mrb[27].mxu0  ;;  %15214 = vmatpush3.bf16.msra.mxu1 %v4427_v39  ;;  %15215 = vmatprep.mubr.msk.bf16.mxu1 %vm16273_vm0, %v16272_v3  ;;  %v13878_v39 = vld [vmem:[%s18833_s1 + $0x40] sm:$0xf] }
 0x198   : > { %15225 = vmatprep.subr.bf16.mxu1 %v16272_v3 }
 0x199   : > { %15198 = vmatmul.mubr.msk.bf16.vlgmr.msra.gmra.mrb[132].mxu0 %vm207_vm2, %v13865_v47  ;;  %v1160_v40 = vpop.f32.mrb[28].mxu1 }
 0x19a   : > { %15208 = vmatpush3.bf16.msra.mxu0 %v4376_v45  ;;  %15209 = vmatprep.mubr.msk.bf16.mxu0 %vm16273_vm0, %v16272_v3  ;;  %v14893_v56 = vpop.f32.mrb[29].mxu1  ;;  %v13895_v45 = vld [vmem:[%s16384_s10 + $0x29] sm:$0x1] }
 0x19b   : > { %v1163_v58 = vpop.f32.mrb[30].mxu1  ;;  %15219 = vmatprep.subr.bf16.mxu0 %v16272_v3  ;;  %v4842_v47 = vrot.slane %v13895_v45, %v16379_v7  ;;  %v4791_v4 = vand.u32 %v13895_v45, %v16386_v8 }
 0x19c   : > { %v1108_v63 = vpop.f32.mrb[28].mxu0  ;;  %v14894_v0 = vpop.f32.mrb[31].mxu1 }
 0x19d   : > { %v1114_v2 = vadd.f32 %v1108_v63, %v1047_v51  ;;  %v14887_v5 = vpop.f32.mrb[29].mxu0  ;;  %v13887_v51 = vld [vmem:[%s18833_s1 + $0x4c] sm:$0xf]  ;;  %v17291_v58 = vpop.permute.xlu0 %11668  ;;  %v4849_v63 = vrot.slane %v4842_v47, %v16379_v7 }
 0x19e   : > { %v1111_v10 = vpop.f32.mrb[30].mxu0  ;;  %15216 = vmatmul.mubr.msk.bf16.vlgmr.msra.gmra.mrb[136].mxu1 %vm207_vm2, %v13876_v35  ;;  %v4740_v35 = vand.u32 %v16967_v50, %v16386_v8 }
 0x19f   : > { %v1166_v14 = vadd.f32 %v1160_v40, %v1114_v2  ;;  %v14888_v18 = vpop.f32.mrb[31].mxu0  ;;  %15226 = vmatpush3.bf16.msra.mxu1 %v4559_v59  ;;  %15227 = vmatprep.mubr.msk.bf16.mxu1 %vm16273_vm0, %v16272_v3  ;;  %v17289_v40 = vld [vmem:[%s16384_s10 + $0x2a] sm:$0x1] }
 0x1a0   : > { %15237 = vmatprep.subr.bf16.mxu1 %v16272_v3  ;;  %v5025_v5 = vrot.slane %v17289_v40, %v16379_v7 }
 0x1a1   : > { %15210 = vmatmul.mubr.msk.bf16.vlgmr.msra.gmra.mrb[136].mxu0 %vm207_vm2, %v13870_v11  ;;  %v1294_v20 = vpop.f32.mrb[32].mxu1  ;;  %v4851_v11 = vshrl.u32 %v4849_v63, 16  ;;  %v17313_v18 = vpop.permute.xlu0 %12033 }
 0x1a2   : > { %15220 = vmatpush3.bf16.msra.mxu0 %v4493_v12  ;;  %15221 = vmatprep.mubr.msk.bf16.mxu0 %vm16273_vm0, %v16272_v3  ;;  %v14905_v22 = vpop.f32.mrb[33].mxu1  ;;  %v5032_v19 = vrot.slane %v5025_v5, %v16379_v7 }
 0x1a3   : > { %v1297_v23 = vpop.f32.mrb[34].mxu1  ;;  %15231 = vmatprep.subr.bf16.mxu0 %v16272_v3 }
 0x1a4   : > { %v1227_v30 = vpop.f32.mrb[32].mxu0  ;;  %v14906_v29 = vpop.f32.mrb[35].mxu1  ;;  %v17317_v23 = vld [vmem:[%s16384_s10 + $0x6] sm:$0x1] }
 0x1a5   : > { %v1233_v31 = vadd.f32 %v1227_v30, %v1166_v14  ;;  %v14899_v34 = vpop.f32.mrb[33].mxu0  ;;  %v4923_v14 = vand.u32 %v4918_v9, %v16386_v8  ;;  %v14100_v30 = vld.sshfl [vmem:[%s16384_s10 + $0xa] sm:$0x1 pattern:$0x75316420] }
 0x1a6   : > { %v1230_v38 = vpop.f32.mrb[34].mxu0  ;;  %15228 = vmatmul.mubr.msk.bf16.vlgmr.msra.gmra.mrb[140].mxu1 %vm207_vm2, %v13881_v24  ;;  %v4857_v34 = vand.u32 %v4851_v11, %v16386_v8 }
 0x1a7   : > { %v1300_v42 = vadd.f32 %v1294_v20, %v1233_v31  ;;  %v14900_v27 = vpop.f32.mrb[35].mxu0  ;;  %15238 = vmatpush3.bf16.msra.mxu1 %v4674_v26  ;;  %15239 = vmatprep.mubr.msk.bf16.mxu1 %vm16273_vm0, %v16272_v3  ;;  %v13890_v31 = vld [vmem:[%s18833_s1 + $0x50] sm:$0xf]  ;;  %v8565_v38 = vrot.slane %v14100_v30, %v16379_v7  ;;  %v13907_v30 = vld [vmem:[%s18833_s1 + $0x60] sm:$0xf] }
 0x1a8   : > { %15249 = vmatprep.subr.bf16.mxu1 %v16272_v3  ;;  %v5162_v27 = vrot.slane %v17317_v23, %v16379_v7 }
 0x1a9   : > { %15222 = vmatmul.mubr.msk.bf16.vlgmr.msra.gmra.mrb[140].mxu0 %vm207_vm2, %v13878_v39  ;;  %v1414_v46 = vpop.f32.mrb[36].mxu1  ;;  %8566 = vrot.lane.b32.xlu1 %v8565_v38, %s16275_s11  ;;  %v5283_v38 = vpop.permute.xlu1 %5282 }
 0x1aa   : > { %15232 = vmatpush3.bf16.msra.mxu0 %v4608_v41  ;;  %15233 = vmatprep.mubr.msk.bf16.mxu0 %vm16273_vm0, %v16272_v3  ;;  %v14917_v43 = vpop.f32.mrb[37].mxu1 }
 0x1ab   : > { %v1417_v48 = vpop.f32.mrb[38].mxu1  ;;  %15243 = vmatprep.subr.bf16.mxu0 %v16272_v3 }
 0x1ac   : > { %v1347_v53 = vpop.f32.mrb[36].mxu0  ;;  %v14918_v54 = vpop.f32.mrb[39].mxu1  ;;  %v13901_v48 = vld [vmem:[%s18833_s1 + $0x5c] sm:$0xf] }
 0x1ad   : > { %v1353_v56 = vadd.f32 %v1347_v53, %v1300_v42  ;;  %v14911_v57 = vpop.f32.mrb[37].mxu0  ;;  %v5034_v42 = vshrl.u32 %v5032_v19, 16 }
 0x1ae   : > { %v1350_v59 = vpop.f32.mrb[38].mxu0  ;;  %15240 = vmatmul.mubr.msk.bf16.vlgmr.msra.gmra.mrb[144].mxu1 %vm207_vm2, %v13887_v51 }
 0x1af   : > { %v1420_v0 = vadd.f32 %v1414_v46, %v1353_v56  ;;  %v14912_v2 = vpop.f32.mrb[39].mxu0  ;;  %15250 = vmatpush3.bf16.msra.mxu1 %v4791_v4  ;;  %15251 = vmatprep.mubr.msk.bf16.mxu1 %vm16273_vm0, %v16272_v3  ;;  %v17333_v46 = vpop.permute.xlu0 %12397  ;;  %v5040_v51 = vand.u32 %v5034_v42, %v16386_v8  ;;  %v5169_v4 = vrot.slane %v5162_v27, %v16379_v7  ;;  %v13898_v59 = vld [vmem:[%s18833_s1 + $0x58] sm:$0xf]  ;;  %v13917_v27 = vld [vmem:[%s18833_s1 + $0x4] sm:$0xf] }
 0x1b0   : > { %15261 = vmatprep.subr.bf16.mxu1 %v16272_v3 }
 0x1b1   : > { %15234 = vmatmul.mubr.msk.bf16.vlgmr.msra.gmra.mrb[144].mxu0 %vm207_vm2, %v13885_v62  ;;  %v1533_v50 = vpop.f32.mrb[40].mxu1  ;;  %v4974_v62 = vand.u32 %v17289_v40, %v16386_v8  ;;  %v5171_v5 = vshrl.u32 %v5169_v4, 16 }
 0x1b2   : > { %15244 = vmatpush3.bf16.msra.mxu0 %v4740_v35  ;;  %15245 = vmatprep.mubr.msk.bf16.mxu0 %vm16273_vm0, %v16272_v3  ;;  %v14929_v10 = vpop.f32.mrb[41].mxu1 }
 0x1b3   : > { %v1536_v12 = vpop.f32.mrb[42].mxu1  ;;  %15255 = vmatprep.subr.bf16.mxu0 %v16272_v3  ;;  %v17349_v2 = vpop.permute.xlu0 %12763  ;;  %v13909_v10 = vld [vmem:[%s18833_s1 + $0x64] sm:$0xf]  ;;  %v5177_v11 = vand.u32 %v5171_v5, %v16386_v8 }
 0x1b4   : > { %v1481_v20 = vpop.f32.mrb[40].mxu0  ;;  %v14930_v22 = vpop.f32.mrb[43].mxu1 }
 0x1b5   : > { %v1487_v24 = vadd.f32 %v1481_v20, %v1420_v0  ;;  %v14923_v26 = vpop.f32.mrb[41].mxu0 }
 0x1b6   : > { %v1484_v29 = vpop.f32.mrb[42].mxu0  ;;  %15252 = vmatmul.mubr.msk.bf16.vlgmr.msra.gmra.mrb[148].mxu1 %vm207_vm2, %v13896_v13 }
 0x1b7   : > { %v1539_v39 = vadd.f32 %v1533_v50, %v1487_v24  ;;  %v14924_v41 = vpop.f32.mrb[43].mxu0  ;;  %15262 = vmatpush3.bf16.msra.mxu1 %v4923_v14  ;;  %15263 = vmatprep.mubr.msk.bf16.mxu1 %vm16273_vm0, %v16272_v3  ;;  %v17363_v14 = vld [vmem:[%s16384_s10 + $0x7] sm:$0x1]  ;;  %v17365_v22 = vpop.permute.xlu0 %13127  ;;  %v5106_v24 = vand.u32 %v16981_v55, %v16386_v8 }
 0x1b8   : > { %15273 = vmatprep.subr.bf16.mxu1 %v16272_v3 }
 0x1b9   : > { %15246 = vmatmul.mubr.msk.bf16.vlgmr.msra.gmra.mrb[148].mxu0 %vm207_vm2, %v13890_v31  ;;  %v1667_v45 = vpop.f32.mrb[44].mxu1 }
 0x1ba   : > { %15256 = vmatpush3.bf16.msra.mxu0 %v4857_v34  ;;  %15257 = vmatprep.mubr.msk.bf16.mxu0 %vm16273_vm0, %v16272_v3  ;;  %v14941_v43 = vpop.f32.mrb[45].mxu1  ;;  %v5390_v34 = vrot.slane %v17363_v14, %v16379_v7 }
 0x1bb   : > { %v1670_v47 = vpop.f32.mrb[46].mxu1  ;;  %15267 = vmatprep.subr.bf16.mxu0 %v16272_v3  ;;  %v17382_v41 = vpop.permute.xlu0 %1862 }
 0x1bc   : > { %v1600_v53 = vpop.f32.mrb[44].mxu0  ;;  %v14942_v54 = vpop.f32.mrb[47].mxu1  ;;  %v5397_v43 = vrot.slane %v5390_v34, %v16379_v7 }
 0x1bd   : > { %v1606_v56 = vadd.f32 %v1600_v53, %v1539_v39  ;;  %v14935_v57 = vpop.f32.mrb[45].mxu0  ;;  %v14118_v53 = vld.sshfl [vmem:[%s16384_s10 + $0xc] sm:$0x1 pattern:$0x75316420] }
 0x1be   : > { %v1603_v35 = vpop.f32.mrb[46].mxu0  ;;  %15264 = vmatmul.mubr.msk.bf16.vlgmr.msra.gmra.mrb[152].mxu1 %vm207_vm2, %v13901_v48  ;;  %v5223_v57 = vand.u32 %v17317_v23, %v16386_v8 }
 0x1bf   : > { %v1673_v63 = vadd.f32 %v1667_v45, %v1606_v56  ;;  %v14936_v0 = vpop.f32.mrb[47].mxu0  ;;  %15274 = vmatpush3.bf16.msra.mxu1 %v5040_v51  ;;  %15275 = vmatprep.mubr.msk.bf16.mxu1 %vm16273_vm0, %v16272_v3  ;;  %v5288_v45 = vand.u32 %v5283_v38, %v16386_v8  ;;  %v13912_v56 = vld [vmem:[%s18833_s1 + $0x68] sm:$0xf]  ;;  %v8931_v35 = vrot.slane %v14118_v53, %v16379_v7  ;;  %v13927_v38 = vld [vmem:[%s18833_s1 + $0x10] sm:$0xf] }
 0x1c0   : > { %15285 = vmatprep.subr.bf16.mxu1 %v16272_v3 }
 0x1c1   : > { %15258 = vmatmul.mubr.msk.bf16.vlgmr.msra.gmra.mrb[152].mxu0 %vm207_vm2, %v13898_v59  ;;  %v1786_v9 = vpop.f32.mrb[48].mxu1  ;;  %8932 = vrot.lane.b32.xlu1 %v8931_v35, %s16275_s11 }
 0x1c2   : > { %15268 = vmatpush3.bf16.msra.mxu0 %v4974_v62  ;;  %15269 = vmatprep.mubr.msk.bf16.mxu0 %vm16273_vm0, %v16272_v3  ;;  %v14953_v40 = vpop.f32.mrb[49].mxu1 }
 0x1c3   : > { %v1789_v50 = vpop.f32.mrb[50].mxu1  ;;  %15279 = vmatprep.subr.bf16.mxu0 %v16272_v3 }
 0x1c4   : > { %v1719_v12 = vpop.f32.mrb[48].mxu0  ;;  %v14954_v13 = vpop.f32.mrb[51].mxu1 }
 0x1c5   : > { %v1725_v19 = vadd.f32 %v1719_v12, %v1673_v63  ;;  %v14947_v20 = vpop.f32.mrb[49].mxu0  ;;  %v5399_v63 = vshrl.u32 %v5397_v43, 16 }
 0x1c6   : > { %v1722_v26 = vpop.f32.mrb[50].mxu0  ;;  %15276 = vmatmul.mubr.msk.bf16.vlgmr.msra.gmra.mrb[156].mxu1 %vm207_vm2, %v13909_v10  ;;  %v5339_v20 = vand.u32 %v17363_v14, %v16386_v8 }
 0x1c7   : > { %v1792_v29 = vadd.f32 %v1786_v9, %v1725_v19  ;;  %v14948_v31 = vpop.f32.mrb[51].mxu0  ;;  %15286 = vmatpush3.bf16.msra.mxu1 %v5177_v11  ;;  %15287 = vmatprep.mubr.msk.bf16.mxu1 %vm16273_vm0, %v16272_v3  ;;  %v13921_v9 = vld [vmem:[%s18833_s1 + $0x8] sm:$0xf]  ;;  %v5405_v40 = vand.u32 %v5399_v63, %v16386_v8  ;;  %v5153_v19 = vld [vmem:[%s18833_s1] sm:$0xf] }
 0x1c8   : > { %15297 = vmatprep.subr.bf16.mxu1 %v16272_v3  ;;  %v13934_v63 = vld [vmem:[%s18833_s1 + $0x18] sm:$0xf] }
 0x1c9   : > { %15270 = vmatmul.mubr.msk.bf16.vlgmr.msra.gmra.mrb[156].mxu0 %vm207_vm2, %v13907_v30  ;;  %v1929_v55 = vpop.f32.mrb[52].mxu1  ;;  %v13933_v30 = vld [vmem:[%s16384_s10 + $0x8] sm:$0x1] }
 0x1ca   : > { %15280 = vmatpush3.bf16.msra.mxu0 %v5106_v24  ;;  %15281 = vmatprep.mubr.msk.bf16.mxu0 %vm16273_vm0, %v16272_v3  ;;  %v14965_v39 = vpop.f32.mrb[53].mxu1  ;;  %v5573_v14 = vrot.slane %v13933_v30, %v16379_v7 }
 0x1cb   : > { %v1932_v42 = vpop.f32.mrb[54].mxu1  ;;  %15291 = vmatprep.subr.bf16.mxu0 %v16272_v3 }
 0x1cc   : > { %v1853_v47 = vpop.f32.mrb[52].mxu0  ;;  %v14966_v48 = vpop.f32.mrb[55].mxu1 }
 0x1cd   : > { %v1859_v51 = vadd.f32 %v1853_v47, %v1792_v29  ;;  %v14959_v4 = vpop.f32.mrb[53].mxu0  ;;  %v5471_v47 = vand.u32 %v16997_v60, %v16386_v8 }
 0x1ce   : > { %v1856_v54 = vpop.f32.mrb[54].mxu0  ;;  %15288 = vmatmul.mubr.msk.bf16.vlgmr.msra.gmra.mrb[160].mxu1 %vm207_vm2, %v13917_v27  ;;  %v17437_v27 = vld [vmem:[%s16384_s10 + $0x18] sm:$0x1]  ;;  %v5580_v4 = vrot.slane %v5573_v14, %v16379_v7  ;;  %v13939_v14 = vld [vmem:[%s18833_s1 + $0x20] sm:$0xf] }
 0x1cf   : > { %v1865_v59 = vadd.f32 %v17382_v41, %v1859_v51  ;;  %v14960_v62 = vpop.f32.mrb[55].mxu0  ;;  %15298 = vmatpush3.bf16.msra.mxu1 %v5288_v45  ;;  %15299 = vmatprep.mubr.msk.bf16.mxu1 %vm16273_vm0, %v16272_v3  ;;  %v13925_v51 = vld [vmem:[%s18833_s1 + $0xc] sm:$0xf] }
 0x1d0   : > { %15309 = vmatprep.subr.bf16.mxu1 %v16272_v3 }
 0x1d1   : > { %1867 = vst.msk [vmem:[%s17405_s20] sm:$0xff] %vm1866_vm3, %v1865_v59  ;;  %15282 = vmatmul.mubr.msk.bf16.vlgmr.msra.gmra.mrb[160].mxu0 %vm207_vm2, %v13912_v56  ;;  %v2040_v23 = vpop.f32.mrb[56].mxu1  ;;  %v5754_v56 = vrot.slane %v17437_v27, %v16379_v7  ;;  %v5582_v59 = vshrl.u32 %v5580_v4, 16  ;;  %v13953_v4 = vld [vmem:[%s16384_s10 + $0x19] sm:$0x1] }
 0x1d2   : > { %15292 = vmatpush3.bf16.msra.mxu0 %v5223_v57  ;;  %15293 = vmatprep.mubr.msk.bf16.mxu0 %vm16273_vm0, %v16272_v3  ;;  %v14977_v0 = vpop.f32.mrb[57].mxu1  ;;  %v5649_v57 = vpop.permute.xlu1 %5648 }
 0x1d3   : > { %v2043_v5 = vpop.f32.mrb[58].mxu1  ;;  %15303 = vmatprep.subr.bf16.mxu0 %v16272_v3  ;;  %v5761_v0 = vrot.slane %v5754_v56, %v16379_v7 }
 0x1d4   : > { %v1975_v50 = vpop.f32.mrb[56].mxu0  ;;  %v14978_v10 = vpop.f32.mrb[59].mxu1 }
 0x1d5   : > { %v1976_v11 = vadd.f32 %v1975_v50, %v1929_v55  ;;  %v14971_v12 = vpop.f32.mrb[57].mxu0  ;;  %v5522_v55 = vand.u32 %v13933_v30, %v16386_v8  ;;  %v14138_v10 = vld.sshfl [vmem:[%s16384_s10 + $0x1d] sm:$0x1 pattern:$0x75316420] }
 0x1d6   : > { %v1978_v13 = vpop.f32.mrb[58].mxu0  ;;  %15300 = vmatmul.mubr.msk.bf16.vlgmr.msra.gmra.mrb[164].mxu1 %vm207_vm2, %v13921_v9  ;;  %v13930_v12 = vld [vmem:[%s18833_s1 + $0x14] sm:$0xf] }
 0x1d7   : > { %v2046_v24 = vadd.f32 %v2040_v23, %v1976_v11  ;;  %v14972_v26 = vpop.f32.mrb[59].mxu0  ;;  %15310 = vmatpush3.bf16.msra.mxu1 %v5405_v40  ;;  %15311 = vmatprep.mubr.msk.bf16.mxu1 %vm16273_vm0, %v16272_v3  ;;  %v5654_v23 = vand.u32 %v5649_v57, %v16386_v8  ;;  %v5588_v13 = vand.u32 %v5582_v59, %v16386_v8  ;;  %v13945_v57 = vld [vmem:[%s18833_s1 + $0x28] sm:$0xf] }
 0x1d8   : > { %15321 = vmatprep.subr.bf16.mxu1 %v16272_v3  ;;  %v5763_v26 = vshrl.u32 %v5761_v0, 16  ;;  %v5835_v0 = vand.u32 %v17010_v1, %v16386_v8 }
 0x1d9   : > { %15294 = vmatmul.mubr.msk.bf16.vlgmr.msra.gmra.mrb[164].mxu0 %vm207_vm2, %v5153_v19  ;;  %v2157_v29 = vpop.f32.mrb[60].mxu1  ;;  %v9295_v19 = vrot.slane %v14138_v10, %v16379_v7 }
 0x1da   : > { %15304 = vmatpush3.bf16.msra.mxu0 %v5339_v20  ;;  %15305 = vmatprep.mubr.msk.bf16.mxu0 %vm16273_vm0, %v16272_v3  ;;  %v14989_v31 = vpop.f32.mrb[61].mxu1 }
 0x1db   : > { %v2160_v34 = vpop.f32.mrb[62].mxu1  ;;  %15315 = vmatprep.subr.bf16.mxu0 %v16272_v3  ;;  %9296 = vrot.lane.b32.xlu1 %v9295_v19, %s16275_s11 }
 0x1dc   : > { %v2091_v39 = vpop.f32.mrb[60].mxu0  ;;  %v14990_v42 = vpop.f32.mrb[63].mxu1  ;;  %v5769_v34 = vand.u32 %v5763_v26, %v16386_v8 }
 0x1dd   : > { %v2097_v45 = vadd.f32 %v2091_v39, %v2046_v24  ;;  %v14983_v43 = vpop.f32.mrb[61].mxu0 }
 0x1de   : > { %v2094_v48 = vpop.f32.mrb[62].mxu0  ;;  %15312 = vmatmul.mubr.msk.bf16.vlgmr.msra.gmra.mrb[168].mxu1 %vm207_vm2, %v13927_v38  ;;  %v13936_v43 = vld [vmem:[%s18833_s1 + $0x1c] sm:$0xf] }
 0x1df   : > { %v2163_v53 = vadd.f32 %v2157_v29, %v2097_v45  ;;  %v14984_v54 = vpop.f32.mrb[63].mxu0  ;;  %15322 = vmatpush3.bf16.msra.mxu1 %v5522_v55  ;;  %15323 = vmatprep.mubr.msk.bf16.mxu1 %vm16273_vm0, %v16272_v3 }
 0x1e0   : > { %15333 = vmatprep.subr.bf16.mxu1 %v16272_v3 }
 0x1e1   : > { %15306 = vmatmul.mubr.msk.bf16.vlgmr.msra.gmra.mrb[168].mxu0 %vm207_vm2, %v13925_v51  ;;  %v2274_v60 = vpop.f32.mrb[64].mxu1 }
 0x1e2   : > { %15316 = vmatpush3.bf16.msra.mxu0 %v5471_v47  ;;  %15317 = vmatprep.mubr.msk.bf16.mxu0 %vm16273_vm0, %v16272_v3  ;;  %v15001_v35 = vpop.f32.mrb[65].mxu1  ;;  %v5703_v47 = vand.u32 %v17437_v27, %v16386_v8  ;;  %v5937_v27 = vrot.slane %v13953_v4, %v16379_v7 }
 0x1e3   : > { %v2277_v62 = vpop.f32.mrb[66].mxu1  ;;  %15327 = vmatprep.subr.bf16.mxu0 %v16272_v3 }
 0x1e4   : > { %v2223_v5 = vpop.f32.mrb[64].mxu0  ;;  %v15002_v9 = vpop.f32.mrb[67].mxu1  ;;  %v17499_v62 = vld [vmem:[%s16384_s10 + $0x1a] sm:$0x1] }
 0x1e5   : > { %v2229_v40 = vadd.f32 %v2223_v5, %v2163_v53  ;;  %v14995_v50 = vpop.f32.mrb[65].mxu0  ;;  %v13943_v9 = vld [vmem:[%s18833_s1 + $0x24] sm:$0xf] }
 0x1e6   : > { %v2226_v11 = vpop.f32.mrb[66].mxu0  ;;  %15324 = vmatmul.mubr.msk.bf16.vlgmr.msra.gmra.mrb[172].mxu1 %vm207_vm2, %v13934_v63 }
 0x1e7   : > { %v2280_v20 = vadd.f32 %v2274_v60, %v2229_v40  ;;  %v14996_v24 = vpop.f32.mrb[67].mxu0  ;;  %15334 = vmatpush3.bf16.msra.mxu1 %v5654_v23  ;;  %15335 = vmatprep.mubr.msk.bf16.mxu1 %vm16273_vm0, %v16272_v3  ;;  %v5886_v60 = vand.u32 %v13953_v4, %v16386_v8  ;;  %v5944_v40 = vrot.slane %v5937_v27, %v16379_v7 }
 0x1e8   : > { %15345 = vmatprep.subr.bf16.mxu1 %v16272_v3  ;;  %v6120_v11 = vrot.slane %v17499_v62, %v16379_v7  ;;  %v13954_v24 = vld [vmem:[%s18833_s1 + $0x30] sm:$0xf] }
 0x1e9   : > { %15318 = vmatmul.mubr.msk.bf16.vlgmr.msra.gmra.mrb[172].mxu0 %vm207_vm2, %v13930_v12  ;;  %v2406_v30 = vpop.f32.mrb[68].mxu1  ;;  %v6013_v12 = vpop.permute.xlu1 %6012  ;;  %v5946_v19 = vshrl.u32 %v5944_v40, 16 }
 0x1ea   : > { %15328 = vmatpush3.bf16.msra.mxu0 %v5588_v13  ;;  %15329 = vmatprep.mubr.msk.bf16.mxu0 %vm16273_vm0, %v16272_v3  ;;  %v15013_v29 = vpop.f32.mrb[69].mxu1  ;;  %v6018_v26 = vand.u32 %v6013_v12, %v16386_v8 }
 0x1eb   : > { %v2409_v31 = vpop.f32.mrb[70].mxu1  ;;  %15339 = vmatprep.subr.bf16.mxu0 %v16272_v3 }
 0x1ec   : > { %v2340_v38 = vpop.f32.mrb[68].mxu0  ;;  %v15014_v55 = vpop.f32.mrb[71].mxu1 }
 0x1ed   : > { %v2346_v39 = vadd.f32 %v2340_v38, %v2280_v20  ;;  %v15007_v42 = vpop.f32.mrb[69].mxu0  ;;  %v14158_v38 = vld.sshfl [vmem:[%s16384_s10 + $0x2e] sm:$0x1 pattern:$0x75316420] }
 0x1ee   : > { %v2343_v45 = vpop.f32.mrb[70].mxu0  ;;  %15336 = vmatmul.mubr.msk.bf16.vlgmr.msra.gmra.mrb[176].mxu1 %vm207_vm2, %v13939_v14  ;;  %v5952_v42 = vand.u32 %v5946_v19, %v16386_v8  ;;  %v17561_v19 = vld [vmem:[%s16384_s10 + $0x2b] sm:$0x1] }
 0x1ef   : > { %v2412_v48 = vadd.f32 %v2406_v30, %v2346_v39  ;;  %v15008_v51 = vpop.f32.mrb[71].mxu0  ;;  %15346 = vmatpush3.bf16.msra.mxu1 %v5769_v34  ;;  %15347 = vmatprep.mubr.msk.bf16.mxu1 %vm16273_vm0, %v16272_v3  ;;  %v6127_v30 = vrot.slane %v6120_v11, %v16379_v7  ;;  %v13948_v39 = vld [vmem:[%s18833_s1 + $0x2c] sm:$0xf]  ;;  %v9659_v45 = vrot.slane %v14158_v38, %v16379_v7  ;;  %v13967_v11 = vld [vmem:[%s18833_s1 + $0x40] sm:$0xf] }
 0x1f0   : > { %15357 = vmatprep.subr.bf16.mxu1 %v16272_v3  ;;  %v6484_v38 = vrot.slane %v17561_v19, %v16379_v7 }
 0x1f1   : > { %15330 = vmatmul.mubr.msk.bf16.vlgmr.msra.gmra.mrb[176].mxu0 %vm207_vm2, %v13936_v43  ;;  %v2521_v53 = vpop.f32.mrb[72].mxu1  ;;  %9660 = vrot.lane.b32.xlu1 %v9659_v45, %s16275_s11 }
 0x1f2   : > { %15340 = vmatpush3.bf16.msra.mxu0 %v5703_v47  ;;  %15341 = vmatprep.mubr.msk.bf16.mxu0 %vm16273_vm0, %v16272_v3  ;;  %v15025_v54 = vpop.f32.mrb[73].mxu1 }
 0x1f3   : > { %v2524_v56 = vpop.f32.mrb[74].mxu1  ;;  %15351 = vmatprep.subr.bf16.mxu0 %v16272_v3  ;;  %v13959_v54 = vld [vmem:[%s18833_s1 + $0x38] sm:$0xf] }
 0x1f4   : > { %v2455_v35 = vpop.f32.mrb[72].mxu0  ;;  %v15026_v59 = vpop.f32.mrb[75].mxu1 }
 0x1f5   : > { %v2461_v63 = vadd.f32 %v2455_v35, %v2412_v48  ;;  %v15019_v23 = vpop.f32.mrb[73].mxu0  ;;  %v6129_v48 = vshrl.u32 %v6127_v30, 16 }
 0x1f6   : > { %v2458_v5 = vpop.f32.mrb[74].mxu0  ;;  %15348 = vmatmul.mubr.msk.bf16.vlgmr.msra.gmra.mrb[180].mxu1 %vm207_vm2, %v13945_v57  ;;  %v6069_v23 = vand.u32 %v17499_v62, %v16386_v8 }
 0x1f7   : > { %v2527_v50 = vadd.f32 %v2521_v53, %v2461_v63  ;;  %v15020_v10 = vpop.f32.mrb[75].mxu0  ;;  %15358 = vmatpush3.bf16.msra.mxu1 %v5886_v60  ;;  %15359 = vmatprep.mubr.msk.bf16.mxu1 %vm16273_vm0, %v16272_v3  ;;  %v6135_v27 = vand.u32 %v6129_v48, %v16386_v8  ;;  %v13956_v63 = vld [vmem:[%s18833_s1 + $0x34] sm:$0xf]  ;;  %v6491_v48 = vrot.slane %v6484_v38, %v16379_v7 }
 0x1f8   : > { %15369 = vmatprep.subr.bf16.mxu1 %v16272_v3 }
 0x1f9   : > { %15342 = vmatmul.mubr.msk.bf16.vlgmr.msra.gmra.mrb[180].mxu0 %vm207_vm2, %v13943_v9  ;;  %v2638_v1 = vpop.f32.mrb[76].mxu1  ;;  %v13973_v9 = vld [vmem:[%s16384_s10 + $0x2a] sm:$0x1] }
 0x1fa   : > { %15352 = vmatpush3.bf16.msra.mxu0 %v5835_v0  ;;  %15353 = vmatprep.mubr.msk.bf16.mxu0 %vm16273_vm0, %v16272_v3  ;;  %v15037_v13 = vpop.f32.mrb[77].mxu1  ;;  %v6301_v62 = vrot.slane %v13973_v9, %v16379_v7  ;;  %v6250_v12 = vand.u32 %v13973_v9, %v16386_v8 }
 0x1fb   : > { %v2641_v20 = vpop.f32.mrb[78].mxu1  ;;  %15363 = vmatprep.subr.bf16.mxu0 %v16272_v3 }
 0x1fc   : > { %v2587_v29 = vpop.f32.mrb[76].mxu0  ;;  %v15038_v31 = vpop.f32.mrb[79].mxu1 }
 0x1fd   : > { %v2593_v14 = vadd.f32 %v2587_v29, %v2527_v50  ;;  %v15031_v34 = vpop.f32.mrb[77].mxu0  ;;  %v13965_v29 = vld [vmem:[%s18833_s1 + $0x3c] sm:$0xf]  ;;  %v6308_v31 = vrot.slane %v6301_v62, %v16379_v7 }
 0x1fe   : > { %v2590_v55 = vpop.f32.mrb[78].mxu0  ;;  %15360 = vmatmul.mubr.msk.bf16.vlgmr.msra.gmra.mrb[184].mxu1 %vm207_vm2, %v13954_v24 }
 0x1ff   : > { %v2644_v43 = vadd.f32 %v2638_v1, %v2593_v14  ;;  %v15032_v47 = vpop.f32.mrb[79].mxu0  ;;  %15370 = vmatpush3.bf16.msra.mxu1 %v6018_v26  ;;  %15371 = vmatprep.mubr.msk.bf16.mxu1 %vm16273_vm0, %v16272_v3  ;;  %v6201_v26 = vand.u32 %v17032_v16, %v16386_v8  ;;  %v6377_v55 = vpop.permute.xlu1 %6376 }
 0x200   : > { %15381 = vmatprep.subr.bf16.mxu1 %v16272_v3  ;;  %v6382_v47 = vand.u32 %v6377_v55, %v16386_v8 }
 0x201   : > { %15354 = vmatmul.mubr.msk.bf16.vlgmr.msra.gmra.mrb[184].mxu0 %vm207_vm2, %v13948_v39  ;;  %v2770_v51 = vpop.f32.mrb[80].mxu1 }
 0x202   : > { %15364 = vmatpush3.bf16.msra.mxu0 %v5952_v42  ;;  %15365 = vmatprep.mubr.msk.bf16.mxu0 %vm16273_vm0, %v16272_v3  ;;  %v15049_v4 = vpop.f32.mrb[81].mxu1  ;;  %v6310_v42 = vshrl.u32 %v6308_v31, 16 }
 0x203   : > { %v2773_v53 = vpop.f32.mrb[82].mxu1  ;;  %15375 = vmatprep.subr.bf16.mxu0 %v16272_v3 }
 0x204   : > { %v2704_v56 = vpop.f32.mrb[80].mxu0  ;;  %v15050_v57 = vpop.f32.mrb[83].mxu1 }
 0x205   : > { %v2710_v60 = vadd.f32 %v2704_v56, %v2644_v43  ;;  %v15043_v35 = vpop.f32.mrb[81].mxu0  ;;  %v13974_v43 = vld [vmem:[%s18833_s1 + $0x48] sm:$0xf]  ;;  %v13970_v57 = vld [vmem:[%s18833_s1 + $0x44] sm:$0xf] }
 0x206   : > { %v2707_v59 = vpop.f32.mrb[82].mxu0  ;;  %15372 = vmatmul.mubr.msk.bf16.vlgmr.msra.gmra.mrb[188].mxu1 %vm207_vm2, %v13959_v54 }
 0x207   : > { %v2776_v0 = vadd.f32 %v2770_v51, %v2710_v60  ;;  %v15044_v5 = vpop.f32.mrb[83].mxu0  ;;  %15382 = vmatpush3.bf16.msra.mxu1 %v6135_v27  ;;  %15383 = vmatprep.mubr.msk.bf16.mxu1 %vm16273_vm0, %v16272_v3  ;;  %v14180_v27 = vld.sshfl [vmem:[%s16384_s10 + $0x30] sm:$0x1 pattern:$0x75316420]  ;;  %v6316_v60 = vand.u32 %v6310_v42, %v16386_v8 }
 0x208   : > { %15393 = vmatprep.subr.bf16.mxu1 %v16272_v3  ;;  %v10025_v35 = vrot.slane %v14180_v27, %v16379_v7 }
 0x209   : > { %15366 = vmatmul.mubr.msk.bf16.vlgmr.msra.gmra.mrb[188].mxu0 %vm207_vm2, %v13956_v63  ;;  %v2887_v40 = vpop.f32.mrb[84].mxu1 }
 0x20a   : > { %15376 = vmatpush3.bf16.msra.mxu0 %v6069_v23  ;;  %15377 = vmatprep.mubr.msk.bf16.mxu0 %vm16273_vm0, %v16272_v3  ;;  %v15061_v50 = vpop.f32.mrb[85].mxu1  ;;  %v6493_v23 = vshrl.u32 %v6491_v48, 16 }
 0x20b   : > { %v2890_v10 = vpop.f32.mrb[86].mxu1  ;;  %15387 = vmatprep.subr.bf16.mxu0 %v16272_v3  ;;  %10026 = vrot.lane.b32.xlu1 %v10025_v35, %s16275_s11  ;;  %v13996_v35 = vld [vmem:[%s18833_s1 + $0x60] sm:$0xf] }
 0x20c   : > { %v2821_v1 = vpop.f32.mrb[84].mxu0  ;;  %v15062_v13 = vpop.f32.mrb[87].mxu1  ;;  %v6499_v50 = vand.u32 %v6493_v23, %v16386_v8 }
 0x20d   : > { %v2827_v20 = vadd.f32 %v2821_v1, %v2776_v0  ;;  %v15055_v24 = vpop.f32.mrb[85].mxu0  ;;  %v13976_v13 = vld [vmem:[%s18833_s1 + $0x4c] sm:$0xf] }
 0x20e   : > { %v2824_v30 = vpop.f32.mrb[86].mxu0  ;;  %15384 = vmatmul.mubr.msk.bf16.vlgmr.msra.gmra.mrb[192].mxu1 %vm207_vm2, %v13967_v11 }
 0x20f   : > { %v2893_v14 = vadd.f32 %v2887_v40, %v2827_v20  ;;  %v15056_v34 = vpop.f32.mrb[87].mxu0  ;;  %15394 = vmatpush3.bf16.msra.mxu1 %v6250_v12  ;;  %15395 = vmatprep.mubr.msk.bf16.mxu1 %vm16273_vm0, %v16272_v3  ;;  %v13979_v40 = vld [vmem:[%s18833_s1 + $0x50] sm:$0xf]  ;;  %v6433_v20 = vand.u32 %v17561_v19, %v16386_v8  ;;  %v13995_v30 = vld [vmem:[%s16384_s10 + $0x2c] sm:$0x1] }
 0x210   : > { %15405 = vmatprep.subr.bf16.mxu1 %v16272_v3  ;;  %v13987_v34 = vld [vmem:[%s18833_s1 + $0x58] sm:$0xf]  ;;  %v6616_v38 = vand.u32 %v13995_v30, %v16386_v8 }
 0x211   : > { %15378 = vmatmul.mubr.msk.bf16.vlgmr.msra.gmra.mrb[192].mxu0 %vm207_vm2, %v13965_v29  ;;  %v3002_v16 = vpop.f32.mrb[88].mxu1 }
 0x212   : > { %15388 = vmatpush3.bf16.msra.mxu0 %v6201_v26  ;;  %15389 = vmatprep.mubr.msk.bf16.mxu0 %vm16273_vm0, %v16272_v3  ;;  %v15073_v39 = vpop.f32.mrb[89].mxu1 }
 0x213   : > { %v3005_v45 = vpop.f32.mrb[90].mxu1  ;;  %15399 = vmatprep.subr.bf16.mxu0 %v16272_v3 }
 0x214   : > { %v2953_v51 = vpop.f32.mrb[88].mxu0  ;;  %v15074_v4 = vpop.f32.mrb[91].mxu1  ;;  %v6565_v45 = vand.u32 %v17047_v21, %v16386_v8 }
 0x215   : > { %v2959_v53 = vadd.f32 %v2953_v51, %v2893_v14  ;;  %v15067_v54 = vpop.f32.mrb[89].mxu0  ;;  %v6667_v14 = vrot.slane %v13995_v30, %v16379_v7  ;;  %v14001_v30 = vld [vmem:[%s18833_s1 + $0x68] sm:$0xf] }
 0x216   : > { %v2956_v56 = vpop.f32.mrb[90].mxu0  ;;  %15396 = vmatmul.mubr.msk.bf16.vlgmr.msra.gmra.mrb[196].mxu1 %vm207_vm2, %v13974_v43  ;;  %v6743_v54 = vpop.permute.xlu1 %6742 }
 0x217   : > { %v3008_v59 = vadd.f32 %v3002_v16, %v2959_v53  ;;  %v15068_v63 = vpop.f32.mrb[91].mxu0  ;;  %15406 = vmatpush3.bf16.msra.mxu1 %v6382_v47  ;;  %15407 = vmatprep.mubr.msk.bf16.mxu1 %vm16273_vm0, %v16272_v3  ;;  %v13985_v47 = vld [vmem:[%s18833_s1 + $0x54] sm:$0xf]  ;;  %v6674_v48 = vrot.slane %v6667_v14, %v16379_v7  ;;  %v14005_v53 = vld [vmem:[%s16384_s10 + $0x8] sm:$0x1] }
 0x218   : > { %15417 = vmatprep.subr.bf16.mxu1 %v16272_v3 }
 0x219   : > { %15390 = vmatmul.mubr.msk.bf16.vlgmr.msra.gmra.mrb[196].mxu0 %vm207_vm2, %v13970_v57  ;;  %v3134_v0 = vpop.f32.mrb[92].mxu1  ;;  %v6676_v56 = vshrl.u32 %v6674_v48, 16  ;;  %v6804_v57 = vrot.slane %v14005_v53, %v16379_v7 }
 0x21a   : > { %15400 = vmatpush3.bf16.msra.mxu0 %v6316_v60  ;;  %15401 = vmatprep.mubr.msk.bf16.mxu0 %vm16273_vm0, %v16272_v3  ;;  %v15085_v5 = vpop.f32.mrb[93].mxu1 }
 0x21b   : > { %v3137_v9 = vpop.f32.mrb[94].mxu1  ;;  %15411 = vmatprep.subr.bf16.mxu0 %v16272_v3 }
 0x21c   : > { %v3068_v62 = vpop.f32.mrb[92].mxu0  ;;  %v15086_v10 = vpop.f32.mrb[95].mxu1  ;;  %v14198_v9 = vld.sshfl [vmem:[%s16384_s10 + $0xd] sm:$0x1 pattern:$0x75316420] }
 0x21d   : > { %v3074_v11 = vadd.f32 %v3068_v62, %v3008_v59  ;;  %v15079_v12 = vpop.f32.mrb[93].mxu0  ;;  %v6748_v59 = vand.u32 %v6743_v54, %v16386_v8  ;;  %v6682_v62 = vand.u32 %v6676_v56, %v16386_v8  ;;  %v6811_v10 = vrot.slane %v6804_v57, %v16379_v7  ;;  %v17684_v56 = vld [vmem:[%s16384_s10 + $0xa] sm:$0x1] }
 0x21e   : > { %v3071_v1 = vpop.f32.mrb[94].mxu0  ;;  %15408 = vmatmul.mubr.msk.bf16.vlgmr.msra.gmra.mrb[200].mxu1 %vm207_vm2, %v13979_v40 }
 0x21f   : > { %v3140_v24 = vadd.f32 %v3134_v0, %v3074_v11  ;;  %v15080_v26 = vpop.f32.mrb[95].mxu0  ;;  %15418 = vmatpush3.bf16.msra.mxu1 %v6499_v50  ;;  %15419 = vmatprep.mubr.msk.bf16.mxu1 %vm16273_vm0, %v16272_v3  ;;  %v13990_v50 = vld [vmem:[%s18833_s1 + $0x5c] sm:$0xf]  ;;  %v10390_v11 = vrot.slane %v14198_v9, %v16379_v7  ;;  %v7108_v9 = vpop.permute.xlu1 %7107 }
 0x220   : > { %15429 = vmatprep.subr.bf16.mxu1 %v16272_v3 }
 0x221   : > { %15402 = vmatmul.mubr.msk.bf16.vlgmr.msra.gmra.mrb[200].mxu0 %vm207_vm2, %v13976_v13  ;;  %v3251_v29 = vpop.f32.mrb[96].mxu1  ;;  %10391 = vrot.lane.b32.xlu1 %v10390_v11, %s16275_s11  ;;  %v7113_v11 = vand.u32 %v7108_v9, %v16386_v8  ;;  %v17746_v9 = vld [vmem:[%s16384_s10 + $0x1b] sm:$0x1] }
 0x222   : > { %15412 = vmatpush3.bf16.msra.mxu0 %v6433_v20  ;;  %15413 = vmatprep.mubr.msk.bf16.mxu0 %vm16273_vm0, %v16272_v3  ;;  %v15097_v31 = vpop.f32.mrb[97].mxu1 }
 0x223   : > { %v3254_v19 = vpop.f32.mrb[98].mxu1  ;;  %15423 = vmatprep.subr.bf16.mxu0 %v16272_v3 }
 0x224   : > { %v3185_v55 = vpop.f32.mrb[96].mxu0  ;;  %v15098_v16 = vpop.f32.mrb[99].mxu1 }
 0x225   : > { %v3191_v39 = vadd.f32 %v3185_v55, %v3140_v24  ;;  %v15091_v42 = vpop.f32.mrb[97].mxu0  ;;  %v6813_v24 = vshrl.u32 %v6811_v10, 16  ;;  %v13998_v55 = vld [vmem:[%s18833_s1 + $0x64] sm:$0xf]  ;;  %v14014_v10 = vld [vmem:[%s18833_s1 + $0xc] sm:$0xf] }
 0x226   : > { %v3188_v43 = vpop.f32.mrb[98].mxu0  ;;  %15420 = vmatmul.mubr.msk.bf16.vlgmr.msra.gmra.mrb[204].mxu1 %vm207_vm2, %v13987_v34 }
 0x227   : > { %v3257_v51 = vadd.f32 %v3251_v29, %v3191_v39  ;;  %v15092_v4 = vpop.f32.mrb[99].mxu0  ;;  %15430 = vmatpush3.bf16.msra.mxu1 %v6616_v38  ;;  %15431 = vmatprep.mubr.msk.bf16.mxu1 %vm16273_vm0, %v16272_v3  ;;  %v6865_v29 = vand.u32 %v14005_v53, %v16386_v8  ;;  %v6819_v16 = vand.u32 %v6813_v24, %v16386_v8  ;;  %v6795_v53 = vld [vmem:[%s18833_s1] sm:$0xf] }
 0x228   : > { %15441 = vmatprep.subr.bf16.mxu1 %v16272_v3 }
 0x229   : > { %15414 = vmatmul.mubr.msk.bf16.vlgmr.msra.gmra.mrb[204].mxu0 %vm207_vm2, %v13985_v47  ;;  %v3368_v21 = vpop.f32.mrb[100].mxu1 }
 0x22a   : > { %15424 = vmatpush3.bf16.msra.mxu0 %v6565_v45  ;;  %15425 = vmatprep.mubr.msk.bf16.mxu0 %vm16273_vm0, %v16272_v3  ;;  %v15109_v27 = vpop.f32.mrb[101].mxu1  ;;  %v14013_v45 = vld [vmem:[%s16384_s10 + $0x9] sm:$0x1] }
 0x22b   : > { %v3371_v60 = vpop.f32.mrb[102].mxu1  ;;  %15435 = vmatprep.subr.bf16.mxu0 %v16272_v3  ;;  %v6981_v54 = vand.u32 %v14013_v45, %v16386_v8 }
 0x22c   : > { %v3317_v63 = vpop.f32.mrb[100].mxu0  ;;  %v15110_v23 = vpop.f32.mrb[103].mxu1 }
 0x22d   : > { %v3323_v0 = vadd.f32 %v3317_v63, %v3257_v51  ;;  %v15103_v5 = vpop.f32.mrb[101].mxu0  ;;  %v7032_v51 = vrot.slane %v14013_v45, %v16379_v7  ;;  %v14006_v63 = vld [vmem:[%s18833_s1 + $0x4] sm:$0xf] }
 0x22e   : > { %v3320_v40 = vpop.f32.mrb[102].mxu0  ;;  %15432 = vmatmul.mubr.msk.bf16.vlgmr.msra.gmra.mrb[208].mxu1 %vm207_vm2, %v13996_v35  ;;  %v6930_v35 = vand.u32 %v17063_v28, %v16386_v8  ;;  %v7215_v5 = vrot.slane %v17684_v56, %v16379_v7 }
 0x22f   : > { %v3374_v12 = vadd.f32 %v3368_v21, %v3323_v0  ;;  %v15104_v1 = vpop.f32.mrb[103].mxu0  ;;  %15442 = vmatpush3.bf16.msra.mxu1 %v6748_v59  ;;  %15443 = vmatprep.mubr.msk.bf16.mxu1 %vm16273_vm0, %v16272_v3  ;;  %v7039_v23 = vrot.slane %v7032_v51, %v16379_v7 }
 0x230   : > { %15453 = vmatprep.subr.bf16.mxu1 %v16272_v3 }
 0x231   : > { %15426 = vmatmul.mubr.msk.bf16.vlgmr.msra.gmra.mrb[208].mxu0 %vm207_vm2, %v13990_v50  ;;  %v3500_v13 = vpop.f32.mrb[104].mxu1  ;;  %v7041_v50 = vshrl.u32 %v7039_v23, 16 }
 0x232   : > { %15436 = vmatpush3.bf16.msra.mxu0 %v6682_v62  ;;  %15437 = vmatprep.mubr.msk.bf16.mxu0 %vm16273_vm0, %v16272_v3  ;;  %v15121_v20 = vpop.f32.mrb[105].mxu1 }
 0x233   : > { %v3503_v26 = vpop.f32.mrb[106].mxu1  ;;  %15447 = vmatprep.subr.bf16.mxu0 %v16272_v3 }
 0x234   : > { %v3434_v31 = vpop.f32.mrb[104].mxu0  ;;  %v15122_v14 = vpop.f32.mrb[107].mxu1  ;;  %v14216_v26 = vld.sshfl [vmem:[%s16384_s10 + $0x1e] sm:$0x1 pattern:$0x75316420] }
 0x235   : > { %v3440_v19 = vadd.f32 %v3434_v31, %v3374_v12  ;;  %v15115_v34 = vpop.f32.mrb[105].mxu0  ;;  %v7222_v12 = vrot.slane %v7215_v5, %v16379_v7  ;;  %v7047_v31 = vand.u32 %v7041_v50, %v16386_v8  ;;  %v10754_v14 = vrot.slane %v14216_v26, %v16379_v7 }
 0x236   : > { %v3437_v38 = vpop.f32.mrb[106].mxu0  ;;  %15444 = vmatmul.mubr.msk.bf16.vlgmr.msra.gmra.mrb[212].mxu1 %vm207_vm2, %v14001_v30  ;;  %v7296_v50 = vand.u32 %v17079_v36, %v16386_v8 }
 0x237   : > { %v3506_v39 = vadd.f32 %v3500_v13, %v3440_v19  ;;  %v15116_v42 = vpop.f32.mrb[107].mxu0  ;;  %15454 = vmatpush3.bf16.msra.mxu1 %v6865_v29  ;;  %15455 = vmatprep.mubr.msk.bf16.mxu1 %vm16273_vm0, %v16272_v3  ;;  %v14010_v29 = vld [vmem:[%s18833_s1 + $0x8] sm:$0xf]  ;;  %v7224_v38 = vshrl.u32 %v7222_v12, 16 }
 0x238   : > { %15465 = vmatprep.subr.bf16.mxu1 %v16272_v3  ;;  %10755 = vrot.lane.b32.xlu1 %v10754_v14, %s16275_s11  ;;  %v14019_v42 = vld [vmem:[%s18833_s1 + $0x14] sm:$0xf] }
 0x239   : > { %v3507_v43 = vadd.f32 %v3506_v39, %v17382_v41  ;;  %15438 = vmatmul.mubr.msk.bf16.vlgmr.msra.gmra.mrb[212].mxu0 %vm207_vm2, %v13998_v55  ;;  %v3617_v47 = vpop.f32.mrb[108].mxu1  ;;  %v7230_v45 = vand.u32 %v7224_v38, %v16386_v8 }
 0x23a   : > { %15448 = vmatpush3.bf16.msra.mxu0 %v6819_v16  ;;  %15449 = vmatprep.mubr.msk.bf16.mxu0 %vm16273_vm0, %v16272_v3  ;;  %v15133_v48 = vpop.f32.mrb[109].mxu1 }
 0x23b   : > { %13826 = vst.msk [vmem:[%s17405_s20 + $0x8] sm:$0xff] %vm1866_vm3, %v3507_v43  ;;  %v3620_v4 = vpop.f32.mrb[110].mxu1  ;;  %15459 = vmatprep.subr.bf16.mxu0 %v16272_v3 }
 0x23c   : > { %v3571_v21 = vpop.f32.mrb[108].mxu0  ;;  %v15134_v27 = vpop.f32.mrb[111].mxu1 }
 0x23d   : > { %v15127_v57 = vpop.f32.mrb[109].mxu0  ;;  %v3618_v60 = vadd.f32 %v3617_v47, %v3571_v21 }
 0x23e   : > { %v3574_v59 = vpop.f32.mrb[110].mxu0  ;;  %15456 = vmatmul.mubr.msk.bf16.vlgmr.msra.gmra.mrb[216].mxu1 %vm207_vm2, %v6795_v53  ;;  %v14016_v53 = vld [vmem:[%s18833_s1 + $0x10] sm:$0xf]  ;;  %v14031_v57 = vld [vmem:[%s16384_s10 + $0x1a] sm:$0x1] }
 0x23f   : > { %v15128_v0 = vpop.f32.mrb[111].mxu0  ;;  %15466 = vmatpush3.bf16.msra.mxu1 %v6981_v54  ;;  %15467 = vmatprep.mubr.msk.bf16.mxu1 %vm16273_vm0, %v16272_v3  ;;  %v7164_v54 = vand.u32 %v17684_v56, %v16386_v8  ;;  %v7396_v56 = vrot.slane %v14031_v57, %v16379_v7  ;;  %v7345_v23 = vand.u32 %v14031_v57, %v16386_v8 }
 0x240   : > { %15477 = vmatprep.subr.bf16.mxu1 %v16272_v3 }
 0x241   : > { %15450 = vmatmul.mubr.msk.bf16.vlgmr.msra.gmra.mrb[216].mxu0 %vm207_vm2, %v14006_v63  ;;  %v3733_v28 = vpop.f32.mrb[112].mxu1  ;;  %v14025_v63 = vld [vmem:[%s18833_s1 + $0x1c] sm:$0xf] }
 0x242   : > { %15460 = vmatpush3.bf16.msra.mxu0 %v6930_v35  ;;  %15461 = vmatprep.mubr.msk.bf16.mxu0 %vm16273_vm0, %v16272_v3  ;;  %v15145_v40 = vpop.f32.mrb[113].mxu1 }
 0x243   : > { %v3736_v62 = vpop.f32.mrb[114].mxu1  ;;  %15471 = vmatprep.subr.bf16.mxu0 %v16272_v3 }
 0x244   : > { %v3682_v1 = vpop.f32.mrb[112].mxu0  ;;  %v15146_v13 = vpop.f32.mrb[115].mxu1 }
 0x245   : > { %v3688_v20 = vadd.f32 %v3682_v1, %v3618_v60  ;;  %v15139_v24 = vpop.f32.mrb[113].mxu0  ;;  %v7579_v13 = vrot.slane %v17746_v9, %v16379_v7 }
 0x246   : > { %v3685_v30 = vpop.f32.mrb[114].mxu0  ;;  %15468 = vmatmul.mubr.msk.bf16.vlgmr.msra.gmra.mrb[220].mxu1 %vm207_vm2, %v14014_v10  ;;  %v14023_v10 = vld [vmem:[%s18833_s1 + $0x18] sm:$0xf] }
 0x247   : > { %v3739_v19 = vadd.f32 %v3733_v28, %v3688_v20  ;;  %v15140_v34 = vpop.f32.mrb[115].mxu0  ;;  %15478 = vmatpush3.bf16.msra.mxu1 %v7113_v11  ;;  %15479 = vmatprep.mubr.msk.bf16.mxu1 %vm16273_vm0, %v16272_v3  ;;  %v7403_v11 = vrot.slane %v7396_v56, %v16379_v7  ;;  %v7472_v20 = vpop.permute.xlu1 %7471  ;;  %v7586_v14 = vrot.slane %v7579_v13, %v16379_v7  ;;  %v17808_v13 = vld [vmem:[%s16384_s10 + $0x2c] sm:$0x1] }
 0x248   : > { %15489 = vmatprep.subr.bf16.mxu1 %v16272_v3 }
 0x249   : > { %15462 = vmatmul.mubr.msk.bf16.vlgmr.msra.gmra.mrb[220].mxu0 %vm207_vm2, %v14010_v29  ;;  %v3865_v55 = vpop.f32.mrb[116].mxu1  ;;  %v7405_v26 = vshrl.u32 %v7403_v11, 16  ;;  %v14032_v29 = vld [vmem:[%s18833_s1 + $0x24] sm:$0xf] }
 0x24a   : > { %15472 = vmatpush3.bf16.msra.mxu0 %v7047_v31  ;;  %15473 = vmatprep.mubr.msk.bf16.mxu0 %vm16273_vm0, %v16272_v3  ;;  %v15157_v16 = vpop.f32.mrb[117].mxu1  ;;  %v7477_v31 = vand.u32 %v7472_v20, %v16386_v8 }
 0x24b   : > { %v3868_v39 = vpop.f32.mrb[118].mxu1  ;;  %15483 = vmatprep.subr.bf16.mxu0 %v16272_v3  ;;  %v14238_v16 = vld.sshfl [vmem:[%s16384_s10 + $0x20] sm:$0x1 pattern:$0x75316420] }
 0x24c   : > { %v3799_v43 = vpop.f32.mrb[116].mxu0  ;;  %v15158_v47 = vpop.f32.mrb[119].mxu1 }
 0x24d   : > { %v3805_v48 = vadd.f32 %v3799_v43, %v3739_v19  ;;  %v15151_v51 = vpop.f32.mrb[117].mxu0  ;;  %v11120_v43 = vrot.slane %v14238_v16, %v16379_v7 }
 0x24e   : > { %v3802_v4 = vpop.f32.mrb[118].mxu0  ;;  %15480 = vmatmul.mubr.msk.bf16.vlgmr.msra.gmra.mrb[224].mxu1 %vm207_vm2, %v14019_v42  ;;  %v14028_v42 = vld [vmem:[%s18833_s1 + $0x20] sm:$0xf]  ;;  %v7588_v51 = vshrl.u32 %v7586_v14, 16 }
 0x24f   : > { %v3871_v21 = vadd.f32 %v3865_v55, %v3805_v48  ;;  %v15152_v27 = vpop.f32.mrb[119].mxu0  ;;  %15490 = vmatpush3.bf16.msra.mxu1 %v7230_v45  ;;  %15491 = vmatprep.mubr.msk.bf16.mxu1 %vm16273_vm0, %v16272_v3  ;;  %v7411_v45 = vand.u32 %v7405_v26, %v16386_v8 }
 0x250   : > { %15501 = vmatprep.subr.bf16.mxu1 %v16272_v3  ;;  %11121 = vrot.lane.b32.xlu1 %v11120_v43, %s16275_s11  ;;  %v7594_v27 = vand.u32 %v7588_v51, %v16386_v8 }
 0x251   : > { %15474 = vmatmul.mubr.msk.bf16.vlgmr.msra.gmra.mrb[224].mxu0 %vm207_vm2, %v14016_v53  ;;  %v3982_v60 = vpop.f32.mrb[120].mxu1 }
 0x252   : > { %15484 = vmatpush3.bf16.msra.mxu0 %v7164_v54  ;;  %15485 = vmatprep.mubr.msk.bf16.mxu0 %vm16273_vm0, %v16272_v3  ;;  %v15169_v35 = vpop.f32.mrb[121].mxu1 }
 0x253   : > { %v3985_v59 = vpop.f32.mrb[122].mxu1  ;;  %15495 = vmatprep.subr.bf16.mxu0 %v16272_v3 }
 0x254   : > { %v3916_v0 = vpop.f32.mrb[120].mxu0  ;;  %v15170_v5 = vpop.f32.mrb[123].mxu1 }
 0x255   : > { %v3922_v28 = vadd.f32 %v3916_v0, %v3871_v21  ;;  %v15163_v40 = vpop.f32.mrb[121].mxu0  ;;  %v14037_v21 = vld [vmem:[%s18833_s1 + $0x2c] sm:$0xf] }
 0x256   : > { %v3919_v62 = vpop.f32.mrb[122].mxu0  ;;  %15492 = vmatmul.mubr.msk.bf16.vlgmr.msra.gmra.mrb[228].mxu1 %vm207_vm2, %v14025_v63  ;;  %v14034_v63 = vld [vmem:[%s18833_s1 + $0x28] sm:$0xf] }
 0x257   : > { %v3988_v12 = vadd.f32 %v3982_v60, %v3922_v28  ;;  %v15164_v1 = vpop.f32.mrb[123].mxu0  ;;  %15502 = vmatpush3.bf16.msra.mxu1 %v7345_v23  ;;  %15503 = vmatprep.mubr.msk.bf16.mxu1 %vm16273_vm0, %v16272_v3  ;;  %v7528_v23 = vand.u32 %v17746_v9, %v16386_v8  ;;  %v14053_v28 = vld [vmem:[%s16384_s10 + $0x1c] sm:$0x1] }
 0x258   : > { %15513 = vmatprep.subr.bf16.mxu1 %v16272_v3  ;;  %v7762_v9 = vrot.slane %v14053_v28, %v16379_v7  ;;  %v7711_v11 = vand.u32 %v14053_v28, %v16386_v8 }
 0x259   : > { %15486 = vmatmul.mubr.msk.bf16.vlgmr.msra.gmra.mrb[228].mxu0 %vm207_vm2, %v14023_v10  ;;  %v4097_v36 = vpop.f32.mrb[124].mxu1  ;;  %v14045_v10 = vld [vmem:[%s18833_s1 + $0x34] sm:$0xf] }
 0x25a   : > { %15496 = vmatpush3.bf16.msra.mxu0 %v7296_v50  ;;  %15497 = vmatprep.mubr.msk.bf16.mxu0 %vm16273_vm0, %v16272_v3  ;;  %v15181_v24 = vpop.f32.mrb[125].mxu1 }
 0x25b   : > { %v4100_v30 = vpop.f32.mrb[126].mxu1  ;;  %15507 = vmatprep.subr.bf16.mxu0 %v16272_v3  ;;  %v7660_v24 = vand.u32 %v17102_v49, %v16386_v8 }
 0x25c   : > { %v4048_v19 = vpop.f32.mrb[124].mxu0  ;;  %v15182_v34 = vpop.f32.mrb[127].mxu1  ;;  %v14043_v30 = vld [vmem:[%s18833_s1 + $0x30] sm:$0xf] }
 0x25d   : > { %v4054_v38 = vadd.f32 %v4048_v19, %v3988_v12  ;;  %v15175_v55 = vpop.f32.mrb[125].mxu0  ;;  %v7943_v19 = vrot.slane %v17808_v13, %v16379_v7  ;;  %v7838_v34 = vpop.permute.xlu1 %7837 }
 0x25e   : > { %v4051_v39 = vpop.f32.mrb[126].mxu0  ;;  %15504 = vmatmul.mubr.msk.bf16.vlgmr.msra.gmra.mrb[232].mxu1 %vm207_vm2, %v14032_v29  ;;  %v7769_v29 = vrot.slane %v7762_v9, %v16379_v7 }
 0x25f   : > { %v4103_v47 = vadd.f32 %v4097_v36, %v4054_v38  ;;  %v15176_v48 = vpop.f32.mrb[127].mxu0  ;;  %15514 = vmatpush3.bf16.msra.mxu1 %v7477_v31  ;;  %15515 = vmatprep.mubr.msk.bf16.mxu1 %vm16273_vm0, %v16272_v3  ;;  %v14054_v39 = vld [vmem:[%s18833_s1 + $0x3c] sm:$0xf] }
 0x260   : > { %15525 = vmatprep.subr.bf16.mxu1 %v16272_v3  ;;  %v7771_v55 = vshrl.u32 %v7769_v29, 16 }
 0x261   : > { %15498 = vmatmul.mubr.msk.bf16.vlgmr.msra.gmra.mrb[232].mxu0 %vm207_vm2, %v14028_v42  ;;  %v4229_v4 = vpop.f32.mrb[128].mxu1  ;;  %v7843_v42 = vand.u32 %v7838_v34, %v16386_v8 }
 0x262   : > { %15508 = vmatpush3.bf16.msra.mxu0 %v7411_v45  ;;  %15509 = vmatprep.mubr.msk.bf16.mxu0 %vm16273_vm0, %v16272_v3  ;;  %v15193_v53 = vpop.f32.mrb[129].mxu1  ;;  %v7950_v45 = vrot.slane %v7943_v19, %v16379_v7 }
 0x263   : > { %v4232_v54 = vpop.f32.mrb[130].mxu1  ;;  %15519 = vmatprep.subr.bf16.mxu0 %v16272_v3 }
 0x264   : > { %v4163_v57 = vpop.f32.mrb[128].mxu0  ;;  %v15194_v60 = vpop.f32.mrb[131].mxu1  ;;  %v14048_v54 = vld [vmem:[%s18833_s1 + $0x38] sm:$0xf] }
 0x265   : > { %v4169_v35 = vadd.f32 %v4163_v57, %v4103_v47  ;;  %v15187_v56 = vpop.f32.mrb[129].mxu0 }
 0x266   : > { %v4166_v59 = vpop.f32.mrb[130].mxu0  ;;  %15516 = vmatmul.mubr.msk.bf16.vlgmr.msra.gmra.mrb[236].mxu1 %vm207_vm2, %v14037_v21  ;;  %v7777_v21 = vand.u32 %v7771_v55, %v16386_v8  ;;  %v14063_v55 = vld [vmem:[%s18833_s1 + $0x48] sm:$0xf] }
 0x267   : > { %v4235_v0 = vadd.f32 %v4229_v4, %v4169_v35  ;;  %v15188_v5 = vpop.f32.mrb[131].mxu0  ;;  %15526 = vmatpush3.bf16.msra.mxu1 %v7594_v27  ;;  %15527 = vmatprep.mubr.msk.bf16.mxu1 %vm16273_vm0, %v16272_v3  ;;  %v14258_v4 = vld.sshfl [vmem:[%s16384_s10 + $0x31] sm:$0x1 pattern:$0x75316420]  ;;  %v7952_v35 = vshrl.u32 %v7950_v45, 16 }
 0x268   : > { %15537 = vmatprep.subr.bf16.mxu1 %v16272_v3  ;;  %v11484_v27 = vrot.slane %v14258_v4, %v16379_v7  ;;  %v14074_v4 = vld [vmem:[%s18833_s1 + $0x54] sm:$0xf] }
 0x269   : > { %15510 = vmatmul.mubr.msk.bf16.vlgmr.msra.gmra.mrb[236].mxu0 %vm207_vm2, %v14034_v63  ;;  %v4346_v40 = vpop.f32.mrb[132].mxu1 }
 0x26a   : > { %15520 = vmatpush3.bf16.msra.mxu0 %v7528_v23  ;;  %15521 = vmatprep.mubr.msk.bf16.mxu0 %vm16273_vm0, %v16272_v3  ;;  %v15205_v50 = vpop.f32.mrb[133].mxu1  ;;  %v14059_v23 = vld [vmem:[%s18833_s1 + $0x44] sm:$0xf] }
 0x26b   : > { %v4349_v62 = vpop.f32.mrb[134].mxu1  ;;  %15531 = vmatprep.subr.bf16.mxu0 %v16272_v3  ;;  %11485 = vrot.lane.b32.xlu1 %v11484_v27, %s16275_s11 }
 0x26c   : > { %v4280_v12 = vpop.f32.mrb[132].mxu0  ;;  %v15206_v1 = vpop.f32.mrb[135].mxu1  ;;  %v14056_v62 = vld [vmem:[%s18833_s1 + $0x40] sm:$0xf] }
 0x26d   : > { %v4286_v20 = vadd.f32 %v4280_v12, %v4235_v0  ;;  %v15199_v36 = vpop.f32.mrb[133].mxu0  ;;  %v7958_v0 = vand.u32 %v7952_v35, %v16386_v8  ;;  %v14073_v1 = vld [vmem:[%s16384_s10 + $0x2d] sm:$0x1] }
 0x26e   : > { %v4283_v26 = vpop.f32.mrb[134].mxu0  ;;  %15528 = vmatmul.mubr.msk.bf16.vlgmr.msra.gmra.mrb[240].mxu1 %vm207_vm2, %v14045_v10  ;;  %v7892_v10 = vand.u32 %v17808_v13, %v16386_v8  ;;  %v8126_v13 = vrot.slane %v14073_v1, %v16379_v7 }
 0x26f   : > { %v4352_v31 = vadd.f32 %v4346_v40, %v4286_v20  ;;  %v15200_v14 = vpop.f32.mrb[135].mxu0  ;;  %15538 = vmatpush3.bf16.msra.mxu1 %v7711_v11  ;;  %15539 = vmatprep.mubr.msk.bf16.mxu1 %vm16273_vm0, %v16272_v3  ;;  %v14065_v26 = vld [vmem:[%s18833_s1 + $0x4c] sm:$0xf] }
 0x270   : > { %15549 = vmatprep.subr.bf16.mxu1 %v16272_v3  ;;  %v17870_v14 = vld [vmem:[%s16384_s10 + $0x2e] sm:$0x1] }
 0x271   : > { %15522 = vmatmul.mubr.msk.bf16.vlgmr.msra.gmra.mrb[240].mxu0 %vm207_vm2, %v14043_v30  ;;  %v4463_v49 = vpop.f32.mrb[136].mxu1  ;;  %v8075_v30 = vand.u32 %v14073_v1, %v16386_v8  ;;  %v8309_v45 = vrot.slane %v17870_v14, %v16379_v7 }
 0x272   : > { %15532 = vmatpush3.bf16.msra.mxu0 %v7660_v24  ;;  %15533 = vmatprep.mubr.msk.bf16.mxu0 %vm16273_vm0, %v16272_v3  ;;  %v15217_v38 = vpop.f32.mrb[137].mxu1 }
 0x273   : > { %v4466_v16 = vpop.f32.mrb[138].mxu1  ;;  %15543 = vmatprep.subr.bf16.mxu0 %v16272_v3 }
 0x274   : > { %v4412_v43 = vpop.f32.mrb[136].mxu0  ;;  %v15218_v47 = vpop.f32.mrb[139].mxu1  ;;  %v8133_v16 = vrot.slane %v8126_v13, %v16379_v7 }
 0x275   : > { %v4418_v48 = vadd.f32 %v4412_v43, %v4352_v31  ;;  %v15211_v51 = vpop.f32.mrb[137].mxu0 }
 0x276   : > { %v4415_v53 = vpop.f32.mrb[138].mxu0  ;;  %15540 = vmatmul.mubr.msk.bf16.vlgmr.msra.gmra.mrb[244].mxu1 %vm207_vm2, %v14054_v39 }
 0x277   : > { %v4469_v57 = vadd.f32 %v4463_v49, %v4418_v48  ;;  %v15212_v60 = vpop.f32.mrb[139].mxu0  ;;  %15550 = vmatpush3.bf16.msra.mxu1 %v7843_v42  ;;  %15551 = vmatprep.mubr.msk.bf16.mxu1 %vm16273_vm0, %v16272_v3  ;;  %v8024_v49 = vand.u32 %v17118_v61, %v16386_v8  ;;  %v8202_v61 = vpop.permute.xlu1 %8201  ;;  %v8135_v48 = vshrl.u32 %v8133_v16, 16 }
 0x278   : > { %15561 = vmatprep.subr.bf16.mxu1 %v16272_v3  ;;  %v8207_v53 = vand.u32 %v8202_v61, %v16386_v8 }
 0x279   : > { %15534 = vmatmul.mubr.msk.bf16.vlgmr.msra.gmra.mrb[244].mxu0 %vm207_vm2, %v14048_v54  ;;  %v4595_v56 = vpop.f32.mrb[140].mxu1  ;;  %v8316_v54 = vrot.slane %v8309_v45, %v16379_v7  ;;  %v17936_v45 = vld [vmem:[%s16384_s10 + $0xb] sm:$0x1] }
 0x27a   : > { %15544 = vmatpush3.bf16.msra.mxu0 %v7777_v21  ;;  %15545 = vmatprep.mubr.msk.bf16.mxu0 %vm16273_vm0, %v16272_v3  ;;  %v15229_v59 = vpop.f32.mrb[141].mxu1 }
 0x27b   : > { %v4598_v63 = vpop.f32.mrb[142].mxu1  ;;  %15555 = vmatprep.subr.bf16.mxu0 %v16272_v3 }
 0x27c   : > { %v4529_v5 = vpop.f32.mrb[140].mxu0  ;;  %v15230_v28 = vpop.f32.mrb[143].mxu1  ;;  %v14068_v63 = vld [vmem:[%s18833_s1 + $0x50] sm:$0xf] }
 0x27d   : > { %v4535_v40 = vadd.f32 %v4529_v5, %v4469_v57  ;;  %v15223_v50 = vpop.f32.mrb[141].mxu0  ;;  %v17894_v57 = vld [vmem:[%s16384_s10 + $0xa] sm:$0x1] }
 0x27e   : > { %v4532_v9 = vpop.f32.mrb[142].mxu0  ;;  %15552 = vmatmul.mubr.msk.bf16.vlgmr.msra.gmra.mrb[248].mxu1 %vm207_vm2, %v14059_v23  ;;  %v8141_v23 = vand.u32 %v8135_v48, %v16386_v8  ;;  %v8446_v50 = vrot.slane %v17894_v57, %v16379_v7 }
 0x27f   : > { %v4601_v11 = vadd.f32 %v4595_v56, %v4535_v40  ;;  %v15224_v12 = vpop.f32.mrb[143].mxu0  ;;  %15562 = vmatpush3.bf16.msra.mxu1 %v7958_v0  ;;  %15563 = vmatprep.mubr.msk.bf16.mxu1 %vm16273_vm0, %v16272_v3  ;;  %v14278_v56 = vld.sshfl [vmem:[%s16384_s10 + $0xe] sm:$0x1 pattern:$0x75316420]  ;;  %v8318_v40 = vshrl.u32 %v8316_v54, 16  ;;  %v8674_v54 = vrot.slane %v17936_v45, %v16379_v7 }
 0x280   : > { %15573 = vmatprep.subr.bf16.mxu1 %v16272_v3  ;;  %v11849_v0 = vrot.slane %v14278_v56, %v16379_v7  ;;  %v8453_v1 = vrot.slane %v8446_v50, %v16379_v7  ;;  %v14090_v50 = vld [vmem:[%s18833_s1 + $0x68] sm:$0xf] }
 0x281   : > { %15546 = vmatmul.mubr.msk.bf16.vlgmr.msra.gmra.mrb[248].mxu0 %vm207_vm2, %v14056_v62  ;;  %v4710_v20 = vpop.f32.mrb[144].mxu1  ;;  %v8324_v12 = vand.u32 %v8318_v40, %v16386_v8 }
 0x282   : > { %15556 = vmatpush3.bf16.msra.mxu0 %v7892_v10  ;;  %15557 = vmatprep.mubr.msk.bf16.mxu0 %vm16273_vm0, %v16272_v3  ;;  %v15241_v36 = vpop.f32.mrb[145].mxu1 }
 0x283   : > { %v4713_v24 = vpop.f32.mrb[146].mxu1  ;;  %15567 = vmatprep.subr.bf16.mxu0 %v16272_v3  ;;  %11850 = vrot.lane.b32.xlu1 %v11849_v0, %s16275_s11 }
 0x284   : > { %v4644_v29 = vpop.f32.mrb[144].mxu0  ;;  %v15242_v31 = vpop.f32.mrb[147].mxu1 }
 0x285   : > { %v4650_v19 = vadd.f32 %v4644_v29, %v4601_v11  ;;  %v15235_v34 = vpop.f32.mrb[145].mxu0  ;;  %v14079_v11 = vld [vmem:[%s18833_s1 + $0x5c] sm:$0xf]  ;;  %v8258_v29 = vand.u32 %v17870_v14, %v16386_v8  ;;  %v14087_v14 = vld [vmem:[%s18833_s1 + $0x64] sm:$0xf] }
 0x286   : > { %v4647_v38 = vpop.f32.mrb[146].mxu0  ;;  %15564 = vmatmul.mubr.msk.bf16.vlgmr.msra.gmra.mrb[252].mxu1 %vm207_vm2, %v14065_v26  ;;  %v8455_v34 = vshrl.u32 %v8453_v1, 16 }
 0x287   : > { %v4716_v39 = vadd.f32 %v4710_v20, %v4650_v19  ;;  %v15236_v42 = vpop.f32.mrb[147].mxu0  ;;  %15574 = vmatpush3.bf16.msra.mxu1 %v8075_v30  ;;  %15575 = vmatprep.mubr.msk.bf16.mxu1 %vm16273_vm0, %v16272_v3  ;;  %v14076_v30 = vld [vmem:[%s18833_s1 + $0x58] sm:$0xf] }
 0x288   : > { %15585 = vmatprep.subr.bf16.mxu1 %v16272_v3  ;;  %v8461_v16 = vand.u32 %v8455_v34, %v16386_v8  ;;  %v8623_v34 = vand.u32 %v17936_v45, %v16386_v8  ;;  %v14105_v45 = vld [vmem:[%s18833_s1 + $0x10] sm:$0xf] }
 0x289   : > { %15558 = vmatmul.mubr.msk.bf16.vlgmr.msra.gmra.mrb[252].mxu0 %vm207_vm2, %v14063_v55  ;;  %v4827_v43 = vpop.f32.mrb[148].mxu1 }
 0x28a   : > { %15568 = vmatpush3.bf16.msra.mxu0 %v8024_v49  ;;  %15569 = vmatprep.mubr.msk.bf16.mxu0 %vm16273_vm0, %v16272_v3  ;;  %v15253_v47 = vpop.f32.mrb[149].mxu1 }
 0x28b   : > { %v4830_v51 = vpop.f32.mrb[150].mxu1  ;;  %15579 = vmatprep.subr.bf16.mxu0 %v16272_v3  ;;  %v8390_v47 = vand.u32 %v17135_v17, %v16386_v8 }
 0x28c   : > { %v4776_v21 = vpop.f32.mrb[148].mxu0  ;;  %v15254_v27 = vpop.f32.mrb[151].mxu1  ;;  %v14085_v51 = vld [vmem:[%s18833_s1 + $0x60] sm:$0xf] }
 0x28d   : > { %v4782_v60 = vadd.f32 %v4776_v21, %v4716_v39  ;;  %v15247_v35 = vpop.f32.mrb[149].mxu0  ;;  %v8567_v21 = vpop.permute.xlu1 %8566 }
 0x28e   : > { %v4779_v59 = vpop.f32.mrb[150].mxu0  ;;  %15576 = vmatmul.mubr.msk.bf16.vlgmr.msra.gmra.mrb[0].mxu1 %vm207_vm2, %v14074_v4  ;;  %v14095_v35 = vld [vmem:[%s18833_s1 + $0x4] sm:$0xf]  ;;  %v8572_v56 = vand.u32 %v8567_v21, %v16386_v8  ;;  %v14103_v21 = vld [vmem:[%s18833_s1 + $0xc] sm:$0xf] }
 0x28f   : > { %v4833_v5 = vadd.f32 %v4827_v43, %v4782_v60  ;;  %v15248_v28 = vpop.f32.mrb[151].mxu0  ;;  %15586 = vmatpush3.bf16.msra.mxu1 %v8207_v53  ;;  %15587 = vmatprep.mubr.msk.bf16.mxu1 %vm16273_vm0, %v16272_v3  ;;  %v8681_v59 = vrot.slane %v8674_v54, %v16379_v7 }
 0x290   : > { %15597 = vmatprep.subr.bf16.mxu1 %v16272_v3  ;;  %v14296_v28 = vld.sshfl [vmem:[%s16384_s10 + $0x10] sm:$0x1 pattern:$0x75316420] }
 0x291   : > { %15570 = vmatmul.mubr.msk.bf16.vlgmr.msra.gmra.mrb[0].mxu0 %vm207_vm2, %v14068_v63  ;;  %v4959_v9 = vpop.f32.mrb[152].mxu1 }
 0x292   : > { %15580 = vmatpush3.bf16.msra.mxu0 %v8141_v23  ;;  %15581 = vmatprep.mubr.msk.bf16.mxu0 %vm16273_vm0, %v16272_v3  ;;  %v15265_v62 = vpop.f32.mrb[153].mxu1 }
 0x293   : > { %v4962_v10 = vpop.f32.mrb[154].mxu1  ;;  %15591 = vmatprep.subr.bf16.mxu0 %v16272_v3  ;;  %v12215_v62 = vrot.slane %v14296_v28, %v16379_v7 }
 0x294   : > { %v4893_v20 = vpop.f32.mrb[152].mxu0  ;;  %v15266_v36 = vpop.f32.mrb[155].mxu1 }
 0x295   : > { %v4899_v13 = vadd.f32 %v4893_v20, %v4833_v5  ;;  %v15259_v24 = vpop.f32.mrb[153].mxu0  ;;  %12216 = vrot.lane.b32.xlu1 %v12215_v62, %s16275_s11  ;;  %v14099_v36 = vld [vmem:[%s18833_s1 + $0x8] sm:$0xf] }
 0x296   : > { %v4896_v26 = vpop.f32.mrb[154].mxu0  ;;  %15588 = vmatmul.mubr.msk.bf16.vlgmr.msra.gmra.mrb[4].mxu1 %vm207_vm2, %v14079_v11 }
 0x297   : > { %v4965_v31 = vadd.f32 %v4959_v9, %v4899_v13  ;;  %v15260_v19 = vpop.f32.mrb[155].mxu0  ;;  %15598 = vmatpush3.bf16.msra.mxu1 %v8324_v12  ;;  %15599 = vmatprep.mubr.msk.bf16.mxu1 %vm16273_vm0, %v16272_v3  ;;  %v8507_v9 = vand.u32 %v17894_v57, %v16386_v8  ;;  %v8683_v12 = vshrl.u32 %v8681_v59, 16 }
 0x298   : > { %15609 = vmatprep.subr.bf16.mxu1 %v16272_v3  ;;  %v8437_v19 = vld [vmem:[%s18833_s1] sm:$0xf] }
 0x299   : > { %15582 = vmatmul.mubr.msk.bf16.vlgmr.msra.gmra.mrb[4].mxu0 %vm207_vm2, %v14076_v30  ;;  %v5076_v49 = vpop.f32.mrb[156].mxu1  ;;  %v8689_v13 = vand.u32 %v8683_v12, %v16386_v8  ;;  %v14108_v12 = vld [vmem:[%s18833_s1 + $0x14] sm:$0xf] }
 0x29a   : > { %15592 = vmatpush3.bf16.msra.mxu0 %v8258_v29  ;;  %15593 = vmatprep.mubr.msk.bf16.mxu0 %vm16273_vm0, %v16272_v3  ;;  %v15277_v38 = vpop.f32.mrb[157].mxu1 }
 0x29b   : > { %v5079_v55 = vpop.f32.mrb[158].mxu1  ;;  %15603 = vmatprep.subr.bf16.mxu0 %v16272_v3 }
 0x29c   : > { %v5010_v39 = vpop.f32.mrb[156].mxu0  ;;  %v15278_v42 = vpop.f32.mrb[159].mxu1  ;;  %v14111_v55 = vld [vmem:[%s16384_s10 + $0xc] sm:$0x1] }
 0x29d   : > { %v5016_v61 = vadd.f32 %v5010_v39, %v4965_v31  ;;  %v15271_v43 = vpop.f32.mrb[157].mxu0  ;;  %v8857_v39 = vrot.slane %v14111_v55, %v16379_v7 }
 0x29e   : > { %v5013_v48 = vpop.f32.mrb[158].mxu0  ;;  %15600 = vmatmul.mubr.msk.bf16.vlgmr.msra.gmra.mrb[8].mxu1 %vm207_vm2, %v14087_v14 }
 0x29f   : > { %v5082_v4 = vadd.f32 %v5076_v49, %v5016_v61  ;;  %v15272_v53 = vpop.f32.mrb[159].mxu0  ;;  %15610 = vmatpush3.bf16.msra.mxu1 %v8461_v16  ;;  %15611 = vmatprep.mubr.msk.bf16.mxu1 %vm16273_vm0, %v16272_v3  ;;  %v8806_v61 = vand.u32 %v14111_v55, %v16386_v8  ;;  %v18001_v48 = vld [vmem:[%s16384_s10 + $0x1c] sm:$0x1] }
 0x2a0   : > { %15621 = vmatprep.subr.bf16.mxu1 %v16272_v3  ;;  %v8755_v53 = vand.u32 %v17151_v33, %v16386_v8 }
 0x2a1   : > { %15594 = vmatmul.mubr.msk.bf16.vlgmr.msra.gmra.mrb[8].mxu0 %vm207_vm2, %v14085_v51  ;;  %v5213_v17 = vpop.f32.mrb[160].mxu1 }
 0x2a2   : > { %15604 = vmatpush3.bf16.msra.mxu0 %v8390_v47  ;;  %15605 = vmatprep.mubr.msk.bf16.mxu0 %vm16273_vm0, %v16272_v3  ;;  %v15289_v27 = vpop.f32.mrb[161].mxu1 }
 0x2a3   : > { %v5216_v60 = vpop.f32.mrb[162].mxu1  ;;  %15615 = vmatprep.subr.bf16.mxu0 %v16272_v3 }
 0x2a4   : > { %v5142_v63 = vpop.f32.mrb[160].mxu0  ;;  %v15290_v23 = vpop.f32.mrb[163].mxu1 }
 0x2a5   : > { %v5148_v0 = vadd.f32 %v5142_v63, %v5082_v4  ;;  %v15283_v5 = vpop.f32.mrb[161].mxu0 }
 0x2a6   : > { %v5145_v40 = vpop.f32.mrb[162].mxu0  ;;  %15612 = vmatmul.mubr.msk.bf16.vlgmr.msra.gmra.mrb[12].mxu1 %vm207_vm2, %v14095_v35  ;;  %v9038_v35 = vrot.slane %v18001_v48, %v16379_v7 }
 0x2a7   : > { %v5149_v10 = vadd.f32 %v5148_v0, %v17382_v41  ;;  %v15284_v11 = vpop.f32.mrb[163].mxu0  ;;  %15622 = vmatpush3.bf16.msra.mxu1 %v8572_v56  ;;  %15623 = vmatprep.mubr.msk.bf16.mxu1 %vm16273_vm0, %v16272_v3  ;;  %v8933_v56 = vpop.permute.xlu1 %8932  ;;  %v14112_v0 = vld [vmem:[%s18833_s1 + $0x18] sm:$0xf] }
 0x2a8   : > { %15633 = vmatprep.subr.bf16.mxu1 %v16272_v3  ;;  %v8938_v5 = vand.u32 %v8933_v56, %v16386_v8  ;;  %v9045_v28 = vrot.slane %v9038_v35, %v16379_v7  ;;  %v14121_v56 = vld [vmem:[%s18833_s1 + $0x24] sm:$0xf] }
 0x2a9   : > { %13915 = vst.msk [vmem:[%s17405_s20 + $0x10] sm:$0xff] %vm1866_vm3, %v5149_v10  ;;  %15606 = vmatmul.mubr.msk.bf16.vlgmr.msra.gmra.mrb[12].mxu0 %vm207_vm2, %v14090_v50  ;;  %v5324_v1 = vpop.f32.mrb[164].mxu1  ;;  %v14316_v10 = vld.sshfl [vmem:[%s16384_s10 + $0x21] sm:$0x1 pattern:$0x75316420] }
 0x2aa   : > { %15616 = vmatpush3.bf16.msra.mxu0 %v8507_v9  ;;  %15617 = vmatprep.mubr.msk.bf16.mxu0 %vm16273_vm0, %v16272_v3  ;;  %v15301_v57 = vpop.f32.mrb[165].mxu1 }
 0x2ab   : > { %v5327_v20 = vpop.f32.mrb[166].mxu1  ;;  %15627 = vmatprep.subr.bf16.mxu0 %v16272_v3  ;;  %v12579_v57 = vrot.slane %v14316_v10, %v16379_v7 }
 0x2ac   : > { %v5259_v24 = vpop.f32.mrb[164].mxu0  ;;  %v15302_v26 = vpop.f32.mrb[167].mxu1 }
 0x2ad   : > { %v5260_v30 = vadd.f32 %v5259_v24, %v5213_v17  ;;  %v15295_v29 = vpop.f32.mrb[165].mxu0  ;;  %v8864_v17 = vrot.slane %v8857_v39, %v16379_v7  ;;  %12580 = vrot.lane.b32.xlu1 %v12579_v57, %s16275_s11  ;;  %v14336_v57 = vld.sshfl [vmem:[%s16384_s10 + $0x32] sm:$0x1 pattern:$0x75316420] }
 0x2ae   : > { %v5262_v31 = vpop.f32.mrb[166].mxu0  ;;  %15624 = vmatmul.mubr.msk.bf16.vlgmr.msra.gmra.mrb[16].mxu1 %vm207_vm2, %v14099_v36  ;;  %v14117_v29 = vld [vmem:[%s18833_s1 + $0x20] sm:$0xf] }
 0x2af   : > { %v5330_v49 = vadd.f32 %v5324_v1, %v5260_v30  ;;  %v15296_v38 = vpop.f32.mrb[167].mxu0  ;;  %15634 = vmatpush3.bf16.msra.mxu1 %v8689_v13  ;;  %15635 = vmatprep.mubr.msk.bf16.mxu1 %vm16273_vm0, %v16272_v3  ;;  %v8866_v63 = vshrl.u32 %v8864_v17, 16  ;;  %v9047_v13 = vshrl.u32 %v9045_v28, 16 }
 0x2b0   : > { %15645 = vmatprep.subr.bf16.mxu1 %v16272_v3 }
 0x2b1   : > { %15618 = vmatmul.mubr.msk.bf16.vlgmr.msra.gmra.mrb[16].mxu0 %vm207_vm2, %v8437_v19  ;;  %v5441_v14 = vpop.f32.mrb[168].mxu1  ;;  %v8872_v1 = vand.u32 %v8866_v63, %v16386_v8  ;;  %v9053_v31 = vand.u32 %v9047_v13, %v16386_v8 }
 0x2b2   : > { %15628 = vmatpush3.bf16.msra.mxu0 %v8623_v34  ;;  %15629 = vmatprep.mubr.msk.bf16.mxu0 %vm16273_vm0, %v16272_v3  ;;  %v15313_v16 = vpop.f32.mrb[169].mxu1 }
 0x2b3   : > { %v5444_v42 = vpop.f32.mrb[170].mxu1  ;;  %15639 = vmatprep.subr.bf16.mxu0 %v16272_v3  ;;  %v8987_v16 = vand.u32 %v18001_v48, %v16386_v8 }
 0x2b4   : > { %v5375_v43 = vpop.f32.mrb[168].mxu0  ;;  %v15314_v47 = vpop.f32.mrb[171].mxu1 }
 0x2b5   : > { %v5381_v51 = vadd.f32 %v5375_v43, %v5330_v49  ;;  %v15307_v4 = vpop.f32.mrb[169].mxu0 }
 0x2b6   : > { %v5378_v54 = vpop.f32.mrb[170].mxu0  ;;  %15636 = vmatmul.mubr.msk.bf16.vlgmr.msra.gmra.mrb[20].mxu1 %vm207_vm2, %v14105_v45  ;;  %v14131_v45 = vld [vmem:[%s16384_s10 + $0x1d] sm:$0x1] }
 0x2b7   : > { %v5447_v27 = vadd.f32 %v5441_v14, %v5381_v51  ;;  %v15308_v60 = vpop.f32.mrb[171].mxu0  ;;  %15646 = vmatpush3.bf16.msra.mxu1 %v8806_v61  ;;  %15647 = vmatprep.mubr.msk.bf16.mxu1 %vm16273_vm0, %v16272_v3  ;;  %v14114_v14 = vld [vmem:[%s18833_s1 + $0x1c] sm:$0xf]  ;;  %v9221_v47 = vrot.slane %v14131_v45, %v16379_v7  ;;  %v14123_v51 = vld [vmem:[%s18833_s1 + $0x28] sm:$0xf]  ;;  %v9170_v4 = vand.u32 %v14131_v45, %v16386_v8 }
 0x2b8   : > { %15657 = vmatprep.subr.bf16.mxu1 %v16272_v3  ;;  %v9119_v60 = vand.u32 %v17174_v52, %v16386_v8  ;;  %v14134_v45 = vld [vmem:[%s18833_s1 + $0x34] sm:$0xf] }
 0x2b9   : > { %15630 = vmatmul.mubr.msk.bf16.vlgmr.msra.gmra.mrb[20].mxu0 %vm207_vm2, %v14103_v21  ;;  %v5558_v33 = vpop.f32.mrb[172].mxu1  ;;  %v18063_v21 = vld [vmem:[%s16384_s10 + $0x1e] sm:$0x1] }
 0x2ba   : > { %15640 = vmatpush3.bf16.msra.mxu0 %v8755_v53  ;;  %15641 = vmatprep.mubr.msk.bf16.mxu0 %vm16273_vm0, %v16272_v3  ;;  %v15325_v59 = vpop.f32.mrb[173].mxu1 }
 0x2bb   : > { %v5561_v23 = vpop.f32.mrb[174].mxu1  ;;  %15651 = vmatprep.subr.bf16.mxu0 %v16272_v3 }
 0x2bc   : > { %v5507_v40 = vpop.f32.mrb[172].mxu0  ;;  %v15326_v50 = vpop.f32.mrb[175].mxu1  ;;  %v9404_v23 = vrot.slane %v18063_v21, %v16379_v7 }
 0x2bd   : > { %v5513_v9 = vadd.f32 %v5507_v40, %v5447_v27  ;;  %v15319_v62 = vpop.f32.mrb[173].mxu0  ;;  %v14132_v50 = vld [vmem:[%s18833_s1 + $0x30] sm:$0xf] }
 0x2be   : > { %v5510_v11 = vpop.f32.mrb[174].mxu0  ;;  %15648 = vmatmul.mubr.msk.bf16.vlgmr.msra.gmra.mrb[24].mxu1 %vm207_vm2, %v14112_v0  ;;  %v9297_v0 = vpop.permute.xlu1 %9296  ;;  %v9411_v62 = vrot.slane %v9404_v23, %v16379_v7  ;;  %v14143_v23 = vld [vmem:[%s18833_s1 + $0x3c] sm:$0xf] }
 0x2bf   : > { %v15320_v20 = vpop.f32.mrb[175].mxu0  ;;  %v5564_v36 = vadd.f32 %v5558_v33, %v5513_v9  ;;  %15658 = vmatpush3.bf16.msra.mxu1 %v8938_v5  ;;  %15659 = vmatprep.mubr.msk.bf16.mxu1 %vm16273_vm0, %v16272_v3  ;;  %v9228_v33 = vrot.slane %v9221_v47, %v16379_v7  ;;  %v9302_v9 = vand.u32 %v9297_v0, %v16386_v8 }
 0x2c0   : > { %15669 = vmatprep.subr.bf16.mxu1 %v16272_v3 }
 0x2c1   : > { %15642 = vmatmul.mubr.msk.bf16.vlgmr.msra.gmra.mrb[24].mxu0 %vm207_vm2, %v14108_v12  ;;  %v5690_v24 = vpop.f32.mrb[176].mxu1  ;;  %v9230_v28 = vshrl.u32 %v9228_v33, 16 }
 0x2c2   : > { %15652 = vmatpush3.bf16.msra.mxu0 %v8872_v1  ;;  %15653 = vmatprep.mubr.msk.bf16.mxu0 %vm16273_vm0, %v16272_v3  ;;  %v15337_v26 = vpop.f32.mrb[177].mxu1 }
 0x2c3   : > { %v5693_v30 = vpop.f32.mrb[178].mxu1  ;;  %15663 = vmatprep.subr.bf16.mxu0 %v16272_v3  ;;  %v9236_v13 = vand.u32 %v9230_v28, %v16386_v8 }
 0x2c4   : > { %v5624_v19 = vpop.f32.mrb[176].mxu0  ;;  %v15338_v34 = vpop.f32.mrb[179].mxu1 }
 0x2c5   : > { %v5630_v49 = vadd.f32 %v5624_v19, %v5564_v36  ;;  %v15331_v38 = vpop.f32.mrb[177].mxu0  ;;  %v14126_v36 = vld [vmem:[%s18833_s1 + $0x2c] sm:$0xf] }
 0x2c6   : > { %v5627_v55 = vpop.f32.mrb[178].mxu0  ;;  %15660 = vmatmul.mubr.msk.bf16.vlgmr.msra.gmra.mrb[28].mxu1 %vm207_vm2, %v14117_v29  ;;  %v9413_v29 = vshrl.u32 %v9411_v62, 16 }
 0x2c7   : > { %v5696_v39 = vadd.f32 %v5690_v24, %v5630_v49  ;;  %v15332_v42 = vpop.f32.mrb[179].mxu0  ;;  %15670 = vmatpush3.bf16.msra.mxu1 %v9053_v31  ;;  %15671 = vmatprep.mubr.msk.bf16.mxu1 %vm16273_vm0, %v16272_v3  ;;  %v12943_v24 = vrot.slane %v14336_v57, %v16379_v7  ;;  %v14137_v49 = vld [vmem:[%s18833_s1 + $0x38] sm:$0xf] }
 0x2c8   : > { %15681 = vmatprep.subr.bf16.mxu1 %v16272_v3  ;;  %v9419_v38 = vand.u32 %v9413_v29, %v16386_v8 }
 0x2c9   : > { %15654 = vmatmul.mubr.msk.bf16.vlgmr.msra.gmra.mrb[28].mxu0 %vm207_vm2, %v14114_v14  ;;  %v5805_v61 = vpop.f32.mrb[180].mxu1  ;;  %12944 = vrot.lane.b32.xlu1 %v12943_v24, %s16275_s11 }
 0x2ca   : > { %15664 = vmatpush3.bf16.msra.mxu0 %v8987_v16  ;;  %15665 = vmatprep.mubr.msk.bf16.mxu0 %vm16273_vm0, %v16272_v3  ;;  %v15349_v43 = vpop.f32.mrb[181].mxu1 }
 0x2cb   : > { %v5808_v48 = vpop.f32.mrb[182].mxu1  ;;  %15675 = vmatprep.subr.bf16.mxu0 %v16272_v3 }
 0x2cc   : > { %v5739_v53 = vpop.f32.mrb[180].mxu0  ;;  %v15350_v54 = vpop.f32.mrb[183].mxu1  ;;  %v14151_v48 = vld [vmem:[%s16384_s10 + $0x2e] sm:$0x1] }
 0x2cd   : > { %v5745_v17 = vadd.f32 %v5739_v53, %v5696_v39  ;;  %v15343_v27 = vpop.f32.mrb[181].mxu0  ;;  %v9585_v53 = vrot.slane %v14151_v48, %v16379_v7 }
 0x2ce   : > { %v5742_v35 = vpop.f32.mrb[182].mxu0  ;;  %15672 = vmatmul.mubr.msk.bf16.vlgmr.msra.gmra.mrb[32].mxu1 %vm207_vm2, %v14123_v51 }
 0x2cf   : > { %v5811_v59 = vadd.f32 %v5805_v61, %v5745_v17  ;;  %v15344_v63 = vpop.f32.mrb[183].mxu0  ;;  %15682 = vmatpush3.bf16.msra.mxu1 %v9170_v4  ;;  %15683 = vmatprep.mubr.msk.bf16.mxu1 %vm16273_vm0, %v16272_v3  ;;  %v9353_v61 = vand.u32 %v18063_v21, %v16386_v8  ;;  %v14145_v21 = vld [vmem:[%s18833_s1 + $0x40] sm:$0xf]  ;;  %v9534_v17 = vand.u32 %v14151_v48, %v16386_v8  ;;  %v18125_v35 = vld [vmem:[%s16384_s10 + $0x2f] sm:$0x1] }
 0x2d0   : > { %15693 = vmatprep.subr.bf16.mxu1 %v16272_v3  ;;  %v9592_v0 = vrot.slane %v9585_v53, %v16379_v7  ;;  %v9768_v28 = vrot.slane %v18125_v35, %v16379_v7  ;;  %v9717_v48 = vand.u32 %v18125_v35, %v16386_v8  ;;  %v14173_v53 = vld [vmem:[%s16384_s10 + $0x30] sm:$0x1] }
 0x2d1   : > { %15666 = vmatmul.mubr.msk.bf16.vlgmr.msra.gmra.mrb[32].mxu0 %vm207_vm2, %v14121_v56  ;;  %v5922_v52 = vpop.f32.mrb[184].mxu1  ;;  %v9900_v35 = vand.u32 %v14173_v53, %v16386_v8 }
 0x2d2   : > { %15676 = vmatpush3.bf16.msra.mxu0 %v9119_v60  ;;  %15677 = vmatprep.mubr.msk.bf16.mxu0 %vm16273_vm0, %v16272_v3  ;;  %v15361_v5 = vpop.f32.mrb[185].mxu1 }
 0x2d3   : > { %v5925_v40 = vpop.f32.mrb[186].mxu1  ;;  %15687 = vmatprep.subr.bf16.mxu0 %v16272_v3 }
 0x2d4   : > { %v5871_v10 = vpop.f32.mrb[184].mxu0  ;;  %v15362_v11 = vpop.f32.mrb[187].mxu1 }
 0x2d5   : > { %v5877_v12 = vadd.f32 %v5871_v10, %v5811_v59  ;;  %v15355_v1 = vpop.f32.mrb[185].mxu0  ;;  %v9485_v59 = vand.u32 %v17188_v6, %v16386_v8  ;;  %v9661_v40 = vpop.permute.xlu1 %9660  ;;  %v14152_v10 = vld [vmem:[%s18833_s1 + $0x48] sm:$0xf] }
 0x2d6   : > { %v5874_v20 = vpop.f32.mrb[186].mxu0  ;;  %15684 = vmatmul.mubr.msk.bf16.vlgmr.msra.gmra.mrb[36].mxu1 %vm207_vm2, %v14132_v50  ;;  %v9666_v11 = vand.u32 %v9661_v40, %v16386_v8 }
 0x2d7   : > { %v5928_v26 = vadd.f32 %v5922_v52, %v5877_v12  ;;  %v15356_v30 = vpop.f32.mrb[187].mxu0  ;;  %15694 = vmatpush3.bf16.msra.mxu1 %v9302_v9  ;;  %15695 = vmatprep.mubr.msk.bf16.mxu1 %vm16273_vm0, %v16272_v3  ;;  %v9594_v9 = vshrl.u32 %v9592_v0, 16  ;;  %v9775_v12 = vrot.slane %v9768_v28, %v16379_v7 }
 0x2d8   : > { %15705 = vmatprep.subr.bf16.mxu1 %v16272_v3 }
 0x2d9   : > { %15678 = vmatmul.mubr.msk.bf16.vlgmr.msra.gmra.mrb[36].mxu0 %vm207_vm2, %v14126_v36  ;;  %v6054_v31 = vpop.f32.mrb[188].mxu1  ;;  %v9600_v30 = vand.u32 %v9594_v9, %v16386_v8 }
 0x2da   : > { %15688 = vmatpush3.bf16.msra.mxu0 %v9236_v13  ;;  %15689 = vmatprep.mubr.msk.bf16.mxu0 %vm16273_vm0, %v16272_v3  ;;  %v15373_v19 = vpop.f32.mrb[189].mxu1  ;;  %v14358_v13 = vld.sshfl [vmem:[%s16384_s10 + $0x34] sm:$0x1 pattern:$0x75316420] }
 0x2db   : > { %v6057_v34 = vpop.f32.mrb[190].mxu1  ;;  %15699 = vmatprep.subr.bf16.mxu0 %v16272_v3  ;;  %v13309_v29 = vrot.slane %v14358_v13, %v16379_v7 }
 0x2dc   : > { %v5988_v55 = vpop.f32.mrb[188].mxu0  ;;  %v15374_v14 = vpop.f32.mrb[191].mxu1  ;;  %v9777_v34 = vshrl.u32 %v9775_v12, 16  ;;  %v14174_v12 = vld [vmem:[%s18833_s1 + $0x60] sm:$0xf] }
 0x2dd   : > { %v5994_v16 = vadd.f32 %v5988_v55, %v5928_v26  ;;  %v15367_v39 = vpop.f32.mrb[189].mxu0  ;;  %v14148_v26 = vld [vmem:[%s18833_s1 + $0x44] sm:$0xf]  ;;  %13310 = vrot.lane.b32.xlu1 %v13309_v29, %s16275_s11  ;;  %v14157_v14 = vld [vmem:[%s18833_s1 + $0x50] sm:$0xf]  ;;  %s14362_s11 = sshll.u32 %s16253_s15, 3 }
 0x2de   : > { %v5991_v42 = vpop.f32.mrb[190].mxu0  ;;  %15696 = vmatmul.mubr.msk.bf16.vlgmr.msra.gmra.mrb[40].mxu1 %vm207_vm2, %v14137_v49 }
 0x2df   : > { %v6060_v43 = vadd.f32 %v6054_v31, %v5994_v16  ;;  %v15368_v47 = vpop.f32.mrb[191].mxu0  ;;  %15706 = vmatpush3.bf16.msra.mxu1 %v9419_v38  ;;  %15707 = vmatprep.mubr.msk.bf16.mxu1 %vm16273_vm0, %v16272_v3  ;;  %v9783_v16 = vand.u32 %v9777_v34, %v16386_v8 }
 0x2e0   : > { %15717 = vmatprep.subr.bf16.mxu1 %v16272_v3  ;;  %v14154_v47 = vld [vmem:[%s18833_s1 + $0x4c] sm:$0xf] }
 0x2e1   : > { %15690 = vmatmul.mubr.msk.bf16.vlgmr.msra.gmra.mrb[40].mxu0 %vm207_vm2, %v14134_v45  ;;  %v6171_v51 = vpop.f32.mrb[192].mxu1 }
 0x2e2   : > { %15700 = vmatpush3.bf16.msra.mxu0 %v9353_v61  ;;  %15701 = vmatprep.mubr.msk.bf16.mxu0 %vm16273_vm0, %v16272_v3  ;;  %v15385_v4 = vpop.f32.mrb[193].mxu1 }
 0x2e3   : > { %v6174_v54 = vpop.f32.mrb[194].mxu1  ;;  %15711 = vmatprep.subr.bf16.mxu0 %v16272_v3 }
 0x2e4   : > { %v6105_v27 = vpop.f32.mrb[192].mxu0  ;;  %v15386_v60 = vpop.f32.mrb[195].mxu1 }
 0x2e5   : > { %v6111_v56 = vadd.f32 %v6105_v27, %v6060_v43  ;;  %v15379_v33 = vpop.f32.mrb[193].mxu0  ;;  %v14165_v60 = vld [vmem:[%s18833_s1 + $0x58] sm:$0xf] }
 0x2e6   : > { %v6108_v63 = vpop.f32.mrb[194].mxu0  ;;  %15708 = vmatmul.mubr.msk.bf16.vlgmr.msra.gmra.mrb[44].mxu1 %vm207_vm2, %v14145_v21 }
 0x2e7   : > { %v6177_v52 = vadd.f32 %v6171_v51, %v6111_v56  ;;  %v15380_v5 = vpop.f32.mrb[195].mxu0  ;;  %15718 = vmatpush3.bf16.msra.mxu1 %v9534_v17  ;;  %15719 = vmatprep.mubr.msk.bf16.mxu1 %vm16273_vm0, %v16272_v3  ;;  %v9951_v17 = vrot.slane %v14173_v53, %v16379_v7  ;;  %v14191_v53 = vld [vmem:[%s16384_s10 + $0xd] sm:$0x1] }
 0x2e8   : > { %15729 = vmatprep.subr.bf16.mxu1 %v16272_v3 }
 0x2e9   : > { %15702 = vmatmul.mubr.msk.bf16.vlgmr.msra.gmra.mrb[44].mxu0 %vm207_vm2, %v14143_v23  ;;  %v6286_v6 = vpop.f32.mrb[196].mxu1  ;;  %v9849_v23 = vand.u32 %v17205_v25, %v16386_v8  ;;  %v9958_v5 = vrot.slane %v9951_v17, %v16379_v7 }
 0x2ea   : > { %15712 = vmatpush3.bf16.msra.mxu0 %v9485_v59  ;;  %15713 = vmatprep.mubr.msk.bf16.mxu0 %vm16273_vm0, %v16272_v3  ;;  %v15397_v50 = vpop.f32.mrb[197].mxu1 }
 0x2eb   : > { %v6289_v62 = vpop.f32.mrb[198].mxu1  ;;  %15723 = vmatprep.subr.bf16.mxu0 %v16272_v3  ;;  %v10027_v50 = vpop.permute.xlu1 %10026 }
 0x2ec   : > { %v6237_v1 = vpop.f32.mrb[196].mxu0  ;;  %v15398_v57 = vpop.f32.mrb[199].mxu1  ;;  %v9960_v62 = vshrl.u32 %v9958_v5, 16 }
 0x2ed   : > { %v6243_v20 = vadd.f32 %v6237_v1, %v6177_v52  ;;  %v15391_v36 = vpop.f32.mrb[197].mxu0  ;;  %v14163_v52 = vld [vmem:[%s18833_s1 + $0x54] sm:$0xf]  ;;  %v10032_v1 = vand.u32 %v10027_v50, %v16386_v8 }
 0x2ee   : > { %v6240_v24 = vpop.f32.mrb[198].mxu0  ;;  %15720 = vmatmul.mubr.msk.bf16.vlgmr.msra.gmra.mrb[48].mxu1 %vm207_vm2, %v14152_v10 }
 0x2ef   : > { %v6292_v31 = vadd.f32 %v6286_v6, %v6243_v20  ;;  %v15392_v19 = vpop.f32.mrb[199].mxu0  ;;  %15730 = vmatpush3.bf16.msra.mxu1 %v9666_v11  ;;  %15731 = vmatprep.mubr.msk.bf16.mxu1 %vm16273_vm0, %v16272_v3  ;;  %v14183_v6 = vld [vmem:[%s16384_s10 + $0xc] sm:$0x1] }
 0x2f0   : > { %15741 = vmatprep.subr.bf16.mxu1 %v16272_v3  ;;  %v10088_v10 = vrot.slane %v14183_v6, %v16379_v7 }
 0x2f1   : > { %15714 = vmatmul.mubr.msk.bf16.vlgmr.msra.gmra.mrb[48].mxu0 %vm207_vm2, %v14148_v26  ;;  %v6418_v49 = vpop.f32.mrb[200].mxu1  ;;  %v14168_v26 = vld [vmem:[%s18833_s1 + $0x5c] sm:$0xf] }
 0x2f2   : > { %15724 = vmatpush3.bf16.msra.mxu0 %v9600_v30  ;;  %15725 = vmatprep.mubr.msk.bf16.mxu0 %vm16273_vm0, %v16272_v3  ;;  %v15409_v38 = vpop.f32.mrb[201].mxu1  ;;  %v9966_v30 = vand.u32 %v9960_v62, %v16386_v8  ;;  %v10095_v29 = vrot.slane %v10088_v10, %v16379_v7 }
 0x2f3   : > { %v6421_v55 = vpop.f32.mrb[202].mxu1  ;;  %15735 = vmatprep.subr.bf16.mxu0 %v16272_v3 }
 0x2f4   : > { %v6352_v39 = vpop.f32.mrb[200].mxu0  ;;  %v15410_v42 = vpop.f32.mrb[203].mxu1  ;;  %v10097_v38 = vshrl.u32 %v10095_v29, 16 }
 0x2f5   : > { %v6358_v45 = vadd.f32 %v6352_v39, %v6292_v31  ;;  %v15403_v61 = vpop.f32.mrb[201].mxu0 }
 0x2f6   : > { %v6355_v43 = vpop.f32.mrb[202].mxu0  ;;  %15732 = vmatmul.mubr.msk.bf16.vlgmr.msra.gmra.mrb[52].mxu1 %vm207_vm2, %v14157_v14  ;;  %v14179_v14 = vld [vmem:[%s18833_s1 + $0x68] sm:$0xf] }
 0x2f7   : > { %v6424_v51 = vadd.f32 %v6418_v49, %v6358_v45  ;;  %v15404_v4 = vpop.f32.mrb[203].mxu0  ;;  %15742 = vmatpush3.bf16.msra.mxu1 %v9783_v16  ;;  %15743 = vmatprep.mubr.msk.bf16.mxu1 %vm16273_vm0, %v16272_v3  ;;  %v10149_v16 = vand.u32 %v14183_v6, %v16386_v8 }
 0x2f8   : > { %15753 = vmatprep.subr.bf16.mxu1 %v16272_v3 }
 0x2f9   : > { %15726 = vmatmul.mubr.msk.bf16.vlgmr.msra.gmra.mrb[52].mxu0 %vm207_vm2, %v14154_v47  ;;  %v6535_v54 = vpop.f32.mrb[204].mxu1  ;;  %v14176_v47 = vld [vmem:[%s18833_s1 + $0x64] sm:$0xf] }
 0x2fa   : > { %15736 = vmatpush3.bf16.msra.mxu0 %v9717_v48  ;;  %15737 = vmatprep.mubr.msk.bf16.mxu0 %vm16273_vm0, %v16272_v3  ;;  %v15421_v21 = vpop.f32.mrb[205].mxu1  ;;  %v10103_v48 = vand.u32 %v10097_v38, %v16386_v8 }
 0x2fb   : > { %v6538_v27 = vpop.f32.mrb[206].mxu1  ;;  %15747 = vmatprep.subr.bf16.mxu0 %v16272_v3 }
 0x2fc   : > { %v6469_v56 = vpop.f32.mrb[204].mxu0  ;;  %v15422_v33 = vpop.f32.mrb[207].mxu1  ;;  %v10316_v27 = vrot.slane %v14191_v53, %v16379_v7 }
 0x2fd   : > { %v6475_v59 = vadd.f32 %v6469_v56, %v6424_v51  ;;  %v15415_v63 = vpop.f32.mrb[205].mxu0  ;;  %v10265_v56 = vand.u32 %v14191_v53, %v16386_v8 }
 0x2fe   : > { %v6472_v0 = vpop.f32.mrb[206].mxu0  ;;  %15744 = vmatmul.mubr.msk.bf16.vlgmr.msra.gmra.mrb[56].mxu1 %vm207_vm2, %v14165_v60  ;;  %v18245_v63 = vld [vmem:[%s16384_s10 + $0xe] sm:$0x1] }
 0x2ff   : > { %v6541_v28 = vadd.f32 %v6535_v54, %v6475_v59  ;;  %v15416_v40 = vpop.f32.mrb[207].mxu0  ;;  %15754 = vmatpush3.bf16.msra.mxu1 %v9900_v35  ;;  %15755 = vmatprep.mubr.msk.bf16.mxu1 %vm16273_vm0, %v16272_v3  ;;  %v10079_v35 = vld [vmem:[%s18833_s1] sm:$0xf]  ;;  %v10499_v50 = vrot.slane %v18245_v63, %v16379_v7 }
 0x300   : > { %15765 = vmatprep.subr.bf16.mxu1 %v16272_v3  ;;  %v10323_v40 = vrot.slane %v10316_v27, %v16379_v7  ;;  %v14203_v27 = vld [vmem:[%s18833_s1 + $0x1c] sm:$0xf] }
 0x301   : > { %15738 = vmatmul.mubr.msk.bf16.vlgmr.msra.gmra.mrb[56].mxu0 %vm207_vm2, %v14163_v52  ;;  %v6652_v25 = vpop.f32.mrb[208].mxu1  ;;  %v10214_v52 = vand.u32 %v17221_v32, %v16386_v8 }
 0x302   : > { %15748 = vmatpush3.bf16.msra.mxu0 %v9849_v23  ;;  %15749 = vmatprep.mubr.msk.bf16.mxu0 %vm16273_vm0, %v16272_v3  ;;  %v15433_v9 = vpop.f32.mrb[209].mxu1  ;;  %v10325_v62 = vshrl.u32 %v10323_v40, 16 }
 0x303   : > { %v6655_v11 = vpop.f32.mrb[210].mxu1  ;;  %15759 = vmatprep.subr.bf16.mxu0 %v16272_v3 }
 0x304   : > { %v6601_v57 = vpop.f32.mrb[208].mxu0  ;;  %v15434_v20 = vpop.f32.mrb[211].mxu1  ;;  %v14192_v11 = vld [vmem:[%s18833_s1 + $0xc] sm:$0xf] }
 0x305   : > { %v6607_v36 = vadd.f32 %v6601_v57, %v6541_v28  ;;  %v15427_v13 = vpop.f32.mrb[209].mxu0  ;;  %v14184_v28 = vld [vmem:[%s18833_s1 + $0x4] sm:$0xf] }
 0x306   : > { %v6604_v24 = vpop.f32.mrb[210].mxu0  ;;  %15756 = vmatmul.mubr.msk.bf16.vlgmr.msra.gmra.mrb[60].mxu1 %vm207_vm2, %v14174_v12 }
 0x307   : > { %v6658_v31 = vadd.f32 %v6652_v25, %v6607_v36  ;;  %v15428_v19 = vpop.f32.mrb[211].mxu0  ;;  %15766 = vmatpush3.bf16.msra.mxu1 %v10032_v1  ;;  %15767 = vmatprep.mubr.msk.bf16.mxu1 %vm16273_vm0, %v16272_v3  ;;  %v10392_v25 = vpop.permute.xlu1 %10391  ;;  %v10506_v1 = vrot.slane %v10499_v50, %v16379_v7 }
 0x308   : > { %15777 = vmatprep.subr.bf16.mxu1 %v16272_v3  ;;  %v10397_v12 = vand.u32 %v10392_v25, %v16386_v8 }
 0x309   : > { %15750 = vmatmul.mubr.msk.bf16.vlgmr.msra.gmra.mrb[60].mxu0 %vm207_vm2, %v14168_v26  ;;  %v6784_v34 = vpop.f32.mrb[212].mxu1  ;;  %v14188_v26 = vld [vmem:[%s18833_s1 + $0x8] sm:$0xf]  ;;  %v10508_v19 = vshrl.u32 %v10506_v1, 16 }
 0x30a   : > { %15760 = vmatpush3.bf16.msra.mxu0 %v9966_v30  ;;  %15761 = vmatprep.mubr.msk.bf16.mxu0 %vm16273_vm0, %v16272_v3  ;;  %v15445_v49 = vpop.f32.mrb[213].mxu1  ;;  %v10331_v30 = vand.u32 %v10325_v62, %v16386_v8  ;;  %v14210_v62 = vld [vmem:[%s18833_s1 + $0x24] sm:$0xf] }
 0x30b   : > { %v6787_v55 = vpop.f32.mrb[214].mxu1  ;;  %15771 = vmatprep.subr.bf16.mxu0 %v16272_v3  ;;  %v10756_v50 = vpop.permute.xlu1 %10755 }
 0x30c   : > { %v6718_v39 = vpop.f32.mrb[212].mxu0  ;;  %v15446_v42 = vpop.f32.mrb[215].mxu1  ;;  %v14197_v55 = vld [vmem:[%s18833_s1 + $0x14] sm:$0xf] }
 0x30d   : > { %v6724_v45 = vadd.f32 %v6718_v39, %v6658_v31  ;;  %v15439_v61 = vpop.f32.mrb[213].mxu0 }
 0x30e   : > { %v6721_v43 = vpop.f32.mrb[214].mxu0  ;;  %15768 = vmatmul.mubr.msk.bf16.vlgmr.msra.gmra.mrb[64].mxu1 %vm207_vm2, %v14179_v14  ;;  %v10514_v14 = vand.u32 %v10508_v19, %v16386_v8 }
 0x30f   : > { %v6790_v51 = vadd.f32 %v6784_v34, %v6724_v45  ;;  %v15440_v4 = vpop.f32.mrb[215].mxu0  ;;  %15778 = vmatpush3.bf16.msra.mxu1 %v10149_v16  ;;  %15779 = vmatprep.mubr.msk.bf16.mxu1 %vm16273_vm0, %v16272_v3  ;;  %v14194_v43 = vld [vmem:[%s18833_s1 + $0x10] sm:$0xf] }
 0x310   : > { %15789 = vmatprep.subr.bf16.mxu1 %v16272_v3  ;;  %v14209_v4 = vld [vmem:[%s16384_s10 + $0x1e] sm:$0x1] }
 0x311   : > { %v6791_v54 = vadd.f32 %v6790_v51, %v17382_v41  ;;  %15762 = vmatmul.mubr.msk.bf16.vlgmr.msra.gmra.mrb[64].mxu0 %vm207_vm2, %v14176_v47  ;;  %v6901_v21 = vpop.f32.mrb[216].mxu1  ;;  %v10448_v47 = vand.u32 %v18245_v63, %v16386_v8 }
 0x312   : > { %15772 = vmatpush3.bf16.msra.mxu0 %v10103_v48  ;;  %15773 = vmatprep.mubr.msk.bf16.mxu0 %vm16273_vm0, %v16272_v3  ;;  %v15457_v17 = vpop.f32.mrb[217].mxu1 }
 0x313   : > { %14004 = vst.msk [vmem:[%s17405_s20 + $0x18] sm:$0xff] %vm1866_vm3, %v6791_v54  ;;  %v6904_v60 = vpop.f32.mrb[218].mxu1  ;;  %15783 = vmatprep.subr.bf16.mxu0 %v16272_v3 }
 0x314   : > { %v6855_v33 = vpop.f32.mrb[216].mxu0  ;;  %v15458_v59 = vpop.f32.mrb[219].mxu1  ;;  %v10629_v60 = vand.u32 %v14209_v4, %v16386_v8 }
 0x315   : > { %v15451_v23 = vpop.f32.mrb[217].mxu0  ;;  %v6902_v0 = vadd.f32 %v6901_v21, %v6855_v33  ;;  %v10680_v21 = vrot.slane %v14209_v4, %v16379_v7  ;;  %v18304_v33 = vld [vmem:[%s16384_s10 + $0x1f] sm:$0x1] }
 0x316   : > { %v6858_v5 = vpop.f32.mrb[218].mxu0  ;;  %15780 = vmatmul.mubr.msk.bf16.vlgmr.msra.gmra.mrb[68].mxu1 %vm207_vm2, %v10079_v35  ;;  %v10580_v23 = vand.u32 %v17243_v37, %v16386_v8 }
 0x317   : > { %v15452_v6 = vpop.f32.mrb[219].mxu0  ;;  %15790 = vmatpush3.bf16.msra.mxu1 %v10265_v56  ;;  %15791 = vmatprep.mubr.msk.bf16.mxu1 %vm16273_vm0, %v16272_v3  ;;  %v10687_v5 = vrot.slane %v10680_v21, %v16379_v7  ;;  %v14223_v21 = vld [vmem:[%s18833_s1 + $0x34] sm:$0xf] }
 0x318   : > { %15801 = vmatprep.subr.bf16.mxu1 %v16272_v3  ;;  %v10863_v6 = vrot.slane %v18304_v33, %v16379_v7 }
 0x319   : > { %15774 = vmatmul.mubr.msk.bf16.vlgmr.msra.gmra.mrb[68].mxu0 %vm207_vm2, %v14184_v28  ;;  %v7017_v32 = vpop.f32.mrb[220].mxu1 }
 0x31a   : > { %15784 = vmatpush3.bf16.msra.mxu0 %v10214_v52  ;;  %15785 = vmatprep.mubr.msk.bf16.mxu0 %vm16273_vm0, %v16272_v3  ;;  %v15469_v9 = vpop.f32.mrb[221].mxu1  ;;  %v14201_v52 = vld [vmem:[%s18833_s1 + $0x18] sm:$0xf] }
 0x31b   : > { %v7020_v10 = vpop.f32.mrb[222].mxu1  ;;  %15795 = vmatprep.subr.bf16.mxu0 %v16272_v3 }
 0x31c   : > { %v6966_v57 = vpop.f32.mrb[220].mxu0  ;;  %v15470_v20 = vpop.f32.mrb[223].mxu1  ;;  %v10761_v10 = vand.u32 %v10756_v50, %v16386_v8 }
 0x31d   : > { %v6972_v36 = vadd.f32 %v6966_v57, %v6902_v0  ;;  %v15463_v13 = vpop.f32.mrb[221].mxu0 }
 0x31e   : > { %v6969_v24 = vpop.f32.mrb[222].mxu0  ;;  %15792 = vmatmul.mubr.msk.bf16.vlgmr.msra.gmra.mrb[72].mxu1 %vm207_vm2, %v14192_v11  ;;  %v10870_v11 = vrot.slane %v10863_v6, %v16379_v7  ;;  %v14206_v13 = vld [vmem:[%s18833_s1 + $0x20] sm:$0xf] }
 0x31f   : > { %v7023_v29 = vadd.f32 %v7017_v32, %v6972_v36  ;;  %v15464_v31 = vpop.f32.mrb[223].mxu0  ;;  %15802 = vmatpush3.bf16.msra.mxu1 %v10397_v12  ;;  %15803 = vmatprep.mubr.msk.bf16.mxu1 %vm16273_vm0, %v16272_v3  ;;  %v10689_v32 = vshrl.u32 %v10687_v5, 16 }
 0x320   : > { %15813 = vmatprep.subr.bf16.mxu1 %v16272_v3 }
 0x321   : > { %15786 = vmatmul.mubr.msk.bf16.vlgmr.msra.gmra.mrb[72].mxu0 %vm207_vm2, %v14188_v26  ;;  %v7149_v34 = vpop.f32.mrb[224].mxu1  ;;  %v10695_v24 = vand.u32 %v10689_v32, %v16386_v8 }
 0x322   : > { %15796 = vmatpush3.bf16.msra.mxu0 %v10331_v30  ;;  %15797 = vmatprep.mubr.msk.bf16.mxu0 %vm16273_vm0, %v16272_v3  ;;  %v15481_v49 = vpop.f32.mrb[225].mxu1 }
 0x323   : > { %v7152_v38 = vpop.f32.mrb[226].mxu1  ;;  %15807 = vmatprep.subr.bf16.mxu0 %v16272_v3  ;;  %v14215_v49 = vld [vmem:[%s18833_s1 + $0x2c] sm:$0xf] }
 0x324   : > { %v7083_v16 = vpop.f32.mrb[224].mxu0  ;;  %v15482_v39 = vpop.f32.mrb[227].mxu1 }
 0x325   : > { %v7089_v42 = vadd.f32 %v7083_v16, %v7023_v29  ;;  %v15475_v45 = vpop.f32.mrb[225].mxu0  ;;  %v10872_v29 = vshrl.u32 %v10870_v11, 16 }
 0x326   : > { %v7086_v61 = vpop.f32.mrb[226].mxu0  ;;  %15804 = vmatmul.mubr.msk.bf16.vlgmr.msra.gmra.mrb[76].mxu1 %vm207_vm2, %v14197_v55  ;;  %v14212_v45 = vld [vmem:[%s18833_s1 + $0x28] sm:$0xf] }
 0x327   : > { %v7155_v48 = vadd.f32 %v7149_v34, %v7089_v42  ;;  %v15476_v51 = vpop.f32.mrb[227].mxu0  ;;  %15814 = vmatpush3.bf16.msra.mxu1 %v10514_v14  ;;  %15815 = vmatprep.mubr.msk.bf16.mxu1 %vm16273_vm0, %v16272_v3  ;;  %v10878_v38 = vand.u32 %v10872_v29, %v16386_v8  ;;  %v10812_v61 = vand.u32 %v18304_v33, %v16386_v8 }
 0x328   : > { %15825 = vmatprep.subr.bf16.mxu1 %v16272_v3 }
 0x329   : > { %15798 = vmatmul.mubr.msk.bf16.vlgmr.msra.gmra.mrb[76].mxu0 %vm207_vm2, %v14194_v43  ;;  %v7266_v53 = vpop.f32.mrb[228].mxu1 }
 0x32a   : > { %15808 = vmatpush3.bf16.msra.mxu0 %v10448_v47  ;;  %15809 = vmatprep.mubr.msk.bf16.mxu0 %vm16273_vm0, %v16272_v3  ;;  %v15493_v54 = vpop.f32.mrb[229].mxu1 }
 0x32b   : > { %v7269_v17 = vpop.f32.mrb[230].mxu1  ;;  %15819 = vmatprep.subr.bf16.mxu0 %v16272_v3 }
 0x32c   : > { %v7200_v35 = vpop.f32.mrb[228].mxu0  ;;  %v15494_v56 = vpop.f32.mrb[231].mxu1 }
 0x32d   : > { %v7206_v59 = vadd.f32 %v7200_v35, %v7155_v48  ;;  %v15487_v63 = vpop.f32.mrb[229].mxu0  ;;  %v14231_v48 = vld [vmem:[%s16384_s10 + $0x20] sm:$0x1]  ;;  %v18363_v35 = vld [vmem:[%s16384_s10 + $0x30] sm:$0x1] }
 0x32e   : > { %v7203_v0 = vpop.f32.mrb[230].mxu0  ;;  %15816 = vmatmul.mubr.msk.bf16.vlgmr.msra.gmra.mrb[80].mxu1 %vm207_vm2, %v14203_v27  ;;  %v10995_v17 = vand.u32 %v14231_v48, %v16386_v8 }
 0x32f   : > { %v7272_v28 = vadd.f32 %v7266_v53, %v7206_v59  ;;  %v15488_v40 = vpop.f32.mrb[231].mxu0  ;;  %15826 = vmatpush3.bf16.msra.mxu1 %v10629_v60  ;;  %15827 = vmatprep.mubr.msk.bf16.mxu1 %vm16273_vm0, %v16272_v3  ;;  %v11046_v53 = vrot.slane %v14231_v48, %v16379_v7  ;;  %v10944_v59 = vand.u32 %v17258_v15, %v16386_v8 }
 0x330   : > { %15837 = vmatprep.subr.bf16.mxu1 %v16272_v3  ;;  %v11122_v40 = vpop.permute.xlu1 %11121 }
 0x331   : > { %15810 = vmatmul.mubr.msk.bf16.vlgmr.msra.gmra.mrb[80].mxu0 %vm207_vm2, %v14201_v52  ;;  %v7381_v37 = vpop.f32.mrb[232].mxu1  ;;  %v11053_v0 = vrot.slane %v11046_v53, %v16379_v7  ;;  %v11127_v32 = vand.u32 %v11122_v40, %v16386_v8 }
 0x332   : > { %15820 = vmatpush3.bf16.msra.mxu0 %v10580_v23  ;;  %15821 = vmatprep.mubr.msk.bf16.mxu0 %vm16273_vm0, %v16272_v3  ;;  %v15505_v25 = vpop.f32.mrb[233].mxu1  ;;  %v14221_v23 = vld [vmem:[%s18833_s1 + $0x30] sm:$0xf] }
 0x333   : > { %v7384_v9 = vpop.f32.mrb[234].mxu1  ;;  %15831 = vmatprep.subr.bf16.mxu0 %v16272_v3  ;;  %v11055_v50 = vshrl.u32 %v11053_v0, 16  ;;  %v14232_v25 = vld [vmem:[%s18833_s1 + $0x3c] sm:$0xf] }
 0x334   : > { %v7332_v12 = vpop.f32.mrb[232].mxu0  ;;  %v15506_v1 = vpop.f32.mrb[235].mxu1 }
 0x335   : > { %v7338_v57 = vadd.f32 %v7332_v12, %v7272_v28  ;;  %v15499_v20 = vpop.f32.mrb[233].mxu0  ;;  %v11227_v28 = vrot.slane %v18363_v35, %v16379_v7 }
 0x336   : > { %v7335_v36 = vpop.f32.mrb[234].mxu0  ;;  %15828 = vmatmul.mubr.msk.bf16.vlgmr.msra.gmra.mrb[84].mxu1 %vm207_vm2, %v14210_v62  ;;  %v11061_v20 = vand.u32 %v11055_v50, %v16386_v8 }
 0x337   : > { %v7387_v26 = vadd.f32 %v7381_v37, %v7338_v57  ;;  %v15500_v30 = vpop.f32.mrb[235].mxu0  ;;  %15838 = vmatpush3.bf16.msra.mxu1 %v10761_v10  ;;  %15839 = vmatprep.mubr.msk.bf16.mxu1 %vm16273_vm0, %v16272_v3  ;;  %v11234_v9 = vrot.slane %v11227_v28, %v16379_v7  ;;  %v14226_v57 = vld [vmem:[%s18833_s1 + $0x38] sm:$0xf] }
 0x338   : > { %15849 = vmatprep.subr.bf16.mxu1 %v16272_v3 }
 0x339   : > { %15822 = vmatmul.mubr.msk.bf16.vlgmr.msra.gmra.mrb[84].mxu0 %vm207_vm2, %v14206_v13  ;;  %v7513_v31 = vpop.f32.mrb[236].mxu1 }
 0x33a   : > { %15832 = vmatpush3.bf16.msra.mxu0 %v10695_v24  ;;  %15833 = vmatprep.mubr.msk.bf16.mxu0 %vm16273_vm0, %v16272_v3  ;;  %v15517_v19 = vpop.f32.mrb[237].mxu1  ;;  %v11236_v24 = vshrl.u32 %v11234_v9, 16 }
 0x33b   : > { %v7516_v34 = vpop.f32.mrb[238].mxu1  ;;  %15843 = vmatprep.subr.bf16.mxu0 %v16272_v3 }
 0x33c   : > { %v7447_v55 = vpop.f32.mrb[236].mxu0  ;;  %v15518_v14 = vpop.f32.mrb[239].mxu1  ;;  %v11242_v19 = vand.u32 %v11236_v24, %v16386_v8 }
 0x33d   : > { %v7453_v16 = vadd.f32 %v7447_v55, %v7387_v26  ;;  %v15511_v39 = vpop.f32.mrb[237].mxu0 }
 0x33e   : > { %v7450_v42 = vpop.f32.mrb[238].mxu0  ;;  %15840 = vmatmul.mubr.msk.bf16.vlgmr.msra.gmra.mrb[88].mxu1 %vm207_vm2, %v14215_v49  ;;  %v11176_v39 = vand.u32 %v18363_v35, %v16386_v8  ;;  %v11308_v35 = vand.u32 %v17275_v44, %v16386_v8  ;;  %v11486_v44 = vpop.permute.xlu1 %11485 }
 0x33f   : > { %v7519_v43 = vadd.f32 %v7513_v31, %v7453_v16  ;;  %v15512_v47 = vpop.f32.mrb[239].mxu0  ;;  %15850 = vmatpush3.bf16.msra.mxu1 %v10878_v38  ;;  %15851 = vmatprep.mubr.msk.bf16.mxu1 %vm16273_vm0, %v16272_v3  ;;  %v14237_v31 = vld [vmem:[%s18833_s1 + $0x44] sm:$0xf]  ;;  %v14234_v16 = vld [vmem:[%s18833_s1 + $0x40] sm:$0xf] }
 0x340   : > { %15861 = vmatprep.subr.bf16.mxu1 %v16272_v3 }
 0x341   : > { %15834 = vmatmul.mubr.msk.bf16.vlgmr.msra.gmra.mrb[88].mxu0 %vm207_vm2, %v14212_v45  ;;  %v7630_v51 = vpop.f32.mrb[240].mxu1 }
 0x342   : > { %15844 = vmatpush3.bf16.msra.mxu0 %v10812_v61  ;;  %15845 = vmatprep.mubr.msk.bf16.mxu0 %vm16273_vm0, %v16272_v3  ;;  %v15529_v4 = vpop.f32.mrb[241].mxu1  ;;  %v14251_v61 = vld [vmem:[%s16384_s10 + $0x31] sm:$0x1] }
 0x343   : > { %v7633_v54 = vpop.f32.mrb[242].mxu1  ;;  %15855 = vmatprep.subr.bf16.mxu0 %v16272_v3  ;;  %v11410_v48 = vrot.slane %v14251_v61, %v16379_v7  ;;  %v14243_v4 = vld [vmem:[%s18833_s1 + $0x4c] sm:$0xf]  ;;  %v11359_v53 = vand.u32 %v14251_v61, %v16386_v8 }
 0x344   : > { %v7564_v27 = vpop.f32.mrb[240].mxu0  ;;  %v15530_v60 = vpop.f32.mrb[243].mxu1 }
 0x345   : > { %v7570_v56 = vadd.f32 %v7564_v27, %v7519_v43  ;;  %v15523_v33 = vpop.f32.mrb[241].mxu0 }
 0x346   : > { %v7567_v63 = vpop.f32.mrb[242].mxu0  ;;  %15852 = vmatmul.mubr.msk.bf16.vlgmr.msra.gmra.mrb[92].mxu1 %vm207_vm2, %v14223_v21  ;;  %v14241_v33 = vld [vmem:[%s18833_s1 + $0x48] sm:$0xf] }
 0x347   : > { %v7636_v52 = vadd.f32 %v7630_v51, %v7570_v56  ;;  %v15524_v5 = vpop.f32.mrb[243].mxu0  ;;  %15862 = vmatpush3.bf16.msra.mxu1 %v10995_v17  ;;  %15863 = vmatprep.mubr.msk.bf16.mxu1 %vm16273_vm0, %v16272_v3  ;;  %v18422_v17 = vld [vmem:[%s16384_s10 + $0x32] sm:$0x1] }
 0x348   : > { %15873 = vmatprep.subr.bf16.mxu1 %v16272_v3  ;;  %v11593_v0 = vrot.slane %v18422_v17, %v16379_v7 }
 0x349   : > { %15846 = vmatmul.mubr.msk.bf16.vlgmr.msra.gmra.mrb[92].mxu0 %vm207_vm2, %v14221_v23  ;;  %v7747_v15 = vpop.f32.mrb[244].mxu1 }
 0x34a   : > { %15856 = vmatpush3.bf16.msra.mxu0 %v10944_v59  ;;  %15857 = vmatprep.mubr.msk.bf16.mxu0 %vm16273_vm0, %v16272_v3  ;;  %v15541_v6 = vpop.f32.mrb[245].mxu1  ;;  %v11417_v59 = vrot.slane %v11410_v48, %v16379_v7  ;;  %v11600_v50 = vrot.slane %v11593_v0, %v16379_v7  ;;  %v14265_v48 = vld [vmem:[%s18833_s1 + $0x64] sm:$0xf] }
 0x34b   : > { %v7750_v37 = vpop.f32.mrb[246].mxu1  ;;  %15867 = vmatprep.subr.bf16.mxu0 %v16272_v3  ;;  %v11491_v6 = vand.u32 %v11486_v44, %v16386_v8  ;;  %v14273_v44 = vld [vmem:[%s18833_s1 + $0x4] sm:$0xf] }
 0x34c   : > { %v7696_v62 = vpop.f32.mrb[244].mxu0  ;;  %v15542_v10 = vpop.f32.mrb[247].mxu1  ;;  %v11419_v28 = vshrl.u32 %v11417_v59, 16 }
 0x34d   : > { %v7702_v11 = vadd.f32 %v7696_v62, %v7636_v52  ;;  %v15535_v12 = vpop.f32.mrb[245].mxu0 }
 0x34e   : > { %v7699_v1 = vpop.f32.mrb[246].mxu0  ;;  %15864 = vmatmul.mubr.msk.bf16.vlgmr.msra.gmra.mrb[96].mxu1 %vm207_vm2, %v14232_v25  ;;  %v11425_v12 = vand.u32 %v11419_v28, %v16386_v8 }
 0x34f   : > { %v7753_v36 = vadd.f32 %v7747_v15, %v7702_v11  ;;  %v15536_v13 = vpop.f32.mrb[247].mxu0  ;;  %15874 = vmatpush3.bf16.msra.mxu1 %v11127_v32  ;;  %15875 = vmatprep.mubr.msk.bf16.mxu1 %vm16273_vm0, %v16272_v3  ;;  %v14252_v15 = vld [vmem:[%s18833_s1 + $0x54] sm:$0xf]  ;;  %v18446_v32 = vld [vmem:[%s16384_s10 + $0xe] sm:$0x1] }
 0x350   : > { %15885 = vmatprep.subr.bf16.mxu1 %v16272_v3  ;;  %v14246_v11 = vld [vmem:[%s18833_s1 + $0x50] sm:$0xf] }
 0x351   : > { %15858 = vmatmul.mubr.msk.bf16.vlgmr.msra.gmra.mrb[96].mxu0 %vm207_vm2, %v14226_v57  ;;  %v7879_v26 = vpop.f32.mrb[248].mxu1 }
 0x352   : > { %15868 = vmatpush3.bf16.msra.mxu0 %v11061_v20  ;;  %15869 = vmatprep.mubr.msk.bf16.mxu0 %vm16273_vm0, %v16272_v3  ;;  %v15553_v30 = vpop.f32.mrb[249].mxu1  ;;  %v11602_v20 = vshrl.u32 %v11600_v50, 16 }
 0x353   : > { %v7882_v29 = vpop.f32.mrb[250].mxu1  ;;  %15879 = vmatprep.subr.bf16.mxu0 %v16272_v3  ;;  %v14257_v30 = vld [vmem:[%s18833_s1 + $0x5c] sm:$0xf] }
 0x354   : > { %v7813_v34 = vpop.f32.mrb[248].mxu0  ;;  %v15554_v49 = vpop.f32.mrb[251].mxu1  ;;  %v11608_v29 = vand.u32 %v11602_v20, %v16386_v8 }
 0x355   : > { %v7819_v38 = vadd.f32 %v7813_v34, %v7753_v36  ;;  %v15547_v55 = vpop.f32.mrb[249].mxu0  ;;  %v11730_v36 = vrot.slane %v18446_v32, %v16379_v7 }
 0x356   : > { %v7816_v14 = vpop.f32.mrb[250].mxu0  ;;  %15876 = vmatmul.mubr.msk.bf16.vlgmr.msra.gmra.mrb[100].mxu1 %vm207_vm2, %v14237_v31 }
 0x357   : > { %v7885_v42 = vadd.f32 %v7879_v26, %v7819_v38  ;;  %v15548_v45 = vpop.f32.mrb[251].mxu0  ;;  %15886 = vmatpush3.bf16.msra.mxu1 %v11242_v19  ;;  %15887 = vmatprep.mubr.msk.bf16.mxu1 %vm16273_vm0, %v16272_v3  ;;  %v11737_v31 = vrot.slane %v11730_v36, %v16379_v7  ;;  %v14254_v14 = vld [vmem:[%s18833_s1 + $0x58] sm:$0xf] }
 0x358   : > { %15897 = vmatprep.subr.bf16.mxu1 %v16272_v3 }
 0x359   : > { %15870 = vmatmul.mubr.msk.bf16.vlgmr.msra.gmra.mrb[100].mxu0 %vm207_vm2, %v14234_v16  ;;  %v7994_v43 = vpop.f32.mrb[252].mxu1  ;;  %v11542_v16 = vand.u32 %v18422_v17, %v16386_v8  ;;  %v11739_v45 = vshrl.u32 %v11737_v31, 16 }
 0x35a   : > { %15880 = vmatpush3.bf16.msra.mxu0 %v11176_v39  ;;  %15881 = vmatprep.mubr.msk.bf16.mxu0 %vm16273_vm0, %v16272_v3  ;;  %v15565_v47 = vpop.f32.mrb[253].mxu1 }
 0x35b   : > { %v7997_v51 = vpop.f32.mrb[254].mxu1  ;;  %15891 = vmatprep.subr.bf16.mxu0 %v16272_v3 }
 0x35c   : > { %v7928_v54 = vpop.f32.mrb[252].mxu0  ;;  %v15566_v21 = vpop.f32.mrb[255].mxu1  ;;  %v11745_v51 = vand.u32 %v11739_v45, %v16386_v8 }
 0x35d   : > { %v7934_v27 = vadd.f32 %v7928_v54, %v7885_v42  ;;  %v15559_v60 = vpop.f32.mrb[253].mxu0  ;;  %v18485_v54 = vld [vmem:[%s16384_s10 + $0xf] sm:$0x1] }
 0x35e   : > { %v7931_v56 = vpop.f32.mrb[254].mxu0  ;;  %15888 = vmatmul.mubr.msk.bf16.vlgmr.msra.gmra.mrb[104].mxu1 %vm207_vm2, %v14243_v4  ;;  %v11958_v59 = vrot.slane %v18485_v54, %v16379_v7 }
 0x35f   : > { %v8000_v63 = vadd.f32 %v7994_v43, %v7934_v27  ;;  %v15560_v23 = vpop.f32.mrb[255].mxu0  ;;  %15898 = vmatpush3.bf16.msra.mxu1 %v11359_v53  ;;  %15899 = vmatprep.mubr.msk.bf16.mxu1 %vm16273_vm0, %v16272_v3  ;;  %v11674_v27 = vand.u32 %v17291_v58, %v16386_v8 }
 0x360   : > { %15909 = vmatprep.subr.bf16.mxu1 %v16272_v3 }
 0x361   : > { %15882 = vmatmul.mubr.msk.bf16.vlgmr.msra.gmra.mrb[104].mxu0 %vm207_vm2, %v14241_v33  ;;  %v8111_v52 = vpop.f32.mrb[0].mxu1 }
 0x362   : > { %15892 = vmatpush3.bf16.msra.mxu0 %v11308_v35  ;;  %15893 = vmatprep.mubr.msk.bf16.mxu0 %vm16273_vm0, %v16272_v3  ;;  %v15577_v5 = vpop.f32.mrb[1].mxu1  ;;  %v14263_v35 = vld [vmem:[%s18833_s1 + $0x60] sm:$0xf] }
 0x363   : > { %v8114_v40 = vpop.f32.mrb[2].mxu1  ;;  %15903 = vmatprep.subr.bf16.mxu0 %v16272_v3  ;;  %v11965_v5 = vrot.slane %v11958_v59, %v16379_v7 }
 0x364   : > { %v8060_v37 = vpop.f32.mrb[0].mxu0  ;;  %v15578_v25 = vpop.f32.mrb[3].mxu1 }
 0x365   : > { %v8066_v9 = vadd.f32 %v8060_v37, %v8000_v63  ;;  %v15571_v62 = vpop.f32.mrb[1].mxu0  ;;  %v11851_v63 = vpop.permute.xlu1 %11850  ;;  %v14268_v37 = vld [vmem:[%s18833_s1 + $0x68] sm:$0xf]  ;;  %v11791_v25 = vand.u32 %v18446_v32, %v16386_v8 }
 0x366   : > { %v8063_v10 = vpop.f32.mrb[2].mxu0  ;;  %15900 = vmatmul.mubr.msk.bf16.vlgmr.msra.gmra.mrb[108].mxu1 %vm207_vm2, %v14252_v15 }
 0x367   : > { %v8117_v1 = vadd.f32 %v8111_v52, %v8066_v9  ;;  %v15572_v57 = vpop.f32.mrb[3].mxu0  ;;  %15910 = vmatpush3.bf16.msra.mxu1 %v11491_v6  ;;  %15911 = vmatprep.mubr.msk.bf16.mxu1 %vm16273_vm0, %v16272_v3  ;;  %v11856_v52 = vand.u32 %v11851_v63, %v16386_v8  ;;  %v11967_v10 = vshrl.u32 %v11965_v5, 16  ;;  %v14286_v5 = vld [vmem:[%s18833_s1 + $0x14] sm:$0xf] }
 0x368   : > { %15921 = vmatprep.subr.bf16.mxu1 %v16272_v3 }
 0x369   : > { %15894 = vmatmul.mubr.msk.bf16.vlgmr.msra.gmra.mrb[108].mxu0 %vm207_vm2, %v14246_v11  ;;  %v8243_v13 = vpop.f32.mrb[4].mxu1  ;;  %v11973_v57 = vand.u32 %v11967_v10, %v16386_v8 }
 0x36a   : > { %15904 = vmatpush3.bf16.msra.mxu0 %v11425_v12  ;;  %15905 = vmatprep.mubr.msk.bf16.mxu0 %vm16273_vm0, %v16272_v3  ;;  %v15589_v24 = vpop.f32.mrb[5].mxu1 }
 0x36b   : > { %v8246_v26 = vpop.f32.mrb[6].mxu1  ;;  %15915 = vmatprep.subr.bf16.mxu0 %v16272_v3 }
 0x36c   : > { %v8177_v19 = vpop.f32.mrb[4].mxu0  ;;  %v15590_v34 = vpop.f32.mrb[7].mxu1 }
 0x36d   : > { %v8183_v49 = vadd.f32 %v8177_v19, %v8117_v1  ;;  %v15583_v38 = vpop.f32.mrb[5].mxu0  ;;  %v14277_v1 = vld [vmem:[%s18833_s1 + $0x8] sm:$0xf]  ;;  %v14289_v34 = vld [vmem:[%s16384_s10 + $0x10] sm:$0x1] }
 0x36e   : > { %v8180_v55 = vpop.f32.mrb[6].mxu0  ;;  %15912 = vmatmul.mubr.msk.bf16.vlgmr.msra.gmra.mrb[112].mxu1 %vm207_vm2, %v14257_v30  ;;  %v11721_v30 = vld [vmem:[%s18833_s1] sm:$0xf] }
 0x36f   : > { %v8249_v39 = vadd.f32 %v8243_v13, %v8183_v49  ;;  %v15584_v42 = vpop.f32.mrb[7].mxu0  ;;  %15922 = vmatpush3.bf16.msra.mxu1 %v11608_v29  ;;  %15923 = vmatprep.mubr.msk.bf16.mxu1 %vm16273_vm0, %v16272_v3  ;;  %v11907_v29 = vand.u32 %v18485_v54, %v16386_v8  ;;  %v12141_v55 = vrot.slane %v14289_v34, %v16379_v7 }
 0x370   : > { %15933 = vmatprep.subr.bf16.mxu1 %v16272_v3 }
 0x371   : > { %15906 = vmatmul.mubr.msk.bf16.vlgmr.msra.gmra.mrb[112].mxu0 %vm207_vm2, %v14254_v14  ;;  %v8360_v61 = vpop.f32.mrb[8].mxu1 }
 0x372   : > { %15916 = vmatpush3.bf16.msra.mxu0 %v11542_v16  ;;  %15917 = vmatprep.mubr.msk.bf16.mxu0 %vm16273_vm0, %v16272_v3  ;;  %v15601_v43 = vpop.f32.mrb[9].mxu1  ;;  %v14283_v16 = vld [vmem:[%s18833_s1 + $0x10] sm:$0xf] }
 0x373   : > { %v8363_v47 = vpop.f32.mrb[10].mxu1  ;;  %15927 = vmatprep.subr.bf16.mxu0 %v16272_v3 }
 0x374   : > { %v8294_v4 = vpop.f32.mrb[8].mxu0  ;;  %v15602_v53 = vpop.f32.mrb[11].mxu1 }
 0x375   : > { %v8300_v21 = vadd.f32 %v8294_v4, %v8249_v39  ;;  %v15595_v17 = vpop.f32.mrb[9].mxu0  ;;  %v12090_v39 = vand.u32 %v14289_v34, %v16386_v8  ;;  %v14281_v4 = vld [vmem:[%s18833_s1 + $0xc] sm:$0xf]  ;;  %v12148_v53 = vrot.slane %v12141_v55, %v16379_v7  ;;  %v18606_v55 = vld [vmem:[%s16384_s10 + $0x22] sm:$0x1] }
 0x376   : > { %v8297_v60 = vpop.f32.mrb[10].mxu0  ;;  %15924 = vmatmul.mubr.msk.bf16.vlgmr.msra.gmra.mrb[116].mxu1 %vm207_vm2, %v14265_v48  ;;  %v12039_v48 = vand.u32 %v17313_v18, %v16386_v8 }
 0x377   : > { %v8366_v56 = vadd.f32 %v8360_v61, %v8300_v21  ;;  %v15596_v33 = vpop.f32.mrb[11].mxu0  ;;  %15934 = vmatpush3.bf16.msra.mxu1 %v11745_v51  ;;  %15935 = vmatprep.mubr.msk.bf16.mxu1 %vm16273_vm0, %v16272_v3  ;;  %v18547_v61 = vld [vmem:[%s16384_s10 + $0x20] sm:$0x1] }
 0x378   : > { %15945 = vmatprep.subr.bf16.mxu1 %v16272_v3  ;;  %v12322_v17 = vrot.slane %v18547_v61, %v16379_v7  ;;  %v14290_v33 = vld [vmem:[%s18833_s1 + $0x18] sm:$0xf] }
 0x379   : > { %15918 = vmatmul.mubr.msk.bf16.vlgmr.msra.gmra.mrb[116].mxu0 %vm207_vm2, %v14263_v35  ;;  %v8497_v58 = vpop.f32.mrb[12].mxu1  ;;  %v12150_v35 = vshrl.u32 %v12148_v53, 16 }
 0x37a   : > { %15928 = vmatpush3.bf16.msra.mxu0 %v11674_v27  ;;  %15929 = vmatprep.mubr.msk.bf16.mxu0 %vm16273_vm0, %v16272_v3  ;;  %v15613_v23 = vpop.f32.mrb[13].mxu1  ;;  %v12217_v27 = vpop.permute.xlu1 %12216  ;;  %v12329_v63 = vrot.slane %v12322_v17, %v16379_v7 }
 0x37b   : > { %v8500_v0 = vpop.f32.mrb[14].mxu1  ;;  %15939 = vmatprep.subr.bf16.mxu0 %v16272_v3  ;;  %v12222_v59 = vand.u32 %v12217_v27, %v16386_v8 }
 0x37c   : > { %v8426_v28 = vpop.f32.mrb[12].mxu0  ;;  %v15614_v40 = vpop.f32.mrb[15].mxu1 }
 0x37d   : > { %v8432_v15 = vadd.f32 %v8426_v28, %v8366_v56  ;;  %v15607_v6 = vpop.f32.mrb[13].mxu0  ;;  %v12156_v28 = vand.u32 %v12150_v35, %v16386_v8 }
 0x37e   : > { %v8429_v50 = vpop.f32.mrb[14].mxu0  ;;  %15936 = vmatmul.mubr.msk.bf16.vlgmr.msra.gmra.mrb[120].mxu1 %vm207_vm2, %v14273_v44  ;;  %v12331_v6 = vshrl.u32 %v12329_v63, 16 }
 0x37f   : > { %v8433_v9 = vadd.f32 %v8432_v15, %v17382_v41  ;;  %v15608_v62 = vpop.f32.mrb[15].mxu0  ;;  %15946 = vmatpush3.bf16.msra.mxu1 %v11856_v52  ;;  %15947 = vmatprep.mubr.msk.bf16.mxu1 %vm16273_vm0, %v16272_v3 }
 0x380   : > { %15957 = vmatprep.subr.bf16.mxu1 %v16272_v3  ;;  %v12337_v62 = vand.u32 %v12331_v6, %v16386_v8 }
 0x381   : > { %14093 = vst.msk [vmem:[%s17405_s20 + $0x20] sm:$0xff] %vm1866_vm3, %v8433_v9  ;;  %15930 = vmatmul.mubr.msk.bf16.vlgmr.msra.gmra.mrb[120].mxu0 %vm207_vm2, %v14268_v37  ;;  %v8608_v11 = vpop.f32.mrb[16].mxu1  ;;  %v14295_v9 = vld [vmem:[%s18833_s1 + $0x20] sm:$0xf] }
 0x382   : > { %15940 = vmatpush3.bf16.msra.mxu0 %v11791_v25  ;;  %15941 = vmatprep.mubr.msk.bf16.mxu0 %vm16273_vm0, %v16272_v3  ;;  %v15625_v32 = vpop.f32.mrb[17].mxu1 }
 0x383   : > { %v8611_v12 = vpop.f32.mrb[18].mxu1  ;;  %15951 = vmatprep.subr.bf16.mxu0 %v16272_v3 }
 0x384   : > { %v8543_v20 = vpop.f32.mrb[16].mxu0  ;;  %v15626_v36 = vpop.f32.mrb[19].mxu1 }
 0x385   : > { %v8544_v13 = vadd.f32 %v8543_v20, %v8497_v58  ;;  %v15619_v24 = vpop.f32.mrb[17].mxu0  ;;  %v12271_v20 = vand.u32 %v18547_v61, %v16386_v8 }
 0x386   : > { %v8546_v26 = vpop.f32.mrb[18].mxu0  ;;  %15948 = vmatmul.mubr.msk.bf16.vlgmr.msra.gmra.mrb[124].mxu1 %vm207_vm2, %v14277_v1  ;;  %v14309_v24 = vld [vmem:[%s16384_s10 + $0x21] sm:$0x1] }
 0x387   : > { %v8614_v31 = vadd.f32 %v8608_v11, %v8544_v13  ;;  %v15620_v19 = vpop.f32.mrb[19].mxu0  ;;  %15958 = vmatpush3.bf16.msra.mxu1 %v11973_v57  ;;  %15959 = vmatprep.mubr.msk.bf16.mxu1 %vm16273_vm0, %v16272_v3  ;;  %v14292_v57 = vld [vmem:[%s18833_s1 + $0x1c] sm:$0xf]  ;;  %v12454_v34 = vand.u32 %v14309_v24, %v16386_v8 }
 0x388   : > { %15969 = vmatprep.subr.bf16.mxu1 %v16272_v3  ;;  %v14301_v19 = vld [vmem:[%s18833_s1 + $0x28] sm:$0xf] }
 0x389   : > { %15942 = vmatmul.mubr.msk.bf16.vlgmr.msra.gmra.mrb[124].mxu0 %vm207_vm2, %v11721_v30  ;;  %v8725_v49 = vpop.f32.mrb[20].mxu1 }
 0x38a   : > { %15952 = vmatpush3.bf16.msra.mxu0 %v11907_v29  ;;  %15953 = vmatprep.mubr.msk.bf16.mxu0 %vm16273_vm0, %v16272_v3  ;;  %v15637_v38 = vpop.f32.mrb[21].mxu1  ;;  %v12505_v29 = vrot.slane %v14309_v24, %v16379_v7 }
 0x38b   : > { %v8728_v14 = vpop.f32.mrb[22].mxu1  ;;  %15963 = vmatprep.subr.bf16.mxu0 %v16272_v3 }
 0x38c   : > { %v8659_v42 = vpop.f32.mrb[20].mxu0  ;;  %v15638_v45 = vpop.f32.mrb[23].mxu1  ;;  %v12512_v61 = vrot.slane %v12505_v29, %v16379_v7 }
 0x38d   : > { %v8665_v43 = vadd.f32 %v8659_v42, %v8614_v31  ;;  %v15631_v47 = vpop.f32.mrb[21].mxu0  ;;  %v14299_v45 = vld [vmem:[%s18833_s1 + $0x24] sm:$0xf] }
 0x38e   : > { %v8662_v51 = vpop.f32.mrb[22].mxu0  ;;  %15960 = vmatmul.mubr.msk.bf16.vlgmr.msra.gmra.mrb[128].mxu1 %vm207_vm2, %v14283_v16  ;;  %v12514_v53 = vshrl.u32 %v12512_v61, 16 }
 0x38f   : > { %v8731_v54 = vadd.f32 %v8725_v49, %v8665_v43  ;;  %v15632_v21 = vpop.f32.mrb[23].mxu0  ;;  %15970 = vmatpush3.bf16.msra.mxu1 %v12090_v39  ;;  %15971 = vmatprep.mubr.msk.bf16.mxu1 %vm16273_vm0, %v16272_v3  ;;  %v12403_v39 = vand.u32 %v17333_v46, %v16386_v8  ;;  %v12581_v51 = vpop.permute.xlu1 %12580 }
 0x390   : > { %15981 = vmatprep.subr.bf16.mxu1 %v16272_v3  ;;  %v14310_v21 = vld [vmem:[%s18833_s1 + $0x30] sm:$0xf]  ;;  %v12586_v17 = vand.u32 %v12581_v51, %v16386_v8  ;;  %v12520_v63 = vand.u32 %v12514_v53, %v16386_v8 }
 0x391   : > { %15954 = vmatmul.mubr.msk.bf16.vlgmr.msra.gmra.mrb[128].mxu0 %vm207_vm2, %v14281_v4  ;;  %v8842_v18 = vpop.f32.mrb[24].mxu1 }
 0x392   : > { %15964 = vmatpush3.bf16.msra.mxu0 %v12039_v48  ;;  %15965 = vmatprep.mubr.msk.bf16.mxu0 %vm16273_vm0, %v16272_v3  ;;  %v15649_v60 = vpop.f32.mrb[25].mxu1  ;;  %v12688_v48 = vrot.slane %v18606_v55, %v16379_v7 }
 0x393   : > { %v8845_v56 = vpop.f32.mrb[26].mxu1  ;;  %15975 = vmatprep.subr.bf16.mxu0 %v16272_v3 }
 0x394   : > { %v8791_v58 = vpop.f32.mrb[24].mxu0  ;;  %v15650_v23 = vpop.f32.mrb[27].mxu1  ;;  %v12695_v27 = vrot.slane %v12688_v48, %v16379_v7 }
 0x395   : > { %v8797_v0 = vadd.f32 %v8791_v58, %v8731_v54  ;;  %v15643_v44 = vpop.f32.mrb[25].mxu0 }
 0x396   : > { %v8794_v52 = vpop.f32.mrb[26].mxu0  ;;  %15972 = vmatmul.mubr.msk.bf16.vlgmr.msra.gmra.mrb[132].mxu1 %vm207_vm2, %v14290_v33 }
 0x397   : > { %v8848_v40 = vadd.f32 %v8842_v18, %v8797_v0  ;;  %v15644_v15 = vpop.f32.mrb[27].mxu0  ;;  %15982 = vmatpush3.bf16.msra.mxu1 %v12222_v59  ;;  %15983 = vmatprep.mubr.msk.bf16.mxu1 %vm16273_vm0, %v16272_v3  ;;  %v14304_v59 = vld [vmem:[%s18833_s1 + $0x2c] sm:$0xf]  ;;  %v12697_v0 = vshrl.u32 %v12695_v27, 16 }
 0x398   : > { %15993 = vmatprep.subr.bf16.mxu1 %v16272_v3 }
 0x399   : > { %15966 = vmatmul.mubr.msk.bf16.vlgmr.msra.gmra.mrb[132].mxu0 %vm207_vm2, %v14286_v5  ;;  %v8974_v50 = vpop.f32.mrb[28].mxu1 }
 0x39a   : > { %15976 = vmatpush3.bf16.msra.mxu0 %v12156_v28  ;;  %15977 = vmatprep.mubr.msk.bf16.mxu0 %vm16273_vm0, %v16272_v3  ;;  %v15661_v37 = vpop.f32.mrb[29].mxu1  ;;  %v14315_v28 = vld [vmem:[%s18833_s1 + $0x38] sm:$0xf] }
 0x39b   : > { %v8977_v25 = vpop.f32.mrb[30].mxu1  ;;  %15987 = vmatprep.subr.bf16.mxu0 %v16272_v3 }
 0x39c   : > { %v8908_v10 = vpop.f32.mrb[28].mxu0  ;;  %v15662_v11 = vpop.f32.mrb[31].mxu1 }
 0x39d   : > { %v8914_v32 = vadd.f32 %v8908_v10, %v8848_v40  ;;  %v15655_v12 = vpop.f32.mrb[29].mxu0  ;;  %v12703_v40 = vand.u32 %v12697_v0, %v16386_v8 }
 0x39e   : > { %v8911_v1 = vpop.f32.mrb[30].mxu0  ;;  %15984 = vmatmul.mubr.msk.bf16.vlgmr.msra.gmra.mrb[136].mxu1 %vm207_vm2, %v14295_v9  ;;  %v14312_v9 = vld [vmem:[%s18833_s1 + $0x34] sm:$0xf] }
 0x39f   : > { %v8980_v36 = vadd.f32 %v8974_v50, %v8914_v32  ;;  %v15656_v13 = vpop.f32.mrb[31].mxu0  ;;  %15994 = vmatpush3.bf16.msra.mxu1 %v12337_v62  ;;  %15995 = vmatprep.mubr.msk.bf16.mxu1 %vm16273_vm0, %v16272_v3  ;;  %v12637_v62 = vand.u32 %v18606_v55, %v16386_v8  ;;  %v14329_v32 = vld [vmem:[%s16384_s10 + $0x32] sm:$0x1] }
 0x3a0   : > { %16005 = vmatprep.subr.bf16.mxu1 %v16272_v3  ;;  %v12818_v13 = vand.u32 %v14329_v32, %v16386_v8 }
 0x3a1   : > { %15978 = vmatmul.mubr.msk.bf16.vlgmr.msra.gmra.mrb[136].mxu0 %vm207_vm2, %v14292_v57  ;;  %v9089_v26 = vpop.f32.mrb[32].mxu1  ;;  %v12869_v57 = vrot.slane %v14329_v32, %v16379_v7 }
 0x3a2   : > { %15988 = vmatpush3.bf16.msra.mxu0 %v12271_v20  ;;  %15989 = vmatprep.mubr.msk.bf16.mxu0 %vm16273_vm0, %v16272_v3  ;;  %v15673_v30 = vpop.f32.mrb[33].mxu1 }
 0x3a3   : > { %v9092_v31 = vpop.f32.mrb[34].mxu1  ;;  %15999 = vmatprep.subr.bf16.mxu0 %v16272_v3  ;;  %v18665_v30 = vld [vmem:[%s16384_s10 + $0x33] sm:$0x1] }
 0x3a4   : > { %v9023_v49 = vpop.f32.mrb[32].mxu0  ;;  %v15674_v38 = vpop.f32.mrb[35].mxu1 }
 0x3a5   : > { %v9029_v14 = vadd.f32 %v9023_v49, %v8980_v36  ;;  %v15667_v16 = vpop.f32.mrb[33].mxu0  ;;  %v14323_v36 = vld [vmem:[%s18833_s1 + $0x40] sm:$0xf]  ;;  %v14321_v49 = vld [vmem:[%s18833_s1 + $0x3c] sm:$0xf]  ;;  %v12876_v38 = vrot.slane %v12869_v57, %v16379_v7  ;;  %v13133_v57 = vand.u32 %v17365_v22, %v16386_v8 }
 0x3a6   : > { %v9026_v42 = vpop.f32.mrb[34].mxu0  ;;  %15996 = vmatmul.mubr.msk.bf16.vlgmr.msra.gmra.mrb[140].mxu1 %vm207_vm2, %v14301_v19  ;;  %v12769_v19 = vand.u32 %v17349_v2, %v16386_v8  ;;  %v13052_v16 = vrot.slane %v18665_v30, %v16379_v7 }
 0x3a7   : > { %v9095_v43 = vadd.f32 %v9089_v26, %v9029_v14  ;;  %v15668_v47 = vpop.f32.mrb[35].mxu0  ;;  %16006 = vmatpush3.bf16.msra.mxu1 %v12454_v34  ;;  %16007 = vmatprep.mubr.msk.bf16.mxu1 %vm16273_vm0, %v16272_v3 }
 0x3a8   : > { %16017 = vmatprep.subr.bf16.mxu1 %v16272_v3  ;;  %v13059_v48 = vrot.slane %v13052_v16, %v16379_v7 }
 0x3a9   : > { %15990 = vmatmul.mubr.msk.bf16.vlgmr.msra.gmra.mrb[140].mxu0 %vm207_vm2, %v14299_v45  ;;  %v9206_v46 = vpop.f32.mrb[36].mxu1  ;;  %v12878_v45 = vshrl.u32 %v12876_v38, 16 }
 0x3aa   : > { %16000 = vmatpush3.bf16.msra.mxu0 %v12403_v39  ;;  %16001 = vmatprep.mubr.msk.bf16.mxu0 %vm16273_vm0, %v16272_v3  ;;  %v15685_v4 = vpop.f32.mrb[37].mxu1  ;;  %v12945_v39 = vpop.permute.xlu1 %12944 }
 0x3ab   : > { %v9209_v54 = vpop.f32.mrb[38].mxu1  ;;  %16011 = vmatprep.subr.bf16.mxu0 %v16272_v3  ;;  %v12950_v47 = vand.u32 %v12945_v39, %v16386_v8  ;;  %v14346_v39 = vld [vmem:[%s18833_s1 + $0x5c] sm:$0xf] }
 0x3ac   : > { %v9155_v18 = vpop.f32.mrb[36].mxu0  ;;  %v15686_v60 = vpop.f32.mrb[39].mxu1 }
 0x3ad   : > { %v9161_v35 = vadd.f32 %v9155_v18, %v9095_v43  ;;  %v15679_v56 = vpop.f32.mrb[37].mxu0  ;;  %v14330_v43 = vld [vmem:[%s18833_s1 + $0x48] sm:$0xf]  ;;  %v13061_v60 = vshrl.u32 %v13059_v48, 16 }
 0x3ae   : > { %v9158_v33 = vpop.f32.mrb[38].mxu0  ;;  %16008 = vmatmul.mubr.msk.bf16.vlgmr.msra.gmra.mrb[144].mxu1 %vm207_vm2, %v14310_v21  ;;  %v14326_v21 = vld [vmem:[%s18833_s1 + $0x44] sm:$0xf] }
 0x3af   : > { %v9212_v58 = vadd.f32 %v9206_v46, %v9161_v35  ;;  %v15680_v23 = vpop.f32.mrb[39].mxu0  ;;  %16018 = vmatpush3.bf16.msra.mxu1 %v12586_v17  ;;  %16019 = vmatprep.mubr.msk.bf16.mxu1 %vm16273_vm0, %v16272_v3  ;;  %v12884_v17 = vand.u32 %v12878_v45, %v16386_v8 }
 0x3b0   : > { %16029 = vmatprep.subr.bf16.mxu1 %v16272_v3 }
 0x3b1   : > { %16002 = vmatmul.mubr.msk.bf16.vlgmr.msra.gmra.mrb[144].mxu0 %vm207_vm2, %v14304_v59  ;;  %v9338_v44 = vpop.f32.mrb[40].mxu1  ;;  %v14335_v59 = vld [vmem:[%s18833_s1 + $0x50] sm:$0xf] }
 0x3b2   : > { %16012 = vmatpush3.bf16.msra.mxu0 %v12520_v63  ;;  %16013 = vmatprep.mubr.msk.bf16.mxu0 %vm16273_vm0, %v16272_v3  ;;  %v15697_v52 = vpop.f32.mrb[41].mxu1  ;;  %v13067_v63 = vand.u32 %v13061_v60, %v16386_v8 }
 0x3b3   : > { %v9341_v5 = vpop.f32.mrb[42].mxu1  ;;  %16023 = vmatprep.subr.bf16.mxu0 %v16272_v3 }
 0x3b4   : > { %v9272_v15 = vpop.f32.mrb[40].mxu0  ;;  %v15698_v6 = vpop.f32.mrb[43].mxu1  ;;  %v14332_v5 = vld [vmem:[%s18833_s1 + $0x4c] sm:$0xf] }
 0x3b5   : > { %v9278_v50 = vadd.f32 %v9272_v15, %v9212_v58  ;;  %v15691_v37 = vpop.f32.mrb[41].mxu0  ;;  %v14351_v6 = vld [vmem:[%s16384_s10 + $0x34] sm:$0x1]  ;;  %s13375_s10 = sadd.s32 %s14363_s6, %s14362_s11 }
 0x3b6   : > { %v9275_v25 = vpop.f32.mrb[42].mxu0  ;;  %16020 = vmatmul.mubr.msk.bf16.vlgmr.msra.gmra.mrb[148].mxu1 %vm207_vm2, %v14315_v28  ;;  %v13001_v28 = vand.u32 %v18665_v30, %v16386_v8  ;;  %v13311_v30 = vpop.permute.xlu1 %13310  ;;  %s14364_s7 = sshll.u32 %s13375_s10, 7 }
 0x3b7   : > { %v9344_v10 = vadd.f32 %v9338_v44, %v9278_v50  ;;  %v15692_v11 = vpop.f32.mrb[43].mxu0  ;;  %16030 = vmatpush3.bf16.msra.mxu1 %v12703_v40  ;;  %16031 = vmatprep.mubr.msk.bf16.mxu1 %vm16273_vm0, %v16272_v3  ;;  %v13235_v25 = vrot.slane %v14351_v6, %v16379_v7  ;;  %s18771_s15 = scalar_lea.hbm %s18835_s3, %s14364_s7 }
 0x3b8   : > { %16041 = vmatprep.subr.bf16.mxu1 %v16272_v3 }
 0x3b9   : > { %16014 = vmatmul.mubr.msk.bf16.vlgmr.msra.gmra.mrb[148].mxu0 %vm207_vm2, %v14312_v9  ;;  %v9455_v12 = vpop.f32.mrb[44].mxu1 }
 0x3ba   : > { %16024 = vmatpush3.bf16.msra.mxu0 %v12637_v62  ;;  %16025 = vmatprep.mubr.msk.bf16.mxu0 %vm16273_vm0, %v16272_v3  ;;  %v15709_v1 = vpop.f32.mrb[45].mxu1  ;;  %v14343_v62 = vld [vmem:[%s18833_s1 + $0x58] sm:$0xf] }
 0x3bb   : > { %v9458_v20 = vpop.f32.mrb[46].mxu1  ;;  %16035 = vmatprep.subr.bf16.mxu0 %v16272_v3 }
 0x3bc   : > { %v9389_v24 = vpop.f32.mrb[44].mxu0  ;;  %v15710_v26 = vpop.f32.mrb[47].mxu1 }
 0x3bd   : > { %v9395_v29 = vadd.f32 %v9389_v24, %v9344_v10  ;;  %v15703_v31 = vpop.f32.mrb[45].mxu0  ;;  %v13184_v10 = vand.u32 %v14351_v6, %v16386_v8 }
 0x3be   : > { %v9392_v34 = vpop.f32.mrb[46].mxu0  ;;  %16032 = vmatmul.mubr.msk.bf16.vlgmr.msra.gmra.mrb[152].mxu1 %vm207_vm2, %v14323_v36  ;;  %v14341_v36 = vld [vmem:[%s18833_s1 + $0x54] sm:$0xf] }
 0x3bf   : > { %v9461_v55 = vadd.f32 %v9455_v12, %v9395_v29  ;;  %v15704_v14 = vpop.f32.mrb[47].mxu0  ;;  %16042 = vmatpush3.bf16.msra.mxu1 %v12818_v13  ;;  %16043 = vmatprep.mubr.msk.bf16.mxu1 %vm16273_vm0, %v16272_v3  ;;  %v13242_v13 = vrot.slane %v13235_v25, %v16379_v7  ;;  %v14352_v7 = vld [vmem:[%s18833_s1 + $0x60] sm:$0xf]  ;;  %v13316_v34 = vand.u32 %v13311_v30, %v16386_v8 }
 0x3c0   : > { %16053 = vmatprep.subr.bf16.mxu1 %v16272_v3 }
 0x3c1   : > { %16026 = vmatmul.mubr.msk.bf16.vlgmr.msra.gmra.mrb[152].mxu0 %vm207_vm2, %v14321_v49  ;;  %v9570_v2 = vpop.f32.mrb[48].mxu1  ;;  %v13244_v31 = vshrl.u32 %v13242_v13, 16 }
 0x3c2   : > { %16036 = vmatpush3.bf16.msra.mxu0 %v12769_v19  ;;  %16037 = vmatprep.mubr.msk.bf16.mxu0 %vm16273_vm0, %v16272_v3  ;;  %v15721_v42 = vpop.f32.mrb[49].mxu1 }
 0x3c3   : > { %v9573_v61 = vpop.f32.mrb[50].mxu1  ;;  %16047 = vmatprep.subr.bf16.mxu0 %v16272_v3 }
 0x3c4   : > { %v9521_v51 = vpop.f32.mrb[48].mxu0  ;;  %v15722_v46 = vpop.f32.mrb[51].mxu1 }
 0x3c5   : > { %v9527_v4 = vadd.f32 %v9521_v51, %v9461_v55  ;;  %v15715_v53 = vpop.f32.mrb[49].mxu0 }
 0x3c6   : > { %v9524_v54 = vpop.f32.mrb[50].mxu0  ;;  %16044 = vmatmul.mubr.msk.bf16.vlgmr.msra.gmra.mrb[156].mxu1 %vm207_vm2, %v14330_v43 }
 0x3c7   : > { %v9576_v27 = vadd.f32 %v9570_v2, %v9527_v4  ;;  %v15716_v18 = vpop.f32.mrb[51].mxu0  ;;  %16054 = vmatpush3.bf16.msra.mxu1 %v12950_v47  ;;  %16055 = vmatprep.mubr.msk.bf16.mxu1 %vm16273_vm0, %v16272_v3  ;;  %v13250_v2 = vand.u32 %v13244_v31, %v16386_v8  ;;  %v14357_v8 = vld [vmem:[%s18833_s1 + $0x68] sm:$0xf]  ;;  %v14354_v54 = vld [vmem:[%s18833_s1 + $0x64] sm:$0xf] }
 0x3c8   : > { %16065 = vmatprep.subr.bf16.mxu1 %v16272_v3 }
 0x3c9   : > { %16038 = vmatmul.mubr.msk.bf16.vlgmr.msra.gmra.mrb[156].mxu0 %vm207_vm2, %v14326_v21  ;;  %v9702_v35 = vpop.f32.mrb[52].mxu1 }
 0x3ca   : > { %16048 = vmatpush3.bf16.msra.mxu0 %v12884_v17  ;;  %16049 = vmatprep.mubr.msk.bf16.mxu0 %vm16273_vm0, %v16272_v3  ;;  %v15733_v56 = vpop.f32.mrb[53].mxu1 }
 0x3cb   : > { %v9705_v33 = vpop.f32.mrb[54].mxu1  ;;  %16059 = vmatprep.subr.bf16.mxu0 %v16272_v3 }
 0x3cc   : > { %v9636_v58 = vpop.f32.mrb[52].mxu0  ;;  %v15734_v23 = vpop.f32.mrb[55].mxu1 }
 0x3cd   : > { %v9642_v0 = vadd.f32 %v9636_v58, %v9576_v27  ;;  %v15727_v44 = vpop.f32.mrb[53].mxu0 }
 0x3ce   : > { %v9639_v52 = vpop.f32.mrb[54].mxu0  ;;  %16056 = vmatmul.mubr.msk.bf16.vlgmr.msra.gmra.mrb[160].mxu1 %vm207_vm2, %v14335_v59 }
 0x3cf   : > { %v9708_v40 = vadd.f32 %v9702_v35, %v9642_v0  ;;  %v15728_v15 = vpop.f32.mrb[55].mxu0  ;;  %16066 = vmatpush3.bf16.msra.mxu1 %v13067_v63  ;;  %16067 = vmatprep.mubr.msk.bf16.mxu1 %vm16273_vm0, %v16272_v3 }
 0x3d0   : > { %16077 = vmatprep.subr.bf16.mxu1 %v16272_v3 }
 0x3d1   : > { %16050 = vmatmul.mubr.msk.bf16.vlgmr.msra.gmra.mrb[160].mxu0 %vm207_vm2, %v14332_v5  ;;  %v9819_v50 = vpop.f32.mrb[56].mxu1 }
 0x3d2   : > { %16060 = vmatpush3.bf16.msra.mxu0 %v13001_v28  ;;  %16061 = vmatprep.mubr.msk.bf16.mxu0 %vm16273_vm0, %v16272_v3  ;;  %v15745_v37 = vpop.f32.mrb[57].mxu1 }
 0x3d3   : > { %v9822_v9 = vpop.f32.mrb[58].mxu1  ;;  %16071 = vmatprep.subr.bf16.mxu0 %v16272_v3 }
 0x3d4   : > { %v9753_v11 = vpop.f32.mrb[56].mxu0  ;;  %v15746_v32 = vpop.f32.mrb[59].mxu1 }
 0x3d5   : > { %v9759_v12 = vadd.f32 %v9753_v11, %v9708_v40  ;;  %v15739_v1 = vpop.f32.mrb[57].mxu0 }
 0x3d6   : > { %v9756_v20 = vpop.f32.mrb[58].mxu0  ;;  %16068 = vmatmul.mubr.msk.bf16.vlgmr.msra.gmra.mrb[164].mxu1 %vm207_vm2, %v14343_v62 }
 0x3d7   : > { %v9825_v24 = vadd.f32 %v9819_v50, %v9759_v12  ;;  %v15740_v26 = vpop.f32.mrb[59].mxu0  ;;  %16078 = vmatpush3.bf16.msra.mxu1 %v13184_v10  ;;  %16079 = vmatprep.mubr.msk.bf16.mxu1 %vm16273_vm0, %v16272_v3 }
 0x3d8   : > { %16089 = vmatprep.subr.bf16.mxu1 %v16272_v3 }
 0x3d9   : > { %16062 = vmatmul.mubr.msk.bf16.vlgmr.msra.gmra.mrb[164].mxu0 %vm207_vm2, %v14341_v36  ;;  %v9936_v22 = vpop.f32.mrb[60].mxu1 }
 0x3da   : > { %16072 = vmatpush3.bf16.msra.mxu0 %v13133_v57  ;;  %16073 = vmatprep.mubr.msk.bf16.mxu0 %vm16273_vm0, %v16272_v3  ;;  %v15757_v29 = vpop.f32.mrb[61].mxu1 }
 0x3db   : > { %v9939_v19 = vpop.f32.mrb[62].mxu1  ;;  %16083 = vmatprep.subr.bf16.mxu0 %v16272_v3 }
 0x3dc   : > { %v9885_v49 = vpop.f32.mrb[60].mxu0  ;;  %v15758_v38 = vpop.f32.mrb[63].mxu1 }
 0x3dd   : > { %v9891_v55 = vadd.f32 %v9885_v49, %v9825_v24  ;;  %v15751_v14 = vpop.f32.mrb[61].mxu0 }
 0x3de   : > { %v9888_v16 = vpop.f32.mrb[62].mxu0  ;;  %16080 = vmatmul.mubr.msk.bf16.vlgmr.msra.gmra.mrb[168].mxu1 %vm207_vm2, %v14352_v7 }
 0x3df   : > { %v9942_v42 = vadd.f32 %v9936_v22, %v9891_v55  ;;  %v15752_v45 = vpop.f32.mrb[63].mxu0  ;;  %16090 = vmatpush3.bf16.msra.mxu1 %v13316_v34  ;;  %16091 = vmatprep.mubr.msk.bf16.mxu1 %vm16273_vm0, %v16272_v3 }
 0x3e1   : > { %16074 = vmatmul.mubr.msk.bf16.vlgmr.msra.gmra.mrb[168].mxu0 %vm207_vm2, %v14346_v39  ;;  %v10068_v61 = vpop.f32.mrb[64].mxu1 }
 0x3e2   : > { %16084 = vmatpush3.bf16.msra.mxu0 %v13250_v2  ;;  %16085 = vmatprep.mubr.msk.bf16.mxu0 %vm16273_vm0, %v16272_v3  ;;  %v15769_v43 = vpop.f32.mrb[65].mxu1 }
 0x3e3   : > { %v10071_v47 = vpop.f32.mrb[66].mxu1 }
 0x3e4   : > { %v10002_v48 = vpop.f32.mrb[64].mxu0  ;;  %v15770_v51 = vpop.f32.mrb[67].mxu1 }
 0x3e5   : > { %v10008_v46 = vadd.f32 %v10002_v48, %v9942_v42  ;;  %v15763_v4 = vpop.f32.mrb[65].mxu0 }
 0x3e6   : > { %v10005_v53 = vpop.f32.mrb[66].mxu0  ;;  %16092 = vmatmul.mubr.msk.bf16.vlgmr.msra.gmra.mrb[172].mxu1 %vm207_vm2, %v14357_v8 }
 0x3e7   : > { %v10074_v21 = vadd.f32 %v10068_v61, %v10008_v46  ;;  %v15764_v3 = vpop.f32.mrb[67].mxu0 }
 0x3e9   : > { %v10075_v17 = vadd.f32 %v10074_v21, %v17382_v41  ;;  %16086 = vmatmul.mubr.msk.bf16.vlgmr.msra.gmra.mrb[172].mxu0 %vm207_vm2, %v14354_v54  ;;  %v10185_v27 = vpop.f32.mrb[68].mxu1 }
 0x3ea   : > { %v15781_v18 = vpop.f32.mrb[69].mxu1 }
 0x3eb   : > { %14182 = vst.msk [vmem:[%s17405_s20 + $0x28] sm:$0xff] %vm1866_vm3, %v10075_v17  ;;  %v10188_v60 = vpop.f32.mrb[70].mxu1 }
 0x3ec   : > { %v10139_v35 = vpop.f32.mrb[68].mxu0  ;;  %v15782_v56 = vpop.f32.mrb[71].mxu1 }
 0x3ed   : > { %v15775_v33 = vpop.f32.mrb[69].mxu0  ;;  %v10186_v59 = vadd.f32 %v10185_v27, %v10139_v35 }
 0x3ee   : > { %v10142_v63 = vpop.f32.mrb[70].mxu0 }
 0x3ef   : > { %v15776_v58 = vpop.f32.mrb[71].mxu0 }
 0x3f1   : > { %v10301_v23 = vpop.f32.mrb[72].mxu1 }
 0x3f2   : > { %v15793_v0 = vpop.f32.mrb[73].mxu1 }
 0x3f3   : > { %v10304_v44 = vpop.f32.mrb[74].mxu1 }
 0x3f4   : > { %v10250_v52 = vpop.f32.mrb[72].mxu0  ;;  %v15794_v5 = vpop.f32.mrb[75].mxu1 }
 0x3f5   : > { %v10256_v28 = vadd.f32 %v10250_v52, %v10186_v59  ;;  %v15787_v40 = vpop.f32.mrb[73].mxu0 }
 0x3f6   : > { %v10253_v15 = vpop.f32.mrb[74].mxu0 }
 0x3f7   : > { %v10307_v6 = vadd.f32 %v10301_v23, %v10256_v28  ;;  %v15788_v50 = vpop.f32.mrb[75].mxu0 }
 0x3f9   : > { %v10433_v37 = vpop.f32.mrb[76].mxu1 }
 0x3fa   : > { %v15805_v25 = vpop.f32.mrb[77].mxu1 }
 0x3fb   : > { %v10436_v9 = vpop.f32.mrb[78].mxu1 }
 0x3fc   : > { %v10367_v62 = vpop.f32.mrb[76].mxu0  ;;  %v15806_v10 = vpop.f32.mrb[79].mxu1 }
 0x3fd   : > { %v10373_v11 = vadd.f32 %v10367_v62, %v10307_v6  ;;  %v15799_v32 = vpop.f32.mrb[77].mxu0 }
 0x3fe   : > { %v10370_v12 = vpop.f32.mrb[78].mxu0 }
 0x3ff   : > { %v10439_v1 = vadd.f32 %v10433_v37, %v10373_v11  ;;  %v15800_v57 = vpop.f32.mrb[79].mxu0 }
 0x401   : > { %v10550_v20 = vpop.f32.mrb[80].mxu1 }
 0x402   : > { %v15817_v36 = vpop.f32.mrb[81].mxu1 }
 0x403   : > { %v10553_v13 = vpop.f32.mrb[82].mxu1 }
 0x404   : > { %v10484_v24 = vpop.f32.mrb[80].mxu0  ;;  %v15818_v26 = vpop.f32.mrb[83].mxu1 }
 0x405   : > { %v10490_v30 = vadd.f32 %v10484_v24, %v10439_v1  ;;  %v15811_v22 = vpop.f32.mrb[81].mxu0 }
 0x406   : > { %v10487_v29 = vpop.f32.mrb[82].mxu0 }
 0x407   : > { %v10556_v31 = vadd.f32 %v10550_v20, %v10490_v30  ;;  %v15812_v19 = vpop.f32.mrb[83].mxu0 }
 0x409   : > { %v10665_v7 = vpop.f32.mrb[84].mxu1 }
 0x40a   : > { %v15829_v34 = vpop.f32.mrb[85].mxu1 }
 0x40b   : > { %v10668_v49 = vpop.f32.mrb[86].mxu1 }
 0x40c   : > { %v10616_v38 = vpop.f32.mrb[84].mxu0  ;;  %v15830_v55 = vpop.f32.mrb[87].mxu1 }
 0x40d   : > { %v10622_v14 = vadd.f32 %v10616_v38, %v10556_v31  ;;  %v15823_v16 = vpop.f32.mrb[85].mxu0 }
 0x40e   : > { %v10619_v39 = vpop.f32.mrb[86].mxu0 }
 0x40f   : > { %v10671_v2 = vadd.f32 %v10665_v7, %v10622_v14  ;;  %v15824_v42 = vpop.f32.mrb[87].mxu0 }
 0x411   : > { %v10797_v45 = vpop.f32.mrb[88].mxu1 }
 0x412   : > { %v15841_v61 = vpop.f32.mrb[89].mxu1 }
 0x413   : > { %v10800_v43 = vpop.f32.mrb[90].mxu1 }
 0x414   : > { %v10731_v47 = vpop.f32.mrb[88].mxu0  ;;  %v15842_v8 = vpop.f32.mrb[91].mxu1 }
 0x415   : > { %v10737_v48 = vadd.f32 %v10731_v47, %v10671_v2  ;;  %v15835_v51 = vpop.f32.mrb[89].mxu0 }
 0x416   : > { %v10734_v46 = vpop.f32.mrb[90].mxu0 }
 0x417   : > { %v10803_v4 = vadd.f32 %v10797_v45, %v10737_v48  ;;  %v15836_v53 = vpop.f32.mrb[91].mxu0 }
 0x419   : > { %v10914_v54 = vpop.f32.mrb[92].mxu1 }
 0x41a   : > { %v15853_v21 = vpop.f32.mrb[93].mxu1 }
 0x41b   : > { %v10917_v3 = vpop.f32.mrb[94].mxu1 }
 0x41c   : > { %v10848_v17 = vpop.f32.mrb[92].mxu0  ;;  %v15854_v27 = vpop.f32.mrb[95].mxu1 }
 0x41d   : > { %v10854_v18 = vadd.f32 %v10848_v17, %v10803_v4  ;;  %v15847_v60 = vpop.f32.mrb[93].mxu0 }
 0x41e   : > { %v10851_v35 = vpop.f32.mrb[94].mxu0 }
 0x41f   : > { %v10920_v56 = vadd.f32 %v10914_v54, %v10854_v18  ;;  %v15848_v33 = vpop.f32.mrb[95].mxu0 }
 0x421   : > { %v11031_v59 = vpop.f32.mrb[96].mxu1 }
 0x422   : > { %v15865_v63 = vpop.f32.mrb[97].mxu1 }
 0x423   : > { %v11034_v58 = vpop.f32.mrb[98].mxu1 }
 0x424   : > { %v10980_v23 = vpop.f32.mrb[96].mxu0  ;;  %v15866_v0 = vpop.f32.mrb[99].mxu1 }
 0x425   : > { %v10986_v44 = vadd.f32 %v10980_v23, %v10920_v56  ;;  %v15859_v52 = vpop.f32.mrb[97].mxu0 }
 0x426   : > { %v10983_v5 = vpop.f32.mrb[98].mxu0 }
 0x427   : > { %v11037_v28 = vadd.f32 %v11031_v59, %v10986_v44  ;;  %v15860_v40 = vpop.f32.mrb[99].mxu0 }
 0x429   : > { %v11163_v15 = vpop.f32.mrb[100].mxu1 }
 0x42a   : > { %v15877_v6 = vpop.f32.mrb[101].mxu1 }
 0x42b   : > { %v11166_v50 = vpop.f32.mrb[102].mxu1 }
 0x42c   : > { %v11097_v37 = vpop.f32.mrb[100].mxu0  ;;  %v15878_v25 = vpop.f32.mrb[103].mxu1 }
 0x42d   : > { %v11103_v9 = vadd.f32 %v11097_v37, %v11037_v28  ;;  %v15871_v62 = vpop.f32.mrb[101].mxu0 }
 0x42e   : > { %v11100_v10 = vpop.f32.mrb[102].mxu0 }
 0x42f   : > { %v11169_v11 = vadd.f32 %v11163_v15, %v11103_v9  ;;  %v15872_v32 = vpop.f32.mrb[103].mxu0 }
 0x431   : > { %v11278_v12 = vpop.f32.mrb[104].mxu1 }
 0x432   : > { %v15889_v1 = vpop.f32.mrb[105].mxu1 }
 0x433   : > { %v11281_v57 = vpop.f32.mrb[106].mxu1 }
 0x434   : > { %v11212_v20 = vpop.f32.mrb[104].mxu0  ;;  %v15890_v36 = vpop.f32.mrb[107].mxu1 }
 0x435   : > { %v11218_v13 = vadd.f32 %v11212_v20, %v11169_v11  ;;  %v15883_v24 = vpop.f32.mrb[105].mxu0 }
 0x436   : > { %v11215_v26 = vpop.f32.mrb[106].mxu0 }
 0x437   : > { %v11284_v30 = vadd.f32 %v11278_v12, %v11218_v13  ;;  %v15884_v22 = vpop.f32.mrb[107].mxu0 }
 0x439   : > { %v11395_v29 = vpop.f32.mrb[108].mxu1 }
 0x43a   : > { %v15901_v31 = vpop.f32.mrb[109].mxu1 }
 0x43b   : > { %v11398_v19 = vpop.f32.mrb[110].mxu1 }
 0x43c   : > { %v11344_v7 = vpop.f32.mrb[108].mxu0  ;;  %v15902_v34 = vpop.f32.mrb[111].mxu1 }
 0x43d   : > { %v11350_v49 = vadd.f32 %v11344_v7, %v11284_v30  ;;  %v15895_v38 = vpop.f32.mrb[109].mxu0 }
 0x43e   : > { %v11347_v55 = vpop.f32.mrb[110].mxu0 }
 0x43f   : > { %v11401_v14 = vadd.f32 %v11395_v29, %v11350_v49  ;;  %v15896_v16 = vpop.f32.mrb[111].mxu0 }
 0x441   : > { %v11527_v39 = vpop.f32.mrb[112].mxu1 }
 0x442   : > { %v15913_v2 = vpop.f32.mrb[113].mxu1 }
 0x443   : > { %v11530_v42 = vpop.f32.mrb[114].mxu1 }
 0x444   : > { %v11461_v45 = vpop.f32.mrb[112].mxu0  ;;  %v15914_v61 = vpop.f32.mrb[115].mxu1 }
 0x445   : > { %v11467_v43 = vadd.f32 %v11461_v45, %v11401_v14  ;;  %v15907_v47 = vpop.f32.mrb[113].mxu0 }
 0x446   : > { %v11464_v8 = vpop.f32.mrb[114].mxu0 }
 0x447   : > { %v11533_v48 = vadd.f32 %v11527_v39, %v11467_v43  ;;  %v15908_v51 = vpop.f32.mrb[115].mxu0 }
 0x449   : > { %v11644_v46 = vpop.f32.mrb[116].mxu1 }
 0x44a   : > { %v15925_v4 = vpop.f32.mrb[117].mxu1 }
 0x44b   : > { %v11647_v53 = vpop.f32.mrb[118].mxu1 }
 0x44c   : > { %v11578_v54 = vpop.f32.mrb[116].mxu0  ;;  %v15926_v21 = vpop.f32.mrb[119].mxu1 }
 0x44d   : > { %v11584_v3 = vadd.f32 %v11578_v54, %v11533_v48  ;;  %v15919_v17 = vpop.f32.mrb[117].mxu0 }
 0x44e   : > { %v11581_v27 = vpop.f32.mrb[118].mxu0 }
 0x44f   : > { %v11650_v18 = vadd.f32 %v11644_v46, %v11584_v3  ;;  %v15920_v60 = vpop.f32.mrb[119].mxu0 }
 0x451   : > { %v11781_v35 = vpop.f32.mrb[120].mxu1 }
 0x452   : > { %v15937_v56 = vpop.f32.mrb[121].mxu1 }
 0x453   : > { %v11784_v33 = vpop.f32.mrb[122].mxu1 }
 0x454   : > { %v11710_v59 = vpop.f32.mrb[120].mxu0  ;;  %v15938_v63 = vpop.f32.mrb[123].mxu1 }
 0x455   : > { %v11716_v58 = vadd.f32 %v11710_v59, %v11650_v18  ;;  %v15931_v23 = vpop.f32.mrb[121].mxu0 }
 0x456   : > { %v11713_v0 = vpop.f32.mrb[122].mxu0 }
 0x457   : > { %v11717_v44 = vadd.f32 %v11716_v58, %v17382_v41  ;;  %v15932_v52 = vpop.f32.mrb[123].mxu0 }
 0x459   : > { %14271 = vst.msk [vmem:[%s17405_s20 + $0x30] sm:$0xff] %vm1866_vm3, %v11717_v44  ;;  %v11892_v5 = vpop.f32.mrb[124].mxu1 }
 0x45a   : > { %v15949_v28 = vpop.f32.mrb[125].mxu1 }
 0x45b   : > { %v11895_v40 = vpop.f32.mrb[126].mxu1 }
 0x45c   : > { %v11827_v15 = vpop.f32.mrb[124].mxu0  ;;  %v15950_v6 = vpop.f32.mrb[127].mxu1 }
 0x45d   : > { %v11828_v50 = vadd.f32 %v11827_v15, %v11781_v35  ;;  %v15943_v37 = vpop.f32.mrb[125].mxu0 }
 0x45e   : > { %v11830_v25 = vpop.f32.mrb[126].mxu0 }
 0x45f   : > { %v11898_v9 = vadd.f32 %v11892_v5, %v11828_v50  ;;  %v15944_v62 = vpop.f32.mrb[127].mxu0 }
 0x461   : > { %v12009_v10 = vpop.f32.mrb[128].mxu1 }
 0x462   : > { %v15961_v11 = vpop.f32.mrb[129].mxu1 }
 0x463   : > { %v12012_v32 = vpop.f32.mrb[130].mxu1 }
 0x464   : > { %v11943_v12 = vpop.f32.mrb[128].mxu0  ;;  %v15962_v1 = vpop.f32.mrb[131].mxu1 }
 0x465   : > { %v11949_v57 = vadd.f32 %v11943_v12, %v11898_v9  ;;  %v15955_v20 = vpop.f32.mrb[129].mxu0 }
 0x466   : > { %v11946_v36 = vpop.f32.mrb[130].mxu0 }
 0x467   : > { %v12015_v13 = vadd.f32 %v12009_v10, %v11949_v57  ;;  %v15956_v24 = vpop.f32.mrb[131].mxu0 }
 0x469   : > { %v12126_v26 = vpop.f32.mrb[132].mxu1 }
 0x46a   : > { %v15973_v30 = vpop.f32.mrb[133].mxu1 }
 0x46b   : > { %v12129_v22 = vpop.f32.mrb[134].mxu1 }
 0x46c   : > { %v12075_v29 = vpop.f32.mrb[132].mxu0  ;;  %v15974_v31 = vpop.f32.mrb[135].mxu1 }
 0x46d   : > { %v12081_v19 = vadd.f32 %v12075_v29, %v12015_v13  ;;  %v15967_v7 = vpop.f32.mrb[133].mxu0 }
 0x46e   : > { %v12078_v34 = vpop.f32.mrb[134].mxu0 }
 0x46f   : > { %v12132_v49 = vadd.f32 %v12126_v26, %v12081_v19  ;;  %v15968_v38 = vpop.f32.mrb[135].mxu0 }
 0x471   : > { %v12258_v55 = vpop.f32.mrb[136].mxu1 }
 0x472   : > { %v15985_v14 = vpop.f32.mrb[137].mxu1 }
 0x473   : > { %v12261_v16 = vpop.f32.mrb[138].mxu1 }
 0x474   : > { %v12192_v39 = vpop.f32.mrb[136].mxu0  ;;  %v15986_v2 = vpop.f32.mrb[139].mxu1 }
 0x475   : > { %v12198_v42 = vadd.f32 %v12192_v39, %v12132_v49  ;;  %v15979_v45 = vpop.f32.mrb[137].mxu0 }
 0x476   : > { %v12195_v61 = vpop.f32.mrb[138].mxu0 }
 0x477   : > { %v12264_v43 = vadd.f32 %v12258_v55, %v12198_v42  ;;  %v15980_v47 = vpop.f32.mrb[139].mxu0 }
 0x479   : > { %v12373_v8 = vpop.f32.mrb[140].mxu1 }
 0x47a   : > { %v15997_v48 = vpop.f32.mrb[141].mxu1 }
 0x47b   : > { %v12376_v51 = vpop.f32.mrb[142].mxu1 }
 0x47c   : > { %v12307_v46 = vpop.f32.mrb[140].mxu0  ;;  %v15998_v4 = vpop.f32.mrb[143].mxu1 }
 0x47d   : > { %v12313_v53 = vadd.f32 %v12307_v46, %v12264_v43  ;;  %v15991_v54 = vpop.f32.mrb[141].mxu0 }
 0x47e   : > { %v12310_v21 = vpop.f32.mrb[142].mxu0 }
 0x47f   : > { %v12379_v3 = vadd.f32 %v12373_v8, %v12313_v53  ;;  %v15992_v17 = vpop.f32.mrb[143].mxu0 }
 0x481   : > { %v12490_v27 = vpop.f32.mrb[144].mxu1 }
 0x482   : > { %v16009_v18 = vpop.f32.mrb[145].mxu1 }
 0x483   : > { %v12493_v60 = vpop.f32.mrb[146].mxu1 }
 0x484   : > { %v12439_v35 = vpop.f32.mrb[144].mxu0  ;;  %v16010_v56 = vpop.f32.mrb[147].mxu1 }
 0x485   : > { %v12445_v33 = vadd.f32 %v12439_v35, %v12379_v3  ;;  %v16003_v59 = vpop.f32.mrb[145].mxu0 }
 0x486   : > { %v12442_v63 = vpop.f32.mrb[146].mxu0 }
 0x487   : > { %v12496_v58 = vadd.f32 %v12490_v27, %v12445_v33  ;;  %v16004_v23 = vpop.f32.mrb[147].mxu0 }
 0x489   : > { %v12622_v0 = vpop.f32.mrb[148].mxu1 }
 0x48a   : > { %v16021_v44 = vpop.f32.mrb[149].mxu1 }
 0x48b   : > { %v12625_v52 = vpop.f32.mrb[150].mxu1 }
 0x48c   : > { %v12556_v5 = vpop.f32.mrb[148].mxu0  ;;  %v16022_v28 = vpop.f32.mrb[151].mxu1 }
 0x48d   : > { %v12562_v40 = vadd.f32 %v12556_v5, %v12496_v58  ;;  %v16015_v15 = vpop.f32.mrb[149].mxu0 }
 0x48e   : > { %v12559_v6 = vpop.f32.mrb[150].mxu0 }
 0x48f   : > { %v12628_v50 = vadd.f32 %v12622_v0, %v12562_v40  ;;  %v16016_v37 = vpop.f32.mrb[151].mxu0 }
 0x491   : > { %v12739_v25 = vpop.f32.mrb[152].mxu1 }
 0x492   : > { %v16033_v9 = vpop.f32.mrb[153].mxu1 }
 0x493   : > { %v12742_v62 = vpop.f32.mrb[154].mxu1 }
 0x494   : > { %v12673_v10 = vpop.f32.mrb[152].mxu0  ;;  %v16034_v11 = vpop.f32.mrb[155].mxu1 }
 0x495   : > { %v12679_v32 = vadd.f32 %v12673_v10, %v12628_v50  ;;  %v16027_v12 = vpop.f32.mrb[153].mxu0 }
 0x496   : > { %v12676_v1 = vpop.f32.mrb[154].mxu0 }
 0x497   : > { %v12745_v57 = vadd.f32 %v12739_v25, %v12679_v32  ;;  %v16028_v20 = vpop.f32.mrb[155].mxu0 }
 0x499   : > { %v12854_v36 = vpop.f32.mrb[156].mxu1 }
 0x49a   : > { %v16045_v13 = vpop.f32.mrb[157].mxu1 }
 0x49b   : > { %v12857_v24 = vpop.f32.mrb[158].mxu1 }
 0x49c   : > { %v12805_v26 = vpop.f32.mrb[156].mxu0  ;;  %v16046_v30 = vpop.f32.mrb[159].mxu1 }
 0x49d   : > { %v12811_v22 = vadd.f32 %v12805_v26, %v12745_v57  ;;  %v16039_v29 = vpop.f32.mrb[157].mxu0 }
 0x49e   : > { %v12808_v31 = vpop.f32.mrb[158].mxu0 }
 0x49f   : > { %v12860_v19 = vadd.f32 %v12854_v36, %v12811_v22  ;;  %v16040_v7 = vpop.f32.mrb[159].mxu0 }
 0x4a1   : > { %v12986_v34 = vpop.f32.mrb[160].mxu1 }
 0x4a2   : > { %v16057_v49 = vpop.f32.mrb[161].mxu1 }
 0x4a3   : > { %v12989_v38 = vpop.f32.mrb[162].mxu1 }
 0x4a4   : > { %v12920_v55 = vpop.f32.mrb[160].mxu0  ;;  %v16058_v14 = vpop.f32.mrb[163].mxu1 }
 0x4a5   : > { %v12926_v16 = vadd.f32 %v12920_v55, %v12860_v19  ;;  %v16051_v39 = vpop.f32.mrb[161].mxu0 }
 0x4a6   : > { %v12923_v2 = vpop.f32.mrb[162].mxu0 }
 0x4a7   : > { %v12992_v42 = vadd.f32 %v12986_v34, %v12926_v16  ;;  %v16052_v45 = vpop.f32.mrb[163].mxu0 }
 0x4a9   : > { %v13103_v61 = vpop.f32.mrb[164].mxu1 }
 0x4aa   : > { %v16069_v43 = vpop.f32.mrb[165].mxu1 }
 0x4ab   : > { %v13106_v47 = vpop.f32.mrb[166].mxu1 }
 0x4ac   : > { %v13037_v8 = vpop.f32.mrb[164].mxu0  ;;  %v16070_v48 = vpop.f32.mrb[167].mxu1 }
 0x4ad   : > { %v13043_v51 = vadd.f32 %v13037_v8, %v12992_v42  ;;  %v16063_v46 = vpop.f32.mrb[165].mxu0 }
 0x4ae   : > { %v13040_v4 = vpop.f32.mrb[166].mxu0 }
 0x4af   : > { %v13109_v53 = vadd.f32 %v13103_v61, %v13043_v51  ;;  %v16064_v54 = vpop.f32.mrb[167].mxu0 }
 0x4b1   : > { %v13220_v21 = vpop.f32.mrb[168].mxu1 }
 0x4b2   : > { %v16081_v3 = vpop.f32.mrb[169].mxu1 }
 0x4b3   : > { %v13223_v17 = vpop.f32.mrb[170].mxu1 }
 0x4b4   : > { %v13169_v27 = vpop.f32.mrb[168].mxu0  ;;  %v16082_v18 = vpop.f32.mrb[171].mxu1 }
 0x4b5   : > { %v13175_v60 = vadd.f32 %v13169_v27, %v13109_v53  ;;  %v16075_v35 = vpop.f32.mrb[169].mxu0 }
 0x4b6   : > { %v13172_v56 = vpop.f32.mrb[170].mxu0 }
 0x4b7   : > { %v13226_v33 = vadd.f32 %v13220_v21, %v13175_v60  ;;  %v16076_v59 = vpop.f32.mrb[171].mxu0 }
 0x4b9   : > { %v13352_v63 = vpop.f32.mrb[172].mxu1 }
 0x4ba   : > { %v16093_v58 = vpop.f32.mrb[173].mxu1 }
 0x4bb   : > { %v13355_v23 = vpop.f32.mrb[174].mxu1 }
 0x4bc   : > { %v13286_v0 = vpop.f32.mrb[172].mxu0  ;;  %v16094_v44 = vpop.f32.mrb[175].mxu1 }
 0x4bd   : > { %v13292_v52 = vadd.f32 %v13286_v0, %v13226_v33  ;;  %v16087_v5 = vpop.f32.mrb[173].mxu0 }
 0x4be   : > { %v13289_v28 = vpop.f32.mrb[174].mxu0 }
 0x4bf   : > { %v13358_v40 = vadd.f32 %v13352_v63, %v13292_v52  ;;  %v16088_v15 = vpop.f32.mrb[175].mxu0 }
 0x4c1   : > { %v13359_v6 = vadd.f32 %v13358_v40, %v17382_v41 }
 0x4c3   : > { %14360 = vst.msk [vmem:[%s17405_s20 + $0x38] sm:$0xff] %vm1866_vm3, %v13359_v6 }
 0x4c4   : > { %16188 = shalt.err (!%p16185_p6)
}
 0x4c5   : > { %s16189_s4 = scalar_lea.hbm %s18771_s15, 1024  ;;  %s16193_s11 = scalar_lea.hbm %s18835_s3, 16384 }
 0x4c6   : > { %p16190_p7 = scmp.ne.s32.totalorder %s18771_s15, %s16189_s4  ;;  %p16194_p11 = scmp.lt.u32.totalorder %s18771_s15, %s18835_s3 }
 0x4c7   : > { %p16195_p12 = scmp.lt.u32.totalorder %s16193_s11, %s16189_s4  ;;  %p16197_p0 = scmp.lt.u32.totalorder %s16189_s4, %s18771_s15 }
 0x4c8   : > { %p16191_p9 = pnand %p16190_p7, %p16350_p3 }
 0x4c9   : > { %p16196_p13 = por %p16195_p12, %p16194_p11 }
 0x4ca   : > { %p16192_p10 = pneg %p16191_p9 }
 0x4cb   : > { %p16198_p1 = por %p16197_p0, %p16196_p13 }
 0x4cd   : > { %p16199_p2 = pnand %p16198_p1, %p16192_p10 }
 0x4cf   : > { %16202 = shalt.err (!%p16199_p2)
}
 0x4d0   : > { %s16277_s7 = smov 128   ;;  %s16278_s9 = smov 8  }
 0x4d1   : > { %16096 = dma.vmem_to_hbm [thread:$0]  (%p16350_p3), %s18773_s8, 1024, %s18771_s15, %s18780_s16, %s16277_s7, %s16277_s7, %s16278_s9  }
 0x4d2 PF: > { %p16102_p4 = scmp.ge.s32.totalorder %s16269_s19, 2  ;;  %s13393_s21 = sand.u32 1, %s16241_s12  }
 0x4d3   : > { %s13394_s24 = scalar_lea.sflag [#allocation3], %s13393_s21 }
 0x4d4   : > { %p16099_p5 = pnand %p16102_p4, %p16359_p8 }
 0x4d6   : > { %16236 = dma.done.wait (!%p16099_p5), %s13394_s24, 1024  }
 0x4d7   : > { %16238 = vsyncadd (!%p16099_p5), %s13394_s24, 4294966272  ;;  %s16_s19 = sadd.s32 1, %s16269_s19   ;;  %s18838_s12 = smov %s16245_s13 }
 0x4d8   : > { %p13_p6 = scmp.ge.s32.totalorder %s16_s19, 18   ;;  %s18839_s13 = smov %s16249_s14 }
 0x4d9   : > { %s18840_s14 = smov %s16368_s30  ;;  %s18841_s15 = smov %s16261_s17 }
 0x4da   : > { %s18842_s16 = smov %s16265_s18  ;;  %s18843_s17 = smov %s18846_s22 }
 0x4db   : > { %s18844_s18 = smov %s18850_s23  ;;  %15 = sbr.rel (!%p13_p6) target bundleno = 5 (0x5), region = 151 }
 0x4e2   :  { %13399 = vsyncpa [#allocation3], 1 }
 0x4e3   :  { %13401 = vsyncpa [#allocation3 + $0x1], 1 }

</bundles_post_ra>
